<compile_context>
chip_gen: v5e
topology: v5e:2x2
jax: 0.10.0
libtpu: 0.0.40
codegen_flags: <defaults>
</compile_context>

<pallas_src>
import functools

import jax
import jax.numpy as jnp
from jax import lax
from jax.experimental import pallas as pl
from jax.experimental.pallas import tpu as pltpu

STATE_DIM = 32   # TODO(synk): get_input_dim(observation_space, action_space)
                 # is external to the module; state_dim fixed for the example.
H1, H2, OUT = 400, 300, 1
H1P, H2P = 512, 320      # lane/sublane-friendly padded hidden sizes


def critic_mlp_kernel(x_ref, w1T_ref, b1_ref, w2T_ref, b2_ref, w3_ref, b3_ref,
                      o_ref, *, f32_tanh_h1):
    # x block arrives in its natural (tile_b, STATE_DIM) layout; cast in-kernel.
    x = x_ref[...].astype(jnp.bfloat16)                          # (tb, S) bf16

    # Layer 1: contract the feature axis of both operands -> (H1P, tb), f32 acc.
    h1 = lax.dot_general(w1T_ref[...], x,
                         dimension_numbers=(((1,), (1,)), ((), ())),
                         preferred_element_type=jnp.float32)     # (H1P, tb)
    h1 = h1 + b1_ref[...]
    if f32_tanh_h1:
        # v5e: no bf16 EUP/VALU -> tanh in f32, cast only for the next matmul.
        h1 = jnp.tanh(h1).astype(jnp.bfloat16)
    else:
        # v6e/v7x: bf16 tanh (EUP ~2x); the bf16 cast is needed for MXU anyway.
        h1 = jnp.tanh(h1.astype(jnp.bfloat16))                   # (H1P, tb) bf16

    # Layer 2: (H2P, H1P) @ (H1P, tb) -> (H2P, tb), f32 acc; tanh stays in f32
    # (no bf16 round-trip before the final VPU reduce).
    h2 = jnp.dot(w2T_ref[...], h1, preferred_element_type=jnp.float32)
    h2 = jnp.tanh(h2 + b2_ref[...])                              # (H2P, tb) f32

    # Final 300->1 layer: VPU multiply + sublane (XLU) reduce; result is already
    # a lane-dense (1, tile_b) row -> unmasked vst, MXU stays free.
    v = jnp.sum(h2 * w3_ref[...], axis=0, keepdims=True)         # (1, tb) f32
    o_ref[...] = (v + b3_ref[...]).astype(o_ref.dtype)


@functools.partial(jax.jit, static_argnames=("tile_b", "f32_tanh_h1"))
def _critic_mlp_call(x, w1T, b1c, w2T, b2c, w3c, b3, *, tile_b, f32_tanh_h1):
    B = x.shape[0]
    num_tiles = pl.cdiv(B, tile_b)
    Bp = num_tiles * tile_b
    if Bp != B:
        # Fallback only (tile_b selection makes this a no-op for typical B).
        x = jnp.pad(x, ((0, Bp - B), (0, 0)))

    def bcast(shape):
        # Constant block index -> weight/bias stays VMEM-resident across grid.
        return pl.BlockSpec(shape, lambda i: (0,) * len(shape))

    kernel = functools.partial(critic_mlp_kernel, f32_tanh_h1=f32_tanh_h1)

    out = pl.pallas_call(
        kernel,
        out_shape=jax.ShapeDtypeStruct((1, Bp), jnp.float32),
        grid_spec=pltpu.PrefetchScalarGridSpec(
            num_scalar_prefetch=0,
            grid=(num_tiles,),
            in_specs=[
                # x in natural layout: (tile_b, STATE_DIM); last dim == full dim.
                pl.BlockSpec((tile_b, STATE_DIM), lambda i: (i, 0)),
                bcast(w1T.shape),
                bcast(b1c.shape),
                bcast(w2T.shape),
                bcast(b2c.shape),
                bcast(w3c.shape),
                bcast(b3.shape),
            ],
            out_specs=pl.BlockSpec((1, tile_b), lambda i: (0, i)),
        ),
        compiler_params=pltpu.CompilerParams(
            dimension_semantics=("parallel",)),
    )(x, w1T, b1c, w2T, b2c, w3c, b3)

    # (1, Bp) -> (Bp, 1) is a pure bitcast (row-major), then trim padding.
    return out.reshape(Bp, 1)[:B]


def _device_kind():
    try:
        return jax.devices()[0].device_kind.lower()
    except Exception:
        return ""


def critic_mlp(x, kernel_params, tile_b=None):
    """x: (B, STATE_DIM) float32 -> (B, 1) float32."""
    kind = _device_kind()
    f32_tanh_h1 = "v5" in kind            # v5e: no bf16 EUP/VALU
    if tile_b is None:
        num_tc = 2 if "v7" in kind else 1  # v7x: 2 TensorCores per chip
        B = x.shape[0]
        # One grid step per TensorCore when possible; cap at 1024 (v5e VMEM-safe),
        # floor at 128 (lane multiple for the output block).
        t = max(128, min(1024, max(1, B // num_tc)))
        tile_b = max(128, (t // 128) * 128)
    assert tile_b % 128 == 0, "tile_b must be a lane multiple"
    w1T, b1c, w2T, b2c, w3c, b3 = kernel_params
    return _critic_mlp_call(x, w1T, b1c, w2T, b2c, w3c, b3,
                            tile_b=tile_b, f32_tanh_h1=f32_tanh_h1)


def init_params(key):
    """PyTorch-like nn.Linear init: U(-1/sqrt(fan_in), +1/sqrt(fan_in))."""
    keys = jax.random.split(key, 6)

    def linear(kw, kb, fan_in, fan_out):
        bound = 1.0 / jnp.sqrt(fan_in)
        w = jax.random.uniform(kw, (fan_in, fan_out), jnp.float32, -bound, bound)
        b = jax.random.uniform(kb, (fan_out,), jnp.float32, -bound, bound)
        return w, b

    w1, b1 = linear(keys[0], keys[1], STATE_DIM, H1)
    w2, b2 = linear(keys[2], keys[3], H1, H2)
    w3, b3 = linear(keys[4], keys[5], H2, OUT)
    return (w1, b1, w2, b2, w3, b3)


def prepare_kernel_params(params):
    """Transpose to feature-major, zero-pad hidden dims, cast matmul weights to bf16.

    Zero-padded rows are exact no-ops: tanh(0)=0 and the corresponding weight
    columns/rows of the next layer are zero.
    """
    w1, b1, w2, b2, w3, b3 = params
    w1T = jnp.zeros((H1P, STATE_DIM), jnp.float32).at[:H1, :].set(w1.T)
    b1c = jnp.zeros((H1P, 1), jnp.float32).at[:H1, 0].set(b1)
    w2T = jnp.zeros((H2P, H1P), jnp.float32).at[:H2, :H1].set(w2.T)
    b2c = jnp.zeros((H2P, 1), jnp.float32).at[:H2, 0].set(b2)
    w3c = jnp.zeros((H2P, 1), jnp.float32).at[:H2, :].set(w3)
    b3r = b3.reshape(1, 1)
    return (w1T.astype(jnp.bfloat16), b1c,
            w2T.astype(jnp.bfloat16), b2c,
            w3c, b3r)


def critic_mlp_ref(x, params):
    w1, b1, w2, b2, w3, b3 = params
    h1 = jnp.tanh(x @ w1 + b1)
    h2 = jnp.tanh(h1 @ w2 + b2)
    return h2 @ w3 + b3


if __name__ == "__main__":
    key = jax.random.PRNGKey(0)
    k_x, k_p = jax.random.split(key)

    B = 512   # v5e/v6e: one 512-wide step; v7x: 2x256 "parallel" -> both TCs
    x = jax.random.normal(k_x, (B, STATE_DIM), jnp.float32)
    params = init_params(k_p)
    kparams = prepare_kernel_params(params)

    out = jax.block_until_ready(critic_mlp(x, kparams))

    ref = critic_mlp_ref(x, params)
    assert out.shape == (B, OUT), out.shape
    max_err = float(jnp.max(jnp.abs(out - ref)))
    assert max_err < 3e-2, f"max err {max_err}"   # bf16 matmul/tanh tolerance

    print("KERNEL_OK")
</pallas_src>

<mosaic_0001>
module attributes {stable_mosaic.version = 11 : i64} {
  func.func @critic_mlp_kernel(%arg0: i32, %arg1: memref<512x32xf32, #tpu.memory_space<vmem>>, %arg2: memref<512x32xbf16, #tpu.memory_space<vmem>>, %arg3: memref<512x1xf32, #tpu.memory_space<vmem>>, %arg4: memref<320x512xbf16, #tpu.memory_space<vmem>>, %arg5: memref<320x1xf32, #tpu.memory_space<vmem>>, %arg6: memref<320x1xf32, #tpu.memory_space<vmem>>, %arg7: memref<1x1xf32, #tpu.memory_space<vmem>>, %arg8: memref<1x512xf32, #tpu.memory_space<vmem>>) attributes {dimension_semantics = [#tpu.dimension_semantics<parallel>], iteration_bounds = array<i64: 1>, scalar_prefetch = 0 : i64, scratch_operands = 0 : i64, tpu.core_type = #tpu.core_type<tc>, window_params = [{transform_indices = @transform_0, window_bounds = array<i64: 512, 32>}, {pipeline_mode = #tpu.pipeline_mode<synchronous>, transform_indices = @transform_1, window_bounds = array<i64: 512, 32>}, {pipeline_mode = #tpu.pipeline_mode<synchronous>, transform_indices = @transform_2, window_bounds = array<i64: 512, 1>}, {pipeline_mode = #tpu.pipeline_mode<synchronous>, transform_indices = @transform_3, window_bounds = array<i64: 320, 512>}, {pipeline_mode = #tpu.pipeline_mode<synchronous>, transform_indices = @transform_4, window_bounds = array<i64: 320, 1>}, {pipeline_mode = #tpu.pipeline_mode<synchronous>, transform_indices = @transform_5, window_bounds = array<i64: 320, 1>}, {pipeline_mode = #tpu.pipeline_mode<synchronous>, transform_indices = @transform_6, window_bounds = array<i64: 1, 1>}, {transform_indices = @transform_7, window_bounds = array<i64: 1, 512>}]} {
    %c0 = arith.constant 0 : index
    %c0_0 = arith.constant 0 : index
    %0 = vector.load %arg1[%c0, %c0_0] : memref<512x32xf32, #tpu.memory_space<vmem>>, vector<512x32xf32>
    %1 = arith.truncf %0 : vector<512x32xf32> to vector<512x32xbf16>
    %c0_1 = arith.constant 0 : index
    %c0_2 = arith.constant 0 : index
    %2 = vector.load %arg2[%c0_1, %c0_2] : memref<512x32xbf16, #tpu.memory_space<vmem>>, vector<512x32xbf16>
    %cst = arith.constant dense<0.000000e+00> : vector<512x512xf32>
    %3 = tpu.matmul %2, %1, %cst {dimension_numbers = #tpu.dot_dimension_numbers<[1], [1], [0], [0], [0, 0, 1, 0], [], []>} : vector<512x32xbf16>, vector<512x32xbf16>, vector<512x512xf32> -> vector<512x512xf32>
    %c0_3 = arith.constant 0 : index
    %c0_4 = arith.constant 0 : index
    %4 = vector.load %arg3[%c0_3, %c0_4] : memref<512x1xf32, #tpu.memory_space<vmem>>, vector<512x1xf32>
    %5 = vector.broadcast %4 : vector<512x1xf32> to vector<512x512xf32>
    %6 = arith.addf %3, %5 : vector<512x512xf32>
    %7 = arith.truncf %6 : vector<512x512xf32> to vector<512x512xbf16>
    %8 = math.tanh %7 : vector<512x512xbf16>
    %c0_5 = arith.constant 0 : index
    %c0_6 = arith.constant 0 : index
    %9 = vector.load %arg4[%c0_5, %c0_6] : memref<320x512xbf16, #tpu.memory_space<vmem>>, vector<320x512xbf16>
    %cst_7 = arith.constant dense<0.000000e+00> : vector<320x512xf32>
    %10 = tpu.matmul %9, %8, %cst_7 {dimension_numbers = #tpu.dot_dimension_numbers<[1], [0], [0], [1], [0, 0, 1, 1], [], []>} : vector<320x512xbf16>, vector<512x512xbf16>, vector<320x512xf32> -> vector<320x512xf32>
    %c0_8 = arith.constant 0 : index
    %c0_9 = arith.constant 0 : index
    %11 = vector.load %arg5[%c0_8, %c0_9] : memref<320x1xf32, #tpu.memory_space<vmem>>, vector<320x1xf32>
    %12 = vector.broadcast %11 : vector<320x1xf32> to vector<320x512xf32>
    %13 = arith.addf %10, %12 : vector<320x512xf32>
    %14 = math.tanh %13 : vector<320x512xf32>
    %c0_10 = arith.constant 0 : index
    %c0_11 = arith.constant 0 : index
    %15 = vector.load %arg6[%c0_10, %c0_11] : memref<320x1xf32, #tpu.memory_space<vmem>>, vector<320x1xf32>
    %16 = vector.broadcast %15 : vector<320x1xf32> to vector<320x512xf32>
    %17 = arith.mulf %14, %16 : vector<320x512xf32>
    %cst_12 = arith.constant dense<0.000000e+00> : vector<512xf32>
    %18 = vector.multi_reduction <add>, %17, %cst_12 [0] : vector<320x512xf32> to vector<512xf32>
    %19 = vector.shape_cast %18 : vector<512xf32> to vector<1x512xf32>
    %c0_13 = arith.constant 0 : index
    %c0_14 = arith.constant 0 : index
    %20 = vector.load %arg7[%c0_13, %c0_14] : memref<1x1xf32, #tpu.memory_space<vmem>>, vector<1x1xf32>
    %21 = vector.broadcast %20 : vector<1x1xf32> to vector<1x512xf32>
    %22 = arith.addf %19, %21 : vector<1x512xf32>
    %c0_15 = arith.constant 0 : index
    %c0_16 = arith.constant 0 : index
    %23 = vector.load %arg8[%c0_15, %c0_16] : memref<1x512xf32, #tpu.memory_space<vmem>>, vector<1x512xf32>
    tpu.vector_store %arg8[%c0_15, %c0_16], %22 {strides = array<i32>} : memref<1x512xf32, #tpu.memory_space<vmem>>, vector<1x512xf32>,
    return
  }
  func.func @transform_0(%arg0: i32) -> (i32, i32) {
    %c0_i32 = arith.constant 0 : i32
    %c0_i32_0 = arith.constant 0 : i32
    return %arg0, %c0_i32 : i32, i32
  }
  func.func @transform_1(%arg0: i32) -> (i32, i32) {
    %c0_i32 = arith.constant 0 : i32
    %c0_i32_0 = arith.constant 0 : i32
    %c0_i32_1 = arith.constant 0 : i32
    return %c0_i32, %c0_i32_0 : i32, i32
  }
  func.func @transform_2(%arg0: i32) -> (i32, i32) {
    %c0_i32 = arith.constant 0 : i32
    %c0_i32_0 = arith.constant 0 : i32
    %c0_i32_1 = arith.constant 0 : i32
    return %c0_i32, %c0_i32_0 : i32, i32
  }
  func.func @transform_3(%arg0: i32) -> (i32, i32) {
    %c0_i32 = arith.constant 0 : i32
    %c0_i32_0 = arith.constant 0 : i32
    %c0_i32_1 = arith.constant 0 : i32
    return %c0_i32, %c0_i32_0 : i32, i32
  }
  func.func @transform_4(%arg0: i32) -> (i32, i32) {
    %c0_i32 = arith.constant 0 : i32
    %c0_i32_0 = arith.constant 0 : i32
    %c0_i32_1 = arith.constant 0 : i32
    return %c0_i32, %c0_i32_0 : i32, i32
  }
  func.func @transform_5(%arg0: i32) -> (i32, i32) {
    %c0_i32 = arith.constant 0 : i32
    %c0_i32_0 = arith.constant 0 : i32
    %c0_i32_1 = arith.constant 0 : i32
    return %c0_i32, %c0_i32_0 : i32, i32
  }
  func.func @transform_6(%arg0: i32) -> (i32, i32) {
    %c0_i32 = arith.constant 0 : i32
    %c0_i32_0 = arith.constant 0 : i32
    %c0_i32_1 = arith.constant 0 : i32
    return %c0_i32, %c0_i32_0 : i32, i32
  }
  func.func @transform_7(%arg0: i32) -> (i32, i32) {
    %c0_i32 = arith.constant 0 : i32
    %c0_i32_0 = arith.constant 0 : i32
    return %c0_i32, %arg0 : i32, i32
  }
}

</mosaic_0001>

<bundles_post_ra>
// kernel: _critic_mlp_call.1
= control target key start
LH: loop header
LB: loop body
LE: loop exit
PB: predicated region body
PF: predicated region fallthrough
CT: control target
= control target key end

     0   :  { %s11502_s0 = inlined_call_operand.vmem [shape: f32[512,32], index: 0, kind: input, shape index: {}]   ;;  %s11503_s1 = inlined_call_operand.vmem [shape: bf16[512,32], index: 1, kind: input, shape index: {}]   ;;  %s11504_s2 = inlined_call_operand.vmem [shape: f32[512,1], index: 2, kind: input, shape index: {}]   ;;  %s11505_s3 = inlined_call_operand.vmem [shape: bf16[320,512], index: 3, kind: input, shape index: {}]   ;;  %s11506_s4 = inlined_call_operand.vmem [shape: f32[320,1], index: 4, kind: input, shape index: {}]   ;;  %s11507_s5 = inlined_call_operand.vmem [shape: f32[320,1], index: 5, kind: input, shape index: {}]   ;;  %s11508_s6 = inlined_call_operand.<no memory space> [shape: f32[1,1], index: 6, kind: input, shape index: {}]   ;;  %s11509_s7 = inlined_call_operand.hbm [shape: f32[1,512], index: 7, kind: output, shape index: {}]  }
   0x1   :  { %v12_v0 = vstv %s11508_s6 }
   0x2   :  { %13 = vst [vmem:[#allocation2] sm:$0x1] %v12_v0 }
   0x3   :  { %v251_v1 = vld [vmem:[%s11504_s2 + $0x1f0] sm:$0xff]  ;;  %v7171_v4 = vmov 0   ;;  %v44_v6 = vld [vmem:[%s11502_s0 + $0x78] sm:$0xff]  ;;  %vm733_vm0 = vcmask 261120   ;;  %v41_v18 = vld [vmem:[%s11502_s0 + $0x60] sm:$0xff] }
   0x4   :  { %v235_v2 = vld [vmem:[%s11504_s2 + $0x170] sm:$0xff]  ;;  %6312 = vset.pattern.permute.xlu2 %v7171_v4  ;;  %6311 = vset.pattern.permute.xlu1 %v7171_v4  ;;  %v60_v9 = vld [vmem:[%s11502_s0 + $0xf8] sm:$0xff]  ;;  %v42_v21 = vld [vmem:[%s11502_s0 + $0x68] sm:$0xff] }
   0x5   :  { %v203_v3 = vld [vmem:[%s11504_s2 + $0x70] sm:$0xff]  ;;  %6310 = vset.pattern.permute.xlu0 %v7171_v4  ;;  %565 = vperm.xlu2 %6312, %v251_v1   ;;  %v76_v11 = vld [vmem:[%s11502_s0 + $0x178] sm:$0xff]  ;;  %v57_v22 = vld [vmem:[%s11502_s0 + $0xe0] sm:$0xff]  ;;  %v99_v25 = vpack.c.bf16 %v42_v21, %v41_v18 }
   0x6   :  { %v43_v5 = vld [vmem:[%s11502_s0 + $0x70] sm:$0xff]  ;;  %485 = vperm.xlu0 %6310, %v235_v2   ;;  %325 = vperm.xlu1 %6311, %v203_v3   ;;  %v92_v15 = vld [vmem:[%s11502_s0 + $0x1f8] sm:$0xff]  ;;  %v58_v23 = vld [vmem:[%s11502_s0 + $0xe8] sm:$0xff] }
   0x7   :  { %v59_v7 = vld [vmem:[%s11502_s0 + $0xf0] sm:$0xff]  ;;  %v100_v8 = vpack.c.bf16 %v44_v6, %v43_v5  ;;  %v73_v26 = vld [vmem:[%s11502_s0 + $0x160] sm:$0xff]  ;;  %v74_v27 = vld [vmem:[%s11502_s0 + $0x168] sm:$0xff]  ;;  %v107_v30 = vpack.c.bf16 %v58_v23, %v57_v22  ;;  %v849_v36 = vsel %vm733_vm0, %v99_v25, 0 }
   0x8   :  { %v75_v10 = vld [vmem:[%s11502_s0 + $0x170] sm:$0xff]  ;;  %v108_v12 = vpack.c.bf16 %v60_v9, %v59_v7  ;;  %v89_v28 = vld [vmem:[%s11502_s0 + $0x1e0] sm:$0xff]  ;;  %v252_v29 = vld [vmem:[%s11504_s2 + $0x1f8] sm:$0xff]  ;;  %v115_v31 = vpack.c.bf16 %v74_v27, %v73_v26 }
   0x9   :  { %v116_v13 = vpack.c.bf16 %v76_v11, %v75_v10  ;;  %v91_v14 = vld [vmem:[%s11502_s0 + $0x1f0] sm:$0xff]  ;;  %v852_v16 = vsel %vm733_vm0, %v100_v8, 0  ;;  %v90_v32 = vld [vmem:[%s11502_s0 + $0x1e8] sm:$0xff]  ;;  %v236_v33 = vld [vmem:[%s11504_s2 + $0x178] sm:$0xff]  ;;  %v873_v37 = vsel %vm733_vm0, %v107_v30, 0 }
   0xa   :  { %v124_v17 = vpack.c.bf16 %v92_v15, %v91_v14  ;;  %926 = vmatpush.bf16.xpose.msra.mxu0 %v852_v16  ;;  %v876_v19 = vsel %vm733_vm0, %v108_v12, 0  ;;  %v204_v34 = vld [vmem:[%s11504_s2 + $0x78] sm:$0xff]  ;;  %v123_v35 = vpack.c.bf16 %v90_v32, %v89_v28  ;;  %v897_v38 = vsel %vm733_vm0, %v115_v31, 0  ;;  %v39_v39 = vld [vmem:[%s11502_s0 + $0x50] sm:$0xff]  ;;  %v233_v49 = vld [vmem:[%s11504_s2 + $0x160] sm:$0xff] }
   0xb   :  { %v900_v20 = vsel %vm733_vm0, %v116_v13, 0  ;;  %1095 = vmatpush.bf16.xpose.msra.mxu1 %v876_v19  ;;  %v40_v40 = vld [vmem:[%s11502_s0 + $0x58] sm:$0xff]  ;;  %v55_v41 = vld [vmem:[%s11502_s0 + $0xd0] sm:$0xff]  ;;  %v37_v58 = vld [vmem:[%s11502_s0 + $0x40] sm:$0xff] }
   0xc   :  { %1264 = vmatpush.bf16.xpose.msra.mxu2 %v900_v20  ;;  %v924_v24 = vsel %vm733_vm0, %v124_v17, 0  ;;  %v921_v42 = vsel %vm733_vm0, %v123_v35, 0  ;;  %v56_v43 = vld [vmem:[%s11502_s0 + $0xd8] sm:$0xff]  ;;  %v71_v44 = vld [vmem:[%s11502_s0 + $0x150] sm:$0xff]  ;;  %v98_v48 = vpack.c.bf16 %v40_v40, %v39_v39  ;;  %v38_v59 = vld [vmem:[%s11502_s0 + $0x48] sm:$0xff] }
   0xd   :  { %1433 = vmatpush.bf16.xpose.msra.mxu3 %v924_v24  ;;  %570 = vperm.xlu2 %6312, %v252_v29   ;;  %v72_v45 = vld [vmem:[%s11502_s0 + $0x158] sm:$0xff]  ;;  %v87_v46 = vld [vmem:[%s11502_s0 + $0x1d0] sm:$0xff]  ;;  %v106_v50 = vpack.c.bf16 %v56_v43, %v55_v41  ;;  %v53_v60 = vld [vmem:[%s11502_s0 + $0xc0] sm:$0xff]  ;;  %v97_v3 = vpack.c.bf16 %v38_v59, %v37_v58 }
   0xe   :  { %490 = vperm.xlu0 %6310, %v236_v33   ;;  %330 = vperm.xlu1 %6311, %v204_v34   ;;  %v88_v47 = vld [vmem:[%s11502_s0 + $0x1d8] sm:$0xff]  ;;  %v114_v51 = vpack.c.bf16 %v72_v45, %v71_v44  ;;  %v219_v52 = vld [vmem:[%s11504_s2 + $0xf0] sm:$0xff]  ;;  %v846_v55 = vsel %vm733_vm0, %v98_v48, 0  ;;  %v54_v62 = vld [vmem:[%s11502_s0 + $0xc8] sm:$0xff] }
   0xf   :  { %v220_v53 = vld [vmem:[%s11504_s2 + $0xf8] sm:$0xff]  ;;  %v122_v54 = vpack.c.bf16 %v88_v47, %v87_v46  ;;  %v870_v56 = vsel %vm733_vm0, %v106_v50, 0  ;;  %v69_v63 = vld [vmem:[%s11502_s0 + $0x140] sm:$0xff]  ;;  %v70_v0 = vld [vmem:[%s11502_s0 + $0x148] sm:$0xff]  ;;  %v105_v5 = vpack.c.bf16 %v54_v62, %v53_v60  ;;  %v843_v10 = vsel %vm733_vm0, %v97_v3, 0 }
  0x10   :  { %v894_v57 = vsel %vm733_vm0, %v114_v51, 0  ;;  %v85_v1 = vld [vmem:[%s11502_s0 + $0x1c0] sm:$0xff]  ;;  %v86_v2 = vld [vmem:[%s11502_s0 + $0x1c8] sm:$0xff]  ;;  %v113_v6 = vpack.c.bf16 %v70_v0, %v69_v63 }
  0x11   :  { %v918_v61 = vsel %vm733_vm0, %v122_v54, 0  ;;  %v202_v4 = vld [vmem:[%s11504_s2 + $0x68] sm:$0xff]  ;;  %v201_v8 = vld [vmem:[%s11504_s2 + $0x60] sm:$0xff]  ;;  %v121_v9 = vpack.c.bf16 %v86_v2, %v85_v1 }
  0x12   :  { %927 = vmatpush.bf16.xpose.msra.mxu0 %v849_v36  ;;  %v234_v7 = vld [vmem:[%s11504_s2 + $0x168] sm:$0xff] }
  0x13   :  { %1096 = vmatpush.bf16.xpose.msra.mxu1 %v873_v37 }
  0x14   :  { %1265 = vmatpush.bf16.xpose.msra.mxu2 %v897_v38 }
  0x15   :  { %1434 = vmatpush.bf16.xpose.msra.mxu3 %v921_v42  ;;  %475 = vperm.xlu2 %6312, %v233_v49  }
  0x16   :  { %405 = vperm.xlu0 %6310, %v219_v52   ;;  %410 = vperm.xlu1 %6311, %v220_v53  }
  0x1a   :  { %928 = vmatpush.bf16.xpose.msra.mxu0 %v846_v55 }
  0x1b   :  { %1097 = vmatpush.bf16.xpose.msra.mxu1 %v870_v56 }
  0x1c   :  { %1266 = vmatpush.bf16.xpose.msra.mxu2 %v894_v57 }
  0x1d   :  { %1435 = vmatpush.bf16.xpose.msra.mxu3 %v918_v61  ;;  %320 = vperm.xlu2 %6312, %v202_v4  }
  0x1e   :  { %14 = vsyncpa [#allocation4], 0  ;;  %480 = vperm.xlu0 %6310, %v234_v7   ;;  %315 = vperm.xlu1 %6311, %v201_v8   ;;  %v867_v11 = vsel %vm733_vm0, %v105_v5, 0  ;;  %v891_v12 = vsel %vm733_vm0, %v113_v6, 0  ;;  %v35_v13 = vld [vmem:[%s11502_s0 + $0x30] sm:$0xff]  ;;  %v36_v14 = vld [vmem:[%s11502_s0 + $0x38] sm:$0xff] }
  0x1f   :  { %v51_v15 = vld [vmem:[%s11502_s0 + $0xb0] sm:$0xff]  ;;  %v915_v16 = vsel %vm733_vm0, %v121_v9, 0  ;;  %v52_v17 = vld [vmem:[%s11502_s0 + $0xb8] sm:$0xff]  ;;  %v96_v22 = vpack.c.bf16 %v36_v14, %v35_v13  ;;  %v217_v23 = vld [vmem:[%s11504_s2 + $0xe0] sm:$0xff]  ;;  %vm5592_vm1 = vcmask 1040384   ;;  %vm5594_vm2 = vcmask 1042434  }
  0x20   :  { %v67_v18 = vld [vmem:[%s11502_s0 + $0x130] sm:$0xff]  ;;  %v68_v19 = vld [vmem:[%s11502_s0 + $0x138] sm:$0xff]  ;;  %v104_v24 = vpack.c.bf16 %v52_v17, %v51_v15  ;;  %v249_v26 = vld [vmem:[%s11504_s2 + $0x1e0] sm:$0xff]  ;;  %s5611_s28 = sshll.u32 %s11509_s7, 4  ;;  %vm5596_vm3 = vcmask 1041408   ;;  %s5612_s28 = int_to_ptr.hbm [resolvable:$true] %s5611_s28 }
  0x21   :  { %v83_v20 = vld [vmem:[%s11502_s0 + $0x1b0] sm:$0xff]  ;;  %v84_v21 = vld [vmem:[%s11502_s0 + $0x1b8] sm:$0xff]  ;;  %v112_v25 = vpack.c.bf16 %v68_v19, %v67_v18  ;;  %v250_v27 = vld [vmem:[%s11504_s2 + $0x1e8] sm:$0xff]  ;;  %v840_v29 = vsel %vm733_vm0, %v96_v22, 0 }
  0x22   :  { %929 = vmatpush.bf16.xpose.msra.mxu0 %v843_v10  ;;  %v120_v28 = vpack.c.bf16 %v84_v21, %v83_v20  ;;  %v864_v30 = vsel %vm733_vm0, %v104_v24, 0  ;;  %v33_v32 = vld [vmem:[%s11502_s0 + $0x20] sm:$0xff]  ;;  %v34_v33 = vld [vmem:[%s11502_s0 + $0x28] sm:$0xff]  ;;  %v232_v42 = vld [vmem:[%s11504_s2 + $0x158] sm:$0xff] }
  0x23   :  { %1098 = vmatpush.bf16.xpose.msra.mxu1 %v867_v11  ;;  %v888_v31 = vsel %vm733_vm0, %v112_v25, 0  ;;  %v49_v34 = vld [vmem:[%s11502_s0 + $0xa0] sm:$0xff]  ;;  %v50_v36 = vld [vmem:[%s11502_s0 + $0xa8] sm:$0xff]  ;;  %v95_v41 = vpack.c.bf16 %v34_v33, %v33_v32  ;;  %v231_v46 = vld [vmem:[%s11504_s2 + $0x150] sm:$0xff] }
  0x24   :  { %1267 = vmatpush.bf16.xpose.msra.mxu2 %v891_v12  ;;  %v912_v35 = vsel %vm733_vm0, %v120_v28, 0  ;;  %v65_v37 = vld [vmem:[%s11502_s0 + $0x120] sm:$0xff]  ;;  %v66_v38 = vld [vmem:[%s11502_s0 + $0x128] sm:$0xff]  ;;  %v103_v43 = vpack.c.bf16 %v50_v36, %v49_v34  ;;  %v31_v51 = vld [vmem:[%s11502_s0 + $0x10] sm:$0xff] }
  0x25   :  { %1436 = vmatpush.bf16.xpose.msra.mxu3 %v915_v16  ;;  %395 = vperm.xlu2 %6312, %v217_v23   ;;  %v81_v39 = vld [vmem:[%s11502_s0 + $0x1a0] sm:$0xff]  ;;  %v82_v40 = vld [vmem:[%s11502_s0 + $0x1a8] sm:$0xff]  ;;  %v111_v44 = vpack.c.bf16 %v66_v38, %v65_v37  ;;  %v837_v48 = vsel %vm733_vm0, %v95_v41, 0  ;;  %v32_v52 = vld [vmem:[%s11502_s0 + $0x18] sm:$0xff] }
  0x26   :  { %555 = vperm.xlu0 %6310, %v249_v26   ;;  %560 = vperm.xlu1 %6311, %v250_v27   ;;  %v218_v45 = vld [vmem:[%s11504_s2 + $0xe8] sm:$0xff]  ;;  %v119_v47 = vpack.c.bf16 %v82_v40, %v81_v39  ;;  %v861_v49 = vsel %vm733_vm0, %v103_v43, 0  ;;  %v47_v53 = vld [vmem:[%s11502_s0 + $0x90] sm:$0xff]  ;;  %v48_v55 = vld [vmem:[%s11502_s0 + $0x98] sm:$0xff]  ;;  %v94_v60 = vpack.c.bf16 %v32_v52, %v31_v51 }
  0x27   :  { %v885_v50 = vsel %vm733_vm0, %v111_v44, 0  ;;  %v63_v56 = vld [vmem:[%s11502_s0 + $0x110] sm:$0xff]  ;;  %v64_v57 = vld [vmem:[%s11502_s0 + $0x118] sm:$0xff]  ;;  %v102_v62 = vpack.c.bf16 %v48_v55, %v47_v53  ;;  %v29_v6 = vld [vmem:[%s11502_s0] sm:$0xff] }
  0x28   :  { %v909_v54 = vsel %vm733_vm0, %v119_v47, 0  ;;  %v79_v58 = vld [vmem:[%s11502_s0 + $0x190] sm:$0xff]  ;;  %v80_v59 = vld [vmem:[%s11502_s0 + $0x198] sm:$0xff]  ;;  %v110_v63 = vpack.c.bf16 %v64_v57, %v63_v56  ;;  %v834_v3 = vsel %vm733_vm0, %v94_v60, 0  ;;  %v30_v7 = vld [vmem:[%s11502_s0 + $0x8] sm:$0xff] }
  0x29   :  { %v247_v61 = vld [vmem:[%s11504_s2 + $0x1d0] sm:$0xff]  ;;  %v200_v0 = vld [vmem:[%s11504_s2 + $0x58] sm:$0xff]  ;;  %v118_v2 = vpack.c.bf16 %v80_v59, %v79_v58  ;;  %v858_v4 = vsel %vm733_vm0, %v102_v62, 0  ;;  %v45_v8 = vld [vmem:[%s11502_s0 + $0x80] sm:$0xff]  ;;  %v93_v15 = vpack.c.bf16 %v30_v7, %v29_v6 }
  0x2a   :  { %930 = vmatpush.bf16.xpose.msra.mxu0 %v840_v29  ;;  %v199_v1 = vld [vmem:[%s11504_s2 + $0x50] sm:$0xff]  ;;  %v882_v5 = vsel %vm733_vm0, %v110_v63, 0  ;;  %v46_v10 = vld [vmem:[%s11502_s0 + $0x88] sm:$0xff]  ;;  %v61_v11 = vld [vmem:[%s11502_s0 + $0x100] sm:$0xff] }
  0x2b   :  { %1099 = vmatpush.bf16.xpose.msra.mxu1 %v864_v30  ;;  %v906_v9 = vsel %vm733_vm0, %v118_v2, 0  ;;  %v62_v12 = vld [vmem:[%s11502_s0 + $0x108] sm:$0xff]  ;;  %v77_v13 = vld [vmem:[%s11502_s0 + $0x180] sm:$0xff]  ;;  %v216_v16 = vld [vmem:[%s11504_s2 + $0xd8] sm:$0xff]  ;;  %v101_v17 = vpack.c.bf16 %v46_v10, %v45_v8  ;;  %v831_v22 = vsel %vm733_vm0, %v93_v15, 0 }
  0x2c   :  { %1268 = vmatpush.bf16.xpose.msra.mxu2 %v888_v31  ;;  %v78_v14 = vld [vmem:[%s11502_s0 + $0x188] sm:$0xff]  ;;  %v109_v18 = vpack.c.bf16 %v62_v12, %v61_v11  ;;  %v215_v19 = vld [vmem:[%s11504_s2 + $0xd0] sm:$0xff]  ;;  %v248_v20 = vld [vmem:[%s11504_s2 + $0x1d8] sm:$0xff] }
  0x2d   :  { %1437 = vmatpush.bf16.xpose.msra.mxu3 %v912_v35  ;;  %470 = vperm.xlu2 %6312, %v232_v42   ;;  %v117_v21 = vpack.c.bf16 %v78_v14, %v77_v13  ;;  %v855_v23 = vsel %vm733_vm0, %v101_v17, 0  ;;  %v197_v26 = vld [vmem:[%s11504_s2 + $0x40] sm:$0xff]  ;;  %v230_v27 = vld [vmem:[%s11504_s2 + $0x148] sm:$0xff]  ;;  %v227_v33 = vld [vmem:[%s11504_s2 + $0x130] sm:$0xff] }
  0x2e   :  { %400 = vperm.xlu0 %6310, %v218_v45   ;;  %465 = vperm.xlu1 %6311, %v231_v46   ;;  %v879_v24 = vsel %vm733_vm0, %v109_v18, 0  ;;  %v229_v28 = vld [vmem:[%s11504_s2 + $0x140] sm:$0xff]  ;;  %v246_v30 = vld [vmem:[%s11504_s2 + $0x1c8] sm:$0xff]  ;;  %v196_v37 = vld [vmem:[%s11504_s2 + $0x38] sm:$0xff] }
  0x2f   :  { %v903_v25 = vsel %vm733_vm0, %v117_v21, 0  ;;  %v6196_v29 = vld [vmem:[%s11503_s1] sm:$0xff]  ;;  %v198_v32 = vld [vmem:[%s11504_s2 + $0x48] sm:$0xff]  ;;  %v228_v38 = vld [vmem:[%s11504_s2 + $0x138] sm:$0xff] }
  0x30   :  { %v245_v31 = vld [vmem:[%s11504_s2 + $0x1c0] sm:$0xff]  ;;  %v214_v34 = vld [vmem:[%s11504_s2 + $0xc8] sm:$0xff]  ;;  %v195_v39 = vld [vmem:[%s11504_s2 + $0x30] sm:$0xff] }
  0x31   :  { %v213_v35 = vld [vmem:[%s11504_s2 + $0xc0] sm:$0xff]  ;;  %v6197_v36 = vld [vmem:[%s11503_s1 + $0x8] sm:$0xff]  ;;  %v211_v41 = vld [vmem:[%s11504_s2 + $0xb0] sm:$0xff] }
  0x32   :  { %931 = vmatpush.bf16.xpose.msra.mxu0 %v837_v48  ;;  %v243_v42 = vld [vmem:[%s11504_s2 + $0x1b0] sm:$0xff]  ;;  %v244_v43 = vld [vmem:[%s11504_s2 + $0x1b8] sm:$0xff]  ;;  %v226_v46 = vld [vmem:[%s11504_s2 + $0x128] sm:$0xff] }
  0x33   :  { %1100 = vmatpush.bf16.xpose.msra.mxu1 %v861_v49  ;;  %v6198_v44 = vld [vmem:[%s11503_s1 + $0x10] sm:$0xff]  ;;  %v212_v47 = vld [vmem:[%s11504_s2 + $0xb8] sm:$0xff]  ;;  %v225_v48 = vld [vmem:[%s11504_s2 + $0x120] sm:$0xff] }
  0x34   :  { %1269 = vmatpush.bf16.xpose.msra.mxu2 %v885_v50  ;;  %v241_v50 = vld [vmem:[%s11504_s2 + $0x1a0] sm:$0xff]  ;;  %v194_v51 = vld [vmem:[%s11504_s2 + $0x28] sm:$0xff]  ;;  %v6199_v53 = vld [vmem:[%s11503_s1 + $0x18] sm:$0xff] }
  0x35   :  { %1438 = vmatpush.bf16.xpose.msra.mxu3 %v909_v54  ;;  %545 = vperm.xlu2 %6312, %v247_v61   ;;  %v193_v52 = vld [vmem:[%s11504_s2 + $0x20] sm:$0xff]  ;;  %v210_v57 = vld [vmem:[%s11504_s2 + $0xa8] sm:$0xff]  ;;  %v191_v63 = vld [vmem:[%s11504_s2 + $0x10] sm:$0xff] }
  0x36   :  { %310 = vperm.xlu1 %6311, %v200_v0   ;;  %305 = vperm.xlu0 %6310, %v199_v1   ;;  %v209_v58 = vld [vmem:[%s11504_s2 + $0xa0] sm:$0xff]  ;;  %v242_v59 = vld [vmem:[%s11504_s2 + $0x1a8] sm:$0xff]  ;;  %v224_v0 = vld [vmem:[%s11504_s2 + $0x118] sm:$0xff] }
  0x37   :  { %v223_v1 = vld [vmem:[%s11504_s2 + $0x110] sm:$0xff]  ;;  %v6200_v2 = vld [vmem:[%s11503_s1 + $0x20] sm:$0xff]  ;;  %v240_v6 = vld [vmem:[%s11504_s2 + $0x198] sm:$0xff] }
  0x38   :  { %v239_v7 = vld [vmem:[%s11504_s2 + $0x190] sm:$0xff]  ;;  %v192_v8 = vld [vmem:[%s11504_s2 + $0x18] sm:$0xff]  ;;  %v221_v12 = vld [vmem:[%s11504_s2 + $0x100] sm:$0xff] }
  0x39   :  { %v208_v13 = vld [vmem:[%s11504_s2 + $0x98] sm:$0xff]  ;;  %v6201_v14 = vld [vmem:[%s11503_s1 + $0x28] sm:$0xff] }
  0x3a   :  { %932 = vmatpush.bf16.xpose.msra.mxu0 %v834_v3  ;;  %v190_v18 = vld [vmem:[%s11504_s2 + $0x8] sm:$0xff] }
  0x3b   :  { %1101 = vmatpush.bf16.xpose.msra.mxu1 %v858_v4 }
  0x3c   :  { %1270 = vmatpush.bf16.xpose.msra.mxu2 %v882_v5 }
  0x3d   :  { %1439 = vmatpush.bf16.xpose.msra.mxu3 %v906_v9  ;;  %390 = vperm.xlu2 %6312, %v216_v16  }
  0x3e   :  { %385 = vperm.xlu1 %6311, %v215_v19   ;;  %550 = vperm.xlu0 %6310, %v248_v20   ;;  %v189_v19 = vld [vmem:[%s11504_s2] sm:$0xff] }
  0x42   :  { %933 = vmatpush.bf16.xpose.msra.mxu0 %v831_v22 }
  0x43   :  { %1102 = vmatpush.bf16.xpose.msra.mxu1 %v855_v23  ;;  %v207_v23 = vld [vmem:[%s11504_s2 + $0x90] sm:$0xff] }
  0x44   :  { %1271 = vmatpush.bf16.xpose.msra.mxu2 %v879_v24  ;;  %v6202_v24 = vld [vmem:[%s11503_s1 + $0x30] sm:$0xff] }
  0x45   :  { %1440 = vmatpush.bf16.xpose.msra.mxu3 %v903_v25  ;;  %295 = vperm.xlu2 %6312, %v197_v26  }
  0x46   :  { %460 = vperm.xlu1 %6311, %v230_v27   ;;  %455 = vperm.xlu0 %6310, %v229_v28   ;;  %v222_v28 = vld [vmem:[%s11504_s2 + $0x108] sm:$0xff] }
  0x49   :  { %5748 = vmatmul.msk.bf16.vlgmr.msra.gmra.mxu0 %vm733_vm0, %v6196_v29 }
  0x4a   :  { %5780 = vmatmul.msk.bf16.vlgmr.msra.gmra.mxu1 %vm733_vm0, %v6196_v29 }
  0x4b   :  { %5812 = vmatmul.msk.bf16.vlgmr.msra.gmra.mxu2 %vm733_vm0, %v6196_v29 }
  0x4c   :  { %5844 = vmatmul.msk.bf16.vlgmr.msra.gmra.mxu3 %vm733_vm0, %v6196_v29 }
  0x4d   :  { %540 = vperm.xlu2 %6312, %v246_v30  }
  0x4e   :  { %535 = vperm.xlu1 %6311, %v245_v31   ;;  %300 = vperm.xlu0 %6310, %v198_v32   ;;  %v237_v32 = vld [vmem:[%s11504_s2 + $0x180] sm:$0xff] }
  0x55   :  { %445 = vperm.xlu2 %6312, %v227_v33   ;;  %v6203_v33 = vld [vmem:[%s11503_s1 + $0x38] sm:$0xff] }
  0x56   :  { %380 = vperm.xlu1 %6311, %v214_v34   ;;  %375 = vperm.xlu0 %6310, %v213_v35  }
  0x59   :  { %5749 = vmatmul.msk.bf16.gmra.mxu0 %vm733_vm0, %v6197_v36 }
  0x5a   :  { %5781 = vmatmul.msk.bf16.gmra.mxu1 %vm733_vm0, %v6197_v36 }
  0x5b   :  { %5813 = vmatmul.msk.bf16.gmra.mxu2 %vm733_vm0, %v6197_v36 }
  0x5c   :  { %5845 = vmatmul.msk.bf16.gmra.mxu3 %vm733_vm0, %v6197_v36 }
  0x5d   :  { %290 = vperm.xlu2 %6312, %v196_v37   ;;  %v206_v37 = vld [vmem:[%s11504_s2 + $0x88] sm:$0xff] }
  0x5e   :  { %450 = vperm.xlu0 %6310, %v228_v38   ;;  %285 = vperm.xlu1 %6311, %v195_v39  }
  0x5f   :  { %v7562_v40 = vpop.permute.xlu2 %565 }
  0x60   :  { %11913 = vst [vmem:[#allocation6_spill] sm:$0xff] %v7562_v40 }
  0x65   :  { %365 = vperm.xlu2 %6312, %v211_v41  }
  0x66   :  { %525 = vperm.xlu0 %6310, %v243_v42   ;;  %530 = vperm.xlu1 %6311, %v244_v43   ;;  %v6204_v42 = vld [vmem:[%s11503_s1 + $0x40] sm:$0xff] }
  0x67   :  { %v7577_v45 = vpop.permute.xlu2 %570 }
  0x68   :  { %11914 = vst [vmem:[#allocation7_spill] sm:$0xff] %v7577_v45  ;;  %v2452_v45 = vld [vmem:[%s11506_s4 + $0x10] sm:$0xff] }
  0x69   :  { %5750 = vmatmul.msk.bf16.gmra.mxu0 %vm733_vm0, %v6198_v44 }
  0x6a   :  { %5782 = vmatmul.msk.bf16.gmra.mxu1 %vm733_vm0, %v6198_v44 }
  0x6b   :  { %5814 = vmatmul.msk.bf16.gmra.mxu2 %vm733_vm0, %v6198_v44 }
  0x6c   :  { %5846 = vmatmul.msk.bf16.gmra.mxu3 %vm733_vm0, %v6198_v44 }
  0x6d   :  { %440 = vperm.xlu2 %6312, %v226_v46  }
  0x6e   :  { %370 = vperm.xlu0 %6310, %v212_v47   ;;  %435 = vperm.xlu1 %6311, %v225_v48  }
  0x6f   :  { %v7591_v49 = vpop.permute.xlu2 %475 }
  0x70   :  { %11915 = vst [vmem:[#allocation8_spill] sm:$0xff] %v7591_v49 }
  0x75   :  { %515 = vperm.xlu2 %6312, %v241_v50   ;;  %v205_v50 = vld [vmem:[%s11504_s2 + $0x80] sm:$0xff] }
  0x76   :  { %280 = vperm.xlu1 %6311, %v194_v51   ;;  %275 = vperm.xlu0 %6310, %v193_v52  }
  0x77   :  { %v7606_v54 = vpop.permute.xlu2 %320 }
  0x78   :  { %v7610_v55 = vpop.permute.xlu0 %485  ;;  %v7612_v56 = vpop.permute.xlu1 %325 }
  0x79   :  { %5751 = vmatmul.msk.bf16.gmra.mxu0 %vm733_vm0, %v6199_v53  ;;  %11916 = vst [vmem:[#allocation9_spill] sm:$0xff] %v7610_v55 }
  0x7a   :  { %5783 = vmatmul.msk.bf16.gmra.mxu1 %vm733_vm0, %v6199_v53 }
  0x7b   :  { %5815 = vmatmul.msk.bf16.gmra.mxu2 %vm733_vm0, %v6199_v53 }
  0x7c   :  { %5847 = vmatmul.msk.bf16.gmra.mxu3 %vm733_vm0, %v6199_v53 }
  0x7d   :  { %360 = vperm.xlu2 %6312, %v210_v57  }
  0x7e   :  { %355 = vperm.xlu1 %6311, %v209_v58   ;;  %520 = vperm.xlu0 %6310, %v242_v59  }
  0x7f   :  { %v7624_v60 = vpop.permute.xlu2 %395 }
  0x80   :  { %v7626_v61 = vpop.permute.xlu0 %490  ;;  %v7628_v62 = vpop.permute.xlu1 %330 }
  0x81   :  { %11917 = vst [vmem:[#allocation10_spill] sm:$0xff] %v7626_v61 }
  0x85   :  { %265 = vperm.xlu2 %6312, %v191_v63  }
  0x86   :  { %430 = vperm.xlu1 %6311, %v224_v0   ;;  %425 = vperm.xlu0 %6310, %v223_v1   ;;  %v238_v0 = vld [vmem:[%s11504_s2 + $0x188] sm:$0xff] }
  0x87   :  { %v7643_v3 = vpop.permute.xlu2 %470 }
  0x88   :  { %11918 = vst [vmem:[#allocation11_spill] sm:$0xff] %v7643_v3  ;;  %v7647_v4 = vpop.permute.xlu0 %405  ;;  %v7649_v5 = vpop.permute.xlu1 %410 }
  0x89   :  { %5752 = vmatmul.msk.bf16.gmra.mxu0 %vm733_vm0, %v6200_v2  ;;  %11919 = vst [vmem:[#allocation12_spill] sm:$0xff] %v7647_v4 }
  0x8a   :  { %5784 = vmatmul.msk.bf16.gmra.mxu1 %vm733_vm0, %v6200_v2  ;;  %11920 = vst [vmem:[#allocation13_spill] sm:$0xff] %v7649_v5 }
  0x8b   :  { %5816 = vmatmul.msk.bf16.gmra.mxu2 %vm733_vm0, %v6200_v2 }
  0x8c   :  { %5848 = vmatmul.msk.bf16.gmra.mxu3 %vm733_vm0, %v6200_v2  ;;  %v6205_v2 = vld [vmem:[%s11503_s1 + $0x48] sm:$0xff] }
  0x8d   :  { %510 = vperm.xlu2 %6312, %v240_v6  }
  0x8e   :  { %505 = vperm.xlu1 %6311, %v239_v7   ;;  %270 = vperm.xlu0 %6310, %v192_v8  }
  0x8f   :  { %v7661_v9 = vpop.permute.xlu2 %545 }
  0x90   :  { %11921 = vst [vmem:[#allocation14_spill] sm:$0xff] %v7661_v9  ;;  %v7663_v10 = vpop.permute.xlu0 %480  ;;  %v7665_v11 = vpop.permute.xlu1 %315 }
  0x91   :  { %11922 = vst [vmem:[#allocation15_spill] sm:$0xff] %v7663_v10 }
  0x95   :  { %415 = vperm.xlu2 %6312, %v221_v12  }
  0x96   :  { %350 = vperm.xlu1 %6311, %v208_v13   ;;  %345 = vperm.xlu0 %6310, %v207_v23  }
  0x97   :  { %v7677_v15 = vpop.permute.xlu2 %390 }
  0x98   :  { %v7681_v16 = vpop.permute.xlu0 %555  ;;  %v7683_v17 = vpop.permute.xlu1 %560 }
  0x99   :  { %5753 = vmatmul.msk.bf16.gmra.mxu0 %vm733_vm0, %v6201_v14  ;;  %11923 = vst [vmem:[#allocation16_spill] sm:$0xff] %v7681_v16 }
  0x9a   :  { %5785 = vmatmul.msk.bf16.gmra.mxu1 %vm733_vm0, %v6201_v14  ;;  %11924 = vst [vmem:[#allocation17_spill] sm:$0xff] %v7683_v17 }
  0x9b   :  { %5817 = vmatmul.msk.bf16.gmra.mxu2 %vm733_vm0, %v6201_v14 }
  0x9c   :  { %5849 = vmatmul.msk.bf16.gmra.mxu3 %vm733_vm0, %v6201_v14 }
  0x9d   :  { %260 = vperm.xlu2 %6312, %v190_v18  }
  0x9e   :  { %255 = vperm.xlu1 %6311, %v189_v19   ;;  %420 = vperm.xlu0 %6310, %v222_v28  }
  0x9f   :  { %v7692_v20 = vpop.permute.xlu2 %295 }
  0xa0   :  { %v7694_v21 = vpop.permute.xlu0 %400  ;;  %v7696_v22 = vpop.permute.xlu1 %465 }
  0xa1   :  { %11925 = vst [vmem:[#allocation18_spill] sm:$0xff] %v7696_v22 }
  0xa5   :  { %335 = vperm.xlu2 %6312, %v205_v50  }
  0xa6   :  { %495 = vperm.xlu0 %6310, %v237_v32   ;;  %500 = vperm.xlu1 %6311, %v238_v0   ;;  %v6206_v0 = vld [vmem:[%s11503_s1 + $0x50] sm:$0xff] }
  0xa7   :  { %v7705_v25 = vpop.permute.xlu2 %540 }
  0xa8   :  { %11926 = vst [vmem:[#allocation19_spill] sm:$0xff] %v7705_v25  ;;  %v7709_v26 = vpop.permute.xlu1 %310  ;;  %v7711_v27 = vpop.permute.xlu0 %305 }
  0xa9   :  { %5754 = vmatmul.msk.bf16.gmra.mxu0 %vm733_vm0, %v6202_v24 }
  0xaa   :  { %5786 = vmatmul.msk.bf16.gmra.mxu1 %vm733_vm0, %v6202_v24 }
  0xab   :  { %5818 = vmatmul.msk.bf16.gmra.mxu2 %vm733_vm0, %v6202_v24 }
  0xac   :  { %5850 = vmatmul.msk.bf16.gmra.mxu3 %vm733_vm0, %v6202_v24 }
  0xae   :  { %340 = vperm.xlu0 %6310, %v206_v37  }
  0xaf   :  { %v7717_v29 = vpop.permute.xlu2 %445 }
  0xb0   :  { %11927 = vst [vmem:[#allocation20_spill] sm:$0xff] %v7717_v29  ;;  %v7719_v30 = vpop.permute.xlu1 %385  ;;  %v7721_v31 = vpop.permute.xlu0 %550 }
  0xb1   :  { %11928 = vst [vmem:[#allocation21_spill] sm:$0xff] %v7721_v31 }
  0xb6   :  { %2502 = vperm.xlu0 %6310, %v2452_v45   ;;  %v2455_v45 = vld [vmem:[%s11506_s4 + $0x28] sm:$0xff] }
  0xb7   :  { %v7730_v34 = vpop.permute.xlu2 %290 }
  0xb8   :  { %v7734_v35 = vpop.permute.xlu1 %460  ;;  %v7736_v36 = vpop.permute.xlu0 %455 }
  0xb9   :  { %5755 = vmatmul.msk.bf16.gmra.mxu0 %vm733_vm0, %v6203_v33  ;;  %11929 = vst [vmem:[#allocation22_spill] sm:$0xff] %v7734_v35 }
  0xba   :  { %5787 = vmatmul.msk.bf16.gmra.mxu1 %vm733_vm0, %v6203_v33  ;;  %11930 = vst [vmem:[#allocation23_spill] sm:$0xff] %v7736_v36 }
  0xbb   :  { %5819 = vmatmul.msk.bf16.gmra.mxu2 %vm733_vm0, %v6203_v33 }
  0xbc   :  { %5851 = vmatmul.msk.bf16.gmra.mxu3 %vm733_vm0, %v6203_v33 }
  0xbe   :  { %2517 = vperm.xlu0 %6310, %v2455_v45  }
  0xbf   :  { %v7742_v38 = vpop.permute.xlu2 %365 }
  0xc0   :  { %v7744_v39 = vpop.permute.xlu1 %535  ;;  %v7746_v41 = vpop.permute.xlu0 %300 }
  0xc1   :  { %11931 = vst [vmem:[#allocation24_spill] sm:$0xff] %v7744_v39 }
  0xc6   :  { %v7751_v43 = vpop.f32.mrf.mxu0 }
  0xc7   :  { %v7753_v44 = vpop.f32.mrf.mxu1  ;;  %v7756_v46 = vpop.permute.xlu2 %440 }
  0xc8   :  { %11932 = vst [vmem:[#allocation25_spill] sm:$0xff] %v7756_v46  ;;  %v7760_v47 = vpop.permute.xlu1 %380  ;;  %v7762_v48 = vpop.permute.xlu0 %375 }
  0xc9   :  { %5756 = vmatmul.msk.bf16.gmra.mxu0 %vm733_vm0, %v6204_v42 }
  0xca   :  { %5788 = vmatmul.msk.bf16.gmra.mxu1 %vm733_vm0, %v6204_v42 }
  0xcb   :  { %5820 = vmatmul.msk.bf16.gmra.mxu2 %vm733_vm0, %v6204_v42 }
  0xcc   :  { %5852 = vmatmul.msk.bf16.gmra.mxu3 %vm733_vm0, %v6204_v42 }
  0xce   :  { %v7768_v51 = vpop.f32.mrf.mxu2  ;;  %v7772_v53 = vpop.f32.mrf.mxu0 }
  0xcf   :  { %v7770_v52 = vpop.f32.mrf.mxu3  ;;  %v7774_v57 = vpop.f32.mrf.mxu1 }
  0xd0   :  { %v7776_v58 = vpop.permute.xlu2 %515  ;;  %v7778_v59 = vpop.permute.xlu0 %450 }
  0xd1   :  { %11933 = vst [vmem:[#allocation26_spill] sm:$0xff] %v7776_v58  ;;  %v7780_v63 = vpop.permute.xlu1 %285 }
  0xd2   :  { %11934 = vst [vmem:[#allocation27_spill] sm:$0xff] %v7778_v59 }
  0xd6   :  { %v7785_v1 = vpop.f32.mrf.mxu2  ;;  %v7792_v7 = vpop.f32.mrf.mxu0 }
  0xd7   :  { %v7790_v6 = vpop.f32.mrf.mxu3  ;;  %v7794_v8 = vpop.f32.mrf.mxu1 }
  0xd8   :  { %v7797_v12 = vpop.permute.xlu2 %360  ;;  %v7801_v13 = vpop.permute.xlu0 %525 }
  0xd9   :  { %5757 = vmatmul.msk.bf16.gmra.mxu0 %vm733_vm0, %v6205_v2  ;;  %11935 = vst [vmem:[#allocation28_spill] sm:$0xff] %v7801_v13  ;;  %v7803_v14 = vpop.permute.xlu1 %530 }
  0xda   :  { %5789 = vmatmul.msk.bf16.gmra.mxu1 %vm733_vm0, %v6205_v2  ;;  %11936 = vst [vmem:[#allocation29_spill] sm:$0xff] %v7803_v14 }
  0xdb   :  { %5821 = vmatmul.msk.bf16.gmra.mxu2 %vm733_vm0, %v6205_v2 }
  0xdc   :  { %5853 = vmatmul.msk.bf16.gmra.mxu3 %vm733_vm0, %v6205_v2 }
  0xde   :  { %v1278_v18 = vpop.f32.mrf.mxu2  ;;  %v7806_v23 = vpop.f32.mrf.mxu0 }
  0xdf   :  { %v1447_v19 = vpop.f32.mrf.mxu3  ;;  %v7808_v24 = vpop.f32.mrf.mxu1 }
  0xe0   :  { %v7810_v28 = vpop.permute.xlu2 %265  ;;  %v7812_v32 = vpop.permute.xlu0 %370 }
  0xe1   :  { %v7814_v33 = vpop.permute.xlu1 %435  ;;  %v7817_v37 = vadd.f32 %v1278_v18, %v7810_v28  ;;  %v7820_v42 = vadd.f32 %v1447_v19, %v7810_v28 }
  0xe2   :  { %11937 = vst [vmem:[#allocation30_spill] sm:$0xff] %v7814_v33 }
  0xe6   :  { %v7822_v50 = vpop.f32.mrf.mxu2  ;;  %v945_v39 = vpop.f32.mrf.mxu0 }
  0xe7   :  { %v7827_v2 = vpop.f32.mrf.mxu3  ;;  %v1114_v25 = vpop.f32.mrf.mxu1 }
  0xe8   :  { %v7830_v9 = vpop.permute.xlu2 %510  ;;  %v276_v19 = vpop.permute.xlu0 %275 }
  0xe9   :  { %5758 = vmatmul.msk.bf16.gmra.mxu0 %vm733_vm0, %v6206_v0  ;;  %11938 = vst [vmem:[#allocation31_spill] sm:$0xff] %v7830_v9  ;;  %v281_v18 = vpop.permute.xlu1 %280  ;;  %v1115_v14 = vadd.f32 %v1114_v25, %v276_v19  ;;  %v946_v58 = vadd.f32 %v945_v39, %v276_v19 }
  0xea   :  { %5790 = vmatmul.msk.bf16.gmra.mxu1 %vm733_vm0, %v6206_v0 }
  0xeb   :  { %5822 = vmatmul.msk.bf16.gmra.mxu2 %vm733_vm0, %v6206_v0 }
  0xec   :  { %5854 = vmatmul.msk.bf16.gmra.mxu3 %vm733_vm0, %v6206_v0 }
  0xee   :  { %v1283_v40 = vpop.f32.mrf.mxu2  ;;  %v947_v17 = vpop.f32.mrf.mxu0 }
  0xef   :  { %v1284_v31 = vadd.f32 %v1283_v40, %v276_v19  ;;  %v1452_v16 = vpop.f32.mrf.mxu3  ;;  %v948_v9 = vadd.f32 %v947_v17, %v281_v18  ;;  %v1116_v36 = vpop.f32.mrf.mxu1  ;;  %v2450_v40 = vld [vmem:[%s11506_s4] sm:$0xff] }
  0xf0   :  { %v1453_v13 = vadd.f32 %v1452_v16, %v276_v19  ;;  %v1117_v35 = vadd.f32 %v1116_v36, %v281_v18  ;;  %v7840_v61 = vpop.permute.xlu2 %415  ;;  %v7846_v3 = vpop.permute.xlu0 %520  ;;  %2492 = vperm.xlu1 %6311, %v2450_v40  }
  0xf1   :  { %v7838_v22 = vpack.c.bf16 %v948_v9, %v946_v58  ;;  %11939 = vst [vmem:[#allocation32_spill] sm:$0xff] %v7840_v61  ;;  %v7844_v55 = vpop.permute.xlu1 %355  ;;  %v6207_v9 = vld [vmem:[%s11503_s1 + $0x58] sm:$0xff] }
  0xf2   :  { %v7842_v0 = vpack.c.bf16 %v1117_v35, %v1115_v14  ;;  %11940 = vst [vmem:[#allocation33_spill] sm:$0xff] %v7846_v3 }
  0xf6   :  { %v1285_v16 = vpop.f32.mrf.mxu2  ;;  %v950_v35 = vpop.f32.mrf.mxu0 }
  0xf7   :  { %v1286_v17 = vadd.f32 %v1285_v16, %v281_v18  ;;  %v1454_v25 = vpop.f32.mrf.mxu3  ;;  %v1119_v39 = vpop.f32.mrf.mxu1 }
  0xf8   :  { %v1455_v36 = vadd.f32 %v1454_v25, %v281_v18  ;;  %v1120_v14 = vadd.f32 %v1119_v39, %v7780_v63  ;;  %v7863_v40 = vpop.permute.xlu2 %260  ;;  %v7869_v16 = vpop.permute.xlu0 %425 }
  0xf9   :  { %v7857_v58 = vpack.c.bf16 %v1286_v17, %v1284_v31  ;;  %5759 = vmatmul.msk.bf16.gmra.mxu0 %vm733_vm0, %v6207_v9  ;;  %v7867_v45 = vpop.permute.xlu1 %430  ;;  %11944 = vst [vmem:[#allocation37_spill] sm:$0xff] %v7869_v16  ;;  %v2453_v31 = vld [vmem:[%s11506_s4 + $0x18] sm:$0xff]  ;;  %v7881_v18 = vadd.f32 %v7790_v6, %v7863_v40  ;;  %v2458_v17 = vld [vmem:[%s11506_s4 + $0x40] sm:$0xff] }
  0xfa   :  { %v7860_v19 = vpack.c.bf16 %v1455_v36, %v1453_v13  ;;  %5791 = vmatmul.msk.bf16.gmra.mxu1 %vm733_vm0, %v6207_v9  ;;  %11943 = vst [vmem:[#allocation36_spill] sm:$0xff] %v7867_v45  ;;  %v7877_v13 = vadd.f32 %v7785_v1, %v7863_v40  ;;  %2507 = vperm.xlu1 %6311, %v2453_v31  }
  0xfb   :  { %11941 = vst [vmem:[#allocation34_spill] sm:$0xff] %v7857_v58  ;;  %5823 = vmatmul.msk.bf16.gmra.mxu2 %vm733_vm0, %v6207_v9  ;;  %2532 = vperm.xlu0 %6310, %v2458_v17   ;;  %v1110_v31 = vadd.f32 %v7794_v8, %v7810_v28 }
  0xfc   :  { %11942 = vst [vmem:[#allocation35_spill] sm:$0xff] %v7860_v19  ;;  %5855 = vmatmul.msk.bf16.gmra.mxu3 %vm733_vm0, %v6207_v9  ;;  %v951_v9 = vadd.f32 %v950_v35, %v7780_v63  ;;  %v2456_v35 = vld [vmem:[%s11506_s4 + $0x30] sm:$0xff] }
  0xfe   :  { %v1288_v25 = vpop.f32.mrf.mxu2  ;;  %v952_v19 = vpop.f32.mrf.mxu0 }
  0xff   :  { %v1289_v36 = vadd.f32 %v1288_v25, %v7780_v63  ;;  %v1457_v39 = vpop.f32.mrf.mxu3  ;;  %v953_v3 = vadd.f32 %v952_v19, %v7730_v34  ;;  %v1121_v49 = vpop.f32.mrf.mxu1 }
 0x100   :  { %v1458_v1 = vadd.f32 %v1457_v39, %v7780_v63  ;;  %v1122_v6 = vadd.f32 %v1121_v49, %v7730_v34  ;;  %v271_v25 = vpop.permute.xlu0 %270  ;;  %v941_v63 = vadd.f32 %v7792_v7, %v7810_v28  ;;  %v6208_v7 = vld [vmem:[%s11503_s1 + $0x60] sm:$0xff] }
 0x101   :  { %v7893_v10 = vpack.c.bf16 %v953_v3, %v951_v9  ;;  %v7897_v17 = vpop.permute.xlu1 %505  ;;  %v943_v19 = vadd.f32 %v7806_v23, %v271_v25  ;;  %v1112_v49 = vadd.f32 %v7808_v24, %v271_v25  ;;  %v1281_v3 = vadd.f32 %v7822_v50, %v271_v25 }
 0x102   :  { %v7895_v58 = vpack.c.bf16 %v1122_v6, %v1120_v14  ;;  %11945 = vst [vmem:[#allocation38_spill] sm:$0xff] %v7897_v17  ;;  %2522 = vperm.xlu1 %6311, %v2456_v35   ;;  %v1450_v8 = vadd.f32 %v7827_v2, %v271_v25  ;;  %v2461_v14 = vld [vmem:[%s11506_s4 + $0x58] sm:$0xff] }
 0x103   :  { %v7911_v39 = vpack.c.bf16 %v943_v19, %v941_v63  ;;  %v7913_v9 = vpack.c.bf16 %v1112_v49, %v1110_v31  ;;  %2547 = vperm.xlu0 %6310, %v2461_v14   ;;  %v7919_v23 = vpack.c.bf16 %v1281_v3, %v7817_v37 }
 0x104   :  { %v7922_v24 = vpack.c.bf16 %v1450_v8, %v7820_v42  ;;  %v2459_v42 = vld [vmem:[%s11506_s4 + $0x48] sm:$0xff]  ;;  %v2462_v8 = vld [vmem:[%s11506_s4 + $0x60] sm:$0xff] }
 0x105   :  { %11946 = vst [vmem:[#allocation39_spill] sm:$0xff] %v7919_v23 }
 0x106   :  { %v1290_v6 = vpop.f32.mrf.mxu2  ;;  %11947 = vst [vmem:[#allocation40_spill] sm:$0xff] %v7922_v24  ;;  %v7925_v2 = vpop.f32.mrf.mxu0 }
 0x107   :  { %v1291_v28 = vadd.f32 %v1290_v6, %v7730_v34  ;;  %v1459_v50 = vpop.f32.mrf.mxu3  ;;  %v7928_v25 = vpop.f32.mrf.mxu1 }
 0x108   :  { %v1460_v31 = vadd.f32 %v1459_v50, %v7730_v34  ;;  %v2451_v34 = vld [vmem:[%s11506_s4 + $0x8] sm:$0xff] }
 0x109   :  { %v7930_v35 = vpack.c.bf16 %v1291_v28, %v1289_v36  ;;  %5760 = vmatmul.msk.bf16.gmra.mxu0 %vm733_vm0, %v6208_v7  ;;  %v7937_v37 = vpop.permute.xlu1 %350  ;;  %v2464_v36 = vld [vmem:[%s11506_s4 + $0x70] sm:$0xff]  ;;  %2497 = vperm.xlu2 %6312, %v2451_v34   ;;  %v2454_v28 = vld [vmem:[%s11506_s4 + $0x20] sm:$0xff]  ;;  %v2467_v50 = vld [vmem:[%s11506_s4 + $0x88] sm:$0xff] }
 0x10a   :  { %v7932_v63 = vpack.c.bf16 %v1460_v31, %v1458_v1  ;;  %5792 = vmatmul.msk.bf16.gmra.mxu1 %vm733_vm0, %v6208_v7  ;;  %2537 = vperm.xlu1 %6311, %v2459_v42  }
 0x10b   :  { %11948 = vst [vmem:[#allocation41_spill] sm:$0xff] %v7930_v35  ;;  %5824 = vmatmul.msk.bf16.gmra.mxu2 %vm733_vm0, %v6208_v7  ;;  %2562 = vperm.xlu0 %6310, %v2464_v36  }
 0x10c   :  { %11949 = vst [vmem:[#allocation42_spill] sm:$0xff] %v7932_v63  ;;  %5856 = vmatmul.msk.bf16.gmra.mxu3 %vm733_vm0, %v6208_v7 }
 0x10e   :  { %v1293_v1 = vpop.f32.mrf.mxu2  ;;  %v7949_v49 = vpop.f32.mrf.mxu0 }
 0x10f   :  { %v1462_v19 = vpop.f32.mrf.mxu3  ;;  %v7951_v3 = vpop.f32.mrf.mxu1  ;;  %v1294_v31 = vadd.f32 %v1293_v1, %v7692_v20 }
 0x110   :  { %v1463_v42 = vadd.f32 %v1462_v19, %v7692_v20 }
 0x111   :  { %v7956_v14 = vpop.permute.xlu1 %255  ;;  %2512 = vperm.xlu2 %6312, %v2454_v28  }
 0x112   :  { %2552 = vperm.xlu1 %6311, %v2462_v8   ;;  %v1274_v6 = vadd.f32 %v7768_v51, %v7956_v14  ;;  %v1443_v7 = vadd.f32 %v7770_v52, %v7956_v14  ;;  %v6209_v51 = vld [vmem:[%s11503_s1 + $0x68] sm:$0xff] }
 0x113   :  { %2577 = vperm.xlu0 %6310, %v2467_v50  }
 0x114   :  { %v7974_v52 = vpack.c.bf16 %v7877_v13, %v1274_v6  ;;  %v7977_v36 = vpack.c.bf16 %v7881_v18, %v1443_v7  ;;  %v2465_v13 = vld [vmem:[%s11506_s4 + $0x78] sm:$0xff] }
 0x115   :  { %v2457_v18 = vld [vmem:[%s11506_s4 + $0x38] sm:$0xff] }
 0x116   :  { %v1295_v34 = vpop.f32.mrf.mxu2  ;;  %11950 = vst [vmem:[#allocation43_spill] sm:$0xff] %v7974_v52  ;;  %v7980_v24 = vpop.f32.mrf.mxu0 }
 0x117   :  { %11951 = vst [vmem:[#allocation44_spill] sm:$0xff] %v7977_v36  ;;  %v1296_v8 = vadd.f32 %v1295_v34, %v7746_v41  ;;  %v1464_v63 = vpop.f32.mrf.mxu3  ;;  %v7983_v19 = vpop.f32.mrf.mxu1  ;;  %v2460_v34 = vld [vmem:[%s11506_s4 + $0x50] sm:$0xff]  ;;  %v961_v33 = vadd.f32 %v7980_v24, %v7711_v27 }
 0x118   :  { %v1465_v1 = vadd.f32 %v1464_v63, %v7746_v41  ;;  %v2470_v63 = vld [vmem:[%s11506_s4 + $0xa0] sm:$0xff]  ;;  %v2472_v24 = vld [vmem:[%s11506_s4 + $0xb0] sm:$0xff] }
 0x119   :  { %v7985_v17 = vpack.c.bf16 %v1296_v8, %v1294_v31  ;;  %5761 = vmatmul.msk.bf16.gmra.mxu0 %vm733_vm0, %v6209_v51  ;;  %2527 = vperm.xlu2 %6312, %v2457_v18   ;;  %v2468_v31 = vld [vmem:[%s11506_s4 + $0x90] sm:$0xff] }
 0x11a   :  { %v7987_v35 = vpack.c.bf16 %v1465_v1, %v1463_v42  ;;  %5793 = vmatmul.msk.bf16.gmra.mxu1 %vm733_vm0, %v6209_v51  ;;  %2567 = vperm.xlu1 %6311, %v2465_v13   ;;  %v6210_v13 = vld [vmem:[%s11503_s1 + $0x70] sm:$0xff] }
 0x11b   :  { %11952 = vst [vmem:[#allocation45_spill] sm:$0xff] %v7985_v17  ;;  %5825 = vmatmul.msk.bf16.gmra.mxu2 %vm733_vm0, %v6209_v51  ;;  %2592 = vperm.xlu0 %6310, %v2470_v63  }
 0x11c   :  { %11953 = vst [vmem:[#allocation46_spill] sm:$0xff] %v7987_v35  ;;  %5857 = vmatmul.msk.bf16.gmra.mxu3 %vm733_vm0, %v6209_v51  ;;  %v2473_v51 = vld [vmem:[%s11506_s4 + $0xb8] sm:$0xff] }
 0x11e   :  { %v1298_v6 = vpop.f32.mrf.mxu2  ;;  %v8002_v28 = vpop.f32.mrf.mxu0 }
 0x11f   :  { %v1467_v7 = vpop.f32.mrf.mxu3  ;;  %v8004_v50 = vpop.f32.mrf.mxu1  ;;  %v1299_v42 = vadd.f32 %v1298_v6, %v7711_v27 }
 0x120   :  { %v1468_v8 = vadd.f32 %v1467_v7, %v7711_v27  ;;  %v2471_v7 = vld [vmem:[%s11506_s4 + $0xa8] sm:$0xff] }
 0x121   :  { %2542 = vperm.xlu2 %6312, %v2460_v34   ;;  %v2476_v34 = vld [vmem:[%s11506_s4 + $0xd0] sm:$0xff] }
 0x122   :  { %2582 = vperm.xlu1 %6311, %v2468_v31  }
 0x123   :  { %2607 = vperm.xlu0 %6310, %v2473_v51  }
 0x126   :  { %v1300_v1 = vpop.f32.mrf.mxu2  ;;  %v965_v6 = vpop.f32.mrf.mxu0 }
 0x127   :  { %v1301_v18 = vadd.f32 %v1300_v1, %v7709_v26  ;;  %v1469_v63 = vpop.f32.mrf.mxu3  ;;  %v8022_v36 = vpop.f32.mrf.mxu1 }
 0x128   :  { %v1470_v31 = vadd.f32 %v1469_v63, %v7709_v26 }
 0x129   :  { %v8024_v35 = vpack.c.bf16 %v1301_v18, %v1299_v42  ;;  %5762 = vmatmul.msk.bf16.gmra.mxu0 %vm733_vm0, %v6210_v13  ;;  %v2463_v42 = vld [vmem:[%s11506_s4 + $0x68] sm:$0xff] }
 0x12a   :  { %v8026_v17 = vpack.c.bf16 %v1470_v31, %v1468_v8  ;;  %5794 = vmatmul.msk.bf16.gmra.mxu1 %vm733_vm0, %v6210_v13  ;;  %2597 = vperm.xlu1 %6311, %v2471_v7   ;;  %v8041_v8 = vpop.permute.xlu0 %345  ;;  %v2466_v7 = vld [vmem:[%s11506_s4 + $0x80] sm:$0xff] }
 0x12b   :  { %11954 = vst [vmem:[#allocation47_spill] sm:$0xff] %v8024_v35  ;;  %5826 = vmatmul.msk.bf16.gmra.mxu2 %vm733_vm0, %v6210_v13  ;;  %2557 = vperm.xlu2 %6312, %v2463_v42   ;;  %v2479_v42 = vld [vmem:[%s11506_s4 + $0xe8] sm:$0xff]  ;;  %v6211_v35 = vld [vmem:[%s11503_s1 + $0x78] sm:$0xff] }
 0x12c   :  { %11955 = vst [vmem:[#allocation48_spill] sm:$0xff] %v8026_v17  ;;  %5858 = vmatmul.msk.bf16.gmra.mxu3 %vm733_vm0, %v6210_v13  ;;  %2622 = vperm.xlu0 %6310, %v2476_v34   ;;  %v2474_v13 = vld [vmem:[%s11506_s4 + $0xc0] sm:$0xff] }
 0x12e   :  { %v1303_v51 = vpop.f32.mrf.mxu2  ;;  %v967_v18 = vpop.f32.mrf.mxu0 }
 0x12f   :  { %v1472_v1 = vpop.f32.mrf.mxu3  ;;  %v8043_v63 = vpop.f32.mrf.mxu1  ;;  %v1304_v31 = vadd.f32 %v1303_v51, %v7665_v11 }
 0x130   :  { %v1473_v34 = vadd.f32 %v1472_v1, %v7665_v11 }
 0x132   :  { %2612 = vperm.xlu1 %6311, %v2474_v13   ;;  %v8065_v46 = vpop.permute.xlu0 %420 }
 0x133   :  { %2572 = vperm.xlu2 %6312, %v2466_v7   ;;  %11957 = vst [vmem:[#allocation50_spill] sm:$0xff] %v8065_v46  ;;  %v968_v7 = vadd.f32 %v967_v18, %v7606_v54  ;;  %v963_v18 = vadd.f32 %v8002_v28, %v7709_v26  ;;  %v2480_v28 = vld [vmem:[%s11506_s4 + $0xf0] sm:$0xff] }
 0x134   :  { %2637 = vperm.xlu0 %6310, %v2479_v42   ;;  %v966_v42 = vadd.f32 %v965_v6, %v7665_v11  ;;  %v958_v6 = vadd.f32 %v7949_v49, %v7746_v41  ;;  %v2485_v49 = vld [vmem:[%s11506_s4 + $0x118] sm:$0xff] }
 0x136   :  { %v1305_v17 = vpop.f32.mrf.mxu2  ;;  %v970_v52 = vpop.f32.mrf.mxu0 }
 0x137   :  { %v1306_v13 = vadd.f32 %v1305_v17, %v7606_v54  ;;  %v1474_v51 = vpop.f32.mrf.mxu3  ;;  %v8061_v59 = vpop.f32.mrf.mxu1  ;;  %v2477_v17 = vld [vmem:[%s11506_s4 + $0xd8] sm:$0xff] }
 0x138   :  { %v1475_v23 = vadd.f32 %v1474_v51, %v7606_v54 }
 0x139   :  { %v8063_v29 = vpack.c.bf16 %v1306_v13, %v1304_v31  ;;  %5763 = vmatmul.msk.bf16.gmra.mxu0 %vm733_vm0, %v6211_v35  ;;  %v2482_v31 = vld [vmem:[%s11506_s4 + $0x100] sm:$0xff] }
 0x13a   :  { %v8067_v1 = vpack.c.bf16 %v1475_v23, %v1473_v34  ;;  %5795 = vmatmul.msk.bf16.gmra.mxu1 %vm733_vm0, %v6211_v35  ;;  %2627 = vperm.xlu1 %6311, %v2477_v17   ;;  %v2469_v23 = vld [vmem:[%s11506_s4 + $0x98] sm:$0xff]  ;;  %v971_v17 = vadd.f32 %v970_v52, %v7612_v56 }
 0x13b   :  { %11956 = vst [vmem:[#allocation49_spill] sm:$0xff] %v8063_v29  ;;  %5827 = vmatmul.msk.bf16.gmra.mxu2 %vm733_vm0, %v6211_v35  ;;  %2587 = vperm.xlu2 %6312, %v2469_v23   ;;  %v8094_v23 = vpop.permute.xlu0 %495 }
 0x13c   :  { %11958 = vst [vmem:[#allocation51_spill] sm:$0xff] %v8067_v1  ;;  %5859 = vmatmul.msk.bf16.gmra.mxu3 %vm733_vm0, %v6211_v35  ;;  %2652 = vperm.xlu0 %6310, %v2482_v31   ;;  %v1626_v35 = vpack.c.bf16 %v968_v7, %v966_v42  ;;  %v1622_v7 = vpack.c.bf16 %v963_v18, %v961_v33 }
 0x13d   :  { %11959 = vst [vmem:[#allocation52_spill] sm:$0xff] %v8094_v23 }
 0x13e   :  { %v1308_v34 = vpop.f32.mrf.mxu2  ;;  %v972_v51 = vpop.f32.mrf.mxu0  ;;  %v1778_v31 = vunpack.c.l.bf16 %v1626_v35  ;;  %v1770_v23 = vunpack.c.l.bf16 %v1622_v7 }
 0x13f   :  { %v1477_v13 = vpop.f32.mrf.mxu3  ;;  %v973_v1 = vadd.f32 %v972_v51, %v7628_v62  ;;  %v8088_v29 = vpop.f32.mrf.mxu1  ;;  %v1782_v51 = vunpack.c.h.bf16 %v1626_v35  ;;  %v1309_v16 = vadd.f32 %v1308_v34, %v7612_v56 }
 0x140   :  { %v1478_v33 = vadd.f32 %v1477_v13, %v7612_v56  ;;  %v1774_v13 = vunpack.c.h.bf16 %v1622_v7 }
 0x141   :  { %v1630_v45 = vpack.c.bf16 %v973_v1, %v971_v17  ;;  %v956_v1 = vadd.f32 %v7925_v2, %v7692_v20 }
 0x142   :  { %2642 = vperm.xlu1 %6311, %v2480_v28  }
 0x143   :  { %v1786_v52 = vunpack.c.l.bf16 %v1630_v45  ;;  %v1790_v42 = vunpack.c.h.bf16 %v1630_v45  ;;  %v6212_v45 = vld [vmem:[%s11503_s1 + $0x80] sm:$0xff]  ;;  %2602 = vperm.xlu2 %6312, %v2472_v24   ;;  %v1618_v28 = vpack.c.bf16 %v958_v6, %v956_v1  ;;  %v2483_v6 = vld [vmem:[%s11506_s4 + $0x108] sm:$0xff]  ;;  %v341_v24 = vpop.permute.xlu0 %340  ;;  %v2488_v1 = vld [vmem:[%s11506_s4 + $0x130] sm:$0xff] }
 0x144   :  { %2667 = vperm.xlu0 %6310, %v2485_v49   ;;  %v2475_v49 = vld [vmem:[%s11506_s4 + $0xc8] sm:$0xff] }
 0x145   :  { %6313 = vtanh.f32 %v1786_v52  ;;  %v1766_v7 = vunpack.c.h.bf16 %v1618_v28 }
 0x146   :  { %v1310_v18 = vpop.f32.mrf.mxu2  ;;  %6315 = vtanh.f32 %v1790_v42  ;;  %v975_v17 = vpop.f32.mrf.mxu0  ;;  %v1762_v42 = vunpack.c.l.bf16 %v1618_v28 }
 0x147   :  { %v1311_v34 = vadd.f32 %v1310_v18, %v7628_v62  ;;  %v1479_v35 = vpop.f32.mrf.mxu3  ;;  %6317 = vtanh.f32 %v1778_v31  ;;  %v1144_v46 = vpop.f32.mrf.mxu1 }
 0x148   :  { %v1480_v2 = vadd.f32 %v1479_v35, %v7628_v62  ;;  %6319 = vtanh.f32 %v1782_v51  ;;  %v336_v51 = vpop.permute.xlu2 %335  ;;  %v1758_v35 = vunpack.c.h.bf16 %v7893_v10 }
 0x149   :  { %v8114_v52 = vpack.c.bf16 %v1311_v34, %v1309_v16  ;;  %5764 = vmatmul.msk.bf16.gmra.mxu0 %vm733_vm0, %v6212_v45  ;;  %6321 = vtanh.f32 %v1770_v23  ;;  %v1145_v28 = vadd.f32 %v1144_v46, %v336_v51 }
 0x14a   :  { %v8116_v61 = vpack.c.bf16 %v1480_v2, %v1478_v33  ;;  %5796 = vmatmul.msk.bf16.gmra.mxu1 %vm733_vm0, %v6212_v45  ;;  %2657 = vperm.xlu1 %6311, %v2483_v6   ;;  %6323 = vtanh.f32 %v1774_v13 }
 0x14b   :  { %11960 = vst [vmem:[#allocation53_spill] sm:$0xff] %v8114_v52  ;;  %5828 = vmatmul.msk.bf16.gmra.mxu2 %vm733_vm0, %v6212_v45  ;;  %v6314_v31 = vpop.eup %6313  ;;  %2617 = vperm.xlu2 %6312, %v2475_v49   ;;  %6325 = vtanh.f32 %v1762_v42 }
 0x14c   :  { %11961 = vst [vmem:[#allocation54_spill] sm:$0xff] %v8116_v61  ;;  %5860 = vmatmul.msk.bf16.gmra.mxu3 %vm733_vm0, %v6212_v45  ;;  %v6316_v16 = vpop.eup %6315  ;;  %2682 = vperm.xlu0 %6310, %v2488_v1   ;;  %v1754_v45 = vunpack.c.l.bf16 %v7893_v10  ;;  %v976_v61 = vadd.f32 %v975_v17, %v336_v51  ;;  %6327 = vtanh.f32 %v1766_v7  ;;  %v1746_v1 = vunpack.c.l.bf16 %v7838_v22 }
 0x14d   :  { %v6318_v33 = vpop.eup %6317  ;;  %v2270_v34 = vpack.c.bf16 %v6316_v16, %v6314_v31  ;;  %v936_v31 = vadd.f32 %v7751_v43, %v7956_v14  ;;  %v938_v10 = vadd.f32 %v7772_v53, %v7863_v40  ;;  %v1140_v17 = vadd.f32 %v8061_v59, %v7612_v56  ;;  %v2478_v56 = vld [vmem:[%s11506_s4 + $0xe0] sm:$0xff] }
 0x14e   :  { %v1313_v18 = vpop.f32.mrf.mxu2  ;;  %v6320_v23 = vpop.eup %6319  ;;  %6329 = vtanh.f32 %v1754_v45  ;;  %v1142_v7 = vadd.f32 %v8088_v29, %v7628_v62  ;;  %v1750_v43 = vunpack.c.h.bf16 %v7838_v22  ;;  %v4995_v62 = vld [vmem:[%s11507_s5 + $0x8] sm:$0xff]  ;;  %v1135_v29 = vadd.f32 %v8022_v36, %v7665_v11 }
 0x14f   :  { %v1314_v2 = vadd.f32 %v1313_v18, %v336_v51  ;;  %v1482_v13 = vpop.f32.mrf.mxu3  ;;  %v977_v6 = vpop.f32.mrf.mxu0  ;;  %3090 = vmatpush.bf16.msrb.mxu0 %v2270_v34  ;;  %v2266_v18 = vpack.c.bf16 %v6320_v23, %v6318_v33  ;;  %6331 = vtanh.f32 %v1758_v35  ;;  %v1137_v22 = vadd.f32 %v8043_v63, %v7606_v54  ;;  %v6213_v33 = vld [vmem:[%s11503_s1 + $0x88] sm:$0xff] }
 0x150   :  { %v1483_v52 = vadd.f32 %v1482_v13, %v336_v51  ;;  %v978_v5 = vadd.f32 %v977_v6, %v341_v24  ;;  %v1146_v4 = vpop.f32.mrf.mxu1  ;;  %v6322_v49 = vpop.eup %6321  ;;  %6333 = vtanh.f32 %v1746_v1  ;;  %v1631_v23 = vpack.c.bf16 %v1142_v7, %v1140_v17  ;;  %v4998_v17 = vld [vmem:[%s11507_s5 + $0x20] sm:$0xff] }
 0x151   :  { %v1147_v16 = vadd.f32 %v1146_v4, %v341_v24  ;;  %v6324_v42 = vpop.eup %6323  ;;  %v2486_v4 = vld [vmem:[%s11506_s4 + $0x120] sm:$0xff]  ;;  %6335 = vtanh.f32 %v1750_v43  ;;  %v1738_v54 = vunpack.c.l.bf16 %v7911_v39  ;;  %v1130_v63 = vadd.f32 %v7983_v19, %v7711_v27  ;;  %v2489_v27 = vld [vmem:[%s11506_s4 + $0x138] sm:$0xff] }
 0x152   :  { %v8138_v46 = vpack.c.bf16 %v978_v5, %v976_v61  ;;  %2672 = vperm.xlu1 %6311, %v2486_v4   ;;  %v8150_v61 = vpack.c.bf16 %v938_v10, %v936_v31  ;;  %v6326_v5 = vpop.eup %6325  ;;  %v2262_v59 = vpack.c.bf16 %v6324_v42, %v6322_v49  ;;  %v1742_v31 = vunpack.c.h.bf16 %v7911_v39 }
 0x153   :  { %v8144_v51 = vpack.c.bf16 %v1147_v16, %v1145_v28  ;;  %3091 = vmatpush.bf16.msrb.mxu0 %v2266_v18  ;;  %2632 = vperm.xlu2 %6312, %v2478_v56   ;;  %v6328_v34 = vpop.eup %6327  ;;  %v1132_v1 = vadd.f32 %v8004_v50, %v7709_v26  ;;  %v1627_v10 = vpack.c.bf16 %v1137_v22, %v1135_v29  ;;  %v1787_v42 = vunpack.c.l.bf16 %v1631_v23 }
 0x154   :  { %5041 = vperm.xlu0 %6310, %v4995_v62   ;;  %v6330_v36 = vpop.eup %6329  ;;  %v1730_v16 = vunpack.c.l.bf16 %v8150_v61  ;;  %v2258_v18 = vpack.c.bf16 %v6328_v34, %v6326_v5  ;;  %v1791_v39 = vunpack.c.h.bf16 %v1631_v23  ;;  %6337 = vtanh.f32 %v1738_v54 }
 0x155   :  { %v6332_v49 = vpop.eup %6331  ;;  %v1125_v19 = vadd.f32 %v7928_v25, %v7692_v20  ;;  %6339 = vtanh.f32 %v1742_v31  ;;  %v1127_v4 = vadd.f32 %v7951_v3, %v7746_v41  ;;  %v1623_v43 = vpack.c.bf16 %v1132_v1, %v1130_v63  ;;  %v2484_v63 = vld [vmem:[%s11506_s4 + $0x110] sm:$0xff]  ;;  %v5001_v31 = vld [vmem:[%s11507_s5 + $0x38] sm:$0xff] }
 0x156   :  { %v1315_v53 = vpop.f32.mrf.mxu2  ;;  %v6334_v26 = vpop.eup %6333  ;;  %v2254_v50 = vpack.c.bf16 %v6332_v49, %v6330_v36  ;;  %v1779_v56 = vunpack.c.l.bf16 %v1627_v10  ;;  %6341 = vtanh.f32 %v1730_v16  ;;  %v1783_v25 = vunpack.c.h.bf16 %v1627_v10  ;;  %v6214_v10 = vld [vmem:[%s11503_s1 + $0x90] sm:$0xff] }
 0x157   :  { %v1316_v45 = vadd.f32 %v1315_v53, %v341_v24  ;;  %v1484_v35 = vpop.f32.mrf.mxu3  ;;  %v980_v28 = vpop.f32.mrf.mxu0  ;;  %3092 = vmatpush.bf16.msrb.mxu0 %v2262_v59  ;;  %6343 = vtanh.f32 %v1787_v42  ;;  %v1775_v54 = vunpack.c.h.bf16 %v1623_v43 }
 0x158   :  { %v1485_v13 = vadd.f32 %v1484_v35, %v341_v24  ;;  %v1149_v11 = vpop.f32.mrf.mxu1  ;;  %v6336_v7 = vpop.eup %6335  ;;  %6345 = vtanh.f32 %v1791_v39  ;;  %v981_v22 = vadd.f32 %v980_v28, %v8041_v8  ;;  %v1619_v35 = vpack.c.bf16 %v1127_v4, %v1125_v19 }
 0x159   :  { %v8168_v6 = vpack.c.bf16 %v1316_v45, %v1314_v2  ;;  %5765 = vmatmul.msk.bf16.gmra.mxu0 %vm733_vm0, %v6213_v33  ;;  %v2481_v2 = vld [vmem:[%s11506_s4 + $0xf8] sm:$0xff]  ;;  %v2250_v23 = vpack.c.bf16 %v6336_v7, %v6334_v26 }
 0x15a   :  { %v8174_v24 = vpack.c.bf16 %v1485_v13, %v1483_v52  ;;  %5797 = vmatmul.msk.bf16.gmra.mxu1 %vm733_vm0, %v6213_v33  ;;  %v1734_v52 = vunpack.c.h.bf16 %v8150_v61  ;;  %2687 = vperm.xlu1 %6311, %v2489_v27   ;;  %v1150_v61 = vadd.f32 %v1149_v11, %v8041_v8  ;;  %v1771_v13 = vunpack.c.l.bf16 %v1623_v43 }
 0x15b   :  { %5829 = vmatmul.msk.bf16.gmra.mxu2 %vm733_vm0, %v6213_v33  ;;  %3093 = vmatpush.bf16.msrb.mxu0 %v2258_v18  ;;  %v1763_v42 = vunpack.c.l.bf16 %v1619_v35  ;;  %v1767_v19 = vunpack.c.h.bf16 %v1619_v35 }
 0x15c   :  { %11962 = vst [vmem:[#allocation55_spill] sm:$0xff] %v8174_v24  ;;  %5861 = vmatmul.msk.bf16.gmra.mxu3 %vm733_vm0, %v6213_v33  ;;  %2647 = vperm.xlu2 %6312, %v2481_v2   ;;  %6347 = vtanh.f32 %v1734_v52  ;;  %v6338_v33 = vpop.eup %6337 }
 0x15d   :  { %5056 = vperm.xlu0 %6310, %v4998_v17   ;;  %v6340_v45 = vpop.eup %6339  ;;  %6349 = vtanh.f32 %v1779_v56 }
 0x15e   :  { %v1318_v20 = vpop.f32.mrf.mxu2  ;;  %v6342_v28 = vpop.eup %6341  ;;  %6351 = vtanh.f32 %v1783_v25  ;;  %v2246_v1 = vpack.c.bf16 %v6340_v45, %v6338_v33  ;;  %v1759_v25 = vunpack.c.h.bf16 %v7895_v58  ;;  %v1751_v33 = vunpack.c.h.bf16 %v7842_v0 }
 0x15f   :  { %v1319_v62 = vadd.f32 %v1318_v20, %v8041_v8  ;;  %v1487_v5 = vpop.f32.mrf.mxu3  ;;  %v982_v29 = vpop.f32.mrf.mxu0  ;;  %3094 = vmatpush.bf16.msrb.mxu0 %v2254_v50  ;;  %6353 = vtanh.f32 %v1771_v13  ;;  %v1755_v20 = vunpack.c.l.bf16 %v7895_v58  ;;  %v1747_v58 = vunpack.c.l.bf16 %v7842_v0 }
 0x160   :  { %v1488_v53 = vadd.f32 %v1487_v5, %v8041_v8  ;;  %v983_v41 = vadd.f32 %v982_v29, %v7937_v37  ;;  %v1151_v3 = vpop.f32.mrf.mxu1  ;;  %v4996_v8 = vld [vmem:[%s11507_s5 + $0x10] sm:$0xff]  ;;  %v6344_v36 = vpop.eup %6343  ;;  %6355 = vtanh.f32 %v1775_v54  ;;  %v1739_v0 = vunpack.c.l.bf16 %v7913_v9 }
 0x161   :  { %v1152_v59 = vadd.f32 %v1151_v3, %v7937_v37  ;;  %v6346_v16 = vpop.eup %6345  ;;  %6357 = vtanh.f32 %v1763_v42  ;;  %v5004_v5 = vld [vmem:[%s11507_s5 + $0x50] sm:$0xff] }
 0x162   :  { %v8200_v34 = vpack.c.bf16 %v983_v41, %v981_v22  ;;  %5046 = vperm.xlu1 %6311, %v4996_v8   ;;  %v6348_v18 = vpop.eup %6347  ;;  %v2271_v7 = vpack.c.bf16 %v6346_v16, %v6344_v36  ;;  %6359 = vtanh.f32 %v1767_v19  ;;  %v1107_v8 = vadd.f32 %v7774_v57, %v7863_v40 }
 0x163   :  { %v8202_v11 = vpack.c.bf16 %v1152_v59, %v1150_v61  ;;  %3095 = vmatpush.bf16.msrb.mxu0 %v2250_v23  ;;  %v6350_v2 = vpop.eup %6349  ;;  %v2242_v56 = vpack.c.bf16 %v6348_v18, %v6342_v28  ;;  %6361 = vtanh.f32 %v1755_v20  ;;  %v1105_v28 = vadd.f32 %v7753_v44, %v7956_v14 }
 0x164   :  { %2662 = vperm.xlu2 %6312, %v2484_v63   ;;  %v6352_v4 = vpop.eup %6351  ;;  %6363 = vtanh.f32 %v1759_v25  ;;  %v1743_v57 = vunpack.c.h.bf16 %v7913_v9  ;;  %v6215_v9 = vld [vmem:[%s11503_s1 + $0x98] sm:$0xff] }
 0x165   :  { %5071 = vperm.xlu0 %6310, %v5001_v31   ;;  %v6354_v61 = vpop.eup %6353  ;;  %v2267_v29 = vpack.c.bf16 %v6352_v4, %v6350_v2  ;;  %6365 = vtanh.f32 %v1747_v58  ;;  %v1603_v40 = vpack.c.bf16 %v1107_v8, %v1105_v28 }
 0x166   :  { %v1320_v49 = vpop.f32.mrf.mxu2  ;;  %v6356_v22 = vpop.eup %6355  ;;  %6367 = vtanh.f32 %v1751_v33 }
 0x167   :  { %v1321_v27 = vadd.f32 %v1320_v49, %v7937_v37  ;;  %v1489_v39 = vpop.f32.mrf.mxu3  ;;  %v985_v26 = vpop.f32.mrf.mxu0  ;;  %3096 = vmatpush.bf16.msrb.mxu0 %v2246_v1  ;;  %v2263_v36 = vpack.c.bf16 %v6356_v22, %v6354_v61  ;;  %v5002_v49 = vld [vmem:[%s11507_s5 + $0x40] sm:$0xff]  ;;  %6369 = vtanh.f32 %v1739_v0  ;;  %v1731_v4 = vunpack.c.l.bf16 %v1603_v40  ;;  %v5000_v0 = vld [vmem:[%s11507_s5 + $0x30] sm:$0xff] }
 0x168   :  { %v1490_v50 = vadd.f32 %v1489_v39, %v7937_v37  ;;  %v1154_v52 = vpop.f32.mrf.mxu1  ;;  %v4999_v37 = vld [vmem:[%s11507_s5 + $0x28] sm:$0xff]  ;;  %v986_v23 = vadd.f32 %v985_v26, %v7844_v55  ;;  %v6358_v13 = vpop.eup %6357  ;;  %v4994_v1 = vld [vmem:[%s11507_s5] sm:$0xff]  ;;  %6371 = vtanh.f32 %v1743_v57 }
 0x169   :  { %v8218_v17 = vpack.c.bf16 %v1321_v27, %v1319_v62  ;;  %5766 = vmatmul.msk.bf16.gmra.mxu0 %vm733_vm0, %v6214_v10  ;;  %v2487_v62 = vld [vmem:[%s11506_s4 + $0x128] sm:$0xff]  ;;  %v1155_v41 = vadd.f32 %v1154_v52, %v7844_v55  ;;  %v6360_v63 = vpop.eup %6359  ;;  %6373 = vtanh.f32 %v1731_v4 }
 0x16a   :  { %v8220_v43 = vpack.c.bf16 %v1490_v50, %v1488_v53  ;;  %5798 = vmatmul.msk.bf16.gmra.mxu1 %vm733_vm0, %v6214_v10  ;;  %5061 = vperm.xlu1 %6311, %v4999_v37   ;;  %v6362_v44 = vpop.eup %6361  ;;  %v2259_v18 = vpack.c.bf16 %v6360_v63, %v6358_v13  ;;  %v1735_v37 = vunpack.c.h.bf16 %v1603_v40  ;;  %v6216_v40 = vld [vmem:[%s11503_s1 + $0xa0] sm:$0xff] }
 0x16b   :  { %5830 = vmatmul.msk.bf16.gmra.mxu2 %vm733_vm0, %v6214_v10  ;;  %3097 = vmatpush.bf16.msrb.mxu0 %v2242_v56  ;;  %v6364_v42 = vpop.eup %6363 }
 0x16c   :  { %11963 = vst [vmem:[#allocation56_spill] sm:$0xff] %v8220_v43  ;;  %5862 = vmatmul.msk.bf16.gmra.mxu3 %vm733_vm0, %v6214_v10  ;;  %2677 = vperm.xlu2 %6312, %v2487_v62   ;;  %v5007_v10 = vld [vmem:[%s11507_s5 + $0x68] sm:$0xff]  ;;  %v4997_v62 = vld [vmem:[%s11507_s5 + $0x18] sm:$0xff]  ;;  %6375 = vtanh.f32 %v1735_v37 }
 0x16d   :  { %5086 = vperm.xlu0 %6310, %v5004_v5   ;;  %v5010_v5 = vld [vmem:[%s11507_s5 + $0x80] sm:$0xff] }
 0x16e   :  { %v1323_v53 = vpop.f32.mrf.mxu2 }
 0x16f   :  { %3526 = vmatpush.bf16.msra.mxu0 %v2271_v7  ;;  %v1492_v3 = vpop.f32.mrf.mxu3  ;;  %v987_v59 = vpop.f32.mrf.mxu0  ;;  %v1324_v14 = vadd.f32 %v1323_v53, %v7844_v55 }
 0x170   :  { %v988_v45 = vadd.f32 %v987_v59, %v7797_v12  ;;  %v1156_v35 = vpop.f32.mrf.mxu1  ;;  %v1493_v27 = vadd.f32 %v1492_v3, %v7844_v55  ;;  %v6366_v7 = vpop.eup %6365  ;;  %v2255_v55 = vpack.c.bf16 %v6364_v42, %v6362_v44 }
 0x171   :  { %v1157_v54 = vadd.f32 %v1156_v35, %v7797_v12  ;;  %v6368_v20 = vpop.eup %6367 }
 0x172   :  { %v8247_v31 = vpack.c.bf16 %v988_v45, %v986_v23  ;;  %5076 = vperm.xlu1 %6311, %v5002_v49   ;;  %v6370_v61 = vpop.eup %6369  ;;  %v5013_v49 = vld [vmem:[%s11507_s5 + $0x98] sm:$0xff] }
 0x173   :  { %3527 = vmatpush.bf16.msra.mxu0 %v2267_v29  ;;  %v8250_v16 = vpack.c.bf16 %v1157_v54, %v1155_v41  ;;  %v2251_v29 = vpack.c.bf16 %v6368_v20, %v6366_v7  ;;  %v6372_v22 = vpop.eup %6371  ;;  %v5008_v54 = vld [vmem:[%s11507_s5 + $0x70] sm:$0xff]  ;;  %v5014_v7 = vld [vmem:[%s11507_s5 + $0xa0] sm:$0xff]  ;;  %v5019_v20 = vld [vmem:[%s11507_s5 + $0xc8] sm:$0xff] }
 0x174   :  { %5036 = vperm.xlu2 %6312, %v4994_v1   ;;  %v2247_v35 = vpack.c.bf16 %v6372_v22, %v6370_v61  ;;  %v6374_v8 = vpop.eup %6373  ;;  %v6217_v61 = vld [vmem:[%s11503_s1 + $0xa8] sm:$0xff] }
 0x175   :  { %5101 = vperm.xlu0 %6310, %v5007_v10  }
 0x176   :  { %v1325_v39 = vpop.f32.mrf.mxu2 }
 0x177   :  { %3528 = vmatpush.bf16.msra.mxu0 %v2263_v36  ;;  %v1326_v26 = vadd.f32 %v1325_v39, %v7797_v12  ;;  %v1494_v19 = vpop.f32.mrf.mxu3  ;;  %v990_v50 = vpop.f32.mrf.mxu0 }
 0x178   :  { %v1495_v52 = vadd.f32 %v1494_v19, %v7797_v12  ;;  %v1159_v2 = vpop.f32.mrf.mxu1  ;;  %v5005_v12 = vld [vmem:[%s11507_s5 + $0x58] sm:$0xff]  ;;  %v991_v59 = vadd.f32 %v990_v50, %v7742_v38  ;;  %v6376_v36 = vpop.eup %6375 }
 0x179   :  { %v8269_v56 = vpack.c.bf16 %v1326_v26, %v1324_v14  ;;  %5767 = vmatmul.msk.bf16.gmra.mxu0 %vm733_vm0, %v6215_v9  ;;  %v1160_v58 = vadd.f32 %v1159_v2, %v7742_v38  ;;  %v5016_v26 = vld [vmem:[%s11507_s5 + $0xb0] sm:$0xff] }
 0x17a   :  { %v8271_v25 = vpack.c.bf16 %v1495_v52, %v1493_v27  ;;  %5799 = vmatmul.msk.bf16.gmra.mxu1 %vm733_vm0, %v6215_v9  ;;  %5091 = vperm.xlu1 %6311, %v5005_v12  }
 0x17b   :  { %3529 = vmatpush.bf16.msra.mxu0 %v2259_v18  ;;  %5831 = vmatmul.msk.bf16.gmra.mxu2 %vm733_vm0, %v6215_v9  ;;  %v2243_v18 = vpack.c.bf16 %v6376_v36, %v6374_v8  ;;  %v1816_v43 = vunpack.c.h.bf16 %v8269_v56 }
 0x17c   :  { %11964 = vst [vmem:[#allocation57_spill] sm:$0xff] %v8271_v25  ;;  %5863 = vmatmul.msk.bf16.gmra.mxu3 %vm733_vm0, %v6215_v9  ;;  %5051 = vperm.xlu2 %6312, %v4997_v62   ;;  %v5011_v9 = vld [vmem:[%s11507_s5 + $0x88] sm:$0xff] }
 0x17d   :  { %5116 = vperm.xlu0 %6310, %v5010_v5  }
 0x17e   :  { %v1328_v53 = vpop.f32.mrf.mxu2 }
 0x17f   :  { %3530 = vmatpush.bf16.msra.mxu0 %v2255_v55  ;;  %v1497_v41 = vpop.f32.mrf.mxu3  ;;  %v992_v3 = vpop.f32.mrf.mxu0  ;;  %v1329_v63 = vadd.f32 %v1328_v53, %v7742_v38  ;;  %v5006_v55 = vld [vmem:[%s11507_s5 + $0x60] sm:$0xff] }
 0x180   :  { %v993_v33 = vadd.f32 %v992_v3, %v7812_v32  ;;  %v1161_v23 = vpop.f32.mrf.mxu1  ;;  %v1498_v57 = vadd.f32 %v1497_v41, %v7742_v38  ;;  %v5017_v3 = vld [vmem:[%s11507_s5 + $0xb8] sm:$0xff] }
 0x181   :  { %v1162_v45 = vadd.f32 %v1161_v23, %v7812_v32 }
 0x182   :  { %v8290_v13 = vpack.c.bf16 %v993_v33, %v991_v59  ;;  %5106 = vperm.xlu1 %6311, %v5008_v54   ;;  %v5009_v59 = vld [vmem:[%s11507_s5 + $0x78] sm:$0xff]  ;;  %v5022_v33 = vld [vmem:[%s11507_s5 + $0xe0] sm:$0xff]  ;;  %v5020_v54 = vld [vmem:[%s11507_s5 + $0xd0] sm:$0xff] }
 0x183   :  { %3531 = vmatpush.bf16.msra.mxu0 %v2251_v29  ;;  %v8292_v28 = vpack.c.bf16 %v1162_v45, %v1160_v58 }
 0x184   :  { %5066 = vperm.xlu2 %6312, %v5000_v0   ;;  %v5025_v0 = vld [vmem:[%s11507_s5 + $0xf8] sm:$0xff] }
 0x185   :  { %5131 = vperm.xlu0 %6310, %v5013_v49  }
 0x186   :  { %v1330_v44 = vpop.f32.mrf.mxu2 }
 0x187   :  { %3532 = vmatpush.bf16.msra.mxu0 %v2247_v35  ;;  %v1331_v14 = vadd.f32 %v1330_v44, %v7812_v32  ;;  %v1499_v1 = vpop.f32.mrf.mxu3  ;;  %v8309_v10 = vpop.f32.mrf.mxu0  ;;  %v6218_v44 = vld [vmem:[%s11503_s1 + $0xb0] sm:$0xff] }
 0x188   :  { %v1500_v42 = vadd.f32 %v1499_v1, %v7812_v32  ;;  %v8312_v27 = vpop.f32.mrf.mxu1  ;;  %v5003_v32 = vld [vmem:[%s11507_s5 + $0x48] sm:$0xff] }
 0x189   :  { %v8314_v39 = vpack.c.bf16 %v1331_v14, %v1329_v63  ;;  %5768 = vmatmul.msk.bf16.gmra.mxu0 %vm733_vm0, %v6216_v40  ;;  %v5012_v63 = vld [vmem:[%s11507_s5 + $0x90] sm:$0xff] }
 0x18a   :  { %v8316_v38 = vpack.c.bf16 %v1500_v42, %v1498_v57  ;;  %5800 = vmatmul.msk.bf16.gmra.mxu1 %vm733_vm0, %v6216_v40  ;;  %5121 = vperm.xlu1 %6311, %v5011_v9  }
 0x18b   :  { %3533 = vmatpush.bf16.msra.mxu0 %v2243_v18  ;;  %5832 = vmatmul.msk.bf16.gmra.mxu2 %vm733_vm0, %v6216_v40 }
 0x18c   :  { %11965 = vst [vmem:[#allocation58_spill] sm:$0xff] %v8316_v38  ;;  %5864 = vmatmul.msk.bf16.gmra.mxu3 %vm733_vm0, %v6216_v40  ;;  %5081 = vperm.xlu2 %6312, %v5003_v32  }
 0x18d   :  { %5146 = vperm.xlu0 %6310, %v5016_v26   ;;  %v5023_v26 = vld [vmem:[%s11507_s5 + $0xe8] sm:$0xff] }
 0x18e   :  { %v1333_v19 = vpop.f32.mrf.mxu2 }
 0x18f   :  { %v1502_v50 = vpop.f32.mrf.mxu3  ;;  %v8331_v52 = vpop.f32.mrf.mxu0  ;;  %v1334_v4 = vadd.f32 %v1333_v19, %v7762_v48  ;;  %v5015_v19 = vld [vmem:[%s11507_s5 + $0xa8] sm:$0xff] }
 0x190   :  { %v8333_v2 = vpop.f32.mrf.mxu1  ;;  %v1503_v37 = vadd.f32 %v1502_v50, %v7762_v48  ;;  %v5028_v50 = vld [vmem:[%s11507_s5 + $0x110] sm:$0xff] }
 0x192   :  { %5136 = vperm.xlu1 %6311, %v5014_v7  }
 0x194   :  { %5096 = vperm.xlu2 %6312, %v5006_v55  }
 0x195   :  { %5161 = vperm.xlu0 %6310, %v5019_v20  }
 0x196   :  { %v1335_v12 = vpop.f32.mrf.mxu2 }
 0x197   :  { %v1336_v62 = vadd.f32 %v1335_v12, %v7760_v47  ;;  %v1504_v5 = vpop.f32.mrf.mxu3  ;;  %v8350_v29 = vpop.f32.mrf.mxu0 }
 0x198   :  { %v1505_v22 = vadd.f32 %v1504_v5, %v7760_v47  ;;  %v8353_v53 = vpop.f32.mrf.mxu1 }
 0x199   :  { %v8355_v58 = vpack.c.bf16 %v1336_v62, %v1334_v4  ;;  %5769 = vmatmul.msk.bf16.gmra.mxu0 %vm733_vm0, %v6217_v61  ;;  %v5031_v62 = vld [vmem:[%s11507_s5 + $0x128] sm:$0xff] }
 0x19a   :  { %v8357_v41 = vpack.c.bf16 %v1505_v22, %v1503_v37  ;;  %5801 = vmatmul.msk.bf16.gmra.mxu1 %vm733_vm0, %v6217_v61  ;;  %5151 = vperm.xlu1 %6311, %v5017_v3   ;;  %v5026_v37 = vld [vmem:[%s11507_s5 + $0x100] sm:$0xff]  ;;  %v6219_v3 = vld [vmem:[%s11503_s1 + $0xb8] sm:$0xff] }
 0x19b   :  { %5833 = vmatmul.msk.bf16.gmra.mxu2 %vm733_vm0, %v6217_v61 }
 0x19c   :  { %11966 = vst [vmem:[#allocation59_spill] sm:$0xff] %v8357_v41  ;;  %5865 = vmatmul.msk.bf16.gmra.mxu3 %vm733_vm0, %v6217_v61  ;;  %5111 = vperm.xlu2 %6312, %v5009_v59   ;;  %v5018_v61 = vld [vmem:[%s11507_s5 + $0xc0] sm:$0xff] }
 0x19d   :  { %5176 = vperm.xlu0 %6310, %v5022_v33  }
 0x19e   :  { %v1338_v23 = vpop.f32.mrf.mxu2 }
 0x19f   :  { %v1507_v45 = vpop.f32.mrf.mxu3  ;;  %v8372_v35 = vpop.f32.mrf.mxu0  ;;  %v1339_v36 = vadd.f32 %v1338_v23, %v7719_v30 }
 0x1a0   :  { %v8374_v8 = vpop.f32.mrf.mxu1  ;;  %v1508_v49 = vadd.f32 %v1507_v45, %v7719_v30 }
 0x1a2   :  { %5166 = vperm.xlu1 %6311, %v5020_v54  }
 0x1a4   :  { %5126 = vperm.xlu2 %6312, %v5012_v63  }
 0x1a5   :  { %5191 = vperm.xlu0 %6310, %v5025_v0   ;;  %v5029_v0 = vld [vmem:[%s11507_s5 + $0x118] sm:$0xff] }
 0x1a6   :  { %v1340_v57 = vpop.f32.mrf.mxu2 }
 0x1a7   :  { %v1341_v40 = vadd.f32 %v1340_v57, %v7677_v15  ;;  %v1509_v14 = vpop.f32.mrf.mxu3  ;;  %v1005_v1 = vpop.f32.mrf.mxu0  ;;  %v5021_v57 = vld [vmem:[%s11507_s5 + $0xd8] sm:$0xff] }
 0x1a8   :  { %v1510_v18 = vadd.f32 %v1509_v14, %v7677_v15  ;;  %v8392_v42 = vpop.f32.mrf.mxu1 }
 0x1a9   :  { %v8394_v9 = vpack.c.bf16 %v1341_v40, %v1339_v36  ;;  %5770 = vmatmul.msk.bf16.gmra.mxu0 %vm733_vm0, %v6218_v44  ;;  %v1006_v40 = vadd.f32 %v1005_v1, %v7624_v60  ;;  %v998_v1 = vadd.f32 %v8331_v52, %v7760_v47 }
 0x1aa   :  { %v8396_v32 = vpack.c.bf16 %v1510_v18, %v1508_v49  ;;  %5802 = vmatmul.msk.bf16.gmra.mxu1 %vm733_vm0, %v6218_v44  ;;  %5181 = vperm.xlu1 %6311, %v5023_v26  }
 0x1ab   :  { %5834 = vmatmul.msk.bf16.gmra.mxu2 %vm733_vm0, %v6218_v44 }
 0x1ac   :  { %11967 = vst [vmem:[#allocation60_spill] sm:$0xff] %v8396_v32  ;;  %5866 = vmatmul.msk.bf16.gmra.mxu3 %vm733_vm0, %v6218_v44  ;;  %5141 = vperm.xlu2 %6312, %v5015_v19   ;;  %v5574_v44 = vld [vmem:[#allocation2] sm:$0x1]  ;;  %v1003_v19 = vadd.f32 %v8372_v35, %v7677_v15  ;;  %v12010_v32 = vld [vmem:[#allocation8_spill] sm:$0xff] }
 0x1ad   :  { %5206 = vperm.xlu0 %6310, %v5028_v50  }
 0x1ae   :  { %v1343_v7 = vpop.f32.mrf.mxu2 }
 0x1af   :  { %v1512_v4 = vpop.f32.mrf.mxu3  ;;  %v1007_v55 = vpop.f32.mrf.mxu0  ;;  %v1344_v12 = vadd.f32 %v1343_v7, %v7624_v60  ;;  %v11969_v7 = vld [vmem:[#allocation12_spill] sm:$0xff] }
 0x1b0   :  { %v8411_v20 = vpop.f32.mrf.mxu1  ;;  %v1513_v5 = vadd.f32 %v1512_v4, %v7624_v60  ;;  %v1008_v49 = vadd.f32 %v1007_v55, %v7694_v21  ;;  %v11970_v55 = vld [vmem:[#allocation13_spill] sm:$0xff] }
 0x1b2   :  { %5196 = vperm.xlu1 %6311, %v5026_v37   ;;  %v1658_v50 = vpack.c.bf16 %v1008_v49, %v1006_v40  ;;  %v6220_v49 = vld [vmem:[%s11503_s1 + $0xc0] sm:$0xff] }
 0x1b4   :  { %5156 = vperm.xlu2 %6312, %v5018_v61   ;;  %v1001_v61 = vadd.f32 %v8350_v29, %v7719_v30  ;;  %v1842_v35 = vunpack.c.l.bf16 %v1658_v50  ;;  %v5024_v29 = vld [vmem:[%s11507_s5 + $0xf0] sm:$0xff] }
 0x1b5   :  { %5221 = vperm.xlu0 %6310, %v5031_v62  }
 0x1b6   :  { %v1345_v22 = vpop.f32.mrf.mxu2 }
 0x1b7   :  { %v1346_v59 = vadd.f32 %v1345_v22, %v7694_v21  ;;  %v1514_v33 = vpop.f32.mrf.mxu3  ;;  %v1010_v23 = vpop.f32.mrf.mxu0  ;;  %v1654_v22 = vpack.c.bf16 %v1003_v19, %v1001_v61 }
 0x1b8   :  { %v1515_v45 = vadd.f32 %v1514_v33, %v7694_v21  ;;  %v8429_v54 = vpop.f32.mrf.mxu1  ;;  %v1011_v4 = vadd.f32 %v1010_v23, %v11969_v7  ;;  %v1846_v33 = vunpack.c.h.bf16 %v1658_v50 }
 0x1b9   :  { %v8431_v36 = vpack.c.bf16 %v1346_v59, %v1344_v12  ;;  %5771 = vmatmul.msk.bf16.gmra.mxu0 %vm733_vm0, %v6219_v3  ;;  %v1838_v50 = vunpack.c.h.bf16 %v1654_v22 }
 0x1ba   :  { %v8433_v63 = vpack.c.bf16 %v1515_v45, %v1513_v5  ;;  %5803 = vmatmul.msk.bf16.gmra.mxu1 %vm733_vm0, %v6219_v3  ;;  %5211 = vperm.xlu1 %6311, %v5029_v0   ;;  %v5032_v5 = vld [vmem:[%s11507_s5 + $0x130] sm:$0xff]  ;;  %v996_v45 = vadd.f32 %v8309_v10, %v7762_v48 }
 0x1bb   :  { %5835 = vmatmul.msk.bf16.gmra.mxu2 %vm733_vm0, %v6219_v3 }
 0x1bc   :  { %11968 = vst [vmem:[#allocation61_spill] sm:$0xff] %v8433_v63  ;;  %5867 = vmatmul.msk.bf16.gmra.mxu3 %vm733_vm0, %v6219_v3  ;;  %5171 = vperm.xlu2 %6312, %v5021_v57  }
 0x1bd   :  { %5577 = vperm.xlu0 %6310, %v5574_v44  }
 0x1be   :  { %v1348_v14 = vpop.f32.mrf.mxu2 }
 0x1bf   :  { %v1517_v18 = vpop.f32.mrf.mxu3  ;;  %v1012_v26 = vpop.f32.mrf.mxu0  ;;  %v1349_v23 = vadd.f32 %v1348_v14, %v11969_v7  ;;  %v1650_v14 = vpack.c.bf16 %v998_v1, %v996_v45 }
 0x1c0   :  { %v1013_v37 = vadd.f32 %v1012_v26, %v11970_v55  ;;  %v8451_v12 = vpop.f32.mrf.mxu1  ;;  %v1518_v52 = vadd.f32 %v1517_v18, %v11969_v7  ;;  %v1834_v26 = vunpack.c.l.bf16 %v1654_v22 }
 0x1c1   :  { %v1826_v61 = vunpack.c.l.bf16 %v1650_v14  ;;  %v1830_v1 = vunpack.c.h.bf16 %v1650_v14  ;;  %v1822_v14 = vunpack.c.h.bf16 %v8290_v13 }
 0x1c2   :  { %v1662_v62 = vpack.c.bf16 %v1013_v37, %v1011_v4  ;;  %5226 = vperm.xlu1 %6311, %v5032_v5   ;;  %v5027_v5 = vld [vmem:[%s11507_s5 + $0x108] sm:$0xff] }
 0x1c4   :  { %v1850_v3 = vunpack.c.l.bf16 %v1662_v62  ;;  %v1854_v59 = vunpack.c.h.bf16 %v1662_v62  ;;  %5186 = vperm.xlu2 %6312, %v5024_v29  }
 0x1c6   :  { %6377 = vtanh.f32 %v1850_v3  ;;  %v1350_v0 = vpop.f32.mrf.mxu2 }
 0x1c7   :  { %6379 = vtanh.f32 %v1854_v59  ;;  %v1351_v57 = vadd.f32 %v1350_v0, %v11970_v55  ;;  %v1519_v44 = vpop.f32.mrf.mxu3  ;;  %v1015_v40 = vpop.f32.mrf.mxu0 }
 0x1c8   :  { %6381 = vtanh.f32 %v1842_v35  ;;  %v1520_v19 = vadd.f32 %v1519_v44, %v11970_v55  ;;  %v1184_v10 = vpop.f32.mrf.mxu1 }
 0x1c9   :  { %6383 = vtanh.f32 %v1846_v33  ;;  %v8472_v18 = vpack.c.bf16 %v1351_v57, %v1349_v23  ;;  %5772 = vmatmul.msk.bf16.gmra.mxu0 %vm733_vm0, %v6220_v49  ;;  %v11972_v33 = vld [vmem:[#allocation32_spill] sm:$0xff] }
 0x1ca   :  { %v8474_v4 = vpack.c.bf16 %v1520_v19, %v1518_v52  ;;  %5804 = vmatmul.msk.bf16.gmra.mxu1 %vm733_vm0, %v6220_v49  ;;  %6385 = vtanh.f32 %v1834_v26  ;;  %v1185_v23 = vadd.f32 %v1184_v10, %v11972_v33  ;;  %v1818_v52 = vunpack.c.l.bf16 %v8290_v13 }
 0x1cb   :  { %5836 = vmatmul.msk.bf16.gmra.mxu2 %vm733_vm0, %v6220_v49  ;;  %6387 = vtanh.f32 %v1838_v50  ;;  %v1016_v0 = vadd.f32 %v1015_v40, %v11972_v33  ;;  %v1182_v40 = vadd.f32 %v8451_v12, %v11970_v55  ;;  %v1814_v13 = vunpack.c.h.bf16 %v8247_v31  ;;  %v6221_v12 = vld [vmem:[%s11503_s1 + $0xc8] sm:$0xff] }
 0x1cc   :  { %11971 = vst [vmem:[#allocation12_spill] sm:$0xff] %v8474_v4  ;;  %v6378_v37 = vpop.eup %6377  ;;  %5868 = vmatmul.msk.bf16.gmra.mxu3 %vm733_vm0, %v6220_v49  ;;  %5201 = vperm.xlu2 %6312, %v5027_v5   ;;  %6389 = vtanh.f32 %v1826_v61  ;;  %v11973_v49 = vld [vmem:[#allocation50_spill] sm:$0xff]  ;;  %v1810_v5 = vunpack.c.l.bf16 %v8247_v31  ;;  %v1175_v31 = vadd.f32 %v8392_v42, %v7624_v60  ;;  %v1856_v38 = vunpack.c.h.bf16 %v8472_v18 }
 0x1cd   :  { %v6380_v62 = vpop.eup %6379  ;;  %6391 = vtanh.f32 %v1830_v1 }
 0x1ce   :  { %v6382_v22 = vpop.eup %6381  ;;  %v1353_v35 = vpop.f32.mrf.mxu2  ;;  %v2302_v3 = vpack.c.bf16 %v6380_v62, %v6378_v37  ;;  %v1180_v62 = vadd.f32 %v8429_v54, %v11969_v7  ;;  %6393 = vtanh.f32 %v1818_v52 }
 0x1cf   :  { %v6384_v59 = vpop.eup %6383  ;;  %v1522_v29 = vpop.f32.mrf.mxu3  ;;  %6395 = vtanh.f32 %v1822_v14  ;;  %v1354_v1 = vadd.f32 %v1353_v35, %v11972_v33  ;;  %v1177_v35 = vadd.f32 %v8411_v20, %v7694_v21  ;;  %v1794_v21 = vunpack.c.l.bf16 %v8138_v46 }
 0x1d0   :  { %v1017_v45 = vpop.f32.mrf.mxu0  ;;  %v1186_v44 = vpop.f32.mrf.mxu1  ;;  %3199 = vmatpush.bf16.msrb.mxu1 %v2302_v3  ;;  %v2298_v10 = vpack.c.bf16 %v6384_v59, %v6382_v22  ;;  %v5030_v22 = vld [vmem:[%s11507_s5 + $0x120] sm:$0xff]  ;;  %v1523_v54 = vadd.f32 %v1522_v29, %v11972_v33  ;;  %v1802_v33 = vunpack.c.l.bf16 %v8200_v34  ;;  %6397 = vtanh.f32 %v1810_v5 }
 0x1d1   :  { %v1018_v57 = vadd.f32 %v1017_v45, %v11973_v49  ;;  %v1187_v26 = vadd.f32 %v1186_v44, %v11973_v49  ;;  %v6386_v19 = vpop.eup %6385  ;;  %v1806_v44 = vunpack.c.h.bf16 %v8200_v34  ;;  %6399 = vtanh.f32 %v1814_v13 }
 0x1d2   :  { %v6388_v37 = vpop.eup %6387  ;;  %6401 = vtanh.f32 %v1802_v33 }
 0x1d3   :  { %v8489_v50 = vpack.c.bf16 %v1018_v57, %v1016_v0  ;;  %v8495_v61 = vpack.c.bf16 %v1187_v26, %v1185_v23  ;;  %v6390_v3 = vpop.eup %6389  ;;  %v2294_v55 = vpack.c.bf16 %v6388_v37, %v6386_v19  ;;  %v1663_v23 = vpack.c.bf16 %v1182_v40, %v1180_v62 }
 0x1d4   :  { %3200 = vmatpush.bf16.msrb.mxu1 %v2298_v10  ;;  %5216 = vperm.xlu2 %6312, %v5030_v22   ;;  %v6392_v59 = vpop.eup %6391  ;;  %v1170_v19 = vadd.f32 %v8353_v53, %v7719_v30  ;;  %v1659_v10 = vpack.c.bf16 %v1177_v35, %v1175_v31  ;;  %v1798_v62 = vunpack.c.h.bf16 %v8138_v46  ;;  %6403 = vtanh.f32 %v1806_v44  ;;  %v5033_v30 = vld [vmem:[%s11507_s5 + $0x138] sm:$0xff] }
 0x1d5   :  { %11974 = vst [vmem:[#allocation13_spill] sm:$0xff] %v8495_v61  ;;  %v6394_v60 = vpop.eup %6393  ;;  %v2290_v20 = vpack.c.bf16 %v6392_v59, %v6390_v3  ;;  %v1851_v34 = vunpack.c.l.bf16 %v1663_v23  ;;  %v1855_v37 = vunpack.c.h.bf16 %v1663_v23  ;;  %6405 = vtanh.f32 %v1794_v21  ;;  %v11977_v46 = vld [vmem:[#allocation37_spill] sm:$0xff]  ;;  %v11978_v59 = vld [vmem:[#allocation36_spill] sm:$0xff] }
 0x1d6   :  { %v1355_v7 = vpop.f32.mrf.mxu2  ;;  %v6396_v26 = vpop.eup %6395  ;;  %v1843_v22 = vunpack.c.l.bf16 %v1659_v10 }
 0x1d7   :  { %v1356_v45 = vadd.f32 %v1355_v7, %v11973_v49  ;;  %v1524_v52 = vpop.f32.mrf.mxu3  ;;  %v6398_v53 = vpop.eup %6397  ;;  %v2286_v5 = vpack.c.bf16 %v6396_v26, %v6394_v60  ;;  %6407 = vtanh.f32 %v1851_v34 }
 0x1d8   :  { %v1020_v0 = vpop.f32.mrf.mxu0  ;;  %v1525_v29 = vadd.f32 %v1524_v52, %v11973_v49  ;;  %v1189_v57 = vpop.f32.mrf.mxu1  ;;  %3201 = vmatpush.bf16.msrb.mxu1 %v2294_v55  ;;  %v1172_v49 = vadd.f32 %v8374_v8, %v7677_v15  ;;  %v1165_v15 = vadd.f32 %v8312_v27, %v7762_v48  ;;  %v1167_v8 = vadd.f32 %v8333_v2, %v7760_v47 }
 0x1d9   :  { %v8515_v14 = vpack.c.bf16 %v1356_v45, %v1354_v1  ;;  %5773 = vmatmul.msk.bf16.gmra.mxu0 %vm733_vm0, %v6221_v12  ;;  %v6400_v13 = vpop.eup %6399  ;;  %v1190_v3 = vadd.f32 %v1189_v57, %v11977_v46  ;;  %v1847_v55 = vunpack.c.h.bf16 %v1659_v10  ;;  %6409 = vtanh.f32 %v1855_v37 }
 0x1da   :  { %v8518_v42 = vpack.c.bf16 %v1525_v29, %v1523_v54  ;;  %5805 = vmatmul.msk.bf16.gmra.mxu1 %vm733_vm0, %v6221_v12  ;;  %v1655_v1 = vpack.c.bf16 %v1172_v49, %v1170_v19  ;;  %6411 = vtanh.f32 %v1798_v62  ;;  %v6402_v2 = vpop.eup %6401  ;;  %v2282_v35 = vpack.c.bf16 %v6400_v13, %v6398_v53  ;;  %v6222_v19 = vld [vmem:[%s11503_s1 + $0xd0] sm:$0xff] }
 0x1db   :  { %11975 = vst [vmem:[#allocation32_spill] sm:$0xff] %v8515_v14  ;;  %5837 = vmatmul.msk.bf16.gmra.mxu2 %vm733_vm0, %v6221_v12  ;;  %v6404_v23 = vpop.eup %6403  ;;  %v1651_v45 = vpack.c.bf16 %v1167_v8, %v1165_v15  ;;  %6413 = vtanh.f32 %v1843_v22  ;;  %v12011_v14 = vld [vmem:[#allocation11_spill] sm:$0xff] }
 0x1dc   :  { %11976 = vst [vmem:[#allocation50_spill] sm:$0xff] %v8518_v42  ;;  %5869 = vmatmul.msk.bf16.gmra.mxu3 %vm733_vm0, %v6221_v12  ;;  %3202 = vmatpush.bf16.msrb.mxu1 %v2290_v20  ;;  %v1021_v12 = vadd.f32 %v1020_v0, %v11977_v46  ;;  %v1835_v52 = vunpack.c.l.bf16 %v1655_v1  ;;  %v6406_v29 = vpop.eup %6405  ;;  %v1839_v57 = vunpack.c.h.bf16 %v1655_v1  ;;  %6415 = vtanh.f32 %v1847_v55 }
 0x1dd   :  { %5231 = vperm.xlu2 %6312, %v5033_v30   ;;  %v6408_v0 = vpop.eup %6407  ;;  %v2278_v26 = vpack.c.bf16 %v6404_v23, %v6402_v2  ;;  %v1827_v10 = vunpack.c.l.bf16 %v1651_v45  ;;  %v1831_v30 = vunpack.c.h.bf16 %v1651_v45  ;;  %v11983_v23 = vld [vmem:[#allocation25_spill] sm:$0xff] }
 0x1de   :  { %v1358_v40 = vpop.f32.mrf.mxu2  ;;  %6417 = vtanh.f32 %v1835_v52 }
 0x1df   :  { %v1527_v54 = vpop.f32.mrf.mxu3  ;;  %v1359_v44 = vadd.f32 %v1358_v40, %v11977_v46  ;;  %v6410_v60 = vpop.eup %6409  ;;  %6419 = vtanh.f32 %v1839_v57 }
 0x1e0   :  { %v1022_v7 = vpop.f32.mrf.mxu0  ;;  %v1191_v27 = vpop.f32.mrf.mxu1  ;;  %3203 = vmatpush.bf16.msrb.mxu1 %v2286_v5  ;;  %v1528_v21 = vadd.f32 %v1527_v54, %v11977_v46  ;;  %v2303_v5 = vpack.c.bf16 %v6410_v60, %v6408_v0  ;;  %v1819_v46 = vunpack.c.l.bf16 %v8292_v28  ;;  %6421 = vtanh.f32 %v1827_v10 }
 0x1e1   :  { %v1023_v48 = vadd.f32 %v1022_v7, %v11978_v59  ;;  %v1192_v47 = vadd.f32 %v1191_v27, %v11978_v59  ;;  %v6412_v49 = vpop.eup %6411  ;;  %6423 = vtanh.f32 %v1831_v30 }
 0x1e2   :  { %v6414_v8 = vpop.eup %6413  ;;  %v2274_v22 = vpack.c.bf16 %v6412_v49, %v6406_v29  ;;  %6425 = vtanh.f32 %v1819_v46 }
 0x1e3   :  { %v8540_v31 = vpack.c.bf16 %v1023_v48, %v1021_v12  ;;  %v8542_v33 = vpack.c.bf16 %v1192_v47, %v1190_v3  ;;  %v6416_v13 = vpop.eup %6415  ;;  %v1823_v3 = vunpack.c.h.bf16 %v8292_v28  ;;  %v11982_v48 = vld [vmem:[#allocation30_spill] sm:$0xff] }
 0x1e4   :  { %3204 = vmatpush.bf16.msrb.mxu1 %v2282_v35  ;;  %v6418_v54 = vpop.eup %6417  ;;  %v2299_v7 = vpack.c.bf16 %v6416_v13, %v6414_v8  ;;  %v1815_v35 = vunpack.c.h.bf16 %v8250_v16  ;;  %v1795_v13 = vunpack.c.l.bf16 %v8144_v51 }
 0x1e5   :  { %11979 = vst [vmem:[#allocation37_spill] sm:$0xff] %v8542_v33  ;;  %v6420_v55 = vpop.eup %6419  ;;  %6427 = vtanh.f32 %v1823_v3 }
 0x1e6   :  { %v1360_v20 = vpop.f32.mrf.mxu2  ;;  %v6422_v29 = vpop.eup %6421  ;;  %v2295_v0 = vpack.c.bf16 %v6420_v55, %v6418_v54  ;;  %v1799_v54 = vunpack.c.h.bf16 %v8144_v51 }
 0x1e7   :  { %v1361_v34 = vadd.f32 %v1360_v20, %v11978_v59  ;;  %v1529_v37 = vpop.f32.mrf.mxu3 }
 0x1e8   :  { %v1025_v62 = vpop.f32.mrf.mxu0  ;;  %v1530_v53 = vadd.f32 %v1529_v37, %v11978_v59  ;;  %v1194_v15 = vpop.f32.mrf.mxu1  ;;  %3205 = vmatpush.bf16.msrb.mxu1 %v2278_v26  ;;  %v1811_v59 = vunpack.c.l.bf16 %v8250_v16  ;;  %v1807_v16 = vunpack.c.h.bf16 %v8202_v11 }
 0x1e9   :  { %v8551_v40 = vpack.c.bf16 %v1361_v34, %v1359_v44  ;;  %5774 = vmatmul.msk.bf16.gmra.mxu0 %vm733_vm0, %v6222_v19  ;;  %v1195_v27 = vadd.f32 %v1194_v15, %v11982_v48  ;;  %v1026_v28 = vadd.f32 %v1025_v62, %v11982_v48  ;;  %v6424_v44 = vpop.eup %6423  ;;  %v6223_v62 = vld [vmem:[%s11503_s1 + $0xd8] sm:$0xff] }
 0x1ea   :  { %v8553_v1 = vpack.c.bf16 %v1530_v53, %v1528_v21  ;;  %5806 = vmatmul.msk.bf16.gmra.mxu1 %vm733_vm0, %v6222_v19  ;;  %v1803_v21 = vunpack.c.l.bf16 %v8202_v11  ;;  %6429 = vtanh.f32 %v1811_v59  ;;  %v6426_v26 = vpop.eup %6425  ;;  %v2291_v49 = vpack.c.bf16 %v6424_v44, %v6422_v29 }
 0x1eb   :  { %11980 = vst [vmem:[#allocation36_spill] sm:$0xff] %v8551_v40  ;;  %5838 = vmatmul.msk.bf16.gmra.mxu2 %vm733_vm0, %v6222_v19  ;;  %6431 = vtanh.f32 %v1815_v35  ;;  %v6428_v10 = vpop.eup %6427 }
 0x1ec   :  { %11981 = vst [vmem:[#allocation62_spill] sm:$0xff] %v8553_v1  ;;  %5870 = vmatmul.msk.bf16.gmra.mxu3 %vm733_vm0, %v6222_v19  ;;  %3206 = vmatpush.bf16.msrb.mxu1 %v2274_v22  ;;  %6433 = vtanh.f32 %v1803_v21  ;;  %v2287_v46 = vpack.c.bf16 %v6428_v10, %v6426_v26 }
 0x1ed   :  { %6435 = vtanh.f32 %v1807_v16 }
 0x1ee   :  { %v1363_v12 = vpop.f32.mrf.mxu2  ;;  %6437 = vtanh.f32 %v1795_v13 }
 0x1ef   :  { %v1532_v47 = vpop.f32.mrf.mxu3  ;;  %v1364_v19 = vadd.f32 %v1363_v12, %v11982_v48  ;;  %6439 = vtanh.f32 %v1799_v54 }
 0x1f0   :  { %3635 = vmatpush.bf16.msra.mxu1 %v2303_v5  ;;  %v1027_v2 = vpop.f32.mrf.mxu0  ;;  %v1196_v52 = vpop.f32.mrf.mxu1  ;;  %v1533_v34 = vadd.f32 %v1532_v47, %v11982_v48 }
 0x1f1   :  { %v1028_v45 = vadd.f32 %v1027_v2, %v11983_v23  ;;  %v1197_v57 = vadd.f32 %v1196_v52, %v11983_v23  ;;  %v6430_v5 = vpop.eup %6429 }
 0x1f2   :  { %v6432_v3 = vpop.eup %6431 }
 0x1f3   :  { %v8567_v60 = vpack.c.bf16 %v1028_v45, %v1026_v28  ;;  %v8570_v20 = vpack.c.bf16 %v1197_v57, %v1195_v27  ;;  %v6434_v55 = vpop.eup %6433  ;;  %v2283_v12 = vpack.c.bf16 %v6432_v3, %v6430_v5  ;;  %v11987_v27 = vld [vmem:[#allocation20_spill] sm:$0xff]  ;;  %v11988_v28 = vld [vmem:[#allocation27_spill] sm:$0xff] }
 0x1f4   :  { %3636 = vmatpush.bf16.msra.mxu1 %v2299_v7  ;;  %v6436_v59 = vpop.eup %6435  ;;  %v6225_v3 = vld [vmem:[%s11503_s1 + $0xe8] sm:$0xff] }
 0x1f5   :  { %11984 = vst [vmem:[#allocation30_spill] sm:$0xff] %v8570_v20  ;;  %v2279_v29 = vpack.c.bf16 %v6436_v59, %v6434_v55 }
 0x1f6   :  { %v1365_v37 = vpop.f32.mrf.mxu2 }
 0x1f7   :  { %v1366_v30 = vadd.f32 %v1365_v37, %v11983_v23  ;;  %v1534_v53 = vpop.f32.mrf.mxu3 }
 0x1f8   :  { %3637 = vmatpush.bf16.msra.mxu1 %v2295_v0  ;;  %v1030_v15 = vpop.f32.mrf.mxu0  ;;  %v1535_v11 = vadd.f32 %v1534_v53, %v11983_v23  ;;  %v1199_v8 = vpop.f32.mrf.mxu1 }
 0x1f9   :  { %v8581_v22 = vpack.c.bf16 %v1366_v30, %v1364_v19  ;;  %5775 = vmatmul.msk.bf16.gmra.mxu0 %vm733_vm0, %v6223_v62  ;;  %v1200_v47 = vadd.f32 %v1199_v8, %v11987_v27  ;;  %v1031_v35 = vadd.f32 %v1030_v15, %v11987_v27  ;;  %v6438_v0 = vpop.eup %6437 }
 0x1fa   :  { %v8584_v7 = vpack.c.bf16 %v1535_v11, %v1533_v34  ;;  %5807 = vmatmul.msk.bf16.gmra.mxu1 %vm733_vm0, %v6223_v62  ;;  %v6440_v21 = vpop.eup %6439 }
 0x1fb   :  { %11985 = vst [vmem:[#allocation25_spill] sm:$0xff] %v8581_v22  ;;  %5839 = vmatmul.msk.bf16.gmra.mxu2 %vm733_vm0, %v6223_v62 }
 0x1fc   :  { %3638 = vmatpush.bf16.msra.mxu1 %v2291_v49  ;;  %11986 = vst [vmem:[#allocation63_spill] sm:$0xff] %v8584_v7  ;;  %5871 = vmatmul.msk.bf16.gmra.mxu3 %vm733_vm0, %v6223_v62  ;;  %v6224_v49 = vld [vmem:[%s11503_s1 + $0xe0] sm:$0xff]  ;;  %v2275_v62 = vpack.c.bf16 %v6440_v21, %v6438_v0 }
 0x1fd   :  { %v11999_v0 = vld [vmem:[#allocation41_spill] sm:$0xff] }
 0x1fe   :  { %v1368_v48 = vpop.f32.mrf.mxu2  ;;  %v1756_v21 = vunpack.c.l.bf16 %v11999_v0 }
 0x1ff   :  { %v1537_v51 = vpop.f32.mrf.mxu3  ;;  %v1369_v16 = vadd.f32 %v1368_v48, %v11987_v27 }
 0x200   :  { %3639 = vmatpush.bf16.msra.mxu1 %v2287_v46  ;;  %v1032_v2 = vpop.f32.mrf.mxu0  ;;  %v1201_v45 = vpop.f32.mrf.mxu1  ;;  %v1538_v26 = vadd.f32 %v1537_v51, %v11987_v27 }
 0x201   :  { %v1033_v23 = vadd.f32 %v1032_v2, %v11988_v28  ;;  %v1202_v52 = vadd.f32 %v1201_v45, %v11988_v28  ;;  %v11997_v2 = vld [vmem:[#allocation34_spill] sm:$0xff]  ;;  %v11998_v45 = vld [vmem:[#allocation39_spill] sm:$0xff] }
 0x203   :  { %v8594_v57 = vpack.c.bf16 %v1033_v23, %v1031_v35  ;;  %v8596_v44 = vpack.c.bf16 %v1202_v52, %v1200_v47  ;;  %v6226_v47 = vld [vmem:[%s11503_s1 + $0xf0] sm:$0xff]  ;;  %v1748_v35 = vunpack.c.l.bf16 %v11997_v2  ;;  %v1752_v23 = vunpack.c.h.bf16 %v11997_v2 }
 0x204   :  { %3640 = vmatpush.bf16.msra.mxu1 %v2283_v12  ;;  %v1740_v52 = vunpack.c.l.bf16 %v11998_v45 }
 0x205   :  { %11989 = vst [vmem:[#allocation20_spill] sm:$0xff] %v8596_v44  ;;  %6441 = vtanh.f32 %v1748_v35  ;;  %v12003_v35 = vld [vmem:[#allocation47_spill] sm:$0xff] }
 0x206   :  { %v1370_v19 = vpop.f32.mrf.mxu2  ;;  %6443 = vtanh.f32 %v1752_v23  ;;  %v1772_v23 = vunpack.c.l.bf16 %v12003_v35 }
 0x207   :  { %v1371_v10 = vadd.f32 %v1370_v19, %v11988_v28  ;;  %v1539_v34 = vpop.f32.mrf.mxu3  ;;  %6445 = vtanh.f32 %v1740_v52  ;;  %v1776_v52 = vunpack.c.h.bf16 %v12003_v35 }
 0x208   :  { %3641 = vmatpush.bf16.msra.mxu1 %v2279_v29  ;;  %v8604_v37 = vpop.f32.mrf.mxu0  ;;  %v1540_v30 = vadd.f32 %v1539_v34, %v11988_v28  ;;  %v8607_v53 = vpop.f32.mrf.mxu1  ;;  %v1744_v29 = vunpack.c.h.bf16 %v11998_v45 }
 0x209   :  { %v8609_v15 = vpack.c.bf16 %v1371_v10, %v1369_v16  ;;  %5776 = vmatmul.msk.bf16.gmra.mxu0 %vm733_vm0, %v6224_v49  ;;  %v1760_v16 = vunpack.c.h.bf16 %v11999_v0  ;;  %v12004_v0 = vld [vmem:[#allocation49_spill] sm:$0xff] }
 0x20a   :  { %v8611_v11 = vpack.c.bf16 %v1540_v30, %v1538_v26  ;;  %5808 = vmatmul.msk.bf16.gmra.mxu1 %vm733_vm0, %v6224_v49  ;;  %v12000_v26 = vld [vmem:[#allocation43_spill] sm:$0xff]  ;;  %6447 = vtanh.f32 %v1744_v29 }
 0x20b   :  { %11990 = vst [vmem:[#allocation27_spill] sm:$0xff] %v8609_v15  ;;  %5840 = vmatmul.msk.bf16.gmra.mxu2 %vm733_vm0, %v6224_v49  ;;  %v1732_v19 = vunpack.c.l.bf16 %v12000_v26  ;;  %v1736_v10 = vunpack.c.h.bf16 %v12000_v26  ;;  %6449 = vtanh.f32 %v1756_v21  ;;  %v8669_v2 = vpop.eup %6441  ;;  %v1780_v21 = vunpack.c.l.bf16 %v12004_v0 }
 0x20c   :  { %3642 = vmatpush.bf16.msra.mxu1 %v2275_v62  ;;  %11991 = vst [vmem:[#allocation64_spill] sm:$0xff] %v8611_v11  ;;  %5872 = vmatmul.msk.bf16.gmra.mxu3 %vm733_vm0, %v6224_v49  ;;  %v12002_v62 = vld [vmem:[#allocation45_spill] sm:$0xff]  ;;  %6451 = vtanh.f32 %v1760_v16  ;;  %v8672_v45 = vpop.eup %6443  ;;  %v1784_v16 = vunpack.c.h.bf16 %v12004_v0  ;;  %v1812_v0 = vunpack.c.l.bf16 %v8269_v56  ;;  %v12009_v56 = vld [vmem:[#allocation15_spill] sm:$0xff] }
 0x20d   :  { %v1764_v30 = vunpack.c.l.bf16 %v12002_v62  ;;  %6453 = vtanh.f32 %v1732_v19  ;;  %v8675_v29 = vpop.eup %6445  ;;  %v12005_v19 = vld [vmem:[#allocation53_spill] sm:$0xff] }
 0x20e   :  { %v8617_v8 = vpop.f32.mrf.mxu2  ;;  %6455 = vtanh.f32 %v1736_v10  ;;  %v1788_v42 = vunpack.c.l.bf16 %v12005_v19  ;;  %v6227_v10 = vld [vmem:[%s11503_s1 + $0xf8] sm:$0xff] }
 0x20f   :  { %11992 = vst [vmem:[#allocation65_spill] sm:$0xff] %v8617_v8  ;;  %6457 = vtanh.f32 %v1764_v30  ;;  %v1792_v30 = vunpack.c.h.bf16 %v12005_v19  ;;  %v1848_v8 = vunpack.c.h.bf16 %v8431_v36 }
 0x210   :  { %v8619_v5 = vpop.f32.mrf.mxu0  ;;  %v8621_v13 = vpop.f32.mrf.mxu1 }
 0x211   :  { %11993 = vst [vmem:[#allocation66_spill] sm:$0xff] %v8621_v13  ;;  %v8678_v26 = vpop.eup %6447 }
 0x216   :  { %v8623_v46 = vpop.f32.mrf.mxu2 }
 0x217   :  { %11994 = vst [vmem:[#allocation67_spill] sm:$0xff] %v8623_v46 }
 0x218   :  { %v8628_v54 = vpop.f32.mrf.mxu0  ;;  %v8630_v55 = vpop.f32.mrf.mxu1 }
 0x219   :  { %5777 = vmatmul.msk.bf16.gmra.mxu0 %vm733_vm0, %v6225_v3 }
 0x21a   :  { %5809 = vmatmul.msk.bf16.gmra.mxu1 %vm733_vm0, %v6225_v3 }
 0x21b   :  { %5841 = vmatmul.msk.bf16.gmra.mxu2 %vm733_vm0, %v6225_v3 }
 0x21c   :  { %5873 = vmatmul.msk.bf16.gmra.mxu3 %vm733_vm0, %v6225_v3 }
 0x21e   :  { %v8636_v12 = vpop.f32.mrf.mxu2 }
 0x21f   :  { %11995 = vst [vmem:[#allocation68_spill] sm:$0xff] %v8636_v12 }
 0x220   :  { %v8638_v59 = vpop.f32.mrf.mxu0  ;;  %v8640_v48 = vpop.f32.mrf.mxu1 }
 0x226   :  { %v8642_v27 = vpop.f32.mrf.mxu2 }
 0x227   :  { %11996 = vst [vmem:[#allocation69_spill] sm:$0xff] %v8642_v27 }
 0x228   :  { %v8647_v51 = vpop.f32.mrf.mxu0  ;;  %v8650_v28 = vpop.f32.mrf.mxu1 }
 0x229   :  { %5778 = vmatmul.msk.bf16.gmra.mxu0 %vm733_vm0, %v6226_v47  ;;  %v1046_v63 = vadd.f32 %v8647_v51, %v12010_v32 }
 0x22a   :  { %5810 = vmatmul.msk.bf16.gmra.mxu1 %vm733_vm0, %v6226_v47 }
 0x22b   :  { %5842 = vmatmul.msk.bf16.gmra.mxu2 %vm733_vm0, %v6226_v47 }
 0x22c   :  { %5874 = vmatmul.msk.bf16.gmra.mxu3 %vm733_vm0, %v6226_v47  ;;  %v1768_v47 = vunpack.c.h.bf16 %v12002_v62  ;;  %v8681_v62 = vpop.eup %6449 }
 0x22d   :  { %v8689_v35 = vpop.eup %6451 }
 0x22e   :  { %v8662_v49 = vpop.f32.mrf.mxu2  ;;  %6459 = vtanh.f32 %v1768_v47  ;;  %v8692_v47 = vpop.eup %6453 }
 0x22f   :  { %12001 = vst [vmem:[#allocation34_spill] sm:$0xff] %v8662_v49  ;;  %6461 = vtanh.f32 %v1772_v23  ;;  %v8697_v11 = vpop.eup %6455  ;;  %v1828_v49 = vunpack.c.l.bf16 %v8355_v58 }
 0x230   :  { %v1047_v34 = vpop.f32.mrf.mxu0  ;;  %v8666_v3 = vpop.f32.mrf.mxu1  ;;  %6463 = vtanh.f32 %v1776_v52  ;;  %12007 = vst [vmem:[#allocation41_spill] sm:$0xff] %v8692_v47  ;;  %v1836_v52 = vunpack.c.l.bf16 %v8394_v9 }
 0x231   :  { %6465 = vtanh.f32 %v1780_v21  ;;  %12008 = vst [vmem:[#allocation43_spill] sm:$0xff] %v8697_v11  ;;  %v8700_v24 = vpop.eup %6457  ;;  %v1852_v21 = vunpack.c.l.bf16 %v8472_v18  ;;  %v12012_v18 = vld [vmem:[#allocation9_spill] sm:$0xff] }
 0x232   :  { %6467 = vtanh.f32 %v1784_v16  ;;  %v1048_v16 = vadd.f32 %v1047_v34, %v12009_v56 }
 0x233   :  { %6469 = vtanh.f32 %v1788_v42 }
 0x234   :  { %v8704_v19 = vpop.eup %6459  ;;  %6471 = vtanh.f32 %v1792_v30  ;;  %v1840_v30 = vunpack.c.h.bf16 %v8394_v9  ;;  %v1690_v40 = vpack.c.bf16 %v1048_v16, %v1046_v63  ;;  %v12014_v9 = vld [vmem:[#allocation10_spill] sm:$0xff] }
 0x235   :  { %v8709_v25 = vpop.eup %6461  ;;  %6473 = vtanh.f32 %v1812_v0  ;;  %v1844_v0 = vunpack.c.l.bf16 %v8431_v36 }
 0x236   :  { %v8684_v1 = vpop.f32.mrf.mxu2  ;;  %v8713_v42 = vpop.eup %6463  ;;  %6475 = vtanh.f32 %v1816_v43  ;;  %v1043_v43 = vadd.f32 %v8638_v59, %v12011_v14  ;;  %v1906_v61 = vunpack.c.l.bf16 %v1690_v40 }
 0x237   :  { %12006 = vst [vmem:[#allocation39_spill] sm:$0xff] %v8684_v1  ;;  %v8716_v41 = vpop.eup %6465  ;;  %6477 = vtanh.f32 %v1836_v52  ;;  %v1910_v1 = vunpack.c.h.bf16 %v1690_v40 }
 0x238   :  { %v1050_v7 = vpop.f32.mrf.mxu0  ;;  %v8695_v23 = vpop.f32.mrf.mxu1  ;;  %6479 = vtanh.f32 %v1852_v21  ;;  %v12015_v21 = vld [vmem:[#allocation18_spill] sm:$0xff] }
 0x239   :  { %5779 = vmatmul.msk.bf16.gmra.mxu0 %vm733_vm0, %v6227_v10  ;;  %v8721_v4 = vpop.eup %6467  ;;  %v1051_v22 = vadd.f32 %v1050_v7, %v12012_v18  ;;  %6481 = vtanh.f32 %v1856_v38  ;;  %v1041_v12 = vadd.f32 %v8628_v54, %v12015_v21  ;;  %v12016_v7 = vld [vmem:[#allocation22_spill] sm:$0xff]  ;;  %v6230_v38 = vld [vmem:[%s11505_s3 + $0xc] sm:$0xf0] }
 0x23a   :  { %5811 = vmatmul.msk.bf16.gmra.mxu1 %vm733_vm0, %v6227_v10  ;;  %6483 = vtanh.f32 %v1840_v30  ;;  %v1038_v16 = vadd.f32 %v8619_v5, %v12016_v7  ;;  %v5880_v5 = vld [vmem:[%s11505_s3 + $0x10] sm:$0xf0] }
 0x23b   :  { %5843 = vmatmul.msk.bf16.gmra.mxu2 %vm733_vm0, %v6227_v10  ;;  %6485 = vtanh.f32 %v1844_v0  ;;  %v1686_v30 = vpack.c.bf16 %v1043_v43, %v1041_v12  ;;  %v6228_v0 = vld [vmem:[%s11505_s3 + $0x4] sm:$0xf] }
 0x23c   :  { %5875 = vmatmul.msk.bf16.gmra.mxu3 %vm733_vm0, %v6227_v10  ;;  %v6470_v10 = vpop.eup %6469  ;;  %6487 = vtanh.f32 %v1848_v8  ;;  %v8761_v44 = vor.u32 %v6228_v0, %v5880_v5  ;;  %v1874_v5 = vunpack.c.l.bf16 %v8567_v60 }
 0x23d   :  { %v6472_v51 = vpop.eup %6471  ;;  %v1898_v8 = vunpack.c.l.bf16 %v1686_v30  ;;  %v1902_v7 = vunpack.c.h.bf16 %v1686_v30 }
 0x23e   :  { %v8727_v15 = vpop.f32.mrf.mxu2  ;;  %v8733_v27 = vpop.eup %6473  ;;  %12019 = vst [vmem:[#allocation49_spill] sm:$0xff] %v8761_v44 }
 0x23f   :  { %12013 = vst [vmem:[#allocation45_spill] sm:$0xff] %v8727_v15  ;;  %v8737_v63 = vpop.eup %6475  ;;  %v12017_v15 = vld [vmem:[#allocation23_spill] sm:$0xff] }
 0x240   :  { %v1052_v34 = vpop.f32.mrf.mxu0  ;;  %v8730_v46 = vpop.f32.mrf.mxu1  ;;  %v1036_v33 = vadd.f32 %v8604_v37, %v12017_v15  ;;  %v2272_v37 = vpack.c.bf16 %v6472_v51, %v6470_v10 }
 0x241   :  { %v1053_v52 = vadd.f32 %v1052_v34, %v12014_v9  ;;  %v5878_v34 = vld [vmem:[%s11505_s3] sm:$0xf]  ;;  %v8747_v36 = vpop.eup %6477 }
 0x242   :  { %v8758_v12 = vor.u32 %v6230_v38, %v5878_v34  ;;  %v1682_v47 = vpack.c.bf16 %v1038_v16, %v1036_v33  ;;  %v1820_v34 = vunpack.c.l.bf16 %v8314_v39 }
 0x243   :  { %v1694_v59 = vpack.c.bf16 %v1053_v52, %v1051_v22  ;;  %v6480_v52 = vpop.eup %6479 }
 0x244   :  { %12018 = vst [vmem:[#allocation47_spill] sm:$0xff] %v8758_v12  ;;  %v6482_v43 = vpop.eup %6481  ;;  %v1890_v33 = vunpack.c.l.bf16 %v1682_v47  ;;  %v1894_v10 = vunpack.c.h.bf16 %v1682_v47 }
 0x245   :  { %v1914_v54 = vunpack.c.l.bf16 %v1694_v59  ;;  %v1918_v22 = vunpack.c.h.bf16 %v1694_v59  ;;  %v1832_v59 = vunpack.c.h.bf16 %v8355_v58  ;;  %v8763_v11 = vpop.eup %6483  ;;  %v2304_v58 = vpack.c.bf16 %v6482_v43, %v6480_v52 }
 0x246   :  { %v6486_v13 = vpop.eup %6485  ;;  %v8766_v38 = vpop.f32.mrf.mxu2  ;;  %v2264_v43 = vpack.c.bf16 %v8713_v42, %v8709_v25  ;;  %v1878_v42 = vunpack.c.h.bf16 %v8567_v60  ;;  %v6234_v60 = vld [vmem:[%s11505_s3 + $0x2c] sm:$0xf0] }
 0x247   :  { %6489 = vtanh.f32 %v1914_v54  ;;  %v6488_v54 = vpop.eup %6487 }
 0x248   :  { %6491 = vtanh.f32 %v1918_v22  ;;  %v1055_v20 = vpop.f32.mrf.mxu0  ;;  %v1224_v40 = vpop.f32.mrf.mxu1  ;;  %v1824_v22 = vunpack.c.h.bf16 %v8314_v39  ;;  %v2300_v30 = vpack.c.bf16 %v6488_v54, %v6486_v13 }
 0x249   :  { %6493 = vtanh.f32 %v1906_v61  ;;  %3098 = vmatmul.bf16.vlgmr.msrb.gmra.mxu0 %v8758_v12  ;;  %v8773_v39 = vpop.permute.xlu1 %500 }
 0x24a   :  { %6495 = vtanh.f32 %v1910_v1  ;;  %3207 = vmatmul.bf16.vlgmr.msrb.gmra.mxu1 %v8761_v44  ;;  %3962 = vmatpush.bf16.msrb.mxu0 %v2272_v37  ;;  %12020 = vst [vmem:[#allocation53_spill] sm:$0xff] %v8773_v39  ;;  %v1886_v37 = vunpack.c.h.bf16 %v8594_v57 }
 0x24b   :  { %6497 = vtanh.f32 %v1828_v49  ;;  %4071 = vmatpush.bf16.msrb.mxu1 %v2304_v58  ;;  %v2268_v49 = vpack.c.bf16 %v8721_v4, %v8716_v41  ;;  %v12021_v41 = vld [vmem:[#allocation52_spill] sm:$0xff] }
 0x24c   :  { %6499 = vtanh.f32 %v1832_v59  ;;  %v1056_v4 = vadd.f32 %v1055_v20, %v12021_v41  ;;  %v2296_v20 = vpack.c.bf16 %v8763_v11, %v8747_v36  ;;  %v6232_v36 = vld [vmem:[%s11505_s3 + $0x24] sm:$0xf] }
 0x24d   :  { %v6490_v61 = vpop.eup %6489  ;;  %6501 = vtanh.f32 %v1898_v8 }
 0x24e   :  { %v6492_v1 = vpop.eup %6491  ;;  %6503 = vtanh.f32 %v1902_v7  ;;  %3963 = vmatpush.bf16.msrb.mxu0 %v2268_v49  ;;  %v1882_v7 = vunpack.c.l.bf16 %v8594_v57  ;;  %v5894_v57 = vld [vmem:[%s11505_s3 + $0x20] sm:$0xf]  ;;  %v8799_v11 = vpop.f32.mrf.mxu2  ;;  %v5896_v49 = vld [vmem:[%s11505_s3 + $0x30] sm:$0xf0] }
 0x24f   :  { %v6494_v51 = vpop.eup %6493  ;;  %6505 = vtanh.f32 %v1820_v34  ;;  %v2334_v16 = vpack.c.bf16 %v6492_v1, %v6490_v61  ;;  %4072 = vmatpush.bf16.msrb.mxu1 %v2300_v30  ;;  %v1225_v34 = vadd.f32 %v1224_v40, %v12021_v41  ;;  %12022 = vst [vmem:[#allocation70_spill] sm:$0xff] %v8799_v11  ;;  %v2260_v30 = vpack.c.bf16 %v8704_v19, %v8700_v24 }
 0x250   :  { %v6496_v0 = vpop.eup %6495  ;;  %6507 = vtanh.f32 %v1824_v22  ;;  %v1057_v52 = vpop.f32.mrf.mxu0  ;;  %v1870_v24 = vunpack.c.h.bf16 %v8540_v31 }
 0x251   :  { %v6498_v47 = vpop.eup %6497  ;;  %6509 = vtanh.f32 %v1890_v33  ;;  %v1058_v59 = vadd.f32 %v1057_v52, %v8773_v39  ;;  %v1226_v13 = vpop.f32.mrf.mxu1  ;;  %3308 = vmatpush.bf16.msrb.mxu2 %v2334_v16  ;;  %v2330_v22 = vpack.c.bf16 %v6496_v0, %v6494_v51  ;;  %v1804_v33 = vunpack.c.l.bf16 %v8218_v17 }
 0x252   :  { %v6500_v8 = vpop.eup %6499  ;;  %6511 = vtanh.f32 %v1894_v10  ;;  %v1227_v58 = vadd.f32 %v1226_v13, %v8773_v39  ;;  %3964 = vmatpush.bf16.msrb.mxu0 %v2264_v43  ;;  %v1808_v10 = vunpack.c.h.bf16 %v8218_v17  ;;  %v1796_v16 = vunpack.c.l.bf16 %v8168_v6 }
 0x253   :  { %v6502_v25 = vpop.eup %6501  ;;  %v8785_v54 = vpack.c.bf16 %v1058_v59, %v1056_v4  ;;  %6513 = vtanh.f32 %v1874_v5  ;;  %4073 = vmatpush.bf16.msrb.mxu1 %v2296_v20  ;;  %v1222_v17 = vadd.f32 %v8730_v46, %v12014_v9  ;;  %v8812_v52 = vor.u32 %v6234_v60, %v5894_v57 }
 0x254   :  { %v6504_v61 = vpop.eup %6503  ;;  %v8790_v1 = vpack.c.bf16 %v1227_v58, %v1225_v34  ;;  %6515 = vtanh.f32 %v1882_v7  ;;  %v2292_v43 = vpack.c.bf16 %v6500_v8, %v6498_v47  ;;  %v1866_v4 = vunpack.c.l.bf16 %v8540_v31 }
 0x255   :  { %v6506_v40 = vpop.eup %6505  ;;  %3309 = vmatpush.bf16.msrb.mxu2 %v2330_v22  ;;  %6517 = vtanh.f32 %v1886_v37  ;;  %v2326_v5 = vpack.c.bf16 %v6504_v61, %v6502_v25  ;;  %12023 = vst [vmem:[#allocation71_spill] sm:$0xff] %v8812_v52  ;;  %v1220_v59 = vadd.f32 %v8695_v23, %v12012_v18  ;;  %v8817_v37 = vor.u32 %v6232_v36, %v5896_v49  ;;  %v12025_v49 = vld [vmem:[#allocation22_spill] sm:$0xff] }
 0x256   :  { %v6508_v51 = vpop.eup %6507  ;;  %6519 = vtanh.f32 %v1878_v42  ;;  %3965 = vmatpush.bf16.msrb.mxu0 %v2260_v30  ;;  %v1800_v46 = vunpack.c.h.bf16 %v8168_v6  ;;  %v1215_v8 = vadd.f32 %v8650_v28, %v12010_v32  ;;  %v1217_v34 = vadd.f32 %v8666_v3, %v12009_v56 }
 0x257   :  { %v6510_v0 = vpop.eup %6509  ;;  %6521 = vtanh.f32 %v1804_v33  ;;  %12024 = vst [vmem:[#allocation72_spill] sm:$0xff] %v8817_v37  ;;  %4074 = vmatpush.bf16.msrb.mxu1 %v2292_v43  ;;  %v1695_v23 = vpack.c.bf16 %v1222_v17, %v1220_v59  ;;  %v2256_v58 = vpack.c.bf16 %v8689_v35, %v8681_v62  ;;  %v2288_v31 = vpack.c.bf16 %v6508_v51, %v6506_v40  ;;  %v12026_v51 = vld [vmem:[#allocation66_spill] sm:$0xff]  ;;  %v12028_v43 = vld [vmem:[#allocation31_spill] sm:$0xff] }
 0x258   :  { %v6512_v7 = vpop.eup %6511  ;;  %v1060_v13 = vpop.f32.mrf.mxu0  ;;  %6523 = vtanh.f32 %v1808_v10  ;;  %v1858_v22 = vunpack.c.l.bf16 %v8489_v50  ;;  %v1862_v3 = vunpack.c.h.bf16 %v8489_v50  ;;  %v1210_v62 = vadd.f32 %v8630_v55, %v12015_v21 }
 0x259   :  { %v1229_v19 = vpop.f32.mrf.mxu1  ;;  %3310 = vmatpush.bf16.msrb.mxu2 %v2326_v5  ;;  %v6514_v47 = vpop.eup %6513  ;;  %6525 = vtanh.f32 %v1796_v16  ;;  %3103 = vmatmul.bf16.gmra.mxu0 %v8812_v52  ;;  %v2322_v6 = vpack.c.bf16 %v6512_v7, %v6510_v0  ;;  %v1212_v35 = vadd.f32 %v8640_v48, %v12011_v14  ;;  %v1691_v61 = vpack.c.bf16 %v1217_v34, %v1215_v8  ;;  %v12027_v0 = vld [vmem:[#allocation38_spill] sm:$0xff]  ;;  %v5910_v8 = vld [vmem:[%s11505_s3 + $0x40] sm:$0xf]  ;;  %v6238_v34 = vld [vmem:[%s11505_s3 + $0x4c] sm:$0xf0] }
 0x25a   :  { %v6516_v25 = vpop.eup %6515  ;;  %6527 = vtanh.f32 %v1866_v4  ;;  %3212 = vmatmul.bf16.gmra.mxu1 %v8817_v37  ;;  %3966 = vmatpush.bf16.msrb.mxu0 %v2256_v58  ;;  %v1915_v33 = vunpack.c.l.bf16 %v1695_v23  ;;  %v2252_v57 = vpack.c.bf16 %v8672_v45, %v8669_v2  ;;  %v1919_v40 = vunpack.c.h.bf16 %v1695_v23  ;;  %v8837_v10 = vpop.f32.mrf.mxu2  ;;  %v5912_v23 = vld [vmem:[%s11505_s3 + $0x50] sm:$0xf0]  ;;  %v12029_v58 = vld [vmem:[#allocation41_spill] sm:$0xff] }
 0x25b   :  { %v6518_v42 = vpop.eup %6517  ;;  %6529 = vtanh.f32 %v1870_v24  ;;  %4075 = vmatpush.bf16.msrb.mxu1 %v2288_v31  ;;  %v2284_v55 = vpack.c.bf16 %v8737_v63, %v8733_v27  ;;  %v2248_v48 = vpack.c.bf16 %v8678_v26, %v8675_v29  ;;  %v1205_v36 = vadd.f32 %v8607_v53, %v12017_v15 }
 0x25c   :  { %v6520_v28 = vpop.eup %6519  ;;  %6531 = vtanh.f32 %v1800_v46  ;;  %v2318_v50 = vpack.c.bf16 %v6518_v42, %v6516_v25  ;;  %v1207_v16 = vadd.f32 %v12026_v51, %v12025_v49  ;;  %v1687_v30 = vpack.c.bf16 %v1212_v35, %v1210_v62  ;;  %v12030_v25 = vld [vmem:[#allocation43_spill] sm:$0xff] }
 0x25d   :  { %3311 = vmatpush.bf16.msrb.mxu2 %v2322_v6  ;;  %v6522_v20 = vpop.eup %6521  ;;  %6533 = vtanh.f32 %v1858_v22  ;;  %v2314_v2 = vpack.c.bf16 %v6520_v28, %v6514_v47  ;;  %v1061_v5 = vadd.f32 %v1060_v13, %v12027_v0  ;;  %v1907_v26 = vunpack.c.l.bf16 %v1691_v61 }
 0x25e   :  { %v6524_v60 = vpop.eup %6523  ;;  %3967 = vmatpush.bf16.msrb.mxu0 %v2252_v57  ;;  %6535 = vtanh.f32 %v1862_v3  ;;  %v1230_v53 = vadd.f32 %v1229_v19, %v12027_v0  ;;  %v1911_v59 = vunpack.c.h.bf16 %v1691_v61  ;;  %v6236_v19 = vld [vmem:[%s11505_s3 + $0x44] sm:$0xf]  ;;  %v2244_v6 = vpack.c.bf16 %v12030_v25, %v12029_v58 }
 0x25f   :  { %v6526_v45 = vpop.eup %6525  ;;  %4076 = vmatpush.bf16.msrb.mxu1 %v2284_v55  ;;  %6537 = vtanh.f32 %v1915_v33  ;;  %v2280_v24 = vpack.c.bf16 %v6524_v60, %v6522_v20  ;;  %v1683_v42 = vpack.c.bf16 %v1207_v16, %v1205_v36  ;;  %v1899_v22 = vunpack.c.l.bf16 %v1687_v30  ;;  %v5886_v55 = vld [vmem:[%s11505_s3 + $0x8] sm:$0xf] }
 0x260   :  { %v1062_v17 = vpop.f32.mrf.mxu0  ;;  %v6528_v29 = vpop.eup %6527  ;;  %6539 = vtanh.f32 %v1919_v40  ;;  %v1903_v62 = vunpack.c.h.bf16 %v1687_v30  ;;  %v8869_v35 = vor.u32 %v6238_v34, %v5910_v8  ;;  %v8871_v57 = vor.u32 %v6236_v19, %v5912_v23  ;;  %v12037_v8 = vld [vmem:[#allocation33_spill] sm:$0xff] }
 0x261   :  { %v1063_v27 = vadd.f32 %v1062_v17, %v12028_v43  ;;  %v1231_v63 = vpop.f32.mrf.mxu1  ;;  %3312 = vmatpush.bf16.msrb.mxu2 %v2318_v50  ;;  %v6530_v4 = vpop.eup %6529  ;;  %6541 = vtanh.f32 %v1907_v26  ;;  %v1891_v36 = vunpack.c.l.bf16 %v1683_v42  ;;  %v1895_v51 = vunpack.c.h.bf16 %v1683_v42 }
 0x262   :  { %v1232_v7 = vadd.f32 %v1231_v63, %v12028_v43  ;;  %v6532_v47 = vpop.eup %6531  ;;  %3968 = vmatpush.bf16.msrb.mxu0 %v2248_v48  ;;  %v2310_v28 = vpack.c.bf16 %v6530_v4, %v6528_v29  ;;  %6543 = vtanh.f32 %v1911_v59  ;;  %12031 = vst [vmem:[#allocation66_spill] sm:$0xff] %v8869_v35  ;;  %v8873_v40 = vpop.f32.mrf.mxu2  ;;  %v6231_v48 = vld [vmem:[%s11505_s3 + $0x14] sm:$0xf0]  ;;  %v12035_v4 = vld [vmem:[#allocation30_spill] sm:$0xff] }
 0x263   :  { %v8851_v46 = vpack.c.bf16 %v1063_v27, %v1061_v5  ;;  %4077 = vmatpush.bf16.msrb.mxu1 %v2280_v24  ;;  %v6534_v31 = vpop.eup %6533  ;;  %v2276_v20 = vpack.c.bf16 %v6532_v47, %v6526_v45  ;;  %12032 = vst [vmem:[#allocation41_spill] sm:$0xff] %v8871_v57  ;;  %6545 = vtanh.f32 %v1899_v22  ;;  %v12034_v5 = vld [vmem:[#allocation20_spill] sm:$0xff]  ;;  %v1875_v59 = vunpack.c.l.bf16 %v12035_v4  ;;  %v12036_v24 = vld [vmem:[#allocation26_spill] sm:$0xff] }
 0x264   :  { %v8853_v13 = vpack.c.bf16 %v1232_v7, %v1230_v53  ;;  %v6536_v3 = vpop.eup %6535  ;;  %6547 = vtanh.f32 %v1903_v62  ;;  %v1883_v27 = vunpack.c.l.bf16 %v12034_v5  ;;  %v1887_v63 = vunpack.c.h.bf16 %v12034_v5  ;;  %v6242_v62 = vld [vmem:[%s11505_s3 + $0x6c] sm:$0xf0] }
 0x265   :  { %3313 = vmatpush.bf16.msrb.mxu2 %v2314_v2  ;;  %v6538_v61 = vpop.eup %6537  ;;  %v2306_v16 = vpack.c.bf16 %v6536_v3, %v6534_v31  ;;  %v8883_v2 = vor.u32 %v6231_v48, %v5886_v55  ;;  %6549 = vtanh.f32 %v1891_v36  ;;  %v1879_v23 = vunpack.c.h.bf16 %v12035_v4  ;;  %v5926_v3 = vld [vmem:[%s11505_s3 + $0x60] sm:$0xf]  ;;  %v6240_v55 = vld [vmem:[%s11505_s3 + $0x64] sm:$0xf]  ;;  %v5928_v48 = vld [vmem:[%s11505_s3 + $0x70] sm:$0xf0] }
 0x266   :  { %3969 = vmatpush.bf16.msrb.mxu0 %v2244_v6  ;;  %v6540_v60 = vpop.eup %6539  ;;  %6551 = vtanh.f32 %v1895_v51  ;;  %v1391_v6 = vadd.f32 %v8766_v38, %v12014_v9  ;;  %v12039_v38 = vld [vmem:[#allocation45_spill] sm:$0xff]  ;;  %v12040_v51 = vld [vmem:[#allocation34_spill] sm:$0xff]  ;;  %v8922_v5 = vor.u32 %v6242_v62, %v5926_v3  ;;  %v9148_v9 = vpop.permute.xlu1 %2492 }
 0x267   :  { %4078 = vmatpush.bf16.msrb.mxu1 %v2276_v20  ;;  %v6542_v17 = vpop.eup %6541  ;;  %12033 = vst [vmem:[#allocation43_spill] sm:$0xff] %v8883_v2  ;;  %v2335_v45 = vpack.c.bf16 %v6540_v60, %v6538_v61  ;;  %6553 = vtanh.f32 %v1883_v27 }
 0x268   :  { %v1065_v33 = vpop.f32.mrf.mxu0  ;;  %v6544_v30 = vpop.eup %6543  ;;  %6555 = vtanh.f32 %v1887_v63  ;;  %12042 = vst [vmem:[#allocation20_spill] sm:$0xff] %v8922_v5 }
 0x269   :  { %v1234_v50 = vpop.f32.mrf.mxu1  ;;  %3314 = vmatpush.bf16.msrb.mxu2 %v2310_v28  ;;  %3108 = vmatmul.bf16.gmra.mxu0 %v8869_v35  ;;  %v6546_v29 = vpop.eup %6545  ;;  %v2331_v53 = vpack.c.bf16 %v6544_v30, %v6542_v17  ;;  %v1066_v47 = vadd.f32 %v1065_v33, %v12036_v24  ;;  %v12038_v33 = vld [vmem:[#allocation37_spill] sm:$0xff]  ;;  %6557 = vtanh.f32 %v1875_v59  ;;  %v12041_v17 = vld [vmem:[#allocation39_spill] sm:$0xff]  ;;  %12084 = vst [vmem:[#allocation81_spill] sm:$0xff] %v9148_v9 }
 0x26a   :  { %3217 = vmatmul.bf16.gmra.mxu1 %v8871_v57  ;;  %v6548_v7 = vpop.eup %6547  ;;  %v1235_v58 = vadd.f32 %v1234_v50, %v12036_v24  ;;  %v8896_v31 = vpop.f32.mrf.mxu2  ;;  %v1867_v60 = vunpack.c.l.bf16 %v12038_v33  ;;  %v1389_v50 = vadd.f32 %v12039_v38, %v12012_v18  ;;  %v1871_v36 = vunpack.c.h.bf16 %v12038_v33 }
 0x26b   :  { %v6550_v22 = vpop.eup %6549  ;;  %v2327_v20 = vpack.c.bf16 %v6548_v7, %v6546_v29  ;;  %6559 = vtanh.f32 %v1879_v23  ;;  %v8924_v29 = vor.u32 %v6240_v55, %v5928_v48  ;;  %v12044_v7 = vld [vmem:[#allocation13_spill] sm:$0xff] }
 0x26c   :  { %v6552_v61 = vpop.eup %6551  ;;  %v1696_v30 = vpack.c.bf16 %v1391_v6, %v1389_v50  ;;  %v1859_v4 = vunpack.c.l.bf16 %v12044_v7  ;;  %6561 = vtanh.f32 %v1867_v60  ;;  %v12046_v6 = vld [vmem:[#allocation69_spill] sm:$0xff] }
 0x26d   :  { %3315 = vmatpush.bf16.msrb.mxu2 %v2306_v16  ;;  %v1384_v16 = vadd.f32 %v12040_v51, %v12010_v32  ;;  %v6554_v27 = vpop.eup %6553  ;;  %12043 = vst [vmem:[#allocation30_spill] sm:$0xff] %v8924_v29  ;;  %6563 = vtanh.f32 %v1871_v36  ;;  %v12048_v50 = vld [vmem:[#allocation65_spill] sm:$0xff]  ;;  %v12049_v36 = vld [vmem:[#allocation67_spill] sm:$0xff] }
 0x26e   :  { %v1916_v62 = vunpack.c.l.bf16 %v1696_v30  ;;  %6565 = vtanh.f32 %v1859_v4  ;;  %v1374_v55 = vadd.f32 %v12048_v50, %v12017_v15  ;;  %v1376_v51 = vadd.f32 %v12049_v36, %v12025_v49  ;;  %v12051_v4 = vld [vmem:[#allocation29_spill] sm:$0xff]  ;;  %v8963_v50 = vpop.f32.mrf.mxu3  ;;  %v5944_v36 = vld [vmem:[%s11505_s3 + $0x90] sm:$0xf0]  ;;  %v5966_v49 = vld [vmem:[%s11505_s3 + $0xa8] sm:$0xf] }
 0x26f   :  { %12052 = vst [vmem:[#allocation45_spill] sm:$0xff] %v8963_v50  ;;  %v6251_v50 = vld [vmem:[%s11505_s3 + $0xb4] sm:$0xf0]  ;;  %v12079_v32 = vld [vmem:[#allocation7_spill] sm:$0xff] }
 0x270   :  { %3316 = vmatmul.bf16.vlgmr.msrb.gmra.mxu2 %v8883_v2  ;;  %v1067_v26 = vpop.f32.mrf.mxu0 }
 0x271   :  { %3744 = vmatpush.bf16.msra.mxu2 %v2335_v45  ;;  %v1068_v34 = vadd.f32 %v1067_v26, %v12037_v8  ;;  %v1236_v19 = vpop.f32.mrf.mxu1  ;;  %v1386_v45 = vadd.f32 %v12041_v17, %v12009_v56  ;;  %v2323_v26 = vpack.c.bf16 %v6552_v61, %v6550_v22  ;;  %v1381_v22 = vadd.f32 %v12046_v6, %v12011_v14  ;;  %v12078_v56 = vld [vmem:[#allocation6_spill] sm:$0xff] }
 0x272   :  { %v1237_v25 = vadd.f32 %v1236_v19, %v12037_v8  ;;  %v1863_v19 = vunpack.c.h.bf16 %v12044_v7  ;;  %v1920_v61 = vunpack.c.h.bf16 %v1696_v30  ;;  %v8942_v38 = vpop.f32.mrf.mxu2  ;;  %v1684_v6 = vpack.c.bf16 %v1376_v51, %v1374_v55  ;;  %v6244_v55 = vld [vmem:[%s11505_s3 + $0x84] sm:$0xf] }
 0x273   :  { %v8898_v42 = vpack.c.bf16 %v1068_v34, %v1066_v47  ;;  %v5902_v47 = vld [vmem:[%s11505_s3 + $0x28] sm:$0xf]  ;;  %v6235_v34 = vld [vmem:[%s11505_s3 + $0x34] sm:$0xf0]  ;;  %v1692_v3 = vpack.c.bf16 %v1386_v45, %v1384_v16 }
 0x274   :  { %v8900_v28 = vpack.c.bf16 %v1237_v25, %v1235_v58  ;;  %v12045_v58 = vld [vmem:[#allocation68_spill] sm:$0xff]  ;;  %v8940_v33 = vor.u32 %v6235_v34, %v5902_v47  ;;  %6567 = vtanh.f32 %v1863_v19 }
 0x275   :  { %3745 = vmatpush.bf16.msra.mxu2 %v2331_v53  ;;  %v6556_v53 = vpop.eup %6555  ;;  %v1379_v25 = vadd.f32 %v12045_v58, %v12015_v21  ;;  %v1908_v17 = vunpack.c.l.bf16 %v1692_v3  ;;  %6569 = vtanh.f32 %v1916_v62  ;;  %v1912_v30 = vunpack.c.h.bf16 %v1692_v3 }
 0x276   :  { %v6558_v23 = vpop.eup %6557  ;;  %12047 = vst [vmem:[#allocation37_spill] sm:$0xff] %v8940_v33  ;;  %v2319_v60 = vpack.c.bf16 %v6556_v53, %v6554_v27  ;;  %6571 = vtanh.f32 %v1920_v61  ;;  %v12050_v53 = vld [vmem:[#allocation28_spill] sm:$0xff] }
 0x277   :  { %v1688_v16 = vpack.c.bf16 %v1381_v22, %v1379_v25  ;;  %6573 = vtanh.f32 %v1908_v17 }
 0x278   :  { %v1070_v63 = vpop.f32.mrf.mxu0  ;;  %6575 = vtanh.f32 %v1912_v30 }
 0x279   :  { %3746 = vmatpush.bf16.msra.mxu2 %v2327_v20  ;;  %v1239_v59 = vpop.f32.mrf.mxu1  ;;  %3113 = vmatmul.bf16.gmra.mxu0 %v8922_v5  ;;  %v6560_v20 = vpop.eup %6559  ;;  %v1071_v7 = vadd.f32 %v1070_v63, %v12050_v53  ;;  %v1900_v22 = vunpack.c.l.bf16 %v1688_v16  ;;  %v1904_v61 = vunpack.c.h.bf16 %v1688_v16  ;;  %v5942_v63 = vld [vmem:[%s11505_s3 + $0x80] sm:$0xf]  ;;  %v1892_v16 = vunpack.c.l.bf16 %v1684_v6 }
 0x27a   :  { %3222 = vmatmul.bf16.gmra.mxu1 %v8924_v29  ;;  %v6562_v48 = vpop.eup %6561  ;;  %v1240_v19 = vadd.f32 %v1239_v59, %v12050_v53  ;;  %v6246_v59 = vld [vmem:[%s11505_s3 + $0x8c] sm:$0xf0]  ;;  %v8971_v17 = vpop.f32.mrf.mxu2 }
 0x27b   :  { %v6564_v45 = vpop.eup %6563  ;;  %6577 = vtanh.f32 %v1900_v22  ;;  %v8973_v30 = vor.u32 %v6246_v59, %v5942_v63 }
 0x27c   :  { %v6566_v25 = vpop.eup %6565  ;;  %6579 = vtanh.f32 %v1904_v61 }
 0x27d   :  { %3747 = vmatpush.bf16.msra.mxu2 %v2323_v26  ;;  %v2315_v26 = vpack.c.bf16 %v6560_v20, %v6558_v23  ;;  %v6568_v62 = vpop.eup %6567  ;;  %v2311_v20 = vpack.c.bf16 %v6564_v45, %v6562_v48  ;;  %12053 = vst [vmem:[#allocation34_spill] sm:$0xff] %v8973_v30  ;;  %v1896_v48 = vunpack.c.h.bf16 %v1684_v6  ;;  %v12055_v6 = vld [vmem:[#allocation27_spill] sm:$0xff]  ;;  %6581 = vtanh.f32 %v1892_v16 }
 0x27e   :  { %v1884_v61 = vunpack.c.l.bf16 %v12055_v6 }
 0x27f   :  { %6583 = vtanh.f32 %v1896_v48 }
 0x280   :  { %3321 = vmatmul.bf16.gmra.mxu2 %v8940_v33  ;;  %v1072_v27 = vpop.f32.mrf.mxu0  ;;  %6585 = vtanh.f32 %v1884_v61  ;;  %v5958_v61 = vld [vmem:[%s11505_s3 + $0xa0] sm:$0xf] }
 0x281   :  { %3748 = vmatpush.bf16.msra.mxu2 %v2319_v60  ;;  %v1073_v47 = vadd.f32 %v1072_v27, %v12051_v4  ;;  %v1241_v34 = vpop.f32.mrf.mxu1  ;;  %v6570_v60 = vpop.eup %6569  ;;  %v8977_v27 = vor.u32 %v6244_v55, %v5944_v36  ;;  %v12057_v55 = vld [vmem:[#allocation25_spill] sm:$0xff] }
 0x282   :  { %v1242_v58 = vadd.f32 %v1241_v34, %v12051_v4  ;;  %v6572_v51 = vpop.eup %6571  ;;  %v5918_v34 = vld [vmem:[%s11505_s3 + $0x48] sm:$0xf]  ;;  %v8994_v36 = vpop.f32.mrf.mxu3 }
 0x283   :  { %v8953_v3 = vpack.c.bf16 %v1073_v47, %v1071_v7  ;;  %12054 = vst [vmem:[#allocation39_spill] sm:$0xff] %v8977_v27  ;;  %v6574_v7 = vpop.eup %6573 }
 0x284   :  { %v8955_v23 = vpack.c.bf16 %v1242_v58, %v1240_v19  ;;  %v6239_v19 = vld [vmem:[%s11505_s3 + $0x54] sm:$0xf0]  ;;  %v2336_v58 = vpack.c.bf16 %v6572_v51, %v6570_v60  ;;  %v6576_v22 = vpop.eup %6575  ;;  %v1876_v60 = vunpack.c.l.bf16 %v12057_v55  ;;  %12058 = vst [vmem:[#allocation68_spill] sm:$0xff] %v8994_v36  ;;  %v1880_v51 = vunpack.c.h.bf16 %v12057_v55 }
 0x285   :  { %3749 = vmatpush.bf16.msra.mxu2 %v2315_v26  ;;  %v2307_v26 = vpack.c.bf16 %v6568_v62, %v6566_v25  ;;  %v1888_v25 = vunpack.c.h.bf16 %v12055_v6  ;;  %v8991_v62 = vor.u32 %v6239_v19, %v5918_v34  ;;  %v6578_v63 = vpop.eup %6577  ;;  %v2332_v59 = vpack.c.bf16 %v6576_v22, %v6574_v7 }
 0x287   :  { %12056 = vst [vmem:[#allocation13_spill] sm:$0xff] %v8991_v62  ;;  %6587 = vtanh.f32 %v1888_v25  ;;  %v6250_v25 = vld [vmem:[%s11505_s3 + $0xac] sm:$0xf0] }
 0x288   :  { %v8975_v45 = vpop.f32.mrf.mxu0  ;;  %6589 = vtanh.f32 %v1876_v60 }
 0x289   :  { %3750 = vmatpush.bf16.msra.mxu2 %v2311_v20  ;;  %v8979_v47 = vpop.f32.mrf.mxu1  ;;  %3118 = vmatmul.bf16.gmra.mxu0 %v8973_v30  ;;  %v6580_v20 = vpop.eup %6579  ;;  %6591 = vtanh.f32 %v1880_v51  ;;  %v12060_v51 = vld [vmem:[#allocation32_spill] sm:$0xff] }
 0x28a   :  { %3227 = vmatmul.bf16.gmra.mxu1 %v8977_v27  ;;  %v6582_v48 = vpop.eup %6581  ;;  %v2328_v7 = vpack.c.bf16 %v6580_v20, %v6578_v63  ;;  %v6248_v63 = vld [vmem:[%s11505_s3 + $0xa4] sm:$0xf]  ;;  %v5960_v20 = vld [vmem:[%s11505_s3 + $0xb0] sm:$0xf0]  ;;  %v9026_v29 = vpop.f32.mrf.mxu3 }
 0x28b   :  { %v6584_v19 = vpop.eup %6583  ;;  %v9024_v30 = vor.u32 %v6248_v63, %v5960_v20  ;;  %12063 = vst [vmem:[#allocation67_spill] sm:$0xff] %v9026_v29  ;;  %v12077_v29 = vld [vmem:[#allocation21_spill] sm:$0xff] }
 0x28c   :  { %v2324_v55 = vpack.c.bf16 %v6584_v19, %v6582_v48  ;;  %v5934_v48 = vld [vmem:[%s11505_s3 + $0x68] sm:$0xf]  ;;  %v6243_v19 = vld [vmem:[%s11505_s3 + $0x74] sm:$0xf0] }
 0x28d   :  { %3751 = vmatpush.bf16.msra.mxu2 %v2307_v26  ;;  %v9000_v26 = vpop.f32.mrf.mxu2  ;;  %12062 = vst [vmem:[#allocation65_spill] sm:$0xff] %v9024_v30 }
 0x290   :  { %3326 = vmatmul.bf16.gmra.mxu2 %v8991_v62  ;;  %v8998_v16 = vpop.f32.mrf.mxu0  ;;  %v1864_v62 = vunpack.c.h.bf16 %v12060_v51 }
 0x291   :  { %4180 = vmatpush.bf16.msrb.mxu2 %v2336_v58  ;;  %v9002_v34 = vpop.f32.mrf.mxu1  ;;  %v12059_v58 = vld [vmem:[#allocation36_spill] sm:$0xff] }
 0x292   :  { %v1868_v22 = vunpack.c.l.bf16 %v12059_v58  ;;  %v1872_v6 = vunpack.c.h.bf16 %v12059_v58  ;;  %v9019_v58 = vor.u32 %v6250_v25, %v5958_v61  ;;  %v9040_v25 = vor.u32 %v6243_v19, %v5934_v48  ;;  %v9045_v57 = vpop.f32.mrf.mxu3  ;;  %v6252_v19 = vld [vmem:[%s11505_s3 + $0xc4] sm:$0xf] }
 0x293   :  { %12065 = vst [vmem:[#allocation25_spill] sm:$0xff] %v9045_v57 }
 0x294   :  { %6593 = vtanh.f32 %v1868_v22  ;;  %12061 = vst [vmem:[#allocation69_spill] sm:$0xff] %v9019_v58 }
 0x295   :  { %4181 = vmatpush.bf16.msrb.mxu2 %v2332_v59  ;;  %v6586_v59 = vpop.eup %6585  ;;  %6595 = vtanh.f32 %v1872_v6  ;;  %v9036_v6 = vpop.f32.mrf.mxu2  ;;  %12064 = vst [vmem:[#allocation27_spill] sm:$0xff] %v9040_v25 }
 0x296   :  { %v6588_v60 = vpop.eup %6587 }
 0x297   :  { %v6590_v33 = vpop.eup %6589  ;;  %v2320_v22 = vpack.c.bf16 %v6588_v60, %v6586_v59 }
 0x298   :  { %v9022_v27 = vpop.f32.mrf.mxu0  ;;  %v6592_v61 = vpop.eup %6591 }
 0x299   :  { %4182 = vmatpush.bf16.msrb.mxu2 %v2328_v7  ;;  %v1860_v7 = vunpack.c.l.bf16 %v12060_v51  ;;  %v9028_v5 = vpop.f32.mrf.mxu1  ;;  %3123 = vmatmul.bf16.gmra.mxu0 %v9019_v58  ;;  %v2316_v20 = vpack.c.bf16 %v6592_v61, %v6590_v33  ;;  %v6254_v33 = vld [vmem:[%s11505_s3 + $0xcc] sm:$0xf0] }
 0x29a   :  { %3232 = vmatmul.bf16.gmra.mxu1 %v9024_v30  ;;  %v6594_v63 = vpop.eup %6593  ;;  %v6247_v30 = vld [vmem:[%s11505_s3 + $0x94] sm:$0xf0] }
 0x29b   :  { %6597 = vtanh.f32 %v1860_v7 }
 0x29c   :  { %6599 = vtanh.f32 %v1864_v62  ;;  %v5974_v62 = vld [vmem:[%s11505_s3 + $0xc0] sm:$0xf] }
 0x29d   :  { %4183 = vmatpush.bf16.msrb.mxu2 %v2324_v55  ;;  %v6596_v55 = vpop.eup %6595  ;;  %v9053_v48 = vpop.f32.mrf.mxu2 }
 0x29e   :  { %v2312_v7 = vpack.c.bf16 %v6596_v55, %v6594_v63  ;;  %v9061_v63 = vor.u32 %v6254_v33, %v5974_v62 }
 0x2a0   :  { %3331 = vmatmul.bf16.gmra.mxu2 %v9040_v25  ;;  %v1082_v51 = vpop.f32.mrf.mxu0  ;;  %12066 = vst [vmem:[#allocation36_spill] sm:$0xff] %v9061_v63  ;;  %v5950_v25 = vld [vmem:[%s11505_s3 + $0x88] sm:$0xf] }
 0x2a1   :  { %4184 = vmatpush.bf16.msrb.mxu2 %v2320_v22  ;;  %v6598_v59 = vpop.eup %6597  ;;  %v9043_v60 = vpop.f32.mrf.mxu1  ;;  %v5976_v22 = vld [vmem:[%s11505_s3 + $0xd0] sm:$0xf0]  ;;  %v1083_v21 = vadd.f32 %v1082_v51, %v12077_v29  ;;  %v6006_v51 = vld [vmem:[%s11505_s3 + $0x100] sm:$0xf] }
 0x2a2   :  { %v6600_v2 = vpop.eup %6599  ;;  %v9063_v55 = vor.u32 %v6252_v19, %v5976_v22  ;;  %v5990_v22 = vld [vmem:[%s11505_s3 + $0xe0] sm:$0xf] }
 0x2a3   :  { %v2308_v61 = vpack.c.bf16 %v6600_v2, %v6598_v59  ;;  %v9075_v2 = vor.u32 %v6247_v30, %v5950_v25  ;;  %v9077_v59 = vpop.f32.mrf.mxu3  ;;  %v6256_v30 = vld [vmem:[%s11505_s3 + $0xe4] sm:$0xf]  ;;  %v5992_v25 = vld [vmem:[%s11505_s3 + $0xf0] sm:$0xf0] }
 0x2a4   :  { %12067 = vst [vmem:[#allocation32_spill] sm:$0xff] %v9063_v55  ;;  %v9100_v58 = vor.u32 %v6256_v30, %v5992_v25  ;;  %v12075_v25 = vld [vmem:[#allocation16_spill] sm:$0xff] }
 0x2a5   :  { %4185 = vmatpush.bf16.msrb.mxu2 %v2316_v20  ;;  %12068 = vst [vmem:[#allocation73_spill] sm:$0xff] %v9075_v2  ;;  %v9079_v62 = vpop.f32.mrf.mxu2 }
 0x2a6   :  { %12069 = vst [vmem:[#allocation74_spill] sm:$0xff] %v9077_v59 }
 0x2a7   :  { %12072 = vst [vmem:[#allocation77_spill] sm:$0xff] %v9100_v58 }
 0x2a8   :  { %v1085_v20 = vpop.f32.mrf.mxu0 }
 0x2a9   :  { %4186 = vmatpush.bf16.msrb.mxu2 %v2312_v7  ;;  %v9065_v7 = vpop.f32.mrf.mxu1  ;;  %3128 = vmatmul.bf16.gmra.mxu0 %v9061_v63  ;;  %v1086_v15 = vadd.f32 %v1085_v20, %v12075_v25 }
 0x2aa   :  { %3237 = vmatmul.bf16.gmra.mxu1 %v9063_v55 }
 0x2ad   :  { %4187 = vmatpush.bf16.msrb.mxu2 %v2308_v61  ;;  %v6258_v61 = vld [vmem:[%s11505_s3 + $0xec] sm:$0xf0]  ;;  %v9102_v35 = vpop.f32.mrf.mxu2 }
 0x2ae   :  { %v9098_v55 = vor.u32 %v6258_v61, %v5990_v22  ;;  %v9114_v22 = vor.u32 %v6251_v50, %v5966_v49  ;;  %v12074_v61 = vld [vmem:[#allocation17_spill] sm:$0xff]  ;;  %v12080_v49 = vld [vmem:[#allocation14_spill] sm:$0xff] }
 0x2af   :  { %v1081_v50 = vadd.f32 %v9022_v27, %v12080_v49  ;;  %v6260_v27 = vld [vmem:[%s11505_s3 + $0x104] sm:$0xf] }
 0x2b0   :  { %3336 = vmatmul.bf16.gmra.mxu2 %v9075_v2  ;;  %v1087_v33 = vpop.f32.mrf.mxu0  ;;  %v9096_v2 = vpop.f32.mrf.mxu3  ;;  %12071 = vst [vmem:[#allocation76_spill] sm:$0xff] %v9098_v55 }
 0x2b1   :  { %v9082_v19 = vpop.f32.mrf.mxu1  ;;  %12070 = vst [vmem:[#allocation75_spill] sm:$0xff] %v9096_v2  ;;  %v1088_v30 = vadd.f32 %v1087_v33, %v12074_v61 }
 0x2b2   :  { %12073 = vst [vmem:[#allocation78_spill] sm:$0xff] %v9114_v22 }
 0x2b3   :  { %v1722_v2 = vpack.c.bf16 %v1088_v30, %v1086_v15  ;;  %v6262_v15 = vld [vmem:[%s11505_s3 + $0x10c] sm:$0xf0] }
 0x2b4   :  { %v9146_v18 = vor.u32 %v6262_v15, %v6006_v51 }
 0x2b5   :  { %v9128_v33 = vpop.f32.mrf.mxu2 }
 0x2b6   :  { %12083 = vst [vmem:[#allocation80_spill] sm:$0xff] %v9146_v18 }
 0x2b8   :  { %v1090_v63 = vpop.f32.mrf.mxu0  ;;  %v9119_v14 = vpop.f32.mrf.mxu3 }
 0x2b9   :  { %v9104_v36 = vpop.f32.mrf.mxu1  ;;  %3133 = vmatmul.bf16.gmra.mxu0 %v9098_v55  ;;  %12076 = vst [vmem:[#allocation79_spill] sm:$0xff] %v9119_v14  ;;  %v1091_v59 = vadd.f32 %v1090_v63, %v12078_v56  ;;  %v1970_v63 = vunpack.c.l.bf16 %v1722_v2 }
 0x2ba   :  { %3242 = vmatmul.bf16.gmra.mxu1 %v9100_v58  ;;  %v12081_v58 = vld [vmem:[#allocation19_spill] sm:$0xff] }
 0x2c0   :  { %3341 = vmatmul.bf16.gmra.mxu2 %v9114_v22  ;;  %v1092_v57 = vpop.f32.mrf.mxu0  ;;  %v1078_v22 = vadd.f32 %v8998_v16, %v12081_v58  ;;  %v6008_v16 = vld [vmem:[%s11505_s3 + $0x110] sm:$0xf0] }
 0x2c1   :  { %v1093_v55 = vadd.f32 %v1092_v57, %v12079_v32  ;;  %v9124_v37 = vpop.f32.mrf.mxu1  ;;  %v1718_v57 = vpack.c.bf16 %v1083_v21, %v1081_v50  ;;  %v9150_v50 = vor.u32 %v6260_v27, %v6008_v16 }
 0x2c3   :  { %v1726_v20 = vpack.c.bf16 %v1093_v55, %v1091_v59  ;;  %v1974_v55 = vunpack.c.h.bf16 %v1722_v2  ;;  %v12082_v59 = vld [vmem:[#allocation24_spill] sm:$0xff]  ;;  %12085 = vst [vmem:[#allocation82_spill] sm:$0xff] %v9150_v50  ;;  %v1962_v44 = vunpack.c.l.bf16 %v1718_v57  ;;  %v5982_v2 = vld [vmem:[%s11505_s3 + $0xc8] sm:$0xf]  ;;  %v1966_v51 = vunpack.c.h.bf16 %v1718_v57 }
 0x2c4   :  { %v1076_v14 = vadd.f32 %v8975_v45, %v12082_v59  ;;  %v6255_v45 = vld [vmem:[%s11505_s3 + $0xd4] sm:$0xf0] }
 0x2c5   :  { %v1978_v30 = vunpack.c.l.bf16 %v1726_v20  ;;  %v1982_v52 = vunpack.c.h.bf16 %v1726_v20 }
 0x2c6   :  { %v1714_v20 = vpack.c.bf16 %v1078_v22, %v1076_v14  ;;  %v9165_v14 = vor.u32 %v6255_v45, %v5982_v2  ;;  %v1950_v45 = vunpack.c.h.bf16 %v8953_v3 }
 0x2c7   :  { %6601 = vtanh.f32 %v1978_v30  ;;  %v9167_v30 = vpop.f32.mrf.mxu2 }
 0x2c8   :  { %6603 = vtanh.f32 %v1982_v52  ;;  %v3099_v21 = vpop.f32.mrf.mxu0  ;;  %v9159_v52 = vpop.f32.mrf.mxu3  ;;  %12087 = vst [vmem:[#allocation84_spill] sm:$0xff] %v9165_v14  ;;  %v1958_v16 = vunpack.c.h.bf16 %v1714_v20 }
 0x2c9   :  { %6605 = vtanh.f32 %v1970_v63  ;;  %v3100_v12 = vadd.f32 %v3099_v21, %v9148_v9  ;;  %v3208_v11 = vpop.f32.mrf.mxu1  ;;  %12086 = vst [vmem:[#allocation83_spill] sm:$0xff] %v9159_v52  ;;  %3138 = vmatmul.bf16.gmra.mxu0 %v9146_v18  ;;  %v1954_v63 = vunpack.c.l.bf16 %v1714_v20  ;;  %v9169_v9 = vpop.permute.xlu2 %2497 }
 0x2ca   :  { %6607 = vtanh.f32 %v1974_v55  ;;  %3247 = vmatmul.bf16.gmra.mxu1 %v9150_v50  ;;  %12088 = vst [vmem:[#allocation85_spill] sm:$0xff] %v9169_v9 }
 0x2cb   :  { %v9161_v15 = vadd.f32 %v3208_v11, %v3100_v12  ;;  %6609 = vtanh.f32 %v1962_v44  ;;  %v1946_v11 = vunpack.c.l.bf16 %v8953_v3  ;;  %v6264_v3 = vld [vmem:[%s11505_s3 + $0x124] sm:$0xf] }
 0x2cc   :  { %6611 = vtanh.f32 %v1966_v51 }
 0x2cd   :  { %v6602_v22 = vpop.eup %6601  ;;  %6613 = vtanh.f32 %v1954_v63  ;;  %v6266_v63 = vld [vmem:[%s11505_s3 + $0x12c] sm:$0xf0] }
 0x2ce   :  { %v6604_v27 = vpop.eup %6603  ;;  %6615 = vtanh.f32 %v1958_v16  ;;  %v6024_v16 = vld [vmem:[%s11505_s3 + $0x130] sm:$0xf0] }
 0x2cf   :  { %v6606_v57 = vpop.eup %6605  ;;  %v2366_v55 = vpack.c.bf16 %v6604_v27, %v6602_v22  ;;  %6617 = vtanh.f32 %v1946_v11  ;;  %v9203_v52 = vor.u32 %v6264_v3, %v6024_v16 }
 0x2d0   :  { %v6608_v21 = vpop.eup %6607  ;;  %3346 = vmatmul.bf16.gmra.mxu2 %v9165_v14  ;;  %v3101_v12 = vpop.f32.mrf.mxu0  ;;  %v6022_v14 = vld [vmem:[%s11505_s3 + $0x120] sm:$0xf]  ;;  %6619 = vtanh.f32 %v1950_v45 }
 0x2d1   :  { %v3102_v2 = vadd.f32 %v3101_v12, %v9169_v9  ;;  %3417 = vmatpush.bf16.msrb.mxu3 %v2366_v55  ;;  %v3210_v44 = vpop.f32.mrf.mxu1  ;;  %v6610_v20 = vpop.eup %6609  ;;  %v2362_v22 = vpack.c.bf16 %v6608_v21, %v6606_v57  ;;  %v1938_v55 = vunpack.c.l.bf16 %v8898_v42  ;;  %v1942_v57 = vunpack.c.h.bf16 %v8898_v42  ;;  %12092 = vst [vmem:[#allocation89_spill] sm:$0xff] %v9203_v52 }
 0x2d2   :  { %v6612_v27 = vpop.eup %6611  ;;  %v9183_v50 = vpop.f32.mrf.mxu3  ;;  %v1262_v21 = vadd.f32 %v9124_v37, %v12079_v32  ;;  %v9197_v11 = vor.u32 %v6266_v63, %v6022_v14  ;;  %v1260_v9 = vadd.f32 %v9104_v36, %v12078_v56  ;;  %v1930_v42 = vunpack.c.l.bf16 %v8851_v46  ;;  %v5998_v14 = vld [vmem:[%s11505_s3 + $0xe8] sm:$0xf] }
 0x2d3   :  { %v9175_v51 = vadd.f32 %v3210_v44, %v3102_v2  ;;  %12089 = vst [vmem:[#allocation86_spill] sm:$0xff] %v9183_v50  ;;  %v6614_v12 = vpop.eup %6613  ;;  %v9195_v2 = vpop.f32.mrf.mxu2  ;;  %v2358_v44 = vpack.c.bf16 %v6612_v27, %v6610_v20  ;;  %6621 = vtanh.f32 %v1938_v55  ;;  %v6259_v20 = vld [vmem:[%s11505_s3 + $0xf4] sm:$0xf0]  ;;  %v1934_v36 = vunpack.c.h.bf16 %v8851_v46 }
 0x2d4   :  { %12090 = vst [vmem:[#allocation87_spill] sm:$0xff] %v9197_v11  ;;  %v9199_v50 = vpop.permute.xlu0 %2502  ;;  %6623 = vtanh.f32 %v1942_v57  ;;  %v1257_v27 = vadd.f32 %v9082_v19, %v12074_v61  ;;  %v1727_v63 = vpack.c.bf16 %v1262_v21, %v1260_v9  ;;  %v9223_v46 = vor.u32 %v6259_v20, %v5998_v14 }
 0x2d5   :  { %3418 = vmatpush.bf16.msrb.mxu3 %v2362_v22  ;;  %v6616_v22 = vpop.eup %6615  ;;  %12091 = vst [vmem:[#allocation88_spill] sm:$0xff] %v9199_v50  ;;  %v1926_v57 = vunpack.c.h.bf16 %v8785_v54  ;;  %6625 = vtanh.f32 %v1930_v42  ;;  %v1252_v9 = vadd.f32 %v9043_v60, %v12077_v29  ;;  %v1247_v20 = vadd.f32 %v9002_v34, %v12081_v58  ;;  %v6270_v34 = vld [vmem:[%s11505_s3 + $0x14c] sm:$0xf0] }
 0x2d6   :  { %v6618_v55 = vpop.eup %6617  ;;  %12093 = vst [vmem:[#allocation90_spill] sm:$0xff] %v9223_v46  ;;  %6627 = vtanh.f32 %v1934_v36  ;;  %v1979_v21 = vunpack.c.l.bf16 %v1727_v63 }
 0x2d7   :  { %v6620_v16 = vpop.eup %6619 }
 0x2d8   :  { %v3104_v18 = vpop.f32.mrf.mxu0 }
 0x2d9   :  { %v3105_v37 = vadd.f32 %v3104_v18, %v9199_v50  ;;  %3419 = vmatpush.bf16.msrb.mxu3 %v2358_v44  ;;  %v3213_v45 = vpop.f32.mrf.mxu1  ;;  %3143 = vmatmul.bf16.gmra.mxu0 %v9197_v11  ;;  %v2354_v18 = vpack.c.bf16 %v6616_v22, %v6614_v12  ;;  %v1922_v44 = vunpack.c.l.bf16 %v8785_v54  ;;  %v1255_v50 = vadd.f32 %v9065_v7, %v12075_v25  ;;  %v6622_v12 = vpop.eup %6621 }
 0x2da   :  { %3252 = vmatmul.bf16.gmra.mxu1 %v9203_v52  ;;  %v9228_v22 = vpop.f32.mrf.mxu3  ;;  %v6624_v7 = vpop.eup %6623  ;;  %v1250_v54 = vadd.f32 %v9028_v5, %v12080_v49 }
 0x2db   :  { %v9216_v3 = vadd.f32 %v3213_v45, %v3105_v37  ;;  %v1723_v19 = vpack.c.bf16 %v1257_v27, %v1255_v50  ;;  %12094 = vst [vmem:[#allocation91_spill] sm:$0xff] %v9228_v22  ;;  %v1983_v37 = vunpack.c.h.bf16 %v1727_v63  ;;  %v2350_v45 = vpack.c.bf16 %v6620_v16, %v6618_v55  ;;  %v9230_v11 = vpop.permute.xlu1 %2507  ;;  %v9235_v14 = vpop.f32.mrf.mxu2  ;;  %v6014_v22 = vld [vmem:[%s11505_s3 + $0x108] sm:$0xf] }
 0x2dc   :  { %12095 = vst [vmem:[#allocation92_spill] sm:$0xff] %v9230_v11  ;;  %6629 = vtanh.f32 %v1922_v44  ;;  %v1719_v36 = vpack.c.bf16 %v1252_v9, %v1250_v54  ;;  %v6626_v63 = vpop.eup %6625  ;;  %v1245_v44 = vadd.f32 %v8979_v47, %v12082_v59  ;;  %v6268_v9 = vld [vmem:[%s11505_s3 + $0x144] sm:$0xf] }
 0x2dd   :  { %3420 = vmatpush.bf16.msrb.mxu3 %v2354_v18  ;;  %6631 = vtanh.f32 %v1926_v57  ;;  %v1971_v27 = vunpack.c.l.bf16 %v1723_v19  ;;  %v1975_v55 = vunpack.c.h.bf16 %v1723_v19  ;;  %v2346_v18 = vpack.c.bf16 %v6624_v7, %v6622_v12  ;;  %v6628_v16 = vpop.eup %6627  ;;  %v6038_v57 = vld [vmem:[%s11505_s3 + $0x140] sm:$0xf]  ;;  %v6040_v19 = vld [vmem:[%s11505_s3 + $0x150] sm:$0xf0] }
 0x2de   :  { %6633 = vtanh.f32 %v1979_v21  ;;  %v1715_v12 = vpack.c.bf16 %v1247_v20, %v1245_v44  ;;  %v1963_v47 = vunpack.c.l.bf16 %v1719_v36  ;;  %v2342_v7 = vpack.c.bf16 %v6628_v16, %v6626_v63  ;;  %v6263_v63 = vld [vmem:[%s11505_s3 + $0x114] sm:$0xf0]  ;;  %v5888_v16 = vld [vmem:[%s11505_s3 + $0x18] sm:$0xf0] }
 0x2df   :  { %6635 = vtanh.f32 %v1983_v37  ;;  %v9256_v54 = vor.u32 %v6270_v34, %v6038_v57 }
 0x2e0   :  { %3351 = vmatmul.bf16.gmra.mxu2 %v9223_v46  ;;  %v3106_v42 = vpop.f32.mrf.mxu0  ;;  %6637 = vtanh.f32 %v1971_v27  ;;  %v1955_v44 = vunpack.c.l.bf16 %v1715_v12  ;;  %v1959_v57 = vunpack.c.h.bf16 %v1715_v12  ;;  %v1951_v12 = vunpack.c.h.bf16 %v8955_v23 }
 0x2e1   :  { %v3107_v60 = vadd.f32 %v3106_v42, %v9230_v11  ;;  %3421 = vmatpush.bf16.msrb.mxu3 %v2350_v45  ;;  %v3215_v50 = vpop.f32.mrf.mxu1  ;;  %v1967_v45 = vunpack.c.h.bf16 %v1719_v36  ;;  %6639 = vtanh.f32 %v1975_v55  ;;  %12096 = vst [vmem:[#allocation93_spill] sm:$0xff] %v9256_v54  ;;  %v6229_v55 = vld [vmem:[%s11505_s3 + $0xc] sm:$0xf] }
 0x2e2   :  { %v6630_v21 = vpop.eup %6629  ;;  %v9265_v20 = vpop.f32.mrf.mxu3  ;;  %6641 = vtanh.f32 %v1963_v47  ;;  %v9284_v46 = vor.u32 %v6229_v55, %v5888_v16 }
 0x2e3   :  { %v9240_v5 = vadd.f32 %v3215_v50, %v3107_v60  ;;  %v6632_v37 = vpop.eup %6631  ;;  %v9258_v60 = vpop.permute.xlu2 %2512  ;;  %12099 = vst [vmem:[#allocation96_spill] sm:$0xff] %v9265_v20  ;;  %6643 = vtanh.f32 %v1967_v45 }
 0x2e4   :  { %v6634_v42 = vpop.eup %6633  ;;  %12097 = vst [vmem:[#allocation94_spill] sm:$0xff] %v9258_v60  ;;  %v1430_v34 = vpop.f32.mrf.mxu2  ;;  %6645 = vtanh.f32 %v1955_v44 }
 0x2e5   :  { %3422 = vmatpush.bf16.msrb.mxu3 %v2346_v18  ;;  %v9260_v18 = vor.u32 %v6268_v9, %v6040_v19  ;;  %v6636_v11 = vpop.eup %6635  ;;  %v2338_v19 = vpack.c.bf16 %v6632_v37, %v6630_v21  ;;  %12101 = vst [vmem:[#allocation98_spill] sm:$0xff] %v9284_v46  ;;  %6647 = vtanh.f32 %v1959_v57  ;;  %v9287_v45 = vpop.permute.xlu0 %2517 }
 0x2e6   :  { %v2367_v20 = vpack.c.bf16 %v6636_v11, %v6634_v42  ;;  %12102 = vst [vmem:[#allocation99_spill] sm:$0xff] %v9287_v45 }
 0x2e7   :  { %12098 = vst [vmem:[#allocation95_spill] sm:$0xff] %v9260_v18 }
 0x2e8   :  { %v3109_v50 = vpop.f32.mrf.mxu0 }
 0x2e9   :  { %v3110_v27 = vadd.f32 %v3109_v50, %v9258_v60  ;;  %3423 = vmatpush.bf16.msrb.mxu3 %v2342_v7  ;;  %v3218_v36 = vpop.f32.mrf.mxu1  ;;  %3148 = vmatmul.bf16.gmra.mxu0 %v9256_v54  ;;  %v6638_v7 = vpop.eup %6637  ;;  %v1947_v50 = vunpack.c.l.bf16 %v8955_v23  ;;  %v9282_v60 = vor.u32 %v6263_v63, %v6014_v22  ;;  %v1939_v23 = vunpack.c.l.bf16 %v8900_v28  ;;  %v6261_v54 = vld [vmem:[%s11505_s3 + $0x10c] sm:$0xf] }
 0x2ea   :  { %3257 = vmatmul.bf16.gmra.mxu1 %v9260_v18  ;;  %v6640_v52 = vpop.eup %6639  ;;  %v6295_v18 = vld [vmem:[%s11505_s3 + $0x214] sm:$0xf0] }
 0x2eb   :  { %v9277_v9 = vadd.f32 %v3218_v36, %v3110_v27  ;;  %12100 = vst [vmem:[#allocation97_spill] sm:$0xff] %v9282_v60  ;;  %v6642_v47 = vpop.eup %6641  ;;  %6649 = vtanh.f32 %v1947_v50  ;;  %v2363_v22 = vpack.c.bf16 %v6640_v52, %v6638_v7  ;;  %v1943_v27 = vunpack.c.h.bf16 %v8900_v28  ;;  %v6274_v28 = vld [vmem:[%s11505_s3 + $0x16c] sm:$0xf0] }
 0x2ec   :  { %v6644_v21 = vpop.eup %6643  ;;  %6651 = vtanh.f32 %v1951_v12  ;;  %v1431_v36 = vadd.f32 %v1430_v34, %v12079_v32  ;;  %v1923_v52 = vunpack.c.l.bf16 %v8790_v1  ;;  %v1931_v34 = vunpack.c.l.bf16 %v8853_v13  ;;  %v6056_v12 = vld [vmem:[%s11505_s3 + $0x170] sm:$0xf0] }
 0x2ed   :  { %3424 = vmatpush.bf16.msrb.mxu3 %v2338_v19  ;;  %v6646_v16 = vpop.eup %6645  ;;  %v2359_v57 = vpack.c.bf16 %v6644_v21, %v6642_v47  ;;  %v6054_v19 = vld [vmem:[%s11505_s3 + $0x160] sm:$0xf]  ;;  %v1429_v50 = vadd.f32 %v9235_v14, %v12078_v56  ;;  %6653 = vtanh.f32 %v1939_v23  ;;  %v1426_v21 = vadd.f32 %v9195_v2, %v12074_v61 }
 0x2ee   :  { %v6648_v7 = vpop.eup %6647  ;;  %6655 = vtanh.f32 %v1943_v27  ;;  %v9321_v14 = vor.u32 %v6274_v28, %v6054_v19  ;;  %v1927_v23 = vunpack.c.h.bf16 %v8790_v1  ;;  %v1424_v2 = vadd.f32 %v9167_v30, %v12075_v25 }
 0x2ef   :  { %6657 = vtanh.f32 %v1923_v52  ;;  %v6267_v52 = vld [vmem:[%s11505_s3 + $0x134] sm:$0xf0]  ;;  %v1421_v30 = vadd.f32 %v9128_v33, %v12077_v29 }
 0x2f0   :  { %3356 = vmatmul.bf16.gmra.mxu2 %v9282_v60  ;;  %3425 = vmatmul.bf16.vlgmr.msrb.gmra.mxu3 %v9284_v46  ;;  %v3111_v11 = vpop.f32.mrf.mxu0  ;;  %12104 = vst [vmem:[#allocation101_spill] sm:$0xff] %v9321_v14  ;;  %6659 = vtanh.f32 %v1931_v34  ;;  %v1724_v19 = vpack.c.bf16 %v1426_v21, %v1424_v2  ;;  %v6291_v60 = vld [vmem:[%s11505_s3 + $0x1f4] sm:$0xf0] }
 0x2f1   :  { %3853 = vmatpush.bf16.msra.mxu3 %v2367_v20  ;;  %v3112_v37 = vadd.f32 %v3111_v11, %v9287_v45  ;;  %v3220_v42 = vpop.f32.mrf.mxu1  ;;  %v9293_v20 = vpop.f32.mrf.mxu3  ;;  %v1935_v11 = vunpack.c.h.bf16 %v8853_v13  ;;  %v2355_v45 = vpack.c.bf16 %v6648_v7, %v6646_v16  ;;  %v6030_v13 = vld [vmem:[%s11505_s3 + $0x128] sm:$0xf]  ;;  %v6233_v16 = vld [vmem:[%s11505_s3 + $0x2c] sm:$0xf] }
 0x2f2   :  { %12103 = vst [vmem:[#allocation100_spill] sm:$0xff] %v9293_v20  ;;  %v6650_v47 = vpop.eup %6649  ;;  %v1972_v2 = vunpack.c.l.bf16 %v1724_v19  ;;  %v6257_v20 = vld [vmem:[%s11505_s3 + $0xec] sm:$0xf] }
 0x2f3   :  { %v9297_v63 = vadd.f32 %v3220_v42, %v3112_v37  ;;  %v3317_v55 = vpop.f32.mrf.mxu2  ;;  %v1728_v37 = vpack.c.bf16 %v1431_v36, %v1429_v50  ;;  %v9323_v42 = vpop.permute.xlu1 %2522  ;;  %6661 = vtanh.f32 %v1935_v11  ;;  %v9352_v11 = vor.u32 %v6267_v52, %v6030_v13 }
 0x2f4   :  { %v9301_v44 = vadd.f32 %v3317_v55, %v9161_v15  ;;  %v6272_v15 = vld [vmem:[%s11505_s3 + $0x164] sm:$0xf]  ;;  %12105 = vst [vmem:[#allocation102_spill] sm:$0xff] %v9323_v42  ;;  %6663 = vtanh.f32 %v1927_v23  ;;  %v1414_v52 = vadd.f32 %v9053_v48, %v12082_v59 }
 0x2f5   :  { %3854 = vmatpush.bf16.msra.mxu3 %v2363_v22  ;;  %v6652_v22 = vpop.eup %6651  ;;  %v9325_v46 = vor.u32 %v6272_v15, %v6056_v12  ;;  %v1980_v28 = vunpack.c.l.bf16 %v1728_v37  ;;  %v1984_v15 = vunpack.c.h.bf16 %v1728_v37  ;;  %12107 = vst [vmem:[#allocation104_spill] sm:$0xff] %v9352_v11 }
 0x2f6   :  { %v2351_v1 = vpack.c.bf16 %v6652_v22, %v6650_v47  ;;  %v6654_v50 = vpop.eup %6653  ;;  %v1419_v22 = vadd.f32 %v9102_v35, %v12080_v49 }
 0x2f7   :  { %12106 = vst [vmem:[#allocation103_spill] sm:$0xff] %v9325_v46  ;;  %v6656_v47 = vpop.eup %6655  ;;  %6665 = vtanh.f32 %v1980_v28 }
 0x2f8   :  { %v3114_v55 = vpop.f32.mrf.mxu0  ;;  %v6658_v21 = vpop.eup %6657  ;;  %v1720_v37 = vpack.c.bf16 %v1421_v30, %v1419_v22  ;;  %6667 = vtanh.f32 %v1984_v15  ;;  %v2347_v35 = vpack.c.bf16 %v6656_v47, %v6654_v50  ;;  %v6070_v47 = vld [vmem:[%s11505_s3 + $0x180] sm:$0xf] }
 0x2f9   :  { %3855 = vmatpush.bf16.msra.mxu3 %v2359_v57  ;;  %v3115_v27 = vadd.f32 %v3114_v55, %v9323_v42  ;;  %v3223_v36 = vpop.f32.mrf.mxu1  ;;  %v5904_v57 = vld [vmem:[%s11505_s3 + $0x38] sm:$0xf0]  ;;  %3153 = vmatmul.bf16.gmra.mxu0 %v9321_v14  ;;  %v9356_v33 = vpop.f32.mrf.mxu3  ;;  %6669 = vtanh.f32 %v1972_v2  ;;  %v1406_v2 = vadd.f32 %v8971_v17, %v12037_v8  ;;  %v6046_v17 = vld [vmem:[%s11505_s3 + $0x148] sm:$0xf]  ;;  %v6287_v14 = vld [vmem:[%s11505_s3 + $0x1d4] sm:$0xf0] }
 0x2fa   :  { %3262 = vmatmul.bf16.gmra.mxu1 %v9325_v46  ;;  %12109 = vst [vmem:[#allocation106_spill] sm:$0xff] %v9356_v33  ;;  %v6660_v55 = vpop.eup %6659  ;;  %v1968_v15 = vunpack.c.h.bf16 %v1720_v37 }
 0x2fb   :  { %v9345_v7 = vadd.f32 %v3223_v36, %v3115_v27  ;;  %v3319_v34 = vpop.f32.mrf.mxu2  ;;  %v6662_v13 = vpop.eup %6661  ;;  %v1976_v36 = vunpack.c.h.bf16 %v1724_v19  ;;  %v1964_v19 = vunpack.c.l.bf16 %v1720_v37  ;;  %v6276_v37 = vld [vmem:[%s11505_s3 + $0x184] sm:$0xf] }
 0x2fc   :  { %v9349_v12 = vadd.f32 %v3319_v34, %v9175_v51  ;;  %v1416_v51 = vadd.f32 %v9079_v62, %v12081_v58  ;;  %v9362_v27 = vpop.permute.xlu2 %2527  ;;  %v2343_v48 = vpack.c.bf16 %v6662_v13, %v6660_v55 }
 0x2fd   :  { %3856 = vmatpush.bf16.msra.mxu3 %v2355_v45  ;;  %v9354_v45 = vor.u32 %v6233_v16, %v5904_v57  ;;  %12110 = vst [vmem:[#allocation107_spill] sm:$0xff] %v9362_v27  ;;  %v1411_v57 = vadd.f32 %v9036_v6, %v12051_v4  ;;  %6671 = vtanh.f32 %v1976_v36  ;;  %v6278_v6 = vld [vmem:[%s11505_s3 + $0x18c] sm:$0xf0] }
 0x2fe   :  { %v1716_v30 = vpack.c.bf16 %v1416_v51, %v1414_v52  ;;  %v1409_v51 = vadd.f32 %v9000_v26, %v12050_v53  ;;  %6673 = vtanh.f32 %v1964_v19  ;;  %v9394_v26 = vor.u32 %v6278_v6, %v6070_v47  ;;  %v9396_v52 = vpop.permute.xlu0 %2532  ;;  %v12179_v4 = vld [vmem:[#allocation35_spill] sm:$0xff] }
 0x2ff   :  { %12108 = vst [vmem:[#allocation105_spill] sm:$0xff] %v9354_v45  ;;  %6675 = vtanh.f32 %v1968_v15  ;;  %v1401_v47 = vadd.f32 %v8896_v31, %v12028_v43 }
 0x300   :  { %3361 = vmatmul.bf16.gmra.mxu2 %v9352_v11  ;;  %3430 = vmatmul.bf16.gmra.mxu3 %v9354_v45  ;;  %v3116_v23 = vpop.f32.mrf.mxu0  ;;  %12112 = vst [vmem:[#allocation109_spill] sm:$0xff] %v9394_v26 }
 0x301   :  { %3857 = vmatpush.bf16.msra.mxu3 %v2351_v1  ;;  %v3117_v16 = vadd.f32 %v3116_v23, %v9362_v27  ;;  %v3225_v62 = vpop.f32.mrf.mxu1  ;;  %v6664_v1 = vpop.eup %6663  ;;  %v1712_v23 = vpack.c.bf16 %v1411_v57, %v1409_v51  ;;  %12113 = vst [vmem:[#allocation110_spill] sm:$0xff] %v9396_v52 }
 0x302   :  { %v6666_v22 = vpop.eup %6665  ;;  %v2339_v13 = vpack.c.bf16 %v6664_v1, %v6658_v21  ;;  %v9392_v36 = vpop.f32.mrf.mxu3 }
 0x303   :  { %v9371_v28 = vadd.f32 %v3225_v62, %v3117_v16  ;;  %v3322_v34 = vpop.f32.mrf.mxu2  ;;  %v6668_v55 = vpop.eup %6667  ;;  %12111 = vst [vmem:[#allocation108_spill] sm:$0xff] %v9392_v36  ;;  %v1404_v16 = vadd.f32 %v8942_v38, %v12036_v24  ;;  %v1960_v62 = vunpack.c.h.bf16 %v1716_v30  ;;  %v6237_v38 = vld [vmem:[%s11505_s3 + $0x4c] sm:$0xf]  ;;  %v1948_v51 = vunpack.c.l.bf16 %v1712_v23 }
 0x304   :  { %v9374_v50 = vadd.f32 %v3322_v34, %v9216_v3  ;;  %v6072_v3 = vld [vmem:[%s11505_s3 + $0x190] sm:$0xf0]  ;;  %v6670_v21 = vpop.eup %6669  ;;  %v2368_v19 = vpack.c.bf16 %v6668_v55, %v6666_v22  ;;  %v1952_v22 = vunpack.c.h.bf16 %v1712_v23 }
 0x305   :  { %3858 = vmatpush.bf16.msra.mxu3 %v2347_v35  ;;  %v1956_v35 = vunpack.c.l.bf16 %v1716_v30  ;;  %v9400_v27 = vor.u32 %v6276_v37, %v6072_v3  ;;  %v5920_v30 = vld [vmem:[%s11505_s3 + $0x58] sm:$0xf0]  ;;  %v6672_v15 = vpop.eup %6671  ;;  %v1708_v6 = vpack.c.bf16 %v1406_v2, %v1404_v16  ;;  %v1396_v16 = vadd.f32 %v8837_v10, %v8773_v39 }
 0x306   :  { %v9426_v31 = vor.u32 %v6237_v38, %v5920_v30  ;;  %v6674_v2 = vpop.eup %6673  ;;  %v2364_v23 = vpack.c.bf16 %v6672_v15, %v6670_v21 }
 0x307   :  { %12114 = vst [vmem:[#allocation111_spill] sm:$0xff] %v9400_v27  ;;  %6677 = vtanh.f32 %v1956_v35  ;;  %v6676_v35 = vpop.eup %6675 }
 0x308   :  { %v3119_v34 = vpop.f32.mrf.mxu0  ;;  %6679 = vtanh.f32 %v1960_v62  ;;  %12116 = vst [vmem:[#allocation113_spill] sm:$0xff] %v9426_v31  ;;  %v1940_v62 = vunpack.c.l.bf16 %v1708_v6  ;;  %v2360_v30 = vpack.c.bf16 %v6676_v35, %v6674_v2  ;;  %v6282_v2 = vld [vmem:[%s11505_s3 + $0x1ac] sm:$0xf0] }
 0x309   :  { %3859 = vmatpush.bf16.msra.mxu3 %v2343_v48  ;;  %v3120_v57 = vadd.f32 %v3119_v34, %v9396_v52  ;;  %v3228_v1 = vpop.f32.mrf.mxu1  ;;  %v6271_v48 = vld [vmem:[%s11505_s3 + $0x154] sm:$0xf0]  ;;  %3158 = vmatmul.bf16.gmra.mxu0 %v9394_v26  ;;  %6681 = vtanh.f32 %v1948_v51 }
 0x30a   :  { %3267 = vmatmul.bf16.gmra.mxu1 %v9400_v27  ;;  %v9424_v34 = vor.u32 %v6271_v48, %v6046_v17  ;;  %6683 = vtanh.f32 %v1952_v22  ;;  %v9438_v48 = vpop.f32.mrf.mxu3 }
 0x30b   :  { %v9417_v37 = vadd.f32 %v3228_v1, %v3120_v57  ;;  %v3324_v3 = vpop.f32.mrf.mxu2  ;;  %v1944_v1 = vunpack.c.h.bf16 %v1708_v6  ;;  %6685 = vtanh.f32 %v1940_v62  ;;  %v6280_v62 = vld [vmem:[%s11505_s3 + $0x1a4] sm:$0xf] }
 0x30c   :  { %v9421_v55 = vadd.f32 %v3324_v3, %v9240_v5  ;;  %12115 = vst [vmem:[#allocation112_spill] sm:$0xff] %v9424_v34  ;;  %v9432_v5 = vpop.permute.xlu1 %2537 }
 0x30d   :  { %3860 = vmatpush.bf16.msra.mxu3 %v2339_v13  ;;  %v1399_v13 = vadd.f32 %v8873_v40, %v12027_v0  ;;  %12117 = vst [vmem:[#allocation114_spill] sm:$0xff] %v9432_v5  ;;  %v12118_v40 = vld [vmem:[#allocation70_spill] sm:$0xff]  ;;  %6687 = vtanh.f32 %v1944_v1 }
 0x30e   :  { %v1394_v21 = vadd.f32 %v12118_v40, %v12021_v41  ;;  %12119 = vst [vmem:[#allocation70_spill] sm:$0xff] %v9438_v48  ;;  %v9460_v40 = vpop.permute.xlu2 %2542 }
 0x30f   :  { %v1704_v57 = vpack.c.bf16 %v1401_v47, %v1399_v13  ;;  %12121 = vst [vmem:[#allocation116_spill] sm:$0xff] %v9460_v40 }
 0x310   :  { %3366 = vmatmul.bf16.gmra.mxu2 %v9424_v34  ;;  %3435 = vmatmul.bf16.gmra.mxu3 %v9426_v31  ;;  %v3121_v17 = vpop.f32.mrf.mxu0  ;;  %v1700_v47 = vpack.c.bf16 %v1396_v16, %v1394_v21  ;;  %v9490_v31 = vpop.permute.xlu0 %2547  ;;  %v6283_v34 = vld [vmem:[%s11505_s3 + $0x1b4] sm:$0xf0] }
 0x311   :  { %4289 = vmatpush.bf16.msrb.mxu3 %v2368_v19  ;;  %v6678_v19 = vpop.eup %6677  ;;  %v3122_v10 = vadd.f32 %v3121_v17, %v9432_v5  ;;  %v3230_v38 = vpop.f32.mrf.mxu1  ;;  %v1932_v51 = vunpack.c.l.bf16 %v1704_v57  ;;  %v1936_v3 = vunpack.c.h.bf16 %v1704_v57  ;;  %v6088_v57 = vld [vmem:[%s11505_s3 + $0x1b0] sm:$0xf0]  ;;  %12126 = vst [vmem:[#allocation121_spill] sm:$0xff] %v9490_v31 }
 0x312   :  { %v6680_v15 = vpop.eup %6679  ;;  %v1924_v1 = vunpack.c.l.bf16 %v1700_v47  ;;  %v1928_v21 = vunpack.c.h.bf16 %v1700_v47  ;;  %v6241_v47 = vld [vmem:[%s11505_s3 + $0x6c] sm:$0xf] }
 0x313   :  { %v9441_v6 = vadd.f32 %v3230_v38, %v3122_v10  ;;  %v3327_v22 = vpop.f32.mrf.mxu2  ;;  %v6682_v35 = vpop.eup %6681  ;;  %v2356_v16 = vpack.c.bf16 %v6680_v15, %v6678_v19  ;;  %6689 = vtanh.f32 %v1932_v51  ;;  %v9462_v19 = vor.u32 %v6280_v62, %v6088_v57  ;;  %v6062_v38 = vld [vmem:[%s11505_s3 + $0x168] sm:$0xf]  ;;  %v6275_v51 = vld [vmem:[%s11505_s3 + $0x174] sm:$0xf0] }
 0x314   :  { %v9444_v13 = vadd.f32 %v3327_v22, %v9277_v9  ;;  %v6684_v9 = vpop.eup %6683  ;;  %6691 = vtanh.f32 %v1936_v3  ;;  %v5936_v3 = vld [vmem:[%s11505_s3 + $0x78] sm:$0xf0]  ;;  %v9486_v57 = vor.u32 %v6275_v51, %v6062_v38 }
 0x315   :  { %4290 = vmatpush.bf16.msrb.mxu3 %v2364_v23  ;;  %v6086_v23 = vld [vmem:[%s11505_s3 + $0x1a0] sm:$0xf]  ;;  %12122 = vst [vmem:[#allocation117_spill] sm:$0xff] %v9462_v19  ;;  %v2352_v5 = vpack.c.bf16 %v6684_v9, %v6682_v35  ;;  %6693 = vtanh.f32 %v1924_v1  ;;  %v9488_v9 = vor.u32 %v6241_v47, %v5936_v3 }
 0x316   :  { %v9458_v17 = vor.u32 %v6282_v2, %v6086_v23  ;;  %v9477_v2 = vpop.f32.mrf.mxu3  ;;  %6695 = vtanh.f32 %v1928_v21  ;;  %12124 = vst [vmem:[#allocation119_spill] sm:$0xff] %v9486_v57  ;;  %v6102_v3 = vld [vmem:[%s11505_s3 + $0x1c0] sm:$0xf] }
 0x317   :  { %12123 = vst [vmem:[#allocation118_spill] sm:$0xff] %v9477_v2 }
 0x318   :  { %12120 = vst [vmem:[#allocation115_spill] sm:$0xff] %v9458_v17  ;;  %v3124_v10 = vpop.f32.mrf.mxu0 }
 0x319   :  { %4291 = vmatpush.bf16.msrb.mxu3 %v2360_v30  ;;  %v6686_v30 = vpop.eup %6685  ;;  %v3125_v15 = vadd.f32 %v3124_v10, %v9460_v40  ;;  %v3233_v22 = vpop.f32.mrf.mxu1  ;;  %3163 = vmatmul.bf16.gmra.mxu0 %v9458_v17  ;;  %12125 = vst [vmem:[#allocation120_spill] sm:$0xff] %v9488_v9 }
 0x31a   :  { %v6688_v23 = vpop.eup %6687  ;;  %3272 = vmatmul.bf16.gmra.mxu1 %v9462_v19 }
 0x31b   :  { %v3329_v62 = vpop.f32.mrf.mxu2  ;;  %v6690_v10 = vpop.eup %6689  ;;  %v2348_v1 = vpack.c.bf16 %v6688_v23, %v6686_v30  ;;  %v6286_v23 = vld [vmem:[%s11505_s3 + $0x1cc] sm:$0xf0] }
 0x31c   :  { %v9483_v35 = vadd.f32 %v3329_v62, %v9297_v63  ;;  %v6692_v40 = vpop.eup %6691 }
 0x31d   :  { %4292 = vmatpush.bf16.msrb.mxu3 %v2356_v16  ;;  %v9479_v16 = vadd.f32 %v3233_v22, %v3125_v15  ;;  %v6694_v21 = vpop.eup %6693  ;;  %v2344_v22 = vpack.c.bf16 %v6692_v40, %v6690_v10  ;;  %v6284_v40 = vld [vmem:[%s11505_s3 + $0x1c4] sm:$0xf]  ;;  %v9514_v10 = vor.u32 %v6286_v23, %v6102_v3  ;;  %v6245_v3 = vld [vmem:[%s11505_s3 + $0x8c] sm:$0xf]  ;;  %v5952_v23 = vld [vmem:[%s11505_s3 + $0x98] sm:$0xf0] }
 0x31e   :  { %v6696_v38 = vpop.eup %6695  ;;  %v9506_v62 = vpop.f32.mrf.mxu3 }
 0x31f   :  { %12127 = vst [vmem:[#allocation122_spill] sm:$0xff] %v9506_v62  ;;  %v1749_v62 = vunpack.c.l.bf16 %v12179_v4 }
 0x320   :  { %3371 = vmatmul.bf16.gmra.mxu2 %v9486_v57  ;;  %3440 = vmatmul.bf16.gmra.mxu3 %v9488_v9  ;;  %12128 = vst [vmem:[#allocation123_spill] sm:$0xff] %v9514_v10  ;;  %v9546_v9 = vor.u32 %v6245_v3, %v5952_v23  ;;  %v6118_v23 = vld [vmem:[%s11505_s3 + $0x1e0] sm:$0xf] }
 0x321   :  { %4293 = vmatpush.bf16.msrb.mxu3 %v2352_v5  ;;  %v3126_v5 = vpop.f32.mrf.mxu0  ;;  %v3235_v15 = vpop.f32.mrf.mxu1  ;;  %6697 = vtanh.f32 %v1749_v62  ;;  %v6304_v62 = vld [vmem:[%s11505_s3 + $0x264] sm:$0xf] }
 0x322   :  { %v3127_v63 = vadd.f32 %v3126_v5, %v9490_v31  ;;  %v9516_v5 = vpop.permute.xlu1 %2552  ;;  %12134 = vst [vmem:[#allocation129_spill] sm:$0xff] %v9546_v9 }
 0x323   :  { %v3332_v47 = vpop.f32.mrf.mxu2  ;;  %12129 = vst [vmem:[#allocation124_spill] sm:$0xff] %v9516_v5 }
 0x324   :  { %v9495_v51 = vadd.f32 %v3235_v15, %v3127_v63  ;;  %v9498_v30 = vadd.f32 %v3332_v47, %v9345_v7  ;;  %v6104_v7 = vld [vmem:[%s11505_s3 + $0x1d0] sm:$0xf0] }
 0x325   :  { %4294 = vmatpush.bf16.msrb.mxu3 %v2348_v1  ;;  %v2340_v1 = vpack.c.bf16 %v6696_v38, %v6694_v21  ;;  %v9518_v15 = vor.u32 %v6284_v40, %v6104_v7  ;;  %v6078_v21 = vld [vmem:[%s11505_s3 + $0x188] sm:$0xf]  ;;  %v9535_v40 = vpop.permute.xlu2 %2557 }
 0x326   :  { %12132 = vst [vmem:[#allocation127_spill] sm:$0xff] %v9535_v40  ;;  %v9548_v57 = vpop.f32.mrf.mxu3 }
 0x327   :  { %12130 = vst [vmem:[#allocation125_spill] sm:$0xff] %v9518_v15 }
 0x328   :  { %12135 = vst [vmem:[#allocation130_spill] sm:$0xff] %v9548_v57  ;;  %v12182_v57 = vld [vmem:[#allocation42_spill] sm:$0xff] }
 0x329   :  { %4295 = vmatpush.bf16.msrb.mxu3 %v2344_v22  ;;  %v3129_v63 = vpop.f32.mrf.mxu0  ;;  %v9523_v22 = vpop.permute.xlu0 %2562  ;;  %3168 = vmatmul.bf16.gmra.mxu0 %v9514_v10  ;;  %v1757_v58 = vunpack.c.l.bf16 %v12182_v57 }
 0x32a   :  { %12131 = vst [vmem:[#allocation126_spill] sm:$0xff] %v9523_v22  ;;  %v3130_v38 = vadd.f32 %v3129_v63, %v9516_v5  ;;  %v3238_v47 = vpop.f32.mrf.mxu1  ;;  %3277 = vmatmul.bf16.gmra.mxu1 %v9518_v15  ;;  %v9553_v10 = vpop.permute.xlu1 %2567 }
 0x32b   :  { %v3334_v31 = vpop.f32.mrf.mxu2  ;;  %12136 = vst [vmem:[#allocation131_spill] sm:$0xff] %v9553_v10 }
 0x32c   :  { %v9537_v7 = vadd.f32 %v3238_v47, %v3130_v38  ;;  %v9541_v63 = vadd.f32 %v3334_v31, %v9371_v28 }
 0x32d   :  { %4296 = vmatpush.bf16.msrb.mxu3 %v2340_v1  ;;  %v6279_v1 = vld [vmem:[%s11505_s3 + $0x194] sm:$0xf0] }
 0x32e   :  { %v9544_v5 = vor.u32 %v6279_v1, %v6078_v21  ;;  %v9559_v1 = vpop.permute.xlu2 %2572 }
 0x32f   :  { %12138 = vst [vmem:[#allocation133_spill] sm:$0xff] %v9559_v1 }
 0x330   :  { %12133 = vst [vmem:[#allocation128_spill] sm:$0xff] %v9544_v5  ;;  %3376 = vmatmul.bf16.gmra.mxu2 %v9544_v5  ;;  %3445 = vmatmul.bf16.gmra.mxu3 %v9546_v9  ;;  %v6094_v9 = vld [vmem:[%s11505_s3 + $0x1a8] sm:$0xf]  ;;  %v9583_v5 = vpop.f32.mrf.mxu3 }
 0x331   :  { %v3131_v38 = vpop.f32.mrf.mxu0  ;;  %v9555_v28 = vpop.permute.xlu0 %2577  ;;  %12141 = vst [vmem:[#allocation136_spill] sm:$0xff] %v9583_v5 }
 0x332   :  { %v3132_v47 = vadd.f32 %v3131_v38, %v9535_v40  ;;  %v3240_v19 = vpop.f32.mrf.mxu1  ;;  %12137 = vst [vmem:[#allocation132_spill] sm:$0xff] %v9555_v28  ;;  %v6290_v38 = vld [vmem:[%s11505_s3 + $0x1ec] sm:$0xf0]  ;;  %v6288_v40 = vld [vmem:[%s11505_s3 + $0x1e4] sm:$0xf]  ;;  %v9598_v27 = vpop.permute.xlu1 %2582 }
 0x333   :  { %v3337_v21 = vpop.f32.mrf.mxu2  ;;  %12142 = vst [vmem:[#allocation137_spill] sm:$0xff] %v9598_v27 }
 0x334   :  { %v9557_v31 = vadd.f32 %v3240_v19, %v3132_v47  ;;  %v9562_v3 = vadd.f32 %v3337_v21, %v9417_v37  ;;  %v6120_v19 = vld [vmem:[%s11505_s3 + $0x1f0] sm:$0xf0]  ;;  %v9576_v47 = vor.u32 %v6290_v38, %v6118_v23  ;;  %v6249_v23 = vld [vmem:[%s11505_s3 + $0xac] sm:$0xf] }
 0x335   :  { %v9578_v21 = vor.u32 %v6288_v40, %v6120_v19  ;;  %v5968_v40 = vld [vmem:[%s11505_s3 + $0xb8] sm:$0xf0] }
 0x336   :  { %12139 = vst [vmem:[#allocation134_spill] sm:$0xff] %v9576_v47  ;;  %v9606_v26 = vor.u32 %v6249_v23, %v5968_v40  ;;  %v9610_v45 = vpop.permute.xlu2 %2587  ;;  %v6134_v23 = vld [vmem:[%s11505_s3 + $0x200] sm:$0xf]  ;;  %v6294_v40 = vld [vmem:[%s11505_s3 + $0x20c] sm:$0xf0] }
 0x337   :  { %12140 = vst [vmem:[#allocation135_spill] sm:$0xff] %v9578_v21 }
 0x338   :  { %12144 = vst [vmem:[#allocation139_spill] sm:$0xff] %v9606_v26 }
 0x339   :  { %v3134_v37 = vpop.f32.mrf.mxu0  ;;  %3173 = vmatmul.bf16.gmra.mxu0 %v9576_v47  ;;  %v9608_v52 = vpop.permute.xlu0 %2592  ;;  %12146 = vst [vmem:[#allocation141_spill] sm:$0xff] %v9610_v45 }
 0x33a   :  { %v3135_v15 = vadd.f32 %v3134_v37, %v9523_v22  ;;  %v3243_v17 = vpop.f32.mrf.mxu1  ;;  %3282 = vmatmul.bf16.gmra.mxu1 %v9578_v21  ;;  %v9604_v22 = vor.u32 %v6283_v34, %v6094_v9  ;;  %12145 = vst [vmem:[#allocation140_spill] sm:$0xff] %v9608_v52  ;;  %v6110_v21 = vld [vmem:[%s11505_s3 + $0x1c8] sm:$0xf] }
 0x33b   :  { %v3339_v19 = vpop.f32.mrf.mxu2 }
 0x33c   :  { %v9595_v38 = vadd.f32 %v3243_v17, %v3135_v15  ;;  %v9601_v37 = vadd.f32 %v3339_v19, %v9441_v6  ;;  %12143 = vst [vmem:[#allocation138_spill] sm:$0xff] %v9604_v22  ;;  %v9615_v6 = vpop.f32.mrf.mxu3 }
 0x33d   :  { %12147 = vst [vmem:[#allocation142_spill] sm:$0xff] %v9615_v6  ;;  %v12191_v6 = vld [vmem:[#allocation54_spill] sm:$0xff] }
 0x340   :  { %3381 = vmatmul.bf16.gmra.mxu2 %v9604_v22  ;;  %3450 = vmatmul.bf16.gmra.mxu3 %v9606_v26 }
 0x341   :  { %v3136_v17 = vpop.f32.mrf.mxu0 }
 0x342   :  { %v3137_v15 = vadd.f32 %v3136_v17, %v9553_v10  ;;  %v3245_v47 = vpop.f32.mrf.mxu1  ;;  %v6292_v17 = vld [vmem:[%s11505_s3 + $0x204] sm:$0xf]  ;;  %v9640_v10 = vpop.permute.xlu2 %2602 }
 0x343   :  { %v3342_v34 = vpop.f32.mrf.mxu2  ;;  %12151 = vst [vmem:[#allocation146_spill] sm:$0xff] %v9640_v10 }
 0x344   :  { %v9617_v19 = vadd.f32 %v3245_v47, %v3137_v15  ;;  %v9620_v9 = vadd.f32 %v3342_v34, %v9479_v16  ;;  %v6136_v47 = vld [vmem:[%s11505_s3 + $0x210] sm:$0xf0]  ;;  %v9634_v15 = vpop.permute.xlu1 %2597  ;;  %v9636_v16 = vpop.permute.xlu0 %2607  ;;  %v9638_v34 = vor.u32 %v6294_v40, %v6134_v23  ;;  %v6253_v23 = vld [vmem:[%s11505_s3 + $0xcc] sm:$0xf]  ;;  %v5984_v40 = vld [vmem:[%s11505_s3 + $0xd8] sm:$0xf0] }
 0x345   :  { %12148 = vst [vmem:[#allocation143_spill] sm:$0xff] %v9634_v15  ;;  %v9642_v22 = vor.u32 %v6292_v17, %v6136_v47  ;;  %v9666_v42 = vor.u32 %v6253_v23, %v5984_v40  ;;  %v9668_v41 = vpop.f32.mrf.mxu3  ;;  %v6150_v40 = vld [vmem:[%s11505_s3 + $0x220] sm:$0xf] }
 0x346   :  { %12149 = vst [vmem:[#allocation144_spill] sm:$0xff] %v9636_v16 }
 0x347   :  { %12150 = vst [vmem:[#allocation145_spill] sm:$0xff] %v9638_v34 }
 0x348   :  { %12152 = vst [vmem:[#allocation147_spill] sm:$0xff] %v9642_v22 }
 0x349   :  { %v3139_v26 = vpop.f32.mrf.mxu0  ;;  %3178 = vmatmul.bf16.gmra.mxu0 %v9638_v34  ;;  %12154 = vst [vmem:[#allocation149_spill] sm:$0xff] %v9666_v42 }
 0x34a   :  { %v3140_v11 = vadd.f32 %v3139_v26, %v9559_v1  ;;  %v3248_v46 = vpop.f32.mrf.mxu1  ;;  %3287 = vmatmul.bf16.gmra.mxu1 %v9642_v22  ;;  %v9664_v1 = vor.u32 %v6287_v14, %v6110_v21  ;;  %12155 = vst [vmem:[#allocation150_spill] sm:$0xff] %v9668_v41  ;;  %v9677_v34 = vpop.permute.xlu2 %2617 }
 0x34b   :  { %v3344_v47 = vpop.f32.mrf.mxu2  ;;  %12158 = vst [vmem:[#allocation153_spill] sm:$0xff] %v9677_v34 }
 0x34c   :  { %v9657_v17 = vadd.f32 %v3248_v46, %v3140_v11  ;;  %v9661_v26 = vadd.f32 %v3344_v47, %v9495_v51  ;;  %12153 = vst [vmem:[#allocation148_spill] sm:$0xff] %v9664_v1  ;;  %v9670_v39 = vpop.permute.xlu1 %2612  ;;  %v9674_v11 = vpop.permute.xlu0 %2622 }
 0x34d   :  { %12156 = vst [vmem:[#allocation151_spill] sm:$0xff] %v9670_v39 }
 0x34e   :  { %12157 = vst [vmem:[#allocation152_spill] sm:$0xff] %v9674_v11 }
 0x350   :  { %3386 = vmatmul.bf16.gmra.mxu2 %v9664_v1  ;;  %3455 = vmatmul.bf16.gmra.mxu3 %v9666_v42  ;;  %v6298_v42 = vld [vmem:[%s11505_s3 + $0x22c] sm:$0xf0]  ;;  %v6126_v1 = vld [vmem:[%s11505_s3 + $0x1e8] sm:$0xf] }
 0x351   :  { %v3141_v46 = vpop.f32.mrf.mxu0  ;;  %v9728_v33 = vor.u32 %v6291_v60, %v6126_v1  ;;  %v6302_v1 = vld [vmem:[%s11505_s3 + $0x24c] sm:$0xf0] }
 0x352   :  { %v3142_v51 = vadd.f32 %v3141_v46, %v9555_v28  ;;  %v3250_v47 = vpop.f32.mrf.mxu1  ;;  %v6296_v46 = vld [vmem:[%s11505_s3 + $0x224] sm:$0xf] }
 0x353   :  { %v3347_v21 = vpop.f32.mrf.mxu2  ;;  %12164 = vst [vmem:[#allocation159_spill] sm:$0xff] %v9728_v33 }
 0x354   :  { %v9679_v14 = vadd.f32 %v3250_v47, %v3142_v51  ;;  %v9682_v23 = vadd.f32 %v3347_v21, %v9537_v7  ;;  %v6152_v51 = vld [vmem:[%s11505_s3 + $0x230] sm:$0xf0]  ;;  %v9696_v47 = vpop.f32.mrf.mxu3  ;;  %v9698_v7 = vor.u32 %v6298_v42, %v6150_v40  ;;  %v6000_v42 = vld [vmem:[%s11505_s3 + $0xf8] sm:$0xf0]  ;;  %v9715_v40 = vpop.permute.xlu1 %2627 }
 0x355   :  { %12159 = vst [vmem:[#allocation154_spill] sm:$0xff] %v9696_v47  ;;  %v9700_v28 = vor.u32 %v6296_v46, %v6152_v51  ;;  %v9717_v46 = vpop.permute.xlu0 %2637  ;;  %v9730_v24 = vor.u32 %v6257_v20, %v6000_v42  ;;  %v6166_v20 = vld [vmem:[%s11505_s3 + $0x240] sm:$0xf] }
 0x356   :  { %12160 = vst [vmem:[#allocation155_spill] sm:$0xff] %v9698_v7 }
 0x357   :  { %12161 = vst [vmem:[#allocation156_spill] sm:$0xff] %v9700_v28 }
 0x358   :  { %12162 = vst [vmem:[#allocation157_spill] sm:$0xff] %v9715_v40 }
 0x359   :  { %v3144_v21 = vpop.f32.mrf.mxu0  ;;  %12163 = vst [vmem:[#allocation158_spill] sm:$0xff] %v9717_v46  ;;  %3183 = vmatmul.bf16.gmra.mxu0 %v9698_v7 }
 0x35a   :  { %v3145_v22 = vadd.f32 %v3144_v21, %v9598_v27  ;;  %v3253_v0 = vpop.f32.mrf.mxu1  ;;  %v9722_v27 = vpop.permute.xlu2 %2632  ;;  %3292 = vmatmul.bf16.gmra.mxu1 %v9700_v28  ;;  %12165 = vst [vmem:[#allocation160_spill] sm:$0xff] %v9730_v24 }
 0x35b   :  { %v3349_v21 = vpop.f32.mrf.mxu2 }
 0x35c   :  { %v9719_v51 = vadd.f32 %v3253_v0, %v3145_v22  ;;  %v9725_v43 = vadd.f32 %v3349_v21, %v9557_v31  ;;  %v9734_v22 = vpop.f32.mrf.mxu3  ;;  %v9739_v21 = vpop.permute.xlu1 %2642 }
 0x35d   :  { %12166 = vst [vmem:[#allocation161_spill] sm:$0xff] %v9734_v22  ;;  %v9750_v42 = vpop.permute.xlu0 %2652 }
 0x35e   :  { %12167 = vst [vmem:[#allocation162_spill] sm:$0xff] %v9739_v21 }
 0x35f   :  { %12169 = vst [vmem:[#allocation164_spill] sm:$0xff] %v9750_v42 }
 0x360   :  { %3391 = vmatmul.bf16.gmra.mxu2 %v9728_v33  ;;  %3460 = vmatmul.bf16.gmra.mxu3 %v9730_v24  ;;  %v6142_v24 = vld [vmem:[%s11505_s3 + $0x208] sm:$0xf] }
 0x361   :  { %v3146_v0 = vpop.f32.mrf.mxu0 }
 0x362   :  { %v3147_v7 = vadd.f32 %v3146_v0, %v9610_v45  ;;  %v3255_v36 = vpop.f32.mrf.mxu1  ;;  %v9760_v0 = vor.u32 %v6302_v1, %v6166_v20  ;;  %v6016_v20 = vld [vmem:[%s11505_s3 + $0x118] sm:$0xf0] }
 0x363   :  { %v3352_v31 = vpop.f32.mrf.mxu2  ;;  %v9788_v48 = vor.u32 %v6261_v54, %v6016_v20  ;;  %v12181_v54 = vld [vmem:[#allocation40_spill] sm:$0xff] }
 0x364   :  { %v9737_v8 = vadd.f32 %v3255_v36, %v3147_v7  ;;  %v9742_v60 = vadd.f32 %v3352_v31, %v9595_v38  ;;  %v6300_v36 = vld [vmem:[%s11505_s3 + $0x244] sm:$0xf]  ;;  %v6168_v7 = vld [vmem:[%s11505_s3 + $0x250] sm:$0xf0]  ;;  %v9758_v38 = vpop.permute.xlu2 %2647  ;;  %12171 = vst [vmem:[#allocation166_spill] sm:$0xff] %v9760_v0  ;;  %v9777_v1 = vpop.f32.mrf.mxu3  ;;  %v1741_v20 = vunpack.c.l.bf16 %v12181_v54 }
 0x365   :  { %12170 = vst [vmem:[#allocation165_spill] sm:$0xff] %v9758_v38  ;;  %v9762_v45 = vor.u32 %v6300_v36, %v6168_v7  ;;  %v9790_v53 = vpop.permute.xlu1 %2657  ;;  %v9792_v2 = vpop.permute.xlu0 %2667 }
 0x366   :  { %12168 = vst [vmem:[#allocation163_spill] sm:$0xff] %v9742_v60 }
 0x367   :  { %12172 = vst [vmem:[#allocation167_spill] sm:$0xff] %v9762_v45 }
 0x368   :  { %12173 = vst [vmem:[#allocation168_spill] sm:$0xff] %v9777_v1 }
 0x369   :  { %v3149_v31 = vpop.f32.mrf.mxu0  ;;  %3188 = vmatmul.bf16.gmra.mxu0 %v9760_v0  ;;  %12176 = vst [vmem:[#allocation171_spill] sm:$0xff] %v9788_v48 }
 0x36a   :  { %v3150_v33 = vadd.f32 %v3149_v31, %v9608_v52  ;;  %v3258_v28 = vpop.f32.mrf.mxu1  ;;  %3297 = vmatmul.bf16.gmra.mxu1 %v9762_v45  ;;  %v9786_v52 = vor.u32 %v6295_v18, %v6142_v24  ;;  %12177 = vst [vmem:[#allocation172_spill] sm:$0xff] %v9790_v53 }
 0x36b   :  { %v3354_v7 = vpop.f32.mrf.mxu2  ;;  %12178 = vst [vmem:[#allocation173_spill] sm:$0xff] %v9792_v2 }
 0x36c   :  { %v9779_v36 = vadd.f32 %v3258_v28, %v3150_v33  ;;  %v9783_v31 = vadd.f32 %v3354_v7, %v9617_v19  ;;  %12175 = vst [vmem:[#allocation170_spill] sm:$0xff] %v9786_v52  ;;  %v9795_v33 = vpop.permute.xlu2 %2662  ;;  %v1753_v19 = vunpack.c.h.bf16 %v12179_v4  ;;  %v1745_v7 = vunpack.c.h.bf16 %v12181_v54  ;;  %v6182_v4 = vld [vmem:[%s11505_s3 + $0x260] sm:$0xf] }
 0x36d   :  { %12180 = vst [vmem:[#allocation35_spill] sm:$0xff] %v9795_v33 }
 0x36e   :  { %12174 = vst [vmem:[#allocation169_spill] sm:$0xff] %v9783_v31  ;;  %6699 = vtanh.f32 %v1753_v19 }
 0x36f   :  { %6701 = vtanh.f32 %v1741_v20  ;;  %v12188_v20 = vld [vmem:[#allocation51_spill] sm:$0xff] }
 0x370   :  { %3396 = vmatmul.bf16.gmra.mxu2 %v9786_v52  ;;  %3465 = vmatmul.bf16.gmra.mxu3 %v9788_v48  ;;  %6703 = vtanh.f32 %v1745_v7  ;;  %v1781_v5 = vunpack.c.l.bf16 %v12188_v20 }
 0x371   :  { %v3151_v28 = vpop.f32.mrf.mxu0  ;;  %6705 = vtanh.f32 %v1757_v58  ;;  %v6265_v58 = vld [vmem:[%s11505_s3 + $0x12c] sm:$0xf] }
 0x372   :  { %v3152_v24 = vadd.f32 %v3151_v28, %v9634_v15  ;;  %v3260_v18 = vpop.f32.mrf.mxu1  ;;  %v6306_v28 = vld [vmem:[%s11505_s3 + $0x26c] sm:$0xf0]  ;;  %v6299_v15 = vld [vmem:[%s11505_s3 + $0x234] sm:$0xf0] }
 0x373   :  { %v3357_v0 = vpop.f32.mrf.mxu2  ;;  %v3426_v59 = vpop.f32.mrf.mxu3 }
 0x374   :  { %v9803_v45 = vadd.f32 %v3260_v18, %v3152_v24  ;;  %v9807_v52 = vadd.f32 %v3357_v0, %v9657_v17  ;;  %v3427_v48 = vadd.f32 %v3426_v59, %v9301_v44  ;;  %v1761_v24 = vunpack.c.h.bf16 %v12182_v57  ;;  %v6184_v17 = vld [vmem:[%s11505_s3 + $0x270] sm:$0xf0]  ;;  %v12184_v59 = vld [vmem:[#allocation46_spill] sm:$0xff]  ;;  %v9826_v18 = vpop.permute.xlu1 %2672  ;;  %v9848_v49 = vpop.permute.xlu2 %2677 }
 0x375   :  { %v1765_v44 = vunpack.c.l.bf16 %v12184_v59  ;;  %v9824_v0 = vor.u32 %v6306_v28, %v6182_v4  ;;  %12186 = vst [vmem:[#allocation46_spill] sm:$0xff] %v9826_v18  ;;  %v9828_v54 = vor.u32 %v6304_v62, %v6184_v17  ;;  %v6158_v57 = vld [vmem:[%s11505_s3 + $0x228] sm:$0xf]  ;;  %v6032_v28 = vld [vmem:[%s11505_s3 + $0x138] sm:$0xf0]  ;;  %v9844_v62 = vpop.eup %6697  ;;  %v9846_v17 = vpop.permute.xlu0 %2682 }
 0x376   :  { %12183 = vst [vmem:[#allocation40_spill] sm:$0xff] %v9807_v52  ;;  %6707 = vtanh.f32 %v1761_v24  ;;  %v9850_v24 = vpop.eup %6699  ;;  %v9857_v47 = vor.u32 %v6299_v15, %v6158_v57  ;;  %v9866_v56 = vor.u32 %v6265_v58, %v6032_v28 }
 0x377   :  { %12185 = vst [vmem:[#allocation42_spill] sm:$0xff] %v9824_v0  ;;  %6709 = vtanh.f32 %v1765_v44  ;;  %v9859_v61 = vpop.eup %6701 }
 0x378   :  { %12187 = vst [vmem:[#allocation174_spill] sm:$0xff] %v9828_v54  ;;  %6711 = vtanh.f32 %v3427_v48 }
 0x379   :  { %v3154_v19 = vpop.f32.mrf.mxu0  ;;  %12189 = vst [vmem:[#allocation51_spill] sm:$0xff] %v9846_v17  ;;  %3193 = vmatmul.bf16.gmra.mxu0 %v9824_v0  ;;  %6713 = vtanh.f32 %v1781_v5  ;;  %v1769_v17 = vunpack.c.h.bf16 %v12184_v59 }
 0x37a   :  { %v3155_v7 = vadd.f32 %v3154_v19, %v9640_v10  ;;  %v3263_v4 = vpop.f32.mrf.mxu1  ;;  %12190 = vst [vmem:[#allocation175_spill] sm:$0xff] %v9848_v49  ;;  %v1789_v19 = vunpack.c.l.bf16 %v12191_v6  ;;  %v1793_v10 = vunpack.c.h.bf16 %v12191_v6  ;;  %3302 = vmatmul.bf16.gmra.mxu1 %v9828_v54  ;;  %v9868_v6 = vpop.eup %6703 }
 0x37b   :  { %v3359_v41 = vpop.f32.mrf.mxu2  ;;  %v3428_v25 = vpop.f32.mrf.mxu3  ;;  %12192 = vst [vmem:[#allocation54_spill] sm:$0xff] %v9857_v47 }
 0x37c   :  { %v9854_v29 = vadd.f32 %v3263_v4, %v3155_v7  ;;  %v9862_v44 = vadd.f32 %v3359_v41, %v9679_v14  ;;  %v3429_v22 = vadd.f32 %v3428_v25, %v9349_v12  ;;  %12194 = vst [vmem:[#allocation177_spill] sm:$0xff] %v9866_v56  ;;  %v12195_v7 = vld [vmem:[#allocation12_spill] sm:$0xff]  ;;  %v9871_v0 = vpop.eup %6705  ;;  %v1785_v41 = vunpack.c.h.bf16 %v12188_v20  ;;  %v12196_v12 = vld [vmem:[#allocation61_spill] sm:$0xff]  ;;  %v9884_v20 = vpop.permute.xlu1 %2687 }
 0x37d   :  { %v1853_v4 = vunpack.c.l.bf16 %v12195_v7  ;;  %v1857_v15 = vunpack.c.h.bf16 %v12195_v7  ;;  %v9874_v48 = vpop.eup %6707  ;;  %v1845_v14 = vunpack.c.l.bf16 %v12196_v12  ;;  %v1849_v57 = vunpack.c.h.bf16 %v12196_v12  ;;  %12197 = vst [vmem:[#allocation12_spill] sm:$0xff] %v9884_v20  ;;  %v12202_v20 = vld [vmem:[#allocation60_spill] sm:$0xff] }
 0x37e   :  { %12193 = vst [vmem:[#allocation176_spill] sm:$0xff] %v9862_v44  ;;  %6715 = vtanh.f32 %v3429_v22  ;;  %v9877_v25 = vpop.eup %6709 }
 0x37f   :  { %6717 = vtanh.f32 %v1789_v19  ;;  %v6712_v28 = vpop.eup %6711 }
 0x380   :  { %6719 = vtanh.f32 %v1793_v10  ;;  %3401 = vmatmul.bf16.gmra.mxu2 %v9857_v47  ;;  %3470 = vmatmul.bf16.gmra.mxu3 %v9866_v56  ;;  %v9886_v19 = vpop.eup %6713  ;;  %v12198_v10 = vld [vmem:[#allocation48_spill] sm:$0xff] }
 0x381   :  { %v3156_v5 = vpop.f32.mrf.mxu0  ;;  %6721 = vtanh.f32 %v1853_v4  ;;  %v1773_v7 = vunpack.c.l.bf16 %v12198_v10  ;;  %v1777_v12 = vunpack.c.h.bf16 %v12198_v10  ;;  %v9892_v4 = vpop.permute.xlu0 %5041 }
 0x382   :  { %v3157_v22 = vadd.f32 %v3156_v5, %v9636_v16  ;;  %v3265_v58 = vpop.f32.mrf.mxu1  ;;  %6723 = vtanh.f32 %v1857_v15  ;;  %12199 = vst [vmem:[#allocation61_spill] sm:$0xff] %v9892_v4  ;;  %v9894_v5 = vpop.permute.xlu2 %5036 }
 0x383   :  { %6725 = vtanh.f32 %v1785_v41  ;;  %v3362_v47 = vpop.f32.mrf.mxu2  ;;  %v3431_v56 = vpop.f32.mrf.mxu3  ;;  %12200 = vst [vmem:[#allocation48_spill] sm:$0xff] %v9894_v5  ;;  %v1837_v41 = vunpack.c.l.bf16 %v12202_v20 }
 0x384   :  { %v9889_v54 = vadd.f32 %v3265_v58, %v3157_v22  ;;  %v6716_v1 = vpop.eup %6715  ;;  %6727 = vtanh.f32 %v1845_v14  ;;  %v9897_v15 = vadd.f32 %v3362_v47, %v9719_v51  ;;  %v3432_v16 = vadd.f32 %v3431_v56, %v9374_v50  ;;  %v12203_v56 = vld [vmem:[#allocation59_spill] sm:$0xff]  ;;  %v9926_v60 = vpop.permute.xlu1 %5046 }
 0x385   :  { %v6718_v32 = vpop.eup %6717  ;;  %6729 = vtanh.f32 %v1849_v57  ;;  %v5234_v22 = vmul.f32 %v6712_v28, %v9894_v5  ;;  %v5238_v58 = vmul.f32 %v6716_v1, %v9892_v4  ;;  %v1841_v14 = vunpack.c.h.bf16 %v12202_v20  ;;  %v6174_v57 = vld [vmem:[%s11505_s3 + $0x248] sm:$0xf]  ;;  %v6303_v1 = vld [vmem:[%s11505_s3 + $0x254] sm:$0xf0] }
 0x386   :  { %12201 = vst [vmem:[#allocation178_spill] sm:$0xff] %v9897_v15  ;;  %v6720_v44 = vpop.eup %6719  ;;  %6731 = vtanh.f32 %v3432_v16  ;;  %v1829_v50 = vunpack.c.l.bf16 %v12203_v56  ;;  %v1833_v16 = vunpack.c.h.bf16 %v12203_v56  ;;  %v9924_v31 = vor.u32 %v6303_v1, %v6174_v57 }
 0x387   :  { %v6722_v10 = vpop.eup %6721  ;;  %6733 = vtanh.f32 %v1773_v7  ;;  %v5394_v47 = vadd.f32 %v5238_v58, %v5234_v22  ;;  %v6269_v7 = vld [vmem:[%s11505_s3 + $0x14c] sm:$0xf]  ;;  %v12204_v58 = vld [vmem:[#allocation44_spill] sm:$0xff]  ;;  %v2273_v5 = vpack.c.bf16 %v6720_v44, %v6718_v32  ;;  %v12207_v44 = vld [vmem:[#allocation49_spill] sm:$0xff] }
 0x388   :  { %v6724_v51 = vpop.eup %6723  ;;  %6735 = vtanh.f32 %v1777_v12  ;;  %v6048_v12 = vld [vmem:[%s11505_s3 + $0x158] sm:$0xf0]  ;;  %v1733_v4 = vunpack.c.l.bf16 %v12204_v58  ;;  %12206 = vst [vmem:[#allocation60_spill] sm:$0xff] %v9924_v31  ;;  %v1737_v57 = vunpack.c.h.bf16 %v12204_v58 }
 0x389   :  { %v3159_v15 = vpop.f32.mrf.mxu0  ;;  %v6726_v28 = vpop.eup %6725  ;;  %6737 = vtanh.f32 %v1837_v41  ;;  %v2305_v49 = vpack.c.bf16 %v6724_v51, %v6722_v10 }
 0x38a   :  { %v3160_v59 = vadd.f32 %v3159_v15, %v9670_v39  ;;  %v3268_v20 = vpop.f32.mrf.mxu1  ;;  %v6728_v22 = vpop.eup %6727  ;;  %6739 = vtanh.f32 %v1841_v14  ;;  %v12205_v39 = vld [vmem:[#allocation47_spill] sm:$0xff]  ;;  %3643 = vmatmul.bf16.vlgmr.msra.gmra.mxu1 %v12207_v44  ;;  %v2269_v1 = vpack.c.bf16 %v6726_v28, %v9886_v19 }
 0x38b   :  { %v6730_v52 = vpop.eup %6729  ;;  %6741 = vtanh.f32 %v1769_v17  ;;  %v3364_v41 = vpop.f32.mrf.mxu2  ;;  %3534 = vmatmul.bf16.vlgmr.msra.gmra.mxu0 %v12205_v39  ;;  %v9933_v17 = vor.u32 %v6269_v7, %v6048_v12  ;;  %4507 = vmatpush.bf16.msra.mxu1 %v2305_v49  ;;  %v12210_v12 = vld [vmem:[#allocation57_spill] sm:$0xff] }
 0x38c   :  { %v9921_v56 = vadd.f32 %v3268_v20, %v3160_v59  ;;  %v3433_v15 = vpop.f32.mrf.mxu3  ;;  %v6732_v18 = vpop.eup %6731  ;;  %6743 = vtanh.f32 %v1829_v50  ;;  %v9929_v2 = vadd.f32 %v3364_v41, %v9737_v8  ;;  %4398 = vmatpush.bf16.msra.mxu0 %v2273_v5  ;;  %v12209_v59 = vld [vmem:[#allocation58_spill] sm:$0xff]  ;;  %v2301_v5 = vpack.c.bf16 %v6730_v52, %v6728_v22 }
 0x38d   :  { %v3434_v32 = vadd.f32 %v3433_v15, %v9421_v55  ;;  %12208 = vst [vmem:[#allocation59_spill] sm:$0xff] %v9933_v17  ;;  %v6734_v14 = vpop.eup %6733  ;;  %v1821_v20 = vunpack.c.l.bf16 %v12209_v59  ;;  %6745 = vtanh.f32 %v1833_v16  ;;  %v5242_v10 = vmul.f32 %v6732_v18, %v9926_v60 }
 0x38e   :  { %v6736_v51 = vpop.eup %6735  ;;  %v1825_v50 = vunpack.c.h.bf16 %v12209_v59  ;;  %v1813_v41 = vunpack.c.l.bf16 %v12210_v12  ;;  %v1817_v16 = vunpack.c.h.bf16 %v12210_v12 }
 0x38f   :  { %6747 = vtanh.f32 %v3434_v32  ;;  %v6738_v8 = vpop.eup %6737  ;;  %v5395_v55 = vadd.f32 %v5394_v47, %v5242_v10  ;;  %4508 = vmatpush.bf16.msra.mxu1 %v2301_v5  ;;  %v2265_v15 = vpack.c.bf16 %v6736_v51, %v6734_v14  ;;  %v12211_v10 = vld [vmem:[#allocation55_spill] sm:$0xff] }
 0x390   :  { %v6740_v7 = vpop.eup %6739  ;;  %6749 = vtanh.f32 %v1733_v4  ;;  %3406 = vmatmul.bf16.gmra.mxu2 %v9924_v31  ;;  %3475 = vmatmul.bf16.gmra.mxu3 %v9933_v17  ;;  %v1797_v17 = vunpack.c.l.bf16 %v12211_v10 }
 0x391   :  { %v3161_v49 = vpop.f32.mrf.mxu0  ;;  %v6742_v18 = vpop.eup %6741  ;;  %6751 = vtanh.f32 %v1821_v20  ;;  %4399 = vmatpush.bf16.msra.mxu0 %v2269_v1  ;;  %v2297_v32 = vpack.c.bf16 %v6740_v7, %v6738_v8  ;;  %v12213_v7 = vld [vmem:[#allocation10_spill] sm:$0xff] }
 0x392   :  { %v3162_v47 = vadd.f32 %v3161_v49, %v9677_v34  ;;  %v3270_v58 = vpop.f32.mrf.mxu1  ;;  %v6744_v19 = vpop.eup %6743  ;;  %6753 = vtanh.f32 %v1825_v50  ;;  %v12212_v50 = vld [vmem:[#allocation56_spill] sm:$0xff] }
 0x393   :  { %v6746_v52 = vpop.eup %6745  ;;  %6755 = vtanh.f32 %v1737_v57  ;;  %v3367_v28 = vpop.f32.mrf.mxu2  ;;  %v1805_v12 = vunpack.c.l.bf16 %v12212_v50  ;;  %4509 = vmatpush.bf16.msra.mxu1 %v2297_v32  ;;  %v1809_v51 = vunpack.c.h.bf16 %v12212_v50  ;;  %v12215_v32 = vld [vmem:[#allocation9_spill] sm:$0xff] }
 0x394   :  { %v9945_v4 = vadd.f32 %v3270_v58, %v3162_v47  ;;  %v3436_v22 = vpop.f32.mrf.mxu3  ;;  %6757 = vtanh.f32 %v1813_v41  ;;  %v9948_v20 = vpop.permute.xlu2 %5051  ;;  %v9951_v1 = vadd.f32 %v3367_v28, %v9779_v36  ;;  %v12214_v41 = vld [vmem:[#allocation83_spill] sm:$0xff]  ;;  %v2261_v47 = vpack.c.bf16 %v6742_v18, %v9877_v25  ;;  %v6190_v28 = vld [vmem:[%s11505_s3 + $0x268] sm:$0xf] }
 0x395   :  { %v6748_v59 = vpop.eup %6747  ;;  %v3437_v5 = vadd.f32 %v3436_v22, %v9444_v13  ;;  %6759 = vtanh.f32 %v1817_v16  ;;  %4400 = vmatpush.bf16.msra.mxu0 %v2265_v15  ;;  %v1560_v49 = vadd.f32 %v12214_v41, %v12213_v7  ;;  %v2293_v13 = vpack.c.bf16 %v6746_v52, %v6744_v19  ;;  %v6273_v18 = vld [vmem:[%s11505_s3 + $0x16c] sm:$0xf]  ;;  %v6064_v19 = vld [vmem:[%s11505_s3 + $0x178] sm:$0xf0] }
 0x396   :  { %v5246_v57 = vmul.f32 %v6748_v59, %v9948_v20  ;;  %v9956_v14 = vpop.eup %6749  ;;  %v1801_v15 = vunpack.c.h.bf16 %v12211_v10  ;;  %v12216_v59 = vld [vmem:[#allocation79_spill] sm:$0xff] }
 0x397   :  { %6761 = vtanh.f32 %v3437_v5  ;;  %v6752_v8 = vpop.eup %6751  ;;  %v1558_v5 = vadd.f32 %v12216_v59, %v12215_v32  ;;  %4510 = vmatpush.bf16.msra.mxu1 %v2293_v13  ;;  %v12217_v41 = vld [vmem:[#allocation71_spill] sm:$0xff]  ;;  %v9985_v32 = vpop.permute.xlu0 %5056 }
 0x398   :  { %v5396_v36 = vadd.f32 %v5395_v55, %v5246_v57  ;;  %v6754_v58 = vpop.eup %6753  ;;  %6763 = vtanh.f32 %v1797_v17  ;;  %v6307_v17 = vld [vmem:[%s11505_s3 + $0x274] sm:$0xf0] }
 0x399   :  { %v3164_v16 = vpop.f32.mrf.mxu0  ;;  %v9965_v22 = vpop.eup %6755  ;;  %6765 = vtanh.f32 %v1805_v12  ;;  %4401 = vmatpush.bf16.msra.mxu0 %v2261_v47  ;;  %v1697_v50 = vpack.c.bf16 %v1560_v49, %v1558_v5  ;;  %v2257_v47 = vpack.c.bf16 %v9874_v48, %v9871_v0  ;;  %v2289_v13 = vpack.c.bf16 %v6754_v58, %v6752_v8  ;;  %v12221_v0 = vld [vmem:[#allocation15_spill] sm:$0xff] }
 0x39a   :  { %v3165_v25 = vadd.f32 %v3164_v16, %v9674_v11  ;;  %v3273_v55 = vpop.f32.mrf.mxu1  ;;  %v6758_v52 = vpop.eup %6757  ;;  %6767 = vtanh.f32 %v1809_v51  ;;  %v12218_v11 = vld [vmem:[#allocation72_spill] sm:$0xff]  ;;  %v9992_v49 = vor.u32 %v6307_v17, %v6190_v28  ;;  %v9994_v5 = vor.u32 %v6273_v18, %v6064_v19  ;;  %v12222_v48 = vld [vmem:[#allocation75_spill] sm:$0xff] }
 0x39b   :  { %v6760_v10 = vpop.eup %6759  ;;  %v3369_v57 = vpop.f32.mrf.mxu2  ;;  %3539 = vmatmul.bf16.gmra.mxu0 %v12217_v41  ;;  %3648 = vmatmul.bf16.gmra.mxu1 %v12218_v11  ;;  %6769 = vtanh.f32 %v1801_v15  ;;  %v1555_v8 = vadd.f32 %v12222_v48, %v12221_v0  ;;  %v2253_v28 = vpack.c.bf16 %v9850_v24, %v9844_v62  ;;  %v12223_v15 = vld [vmem:[#allocation18_spill] sm:$0xff]  ;;  %v12224_v19 = vld [vmem:[#allocation67_spill] sm:$0xff]  ;;  %v1917_v0 = vunpack.c.l.bf16 %v1697_v50 }
 0x39c   :  { %v9980_v12 = vadd.f32 %v3273_v55, %v3165_v25  ;;  %v3438_v7 = vpop.f32.mrf.mxu3  ;;  %v9988_v59 = vadd.f32 %v3369_v57, %v9803_v45  ;;  %v12219_v25 = vld [vmem:[#allocation8_spill] sm:$0xff]  ;;  %v12220_v55 = vld [vmem:[#allocation74_spill] sm:$0xff]  ;;  %4511 = vmatpush.bf16.msra.mxu1 %v2289_v13  ;;  %v2285_v17 = vpack.c.bf16 %v6760_v10, %v6758_v52  ;;  %v12227_v52 = vld [vmem:[#allocation23_spill] sm:$0xff] }
 0x39d   :  { %v6762_v16 = vpop.eup %6761  ;;  %v3439_v51 = vadd.f32 %v3438_v7, %v9483_v35  ;;  %v1553_v41 = vadd.f32 %v12220_v55, %v12219_v25  ;;  %4402 = vmatpush.bf16.msra.mxu0 %v2257_v47  ;;  %v1548_v7 = vadd.f32 %v12224_v19, %v12223_v15  ;;  %v12225_v25 = vld [vmem:[#allocation11_spill] sm:$0xff]  ;;  %v12226_v55 = vld [vmem:[#allocation25_spill] sm:$0xff]  ;;  %v2249_v19 = vpack.c.bf16 %v9868_v6, %v9859_v61 }
 0x39e   :  { %v5250_v58 = vmul.f32 %v6762_v16, %v9985_v32  ;;  %v6764_v45 = vpop.eup %6763  ;;  %v1550_v11 = vadd.f32 %v12226_v55, %v12225_v25  ;;  %v1921_v16 = vunpack.c.h.bf16 %v1697_v50  ;;  %v12228_v10 = vld [vmem:[#allocation45_spill] sm:$0xff]  ;;  %v10016_v50 = vpop.permute.xlu1 %5061  ;;  %v2245_v6 = vpack.c.bf16 %v9965_v22, %v9956_v14 }
 0x39f   :  { %6771 = vtanh.f32 %v3439_v51  ;;  %v6766_v35 = vpop.eup %6765  ;;  %v1693_v13 = vpack.c.bf16 %v1555_v8, %v1553_v41  ;;  %v1543_v51 = vadd.f32 %v12228_v10, %v12227_v52 }
 0x3a0   :  { %v5397_v57 = vadd.f32 %v5396_v36, %v5250_v58  ;;  %v6768_v18 = vpop.eup %6767  ;;  %3411 = vmatmul.bf16.gmra.mxu2 %v9992_v49  ;;  %3480 = vmatmul.bf16.gmra.mxu3 %v9994_v5  ;;  %v1689_v41 = vpack.c.bf16 %v1550_v11, %v1548_v7  ;;  %6773 = vtanh.f32 %v1917_v0 }
 0x3a1   :  { %v3166_v47 = vpop.f32.mrf.mxu0  ;;  %4403 = vmatpush.bf16.msra.mxu0 %v2253_v28  ;;  %4512 = vmatpush.bf16.msra.mxu1 %v2285_v17  ;;  %v6770_v36 = vpop.eup %6769  ;;  %v2281_v25 = vpack.c.bf16 %v6768_v18, %v6766_v35  ;;  %v12229_v17 = vld [vmem:[#allocation22_spill] sm:$0xff]  ;;  %6775 = vtanh.f32 %v1921_v16  ;;  %v1913_v61 = vunpack.c.h.bf16 %v1693_v13 }
 0x3a2   :  { %v3167_v62 = vadd.f32 %v3166_v47, %v9715_v40  ;;  %v3275_v24 = vpop.f32.mrf.mxu1  ;;  %v12230_v47 = vld [vmem:[#allocation68_spill] sm:$0xff]  ;;  %v2277_v35 = vpack.c.bf16 %v6770_v36, %v6764_v45 }
 0x3a3   :  { %v3372_v58 = vpop.f32.mrf.mxu2 }
 0x3a4   :  { %v10012_v48 = vadd.f32 %v3275_v24, %v3167_v62  ;;  %v3441_v15 = vpop.f32.mrf.mxu3  ;;  %v10019_v8 = vadd.f32 %v3372_v58, %v9854_v29  ;;  %v1545_v62 = vadd.f32 %v12230_v47, %v12229_v17  ;;  %v1909_v24 = vunpack.c.l.bf16 %v1693_v13  ;;  %v6277_v13 = vld [vmem:[%s11505_s3 + $0x18c] sm:$0xf] }
 0x3a5   :  { %v6772_v55 = vpop.eup %6771  ;;  %v3442_v28 = vadd.f32 %v3441_v15, %v9498_v30  ;;  %4404 = vmatpush.bf16.msra.mxu0 %v2249_v19  ;;  %4513 = vmatpush.bf16.msra.mxu1 %v2281_v25  ;;  %v1901_v29 = vunpack.c.l.bf16 %v1689_v41  ;;  %v1905_v30 = vunpack.c.h.bf16 %v1689_v41  ;;  %v10037_v15 = vpop.permute.xlu2 %5066 }
 0x3a6   :  { %v5254_v52 = vmul.f32 %v6772_v55, %v10016_v50  ;;  %v1685_v7 = vpack.c.bf16 %v1545_v62, %v1543_v51  ;;  %v6774_v14 = vpop.eup %6773  ;;  %v12231_v51 = vld [vmem:[#allocation66_spill] sm:$0xff]  ;;  %12232 = vst [vmem:[#allocation44_spill] sm:$0xff] %v10037_v15  ;;  %v12233_v55 = vld [vmem:[#allocation41_spill] sm:$0xff] }
 0x3a7   :  { %6777 = vtanh.f32 %v3442_v28  ;;  %v6776_v22 = vpop.eup %6775 }
 0x3a8   :  { %v5398_v11 = vadd.f32 %v5397_v57, %v5254_v52  ;;  %6779 = vtanh.f32 %v1909_v24  ;;  %v6080_v57 = vld [vmem:[%s11505_s3 + $0x198] sm:$0xf0]  ;;  %v1893_v28 = vunpack.c.l.bf16 %v1685_v7  ;;  %v1897_v47 = vunpack.c.h.bf16 %v1685_v7 }
 0x3a9   :  { %v3169_v18 = vpop.f32.mrf.mxu0  ;;  %4405 = vmatpush.bf16.msra.mxu0 %v2245_v6  ;;  %4514 = vmatpush.bf16.msra.mxu1 %v2277_v35  ;;  %6781 = vtanh.f32 %v1913_v61  ;;  %v10044_v41 = vor.u32 %v6277_v13, %v6080_v57  ;;  %v2337_v52 = vpack.c.bf16 %v6776_v22, %v6774_v14  ;;  %v12235_v6 = vld [vmem:[#allocation64_spill] sm:$0xff]  ;;  %v10054_v22 = vpop.permute.xlu0 %5071 }
 0x3aa   :  { %v3170_v0 = vadd.f32 %v3169_v18, %v9722_v27  ;;  %v3278_v16 = vpop.f32.mrf.mxu1  ;;  %6783 = vtanh.f32 %v1901_v29  ;;  %v1885_v35 = vunpack.c.l.bf16 %v12235_v6  ;;  %v1889_v29 = vunpack.c.h.bf16 %v12235_v6  ;;  %12237 = vst [vmem:[#allocation49_spill] sm:$0xff] %v10054_v22  ;;  %v12239_v6 = vld [vmem:[#allocation62_spill] sm:$0xff] }
 0x3ab   :  { %v3374_v36 = vpop.f32.mrf.mxu2  ;;  %3544 = vmatmul.bf16.gmra.mxu0 %v12231_v51  ;;  %3653 = vmatmul.bf16.gmra.mxu1 %v12233_v55  ;;  %12234 = vst [vmem:[#allocation47_spill] sm:$0xff] %v10044_v41  ;;  %6785 = vtanh.f32 %v1905_v30 }
 0x3ac   :  { %v10034_v45 = vadd.f32 %v3278_v16, %v3170_v0  ;;  %v3443_v10 = vpop.f32.mrf.mxu3  ;;  %v10040_v19 = vadd.f32 %v3374_v36, %v9889_v54  ;;  %v12236_v54 = vld [vmem:[#allocation43_spill] sm:$0xff] }
 0x3ad   :  { %v6778_v58 = vpop.eup %6777  ;;  %v3444_v25 = vadd.f32 %v3443_v10, %v9541_v63 }
 0x3ae   :  { %v5258_v17 = vmul.f32 %v6778_v58, %v10037_v15  ;;  %v6780_v62 = vpop.eup %6779  ;;  %v12238_v58 = vld [vmem:[#allocation63_spill] sm:$0xff] }
 0x3af   :  { %6787 = vtanh.f32 %v3444_v25  ;;  %v6782_v61 = vpop.eup %6781  ;;  %v1877_v25 = vunpack.c.l.bf16 %v12238_v58 }
 0x3b0   :  { %v5399_v24 = vadd.f32 %v5398_v11, %v5258_v17  ;;  %3485 = vmatmul.bf16.gmra.mxu3 %v10044_v41  ;;  %3752 = vmatmul.bf16.vlgmr.msra.gmra.mxu2 %v12236_v54  ;;  %6789 = vtanh.f32 %v1893_v28  ;;  %v6784_v7 = vpop.eup %6783  ;;  %v2333_v57 = vpack.c.bf16 %v6782_v61, %v6780_v62  ;;  %v1881_v17 = vunpack.c.h.bf16 %v12238_v58  ;;  %v10075_v58 = vpop.permute.xlu1 %5076  ;;  %v12327_v54 = vld [vmem:[#allocation97_spill] sm:$0xff] }
 0x3b1   :  { %v3171_v63 = vpop.f32.mrf.mxu0  ;;  %4616 = vmatpush.bf16.msra.mxu2 %v2337_v52  ;;  %6791 = vtanh.f32 %v1897_v47  ;;  %v6786_v0 = vpop.eup %6785  ;;  %12241 = vst [vmem:[#allocation58_spill] sm:$0xff] %v10075_v58 }
 0x3b2   :  { %v3172_v18 = vadd.f32 %v3171_v63, %v9717_v46  ;;  %v3280_v30 = vpop.f32.mrf.mxu1  ;;  %6793 = vtanh.f32 %v1885_v35  ;;  %v2329_v52 = vpack.c.bf16 %v6786_v0, %v6784_v7  ;;  %v1869_v35 = vunpack.c.l.bf16 %v12239_v6  ;;  %v12316_v46 = vld [vmem:[#allocation28_spill] sm:$0xff] }
 0x3b3   :  { %v3377_v16 = vpop.f32.mrf.mxu2  ;;  %6795 = vtanh.f32 %v1889_v29 }
 0x3b4   :  { %v10052_v11 = vadd.f32 %v3280_v30, %v3172_v18  ;;  %v3446_v13 = vpop.f32.mrf.mxu3  ;;  %v10057_v36 = vadd.f32 %v3377_v16, %v9921_v56  ;;  %v1873_v56 = vunpack.c.h.bf16 %v12239_v6  ;;  %v6281_v18 = vld [vmem:[%s11505_s3 + $0x1ac] sm:$0xf] }
 0x3b5   :  { %v6788_v14 = vpop.eup %6787  ;;  %v3447_v10 = vadd.f32 %v3446_v13, %v9562_v3  ;;  %4617 = vmatpush.bf16.msra.mxu2 %v2333_v57  ;;  %v12240_v57 = vld [vmem:[#allocation20_spill] sm:$0xff]  ;;  %v12244_v6 = vld [vmem:[#allocation50_spill] sm:$0xff] }
 0x3b6   :  { %v5262_v28 = vmul.f32 %v6788_v14, %v10054_v22  ;;  %v6790_v47 = vpop.eup %6789 }
 0x3b7   :  { %6797 = vtanh.f32 %v3447_v10  ;;  %v6792_v61 = vpop.eup %6791 }
 0x3b8   :  { %v5400_v62 = vadd.f32 %v5399_v24, %v5262_v28  ;;  %6799 = vtanh.f32 %v1877_v25  ;;  %v6096_v24 = vld [vmem:[%s11505_s3 + $0x1b8] sm:$0xf0]  ;;  %v6794_v30 = vpop.eup %6793  ;;  %v2325_v14 = vpack.c.bf16 %v6792_v61, %v6790_v47  ;;  %v1865_v47 = vunpack.c.h.bf16 %v12244_v6 }
 0x3b9   :  { %v3174_v63 = vpop.f32.mrf.mxu0  ;;  %4618 = vmatpush.bf16.msra.mxu2 %v2329_v52  ;;  %6801 = vtanh.f32 %v1881_v17  ;;  %v6796_v7 = vpop.eup %6795  ;;  %v12242_v52 = vld [vmem:[#allocation30_spill] sm:$0xff]  ;;  %v10082_v17 = vor.u32 %v6281_v18, %v6096_v24 }
 0x3ba   :  { %v3175_v3 = vadd.f32 %v3174_v63, %v9739_v21  ;;  %v3283_v29 = vpop.f32.mrf.mxu1  ;;  %6803 = vtanh.f32 %v1869_v35  ;;  %v1861_v63 = vunpack.c.l.bf16 %v12244_v6 }
 0x3bb   :  { %v3379_v16 = vpop.f32.mrf.mxu2  ;;  %3549 = vmatmul.bf16.gmra.mxu0 %v12240_v57  ;;  %3658 = vmatmul.bf16.gmra.mxu1 %v12242_v52  ;;  %12243 = vst [vmem:[#allocation57_spill] sm:$0xff] %v10082_v17  ;;  %6805 = vtanh.f32 %v1873_v56 }
 0x3bc   :  { %v10072_v0 = vadd.f32 %v3283_v29, %v3175_v3  ;;  %v3448_v13 = vpop.f32.mrf.mxu3  ;;  %v10078_v25 = vadd.f32 %v3379_v16, %v9945_v4  ;;  %v2321_v29 = vpack.c.bf16 %v6796_v7, %v6794_v30  ;;  %v10092_v7 = vpop.permute.xlu2 %5081 }
 0x3bd   :  { %v6798_v10 = vpop.eup %6797  ;;  %v3449_v28 = vadd.f32 %v3448_v13, %v9601_v37  ;;  %4619 = vmatpush.bf16.msra.mxu2 %v2325_v14  ;;  %v12245_v37 = vld [vmem:[#allocation37_spill] sm:$0xff]  ;;  %12246 = vst [vmem:[#allocation55_spill] sm:$0xff] %v10092_v7 }
 0x3be   :  { %v5266_v3 = vmul.f32 %v6798_v10, %v10075_v58  ;;  %v6800_v61 = vpop.eup %6799 }
 0x3bf   :  { %6807 = vtanh.f32 %v3449_v28  ;;  %v6802_v4 = vpop.eup %6801 }
 0x3c0   :  { %v5401_v35 = vadd.f32 %v5400_v62, %v5266_v3  ;;  %3490 = vmatmul.bf16.gmra.mxu3 %v10082_v17  ;;  %3757 = vmatmul.bf16.gmra.mxu2 %v12245_v37  ;;  %6809 = vtanh.f32 %v1861_v63  ;;  %v6804_v24 = vpop.eup %6803  ;;  %v2317_v62 = vpack.c.bf16 %v6802_v4, %v6800_v61 }
 0x3c1   :  { %v3176_v16 = vpop.f32.mrf.mxu0  ;;  %4620 = vmatpush.bf16.msra.mxu2 %v2321_v29  ;;  %6811 = vtanh.f32 %v1865_v47  ;;  %v6806_v13 = vpop.eup %6805 }
 0x3c2   :  { %v3177_v18 = vadd.f32 %v3176_v16, %v9758_v38  ;;  %v3285_v56 = vpop.f32.mrf.mxu1  ;;  %v2313_v16 = vpack.c.bf16 %v6806_v13, %v6804_v24 }
 0x3c3   :  { %v3382_v10 = vpop.f32.mrf.mxu2 }
 0x3c4   :  { %v10090_v14 = vadd.f32 %v3285_v56, %v3177_v18  ;;  %v3451_v28 = vpop.f32.mrf.mxu3  ;;  %v10095_v6 = vadd.f32 %v3382_v10, %v9980_v12  ;;  %v6285_v12 = vld [vmem:[%s11505_s3 + $0x1cc] sm:$0xf] }
 0x3c5   :  { %v6808_v30 = vpop.eup %6807  ;;  %v3452_v63 = vadd.f32 %v3451_v28, %v9620_v9  ;;  %4621 = vmatpush.bf16.msra.mxu2 %v2317_v62  ;;  %v6112_v9 = vld [vmem:[%s11505_s3 + $0x1d8] sm:$0xf0] }
 0x3c6   :  { %v5270_v3 = vmul.f32 %v6808_v30, %v10092_v7  ;;  %v6810_v29 = vpop.eup %6809  ;;  %v10109_v30 = vpop.permute.xlu0 %5086 }
 0x3c7   :  { %6813 = vtanh.f32 %v3452_v63  ;;  %v6812_v18 = vpop.eup %6811  ;;  %12248 = vst [vmem:[#allocation56_spill] sm:$0xff] %v10109_v30 }
 0x3c8   :  { %v5402_v47 = vadd.f32 %v5401_v35, %v5270_v3  ;;  %v12247_v35 = vld [vmem:[#allocation34_spill] sm:$0xff]  ;;  %v2309_v24 = vpack.c.bf16 %v6812_v18, %v6810_v29  ;;  %v12251_v29 = vld [vmem:[#allocation13_spill] sm:$0xff] }
 0x3c9   :  { %v3179_v56 = vpop.f32.mrf.mxu0  ;;  %4622 = vmatpush.bf16.msra.mxu2 %v2313_v16  ;;  %v12249_v16 = vld [vmem:[#allocation39_spill] sm:$0xff] }
 0x3ca   :  { %v3180_v61 = vadd.f32 %v3179_v56, %v9750_v42  ;;  %v3288_v4 = vpop.f32.mrf.mxu1  ;;  %v10116_v56 = vor.u32 %v6285_v12, %v6112_v9  ;;  %v10124_v12 = vpop.permute.xlu1 %5091 }
 0x3cb   :  { %v3384_v28 = vpop.f32.mrf.mxu2  ;;  %3554 = vmatmul.bf16.gmra.mxu0 %v12247_v35  ;;  %3663 = vmatmul.bf16.gmra.mxu1 %v12249_v16  ;;  %12252 = vst [vmem:[#allocation83_spill] sm:$0xff] %v10124_v12 }
 0x3cc   :  { %v10106_v10 = vadd.f32 %v3288_v4, %v3180_v61  ;;  %v3453_v62 = vpop.f32.mrf.mxu3  ;;  %v10112_v63 = vadd.f32 %v3384_v28, %v10012_v48  ;;  %12250 = vst [vmem:[#allocation10_spill] sm:$0xff] %v10116_v56 }
 0x3cd   :  { %v6814_v13 = vpop.eup %6813  ;;  %v3454_v3 = vadd.f32 %v3453_v62, %v9661_v26  ;;  %4623 = vmatpush.bf16.msra.mxu2 %v2309_v24 }
 0x3ce   :  { %v5274_v61 = vmul.f32 %v6814_v13, %v10109_v30 }
 0x3cf   :  { %6815 = vtanh.f32 %v3454_v3 }
 0x3d0   :  { %v5403_v4 = vadd.f32 %v5402_v47, %v5274_v61  ;;  %3495 = vmatmul.bf16.gmra.mxu3 %v10116_v56  ;;  %3762 = vmatmul.bf16.gmra.mxu2 %v12251_v29 }
 0x3d1   :  { %v3181_v18 = vpop.f32.mrf.mxu0 }
 0x3d2   :  { %v3182_v35 = vadd.f32 %v3181_v18, %v9790_v53  ;;  %v3290_v48 = vpop.f32.mrf.mxu1  ;;  %v12258_v53 = vld [vmem:[#allocation173_spill] sm:$0xff] }
 0x3d3   :  { %v3387_v26 = vpop.f32.mrf.mxu2 }
 0x3d4   :  { %v10122_v28 = vadd.f32 %v3290_v48, %v3182_v35  ;;  %v3456_v62 = vpop.f32.mrf.mxu3  ;;  %v10127_v9 = vadd.f32 %v3387_v26, %v10034_v45  ;;  %v6289_v35 = vld [vmem:[%s11505_s3 + $0x1ec] sm:$0xf]  ;;  %v6128_v48 = vld [vmem:[%s11505_s3 + $0x1f8] sm:$0xf0] }
 0x3d5   :  { %v6816_v16 = vpop.eup %6815  ;;  %v3457_v47 = vadd.f32 %v3456_v62, %v9682_v23  ;;  %v12253_v62 = vld [vmem:[#allocation69_spill] sm:$0xff] }
 0x3d6   :  { %v5278_v24 = vmul.f32 %v6816_v16, %v10124_v12 }
 0x3d7   :  { %6817 = vtanh.f32 %v3457_v47 }
 0x3d8   :  { %v5404_v13 = vadd.f32 %v5403_v4, %v5278_v24  ;;  %v10141_v4 = vpop.permute.xlu2 %5096 }
 0x3d9   :  { %v3184_v3 = vpop.f32.mrf.mxu0  ;;  %12254 = vst [vmem:[#allocation9_spill] sm:$0xff] %v10141_v4 }
 0x3da   :  { %v3185_v61 = vadd.f32 %v3184_v3, %v9795_v33  ;;  %v3293_v18 = vpop.f32.mrf.mxu1  ;;  %v12255_v3 = vld [vmem:[#allocation65_spill] sm:$0xff]  ;;  %v10148_v33 = vor.u32 %v6289_v35, %v6128_v48  ;;  %v12260_v48 = vld [vmem:[#allocation163_spill] sm:$0xff] }
 0x3db   :  { %v3389_v26 = vpop.f32.mrf.mxu2  ;;  %3559 = vmatmul.bf16.gmra.mxu0 %v12253_v62  ;;  %3668 = vmatmul.bf16.gmra.mxu1 %v12255_v3  ;;  %v10156_v3 = vpop.permute.xlu0 %5101 }
 0x3dc   :  { %v10138_v45 = vadd.f32 %v3293_v18, %v3185_v61  ;;  %v3458_v23 = vpop.f32.mrf.mxu3  ;;  %v10144_v47 = vadd.f32 %v3389_v26, %v10052_v11  ;;  %12256 = vst [vmem:[#allocation79_spill] sm:$0xff] %v10148_v33  ;;  %v12257_v18 = vld [vmem:[#allocation27_spill] sm:$0xff] }
 0x3dd   :  { %v6818_v16 = vpop.eup %6817  ;;  %v3459_v24 = vadd.f32 %v3458_v23, %v9725_v43  ;;  %12259 = vst [vmem:[#allocation8_spill] sm:$0xff] %v10156_v3 }
 0x3de   :  { %v5282_v12 = vmul.f32 %v6818_v16, %v10141_v4  ;;  %v12268_v4 = vld [vmem:[#allocation175_spill] sm:$0xff] }
 0x3df   :  { %6819 = vtanh.f32 %v3459_v24 }
 0x3e0   :  { %v5405_v61 = vadd.f32 %v5404_v13, %v5282_v12  ;;  %3500 = vmatmul.bf16.gmra.mxu3 %v10148_v33  ;;  %3767 = vmatmul.bf16.gmra.mxu2 %v12257_v18  ;;  %v12261_v18 = vld [vmem:[#allocation46_spill] sm:$0xff] }
 0x3e1   :  { %v3186_v62 = vpop.f32.mrf.mxu0 }
 0x3e2   :  { %v3187_v29 = vadd.f32 %v3186_v62, %v12258_v53  ;;  %v3295_v56 = vpop.f32.mrf.mxu1 }
 0x3e3   :  { %v3392_v26 = vpop.f32.mrf.mxu2 }
 0x3e4   :  { %v10154_v11 = vadd.f32 %v3295_v56, %v3187_v29  ;;  %v3461_v43 = vpop.f32.mrf.mxu3  ;;  %v10159_v35 = vadd.f32 %v3392_v26, %v10072_v0  ;;  %v6293_v56 = vld [vmem:[%s11505_s3 + $0x20c] sm:$0xf]  ;;  %v6144_v29 = vld [vmem:[%s11505_s3 + $0x218] sm:$0xf0] }
 0x3e5   :  { %v6820_v23 = vpop.eup %6819  ;;  %v3462_v12 = vadd.f32 %v3461_v43, %v12260_v48  ;;  %v12262_v48 = vld [vmem:[#allocation36_spill] sm:$0xff] }
 0x3e6   :  { %v5286_v13 = vmul.f32 %v6820_v23, %v10156_v3  ;;  %v10180_v3 = vor.u32 %v6293_v56, %v6144_v29  ;;  %v12270_v29 = vld [vmem:[#allocation40_spill] sm:$0xff] }
 0x3e7   :  { %6821 = vtanh.f32 %v3462_v12 }
 0x3e8   :  { %v5406_v16 = vadd.f32 %v5405_v61, %v5286_v13  ;;  %v10173_v61 = vpop.permute.xlu1 %5106  ;;  %v12264_v13 = vld [vmem:[#allocation169_spill] sm:$0xff]  ;;  %12266 = vst [vmem:[#allocation15_spill] sm:$0xff] %v10180_v3 }
 0x3e9   :  { %v3189_v24 = vpop.f32.mrf.mxu0  ;;  %12263 = vst [vmem:[#allocation74_spill] sm:$0xff] %v10173_v61 }
 0x3ea   :  { %v3190_v62 = vadd.f32 %v3189_v24, %v12261_v18  ;;  %v3298_v53 = vpop.f32.mrf.mxu1  ;;  %v12265_v18 = vld [vmem:[#allocation32_spill] sm:$0xff] }
 0x3eb   :  { %v3394_v26 = vpop.f32.mrf.mxu2  ;;  %3564 = vmatmul.bf16.gmra.mxu0 %v12262_v48  ;;  %3673 = vmatmul.bf16.gmra.mxu1 %v12265_v18  ;;  %v10188_v18 = vpop.permute.xlu2 %5111 }
 0x3ec   :  { %v10170_v0 = vadd.f32 %v3298_v53, %v3190_v62  ;;  %v3463_v43 = vpop.f32.mrf.mxu3  ;;  %v10176_v12 = vadd.f32 %v3394_v26, %v10090_v14  ;;  %v12267_v62 = vld [vmem:[#allocation73_spill] sm:$0xff]  ;;  %12269 = vst [vmem:[#allocation75_spill] sm:$0xff] %v10188_v18 }
 0x3ed   :  { %v6822_v23 = vpop.eup %6821  ;;  %v3464_v24 = vadd.f32 %v3463_v43, %v12264_v13 }
 0x3ee   :  { %v5290_v33 = vmul.f32 %v6822_v23, %v10173_v61  ;;  %v12278_v61 = vld [vmem:[#allocation12_spill] sm:$0xff] }
 0x3ef   :  { %6823 = vtanh.f32 %v3464_v24 }
 0x3f0   :  { %v5407_v53 = vadd.f32 %v5406_v16, %v5290_v33  ;;  %3505 = vmatmul.bf16.gmra.mxu3 %v10180_v3  ;;  %3772 = vmatmul.bf16.gmra.mxu2 %v12267_v62  ;;  %v12271_v62 = vld [vmem:[#allocation51_spill] sm:$0xff] }
 0x3f1   :  { %v3191_v48 = vpop.f32.mrf.mxu0 }
 0x3f2   :  { %v3192_v30 = vadd.f32 %v3191_v48, %v12268_v4  ;;  %v3300_v42 = vpop.f32.mrf.mxu1 }
 0x3f3   :  { %v3397_v26 = vpop.f32.mrf.mxu2 }
 0x3f4   :  { %v10186_v14 = vadd.f32 %v3300_v42, %v3192_v30  ;;  %v3466_v43 = vpop.f32.mrf.mxu3  ;;  %v10191_v56 = vadd.f32 %v3397_v26, %v10106_v10  ;;  %v6297_v42 = vld [vmem:[%s11505_s3 + $0x22c] sm:$0xf]  ;;  %v6160_v30 = vld [vmem:[%s11505_s3 + $0x238] sm:$0xf0] }
 0x3f5   :  { %v6824_v13 = vpop.eup %6823  ;;  %v3467_v33 = vadd.f32 %v3466_v43, %v12270_v29  ;;  %v12272_v29 = vld [vmem:[#allocation76_spill] sm:$0xff] }
 0x3f6   :  { %v5294_v16 = vmul.f32 %v6824_v13, %v10188_v18  ;;  %v10212_v18 = vor.u32 %v6297_v42, %v6160_v30  ;;  %v12280_v30 = vld [vmem:[#allocation178_spill] sm:$0xff] }
 0x3f7   :  { %6825 = vtanh.f32 %v3467_v33 }
 0x3f8   :  { %v5408_v23 = vadd.f32 %v5407_v53, %v5294_v16  ;;  %v10205_v53 = vpop.permute.xlu0 %5116  ;;  %v12274_v16 = vld [vmem:[#allocation176_spill] sm:$0xff]  ;;  %12276 = vst [vmem:[#allocation67_spill] sm:$0xff] %v10212_v18 }
 0x3f9   :  { %v3194_v24 = vpop.f32.mrf.mxu0  ;;  %12273 = vst [vmem:[#allocation18_spill] sm:$0xff] %v10205_v53 }
 0x3fa   :  { %v3195_v48 = vadd.f32 %v3194_v24, %v12271_v62  ;;  %v3303_v4 = vpop.f32.mrf.mxu1  ;;  %v12275_v62 = vld [vmem:[#allocation77_spill] sm:$0xff] }
 0x3fb   :  { %v3399_v26 = vpop.f32.mrf.mxu2  ;;  %3569 = vmatmul.bf16.gmra.mxu0 %v12272_v29  ;;  %3678 = vmatmul.bf16.gmra.mxu1 %v12275_v62  ;;  %v10220_v62 = vpop.permute.xlu1 %5121 }
 0x3fc   :  { %v10202_v10 = vadd.f32 %v3303_v4, %v3195_v48  ;;  %v3468_v43 = vpop.f32.mrf.mxu3  ;;  %v10208_v33 = vadd.f32 %v3399_v26, %v10122_v28  ;;  %v12277_v48 = vld [vmem:[#allocation78_spill] sm:$0xff]  ;;  %12279 = vst [vmem:[#allocation11_spill] sm:$0xff] %v10220_v62 }
 0x3fd   :  { %v6826_v13 = vpop.eup %6825  ;;  %v3469_v24 = vadd.f32 %v3468_v43, %v12274_v16 }
 0x3fe   :  { %v5298_v3 = vmul.f32 %v6826_v13, %v10205_v53 }
 0x3ff   :  { %6827 = vtanh.f32 %v3469_v24 }
 0x400   :  { %v5409_v4 = vadd.f32 %v5408_v23, %v5298_v3  ;;  %3510 = vmatmul.bf16.gmra.mxu3 %v10212_v18  ;;  %3777 = vmatmul.bf16.gmra.mxu2 %v12277_v48  ;;  %v12281_v48 = vld [vmem:[#allocation81_spill] sm:$0xff] }
 0x401   :  { %v3196_v29 = vpop.f32.mrf.mxu0 }
 0x402   :  { %v3197_v7 = vadd.f32 %v3196_v29, %v12278_v61  ;;  %v3305_v38 = vpop.f32.mrf.mxu1 }
 0x403   :  { %v3402_v26 = vpop.f32.mrf.mxu2 }
 0x404   :  { %v10218_v28 = vadd.f32 %v3305_v38, %v3197_v7  ;;  %v3471_v43 = vpop.f32.mrf.mxu3  ;;  %v10223_v42 = vadd.f32 %v3402_v26, %v10138_v45  ;;  %v6301_v38 = vld [vmem:[%s11505_s3 + $0x24c] sm:$0xf]  ;;  %v6176_v7 = vld [vmem:[%s11505_s3 + $0x258] sm:$0xf0] }
 0x405   :  { %v6828_v16 = vpop.eup %6827  ;;  %v3472_v3 = vadd.f32 %v3471_v43, %v12280_v30  ;;  %v12282_v43 = vld [vmem:[#allocation80_spill] sm:$0xff] }
 0x406   :  { %v5302_v23 = vmul.f32 %v6828_v16, %v10220_v62 }
 0x407   :  { %6829 = vtanh.f32 %v3472_v3 }
 0x408   :  { %v5410_v13 = vadd.f32 %v5409_v4, %v5302_v23  ;;  %v10237_v4 = vpop.permute.xlu2 %5126  ;;  %v12284_v23 = vld [vmem:[#allocation82_spill] sm:$0xff] }
 0x409   :  { %v3535_v24 = vpop.f32.mrf.mxu0  ;;  %12283 = vst [vmem:[#allocation25_spill] sm:$0xff] %v10237_v4 }
 0x40a   :  { %v3536_v29 = vadd.f32 %v3535_v24, %v12281_v48  ;;  %v3644_v61 = vpop.f32.mrf.mxu1  ;;  %v10244_v24 = vor.u32 %v6301_v38, %v6176_v7 }
 0x40b   :  { %v3404_v45 = vpop.f32.mrf.mxu2  ;;  %3574 = vmatmul.bf16.gmra.mxu0 %v12282_v43  ;;  %3683 = vmatmul.bf16.gmra.mxu1 %v12284_v23  ;;  %v12287_v43 = vld [vmem:[#allocation85_spill] sm:$0xff] }
 0x40c   :  { %v3473_v26 = vpop.f32.mrf.mxu3  ;;  %v10234_v18 = vadd.f32 %v3644_v61, %v3536_v29  ;;  %v10240_v30 = vadd.f32 %v3404_v45, %v10154_v11  ;;  %12285 = vst [vmem:[#allocation23_spill] sm:$0xff] %v10244_v24  ;;  %v12286_v61 = vld [vmem:[#allocation84_spill] sm:$0xff] }
 0x40d   :  { %v6830_v16 = vpop.eup %6829  ;;  %v3474_v3 = vadd.f32 %v3473_v26, %v9929_v2  ;;  %v10252_v26 = vpop.permute.xlu0 %5131 }
 0x40e   :  { %v5306_v48 = vmul.f32 %v6830_v16, %v10237_v4  ;;  %12288 = vst [vmem:[#allocation45_spill] sm:$0xff] %v10252_v26  ;;  %v12289_v16 = vld [vmem:[#allocation7_spill] sm:$0xff]  ;;  %v12296_v4 = vld [vmem:[#allocation89_spill] sm:$0xff] }
 0x40f   :  { %6831 = vtanh.f32 %v3474_v3  ;;  %v12290_v3 = vld [vmem:[#allocation168_spill] sm:$0xff] }
 0x410   :  { %v5411_v62 = vadd.f32 %v5410_v13, %v5306_v48  ;;  %3515 = vmatmul.bf16.gmra.mxu3 %v10244_v24  ;;  %3782 = vmatmul.bf16.gmra.mxu2 %v12286_v61  ;;  %v12291_v61 = vld [vmem:[#allocation88_spill] sm:$0xff] }
 0x411   :  { %v3537_v29 = vpop.f32.mrf.mxu0 }
 0x412   :  { %v3538_v53 = vadd.f32 %v3537_v29, %v12287_v43  ;;  %v3646_v37 = vpop.f32.mrf.mxu1  ;;  %v1600_v29 = vadd.f32 %v12290_v3, %v12289_v16 }
 0x413   :  { %v3407_v11 = vpop.f32.mrf.mxu2 }
 0x414   :  { %v3476_v45 = vpop.f32.mrf.mxu3  ;;  %v10250_v17 = vadd.f32 %v3646_v37, %v3538_v53  ;;  %v10255_v38 = vadd.f32 %v3407_v11, %v10170_v0  ;;  %v6305_v53 = vld [vmem:[%s11505_s3 + $0x26c] sm:$0xf]  ;;  %v6192_v0 = vld [vmem:[%s11505_s3 + $0x278] sm:$0xf0]  ;;  %s7172_s3 = smov [#allocation3]  }
 0x415   :  { %v6832_v2 = vpop.eup %6831  ;;  %v3477_v48 = vadd.f32 %v3476_v45, %v9951_v1  ;;  %v12292_v1 = vld [vmem:[#allocation6_spill] sm:$0xff]  ;;  %v12293_v11 = vld [vmem:[#allocation161_spill] sm:$0xff]  ;;  %v10280_v23 = vor.u32 %v6305_v53, %v6192_v0  ;;  %s5609_s25 = sshll.u32 %s7172_s3, 4  ;;  %s5610_s25 = int_to_ptr.vmem [resolvable:$true] %s5609_s25 }
 0x416   :  { %v5310_v13 = vmul.f32 %v6832_v2, %v10252_v26  ;;  %v1598_v45 = vadd.f32 %v12293_v11, %v12292_v1  ;;  %v12298_v1 = vld [vmem:[#allocation17_spill] sm:$0xff]  ;;  %v12299_v11 = vld [vmem:[#allocation154_spill] sm:$0xff] }
 0x417   :  { %6833 = vtanh.f32 %v3477_v48  ;;  %12297 = vst [vmem:[#allocation68_spill] sm:$0xff] %v10280_v23  ;;  %v1595_v58 = vadd.f32 %v12299_v11, %v12298_v1 }
 0x418   :  { %v5412_v7 = vadd.f32 %v5411_v62, %v5310_v13  ;;  %v12294_v13 = vld [vmem:[#allocation87_spill] sm:$0xff]  ;;  %v1729_v3 = vpack.c.bf16 %v1600_v29, %v1598_v45  ;;  %v12302_v29 = vld [vmem:[#allocation21_spill] sm:$0xff]  ;;  %v12303_v45 = vld [vmem:[#allocation142_spill] sm:$0xff] }
 0x419   :  { %v3540_v43 = vpop.f32.mrf.mxu0 }
 0x41a   :  { %v3541_v24 = vadd.f32 %v3540_v43, %v12291_v61  ;;  %v3649_v37 = vpop.f32.mrf.mxu1  ;;  %v10273_v43 = vpop.permute.xlu1 %5136 }
 0x41b   :  { %v3409_v2 = vpop.f32.mrf.mxu2  ;;  %3579 = vmatmul.bf16.gmra.mxu0 %v12294_v13  ;;  %12295 = vst [vmem:[#allocation22_spill] sm:$0xff] %v10273_v43  ;;  %3688 = vmatmul.bf16.gmra.mxu1 %v12296_v4  ;;  %v12301_v13 = vld [vmem:[#allocation150_spill] sm:$0xff]  ;;  %v12305_v4 = vld [vmem:[#allocation92_spill] sm:$0xff] }
 0x41c   :  { %v3478_v62 = vpop.f32.mrf.mxu3  ;;  %v10270_v48 = vadd.f32 %v3649_v37, %v3541_v24  ;;  %v10276_v61 = vadd.f32 %v3409_v2, %v10186_v14  ;;  %v12300_v37 = vld [vmem:[#allocation16_spill] sm:$0xff]  ;;  %v1590_v14 = vadd.f32 %v12303_v45, %v12302_v29  ;;  %v1981_v2 = vunpack.c.l.bf16 %v1729_v3 }
 0x41d   :  { %v6834_v16 = vpop.eup %6833  ;;  %v3479_v26 = vadd.f32 %v3478_v62, %v9988_v59  ;;  %v1593_v52 = vadd.f32 %v12301_v13, %v12300_v37  ;;  %v12304_v59 = vld [vmem:[#allocation90_spill] sm:$0xff]  ;;  %v1985_v62 = vunpack.c.h.bf16 %v1729_v3  ;;  %v10296_v37 = vpop.permute.xlu2 %5141 }
 0x41e   :  { %v5314_v24 = vmul.f32 %v6834_v16, %v10273_v43  ;;  %v12306_v16 = vld [vmem:[#allocation14_spill] sm:$0xff]  ;;  %12308 = vst [vmem:[#allocation64_spill] sm:$0xff] %v10296_v37 }
 0x41f   :  { %6835 = vtanh.f32 %v3479_v26  ;;  %v1725_v0 = vpack.c.bf16 %v1595_v58, %v1593_v52  ;;  %v12307_v26 = vld [vmem:[#allocation136_spill] sm:$0xff]  ;;  %v12309_v52 = vld [vmem:[#allocation19_spill] sm:$0xff]  ;;  %v12310_v3 = vld [vmem:[#allocation130_spill] sm:$0xff] }
 0x420   :  { %v5413_v57 = vadd.f32 %v5412_v7, %v5314_v24  ;;  %3520 = vmatmul.bf16.gmra.mxu3 %v10280_v23  ;;  %3787 = vmatmul.bf16.gmra.mxu2 %v12304_v59  ;;  %v1588_v43 = vadd.f32 %v12307_v26, %v12306_v16  ;;  %6837 = vtanh.f32 %v1981_v2 }
 0x421   :  { %v3542_v53 = vpop.f32.mrf.mxu0  ;;  %6839 = vtanh.f32 %v1985_v62  ;;  %v1977_v26 = vunpack.c.h.bf16 %v1725_v0 }
 0x422   :  { %v3543_v1 = vadd.f32 %v3542_v53, %v12305_v4  ;;  %v3651_v11 = vpop.f32.mrf.mxu1  ;;  %v1721_v29 = vpack.c.bf16 %v1590_v14, %v1588_v43  ;;  %v1585_v53 = vadd.f32 %v12310_v3, %v12309_v52  ;;  %v1973_v4 = vunpack.c.l.bf16 %v1725_v0  ;;  %v12313_v43 = vld [vmem:[#allocation29_spill] sm:$0xff]  ;;  %v12314_v14 = vld [vmem:[#allocation118_spill] sm:$0xff] }
 0x423   :  { %v3412_v21 = vpop.f32.mrf.mxu2  ;;  %v1580_v2 = vadd.f32 %v12314_v14, %v12313_v43  ;;  %v10315_v43 = vpop.permute.xlu0 %5146 }
 0x424   :  { %v3481_v13 = vpop.f32.mrf.mxu3  ;;  %v10294_v7 = vadd.f32 %v3651_v11, %v3543_v1  ;;  %v10299_v45 = vadd.f32 %v3412_v21, %v10202_v10  ;;  %v12311_v1 = vld [vmem:[#allocation24_spill] sm:$0xff]  ;;  %v12312_v11 = vld [vmem:[#allocation122_spill] sm:$0xff]  ;;  %v1965_v21 = vunpack.c.l.bf16 %v1721_v29  ;;  %12319 = vst [vmem:[#allocation63_spill] sm:$0xff] %v10315_v43 }
 0x425   :  { %v6836_v24 = vpop.eup %6835  ;;  %v3482_v58 = vadd.f32 %v3481_v13, %v10019_v8  ;;  %v1583_v59 = vadd.f32 %v12312_v11, %v12311_v1  ;;  %v1969_v8 = vunpack.c.h.bf16 %v1721_v29  ;;  %v12315_v13 = vld [vmem:[#allocation94_spill] sm:$0xff] }
 0x426   :  { %v5318_v16 = vmul.f32 %v6836_v24, %v10296_v37  ;;  %v6838_v62 = vpop.eup %6837  ;;  %v12317_v24 = vld [vmem:[#allocation70_spill] sm:$0xff] }
 0x427   :  { %6841 = vtanh.f32 %v3482_v58  ;;  %v1717_v22 = vpack.c.bf16 %v1585_v53, %v1583_v59  ;;  %v1578_v0 = vadd.f32 %v12317_v24, %v12316_v46  ;;  %v6840_v58 = vpop.eup %6839  ;;  %v12320_v53 = vld [vmem:[#allocation95_spill] sm:$0xff]  ;;  %v12321_v46 = vld [vmem:[#allocation33_spill] sm:$0xff] }
 0x428   :  { %v5414_v23 = vadd.f32 %v5413_v57, %v5318_v16  ;;  %6843 = vtanh.f32 %v1973_v4  ;;  %v12318_v16 = vld [vmem:[#allocation93_spill] sm:$0xff] }
 0x429   :  { %v3545_v10 = vpop.f32.mrf.mxu0  ;;  %6845 = vtanh.f32 %v1977_v26  ;;  %v1713_v59 = vpack.c.bf16 %v1580_v2, %v1578_v0  ;;  %v12322_v26 = vld [vmem:[#allocation108_spill] sm:$0xff]  ;;  %v12324_v2 = vld [vmem:[#allocation106_spill] sm:$0xff] }
 0x42a   :  { %v3546_v52 = vadd.f32 %v3545_v10, %v12315_v13  ;;  %v3654_v3 = vpop.f32.mrf.mxu1  ;;  %6847 = vtanh.f32 %v1965_v21  ;;  %v1575_v14 = vadd.f32 %v12322_v26, %v12321_v46  ;;  %v1957_v10 = vunpack.c.l.bf16 %v1717_v22  ;;  %v12325_v13 = vld [vmem:[#allocation31_spill] sm:$0xff]  ;;  %v12328_v46 = vld [vmem:[#allocation98_spill] sm:$0xff] }
 0x42b   :  { %v3414_v37 = vpop.f32.mrf.mxu2  ;;  %3584 = vmatmul.bf16.gmra.mxu0 %v12318_v16  ;;  %3693 = vmatmul.bf16.gmra.mxu1 %v12320_v53  ;;  %6849 = vtanh.f32 %v1969_v8  ;;  %v12323_v16 = vld [vmem:[#allocation26_spill] sm:$0xff]  ;;  %v1949_v53 = vunpack.c.l.bf16 %v1713_v59 }
 0x42c   :  { %v3483_v1 = vpop.f32.mrf.mxu3  ;;  %v10312_v57 = vadd.f32 %v3654_v3, %v3546_v52  ;;  %v10318_v4 = vadd.f32 %v3414_v37, %v10218_v28  ;;  %v1961_v3 = vunpack.c.h.bf16 %v1717_v22  ;;  %v1573_v21 = vadd.f32 %v12324_v2, %v12323_v16  ;;  %v12329_v22 = vld [vmem:[#allocation99_spill] sm:$0xff] }
 0x42d   :  { %v6842_v11 = vpop.eup %6841  ;;  %v3484_v29 = vadd.f32 %v3483_v1, %v10040_v19  ;;  %v2369_v28 = vpack.c.bf16 %v6840_v58, %v6838_v62  ;;  %v12326_v19 = vld [vmem:[#allocation100_spill] sm:$0xff] }
 0x42e   :  { %v5322_v52 = vmul.f32 %v6842_v11, %v10315_v43  ;;  %v6844_v24 = vpop.eup %6843  ;;  %v1570_v1 = vadd.f32 %v12326_v19, %v12325_v13  ;;  %v1709_v26 = vpack.c.bf16 %v1575_v14, %v1573_v21  ;;  %v1953_v11 = vunpack.c.h.bf16 %v1713_v59  ;;  %v12331_v62 = vld [vmem:[#allocation96_spill] sm:$0xff]  ;;  %v10336_v59 = vpop.permute.xlu1 %5151  ;;  %v12333_v21 = vld [vmem:[#allocation53_spill] sm:$0xff] }
 0x42f   :  { %6851 = vtanh.f32 %v3484_v29  ;;  %v6846_v37 = vpop.eup %6845  ;;  %12332 = vst [vmem:[#allocation62_spill] sm:$0xff] %v10336_v59 }
 0x430   :  { %v5415_v0 = vadd.f32 %v5414_v23, %v5322_v52  ;;  %3792 = vmatmul.bf16.gmra.mxu2 %v12327_v54  ;;  %3861 = vmatmul.bf16.vlgmr.msra.gmra.mxu3 %v12328_v46  ;;  %6853 = vtanh.f32 %v1957_v10  ;;  %v6848_v16 = vpop.eup %6847  ;;  %v12330_v23 = vld [vmem:[#allocation38_spill] sm:$0xff]  ;;  %v2365_v54 = vpack.c.bf16 %v6846_v37, %v6844_v24  ;;  %v12335_v37 = vld [vmem:[#allocation52_spill] sm:$0xff] }
 0x431   :  { %v3547_v8 = vpop.f32.mrf.mxu0  ;;  %4725 = vmatpush.bf16.msra.mxu3 %v2369_v28  ;;  %v1568_v58 = vadd.f32 %v12331_v62, %v12330_v23  ;;  %6855 = vtanh.f32 %v1961_v3  ;;  %v6850_v52 = vpop.eup %6849  ;;  %v12334_v28 = vld [vmem:[#allocation91_spill] sm:$0xff]  ;;  %v1941_v3 = vunpack.c.l.bf16 %v1709_v26 }
 0x432   :  { %v3548_v29 = vadd.f32 %v3547_v8, %v12329_v22  ;;  %v3656_v43 = vpop.f32.mrf.mxu1  ;;  %6857 = vtanh.f32 %v1949_v53  ;;  %v1565_v8 = vadd.f32 %v12334_v28, %v12333_v21  ;;  %v12336_v53 = vld [vmem:[#allocation86_spill] sm:$0xff]  ;;  %v2361_v62 = vpack.c.bf16 %v6850_v52, %v6848_v16  ;;  %v10351_v52 = vpop.permute.xlu2 %5156 }
 0x433   :  { %v3753_v19 = vpop.f32.mrf.mxu2  ;;  %v1705_v41 = vpack.c.bf16 %v1570_v1, %v1568_v58  ;;  %6859 = vtanh.f32 %v1953_v11  ;;  %v1563_v1 = vadd.f32 %v12336_v53, %v12335_v37  ;;  %v12337_v21 = vld [vmem:[#allocation102_spill] sm:$0xff]  ;;  %v12338_v37 = vld [vmem:[#allocation101_spill] sm:$0xff]  ;;  %12339 = vst [vmem:[#allocation50_spill] sm:$0xff] %v10351_v52 }
 0x434   :  { %v3486_v13 = vpop.f32.mrf.mxu3  ;;  %v10334_v2 = vadd.f32 %v3656_v43, %v3548_v29  ;;  %v10340_v10 = vadd.f32 %v3753_v19, %v10234_v18  ;;  %v1945_v29 = vunpack.c.h.bf16 %v1709_v26 }
 0x435   :  { %v6852_v46 = vpop.eup %6851  ;;  %v3487_v14 = vadd.f32 %v3486_v13, %v10057_v36  ;;  %4726 = vmatpush.bf16.msra.mxu3 %v2365_v54  ;;  %v1933_v58 = vunpack.c.l.bf16 %v1705_v41  ;;  %v1701_v13 = vpack.c.bf16 %v1565_v8, %v1563_v1  ;;  %v1937_v19 = vunpack.c.h.bf16 %v1705_v41 }
 0x436   :  { %v5326_v43 = vmul.f32 %v6852_v46, %v10336_v59  ;;  %v6854_v24 = vpop.eup %6853 }
 0x437   :  { %6861 = vtanh.f32 %v3487_v14  ;;  %v6856_v36 = vpop.eup %6855  ;;  %v1929_v53 = vunpack.c.h.bf16 %v1701_v13 }
 0x438   :  { %v5416_v23 = vadd.f32 %v5415_v0, %v5326_v43  ;;  %6863 = vtanh.f32 %v1941_v3  ;;  %v6858_v46 = vpop.eup %6857  ;;  %v2357_v0 = vpack.c.bf16 %v6856_v36, %v6854_v24  ;;  %v12340_v3 = vld [vmem:[#allocation103_spill] sm:$0xff]  ;;  %v1925_v43 = vunpack.c.l.bf16 %v1701_v13 }
 0x439   :  { %v3550_v18 = vpop.f32.mrf.mxu0  ;;  %4727 = vmatpush.bf16.msra.mxu3 %v2361_v62  ;;  %6865 = vtanh.f32 %v1945_v29  ;;  %v6860_v54 = vpop.eup %6859 }
 0x43a   :  { %v3551_v11 = vadd.f32 %v3550_v18, %v12337_v21  ;;  %v3659_v28 = vpop.f32.mrf.mxu1  ;;  %6867 = vtanh.f32 %v1933_v58  ;;  %v2353_v62 = vpack.c.bf16 %v6860_v54, %v6858_v46  ;;  %v12341_v58 = vld [vmem:[#allocation104_spill] sm:$0xff]  ;;  %v12342_v18 = vld [vmem:[#allocation105_spill] sm:$0xff]  ;;  %v10364_v54 = vpop.permute.xlu0 %5161 }
 0x43b   :  { %v3755_v59 = vpop.f32.mrf.mxu2  ;;  %3589 = vmatmul.bf16.gmra.mxu0 %v12338_v37  ;;  %3698 = vmatmul.bf16.gmra.mxu1 %v12340_v3  ;;  %6869 = vtanh.f32 %v1937_v19  ;;  %12344 = vst [vmem:[#allocation163_spill] sm:$0xff] %v10364_v54 }
 0x43c   :  { %v3488_v26 = vpop.f32.mrf.mxu3  ;;  %v10348_v14 = vadd.f32 %v3659_v28, %v3551_v11  ;;  %v10355_v8 = vadd.f32 %v3755_v59, %v10250_v17  ;;  %v12343_v17 = vld [vmem:[#allocation107_spill] sm:$0xff] }
 0x43d   :  { %v6862_v16 = vpop.eup %6861  ;;  %v3489_v41 = vadd.f32 %v3488_v26, %v10078_v25  ;;  %4728 = vmatpush.bf16.msra.mxu3 %v2357_v0 }
 0x43e   :  { %v5330_v29 = vmul.f32 %v6862_v16, %v10351_v52  ;;  %v6864_v1 = vpop.eup %6863 }
 0x43f   :  { %6871 = vtanh.f32 %v3489_v41  ;;  %v6866_v36 = vpop.eup %6865 }
 0x440   :  { %v5417_v24 = vadd.f32 %v5416_v23, %v5330_v29  ;;  %3797 = vmatmul.bf16.gmra.mxu2 %v12341_v58  ;;  %3866 = vmatmul.bf16.gmra.mxu3 %v12342_v18  ;;  %6873 = vtanh.f32 %v1925_v43  ;;  %v6868_v19 = vpop.eup %6867  ;;  %v2349_v23 = vpack.c.bf16 %v6866_v36, %v6864_v1 }
 0x441   :  { %v3552_v25 = vpop.f32.mrf.mxu0  ;;  %4729 = vmatpush.bf16.msra.mxu3 %v2353_v62  ;;  %6875 = vtanh.f32 %v1929_v53  ;;  %v6870_v28 = vpop.eup %6869 }
 0x442   :  { %v3553_v59 = vadd.f32 %v3552_v25, %v12343_v17  ;;  %v3661_v11 = vpop.f32.mrf.mxu1  ;;  %v2345_v62 = vpack.c.bf16 %v6870_v28, %v6868_v19  ;;  %v12348_v19 = vld [vmem:[#allocation111_spill] sm:$0xff] }
 0x443   :  { %v3758_v0 = vpop.f32.mrf.mxu2 }
 0x444   :  { %v3491_v26 = vpop.f32.mrf.mxu3  ;;  %v10362_v13 = vadd.f32 %v3661_v11, %v3553_v59  ;;  %v10368_v41 = vadd.f32 %v3758_v0, %v10270_v48  ;;  %v12345_v11 = vld [vmem:[#allocation110_spill] sm:$0xff] }
 0x445   :  { %v6872_v46 = vpop.eup %6871  ;;  %v3492_v16 = vadd.f32 %v3491_v26, %v10095_v6  ;;  %4730 = vmatpush.bf16.msra.mxu3 %v2349_v23  ;;  %v12346_v26 = vld [vmem:[#allocation109_spill] sm:$0xff] }
 0x446   :  { %v5334_v43 = vmul.f32 %v6872_v46, %v10364_v54  ;;  %v6874_v29 = vpop.eup %6873  ;;  %v10375_v46 = vpop.permute.xlu1 %5166 }
 0x447   :  { %6877 = vtanh.f32 %v3492_v16  ;;  %v6876_v25 = vpop.eup %6875  ;;  %12347 = vst [vmem:[#allocation169_spill] sm:$0xff] %v10375_v46 }
 0x448   :  { %v5418_v53 = vadd.f32 %v5417_v24, %v5334_v43  ;;  %v2341_v48 = vpack.c.bf16 %v6876_v25, %v6874_v29  ;;  %v12349_v43 = vld [vmem:[#allocation112_spill] sm:$0xff]  ;;  %v12351_v25 = vld [vmem:[#allocation114_spill] sm:$0xff] }
 0x449   :  { %v3555_v59 = vpop.f32.mrf.mxu0  ;;  %4731 = vmatpush.bf16.msra.mxu3 %v2345_v62  ;;  %v12350_v62 = vld [vmem:[#allocation113_spill] sm:$0xff] }
 0x44a   :  { %v3556_v1 = vadd.f32 %v3555_v59, %v12345_v11  ;;  %v3664_v36 = vpop.f32.mrf.mxu1 }
 0x44b   :  { %v3760_v6 = vpop.f32.mrf.mxu2  ;;  %3594 = vmatmul.bf16.gmra.mxu0 %v12346_v26  ;;  %3703 = vmatmul.bf16.gmra.mxu1 %v12348_v19  ;;  %v10399_v26 = vpop.permute.xlu0 %5176 }
 0x44c   :  { %v3493_v17 = vpop.f32.mrf.mxu3  ;;  %v10372_v18 = vadd.f32 %v3664_v36, %v3556_v1  ;;  %v10379_v24 = vadd.f32 %v3760_v6, %v10294_v7  ;;  %v10388_v6 = vpop.permute.xlu2 %5171  ;;  %12355 = vst [vmem:[#allocation176_spill] sm:$0xff] %v10399_v26 }
 0x44d   :  { %v6878_v0 = vpop.eup %6877  ;;  %v3494_v23 = vadd.f32 %v3493_v17, %v10112_v63  ;;  %4732 = vmatpush.bf16.msra.mxu3 %v2341_v48  ;;  %12352 = vst [vmem:[#allocation40_spill] sm:$0xff] %v10388_v6 }
 0x44e   :  { %v5338_v28 = vmul.f32 %v6878_v0, %v10375_v46  ;;  %v12354_v46 = vld [vmem:[#allocation115_spill] sm:$0xff] }
 0x44f   :  { %6879 = vtanh.f32 %v3494_v23 }
 0x450   :  { %v5419_v16 = vadd.f32 %v5418_v53, %v5338_v28  ;;  %3802 = vmatmul.bf16.gmra.mxu2 %v12349_v43  ;;  %3871 = vmatmul.bf16.gmra.mxu3 %v12350_v62  ;;  %v12353_v62 = vld [vmem:[#allocation116_spill] sm:$0xff] }
 0x451   :  { %v3557_v29 = vpop.f32.mrf.mxu0 }
 0x452   :  { %v3558_v59 = vadd.f32 %v3557_v29, %v12351_v25  ;;  %v3666_v1 = vpop.f32.mrf.mxu1 }
 0x453   :  { %v3763_v7 = vpop.f32.mrf.mxu2 }
 0x454   :  { %v3496_v36 = vpop.f32.mrf.mxu3  ;;  %v10386_v63 = vadd.f32 %v3666_v1, %v3558_v59  ;;  %v10392_v48 = vadd.f32 %v3763_v7, %v10312_v57 }
 0x455   :  { %v6880_v17 = vpop.eup %6879  ;;  %v3497_v0 = vadd.f32 %v3496_v36, %v10127_v9  ;;  %v12356_v36 = vld [vmem:[#allocation117_spill] sm:$0xff] }
 0x456   :  { %v5342_v53 = vmul.f32 %v6880_v17, %v10388_v6  ;;  %v12357_v17 = vld [vmem:[#allocation119_spill] sm:$0xff]  ;;  %v10423_v6 = vpop.permute.xlu2 %5186 }
 0x457   :  { %6881 = vtanh.f32 %v3497_v0  ;;  %12363 = vst [vmem:[#allocation7_spill] sm:$0xff] %v10423_v6 }
 0x458   :  { %v5420_v23 = vadd.f32 %v5419_v16, %v5342_v53  ;;  %v12359_v53 = vld [vmem:[#allocation121_spill] sm:$0xff] }
 0x459   :  { %v3560_v28 = vpop.f32.mrf.mxu0 }
 0x45a   :  { %v3561_v29 = vadd.f32 %v3560_v28, %v12353_v62  ;;  %v3669_v25 = vpop.f32.mrf.mxu1 }
 0x45b   :  { %v3765_v1 = vpop.f32.mrf.mxu2  ;;  %3599 = vmatmul.bf16.gmra.mxu0 %v12354_v46  ;;  %3708 = vmatmul.bf16.gmra.mxu1 %v12356_v36 }
 0x45c   :  { %v3498_v43 = vpop.f32.mrf.mxu3  ;;  %v10396_v59 = vadd.f32 %v3669_v25, %v3561_v29  ;;  %v10403_v57 = vadd.f32 %v3765_v1, %v10334_v2  ;;  %v12358_v25 = vld [vmem:[#allocation120_spill] sm:$0xff] }
 0x45d   :  { %v6882_v19 = vpop.eup %6881  ;;  %v3499_v9 = vadd.f32 %v3498_v43, %v10144_v47  ;;  %v10412_v43 = vpop.permute.xlu1 %5181 }
 0x45e   :  { %v5346_v16 = vmul.f32 %v6882_v19, %v10399_v26  ;;  %12360 = vst [vmem:[#allocation178_spill] sm:$0xff] %v10412_v43  ;;  %v12362_v26 = vld [vmem:[#allocation123_spill] sm:$0xff] }
 0x45f   :  { %6883 = vtanh.f32 %v3499_v9 }
 0x460   :  { %v5421_v7 = vadd.f32 %v5420_v23, %v5346_v16  ;;  %3807 = vmatmul.bf16.gmra.mxu2 %v12357_v17  ;;  %3876 = vmatmul.bf16.gmra.mxu3 %v12358_v25  ;;  %v12361_v25 = vld [vmem:[#allocation124_spill] sm:$0xff] }
 0x461   :  { %v3562_v0 = vpop.f32.mrf.mxu0 }
 0x462   :  { %v3563_v28 = vadd.f32 %v3562_v0, %v12359_v53  ;;  %v3671_v29 = vpop.f32.mrf.mxu1 }
 0x463   :  { %v3768_v47 = vpop.f32.mrf.mxu2 }
 0x464   :  { %v3501_v46 = vpop.f32.mrf.mxu3  ;;  %v10410_v62 = vadd.f32 %v3671_v29, %v3563_v28  ;;  %v10416_v19 = vadd.f32 %v3768_v47, %v10348_v14 }
 0x465   :  { %v6884_v2 = vpop.eup %6883  ;;  %v3502_v1 = vadd.f32 %v3501_v46, %v10159_v35  ;;  %v12364_v46 = vld [vmem:[#allocation125_spill] sm:$0xff] }
 0x466   :  { %v5350_v23 = vmul.f32 %v6884_v2, %v10412_v43  ;;  %v12365_v2 = vld [vmem:[#allocation128_spill] sm:$0xff]  ;;  %v10447_v43 = vpop.permute.xlu1 %5196 }
 0x467   :  { %6885 = vtanh.f32 %v3502_v1  ;;  %12371 = vst [vmem:[#allocation6_spill] sm:$0xff] %v10447_v43 }
 0x468   :  { %v5422_v9 = vadd.f32 %v5421_v7, %v5350_v23  ;;  %v12367_v23 = vld [vmem:[#allocation127_spill] sm:$0xff] }
 0x469   :  { %v3565_v16 = vpop.f32.mrf.mxu0 }
 0x46a   :  { %v3566_v0 = vadd.f32 %v3565_v16, %v12361_v25  ;;  %v3674_v53 = vpop.f32.mrf.mxu1 }
 0x46b   :  { %v3770_v29 = vpop.f32.mrf.mxu2  ;;  %3604 = vmatmul.bf16.gmra.mxu0 %v12362_v26  ;;  %3713 = vmatmul.bf16.gmra.mxu1 %v12364_v46 }
 0x46c   :  { %v3503_v17 = vpop.f32.mrf.mxu3  ;;  %v10420_v28 = vadd.f32 %v3674_v53, %v3566_v0  ;;  %v10427_v14 = vadd.f32 %v3770_v29, %v10362_v13  ;;  %v12366_v53 = vld [vmem:[#allocation129_spill] sm:$0xff] }
 0x46d   :  { %v6886_v36 = vpop.eup %6885  ;;  %v3504_v35 = vadd.f32 %v3503_v17, %v10176_v12  ;;  %v10436_v17 = vpop.permute.xlu0 %5191 }
 0x46e   :  { %v5354_v7 = vmul.f32 %v6886_v36, %v10423_v6  ;;  %12368 = vst [vmem:[#allocation168_spill] sm:$0xff] %v10436_v17  ;;  %v12370_v6 = vld [vmem:[#allocation134_spill] sm:$0xff] }
 0x46f   :  { %6887 = vtanh.f32 %v3504_v35 }
 0x470   :  { %v5423_v47 = vadd.f32 %v5422_v9, %v5354_v7  ;;  %3812 = vmatmul.bf16.gmra.mxu2 %v12365_v2  ;;  %3881 = vmatmul.bf16.gmra.mxu3 %v12366_v53  ;;  %v12369_v53 = vld [vmem:[#allocation126_spill] sm:$0xff] }
 0x471   :  { %v3567_v1 = vpop.f32.mrf.mxu0 }
 0x472   :  { %v3568_v16 = vadd.f32 %v3567_v1, %v12367_v23  ;;  %v3676_v0 = vpop.f32.mrf.mxu1 }
 0x473   :  { %v3773_v12 = vpop.f32.mrf.mxu2 }
 0x474   :  { %v3506_v26 = vpop.f32.mrf.mxu3  ;;  %v10434_v25 = vadd.f32 %v3676_v0, %v3568_v16  ;;  %v10440_v36 = vadd.f32 %v3773_v12, %v10372_v18 }
 0x475   :  { %v6888_v13 = vpop.eup %6887  ;;  %v3507_v29 = vadd.f32 %v3506_v26, %v10191_v56  ;;  %v12372_v26 = vld [vmem:[#allocation135_spill] sm:$0xff] }
 0x476   :  { %v5358_v9 = vmul.f32 %v6888_v13, %v10436_v17  ;;  %v12373_v13 = vld [vmem:[#allocation138_spill] sm:$0xff]  ;;  %v10471_v17 = vpop.permute.xlu0 %5206 }
 0x477   :  { %6889 = vtanh.f32 %v3507_v29  ;;  %12379 = vst [vmem:[#allocation17_spill] sm:$0xff] %v10471_v17 }
 0x478   :  { %v5424_v35 = vadd.f32 %v5423_v47, %v5358_v9  ;;  %v12375_v9 = vld [vmem:[#allocation131_spill] sm:$0xff] }
 0x479   :  { %v3570_v7 = vpop.f32.mrf.mxu0 }
 0x47a   :  { %v3571_v1 = vadd.f32 %v3570_v7, %v12369_v53  ;;  %v3679_v23 = vpop.f32.mrf.mxu1 }
 0x47b   :  { %v3775_v0 = vpop.f32.mrf.mxu2  ;;  %3609 = vmatmul.bf16.gmra.mxu0 %v12370_v6  ;;  %3718 = vmatmul.bf16.gmra.mxu1 %v12372_v26 }
 0x47c   :  { %v3508_v2 = vpop.f32.mrf.mxu3  ;;  %v10444_v16 = vadd.f32 %v3679_v23, %v3571_v1  ;;  %v10451_v18 = vadd.f32 %v3775_v0, %v10386_v63  ;;  %v12374_v23 = vld [vmem:[#allocation139_spill] sm:$0xff] }
 0x47d   :  { %v6890_v46 = vpop.eup %6889  ;;  %v3509_v56 = vadd.f32 %v3508_v2, %v10208_v33  ;;  %v10460_v2 = vpop.permute.xlu2 %5201 }
 0x47e   :  { %v5362_v47 = vmul.f32 %v6890_v46, %v10447_v43  ;;  %12376 = vst [vmem:[#allocation161_spill] sm:$0xff] %v10460_v2  ;;  %v12378_v43 = vld [vmem:[#allocation145_spill] sm:$0xff] }
 0x47f   :  { %6891 = vtanh.f32 %v3509_v56 }
 0x480   :  { %v5425_v12 = vadd.f32 %v5424_v35, %v5362_v47  ;;  %3817 = vmatmul.bf16.gmra.mxu2 %v12373_v13  ;;  %3886 = vmatmul.bf16.gmra.mxu3 %v12374_v23  ;;  %v12377_v23 = vld [vmem:[#allocation133_spill] sm:$0xff] }
 0x481   :  { %v3572_v29 = vpop.f32.mrf.mxu0 }
 0x482   :  { %v3573_v7 = vadd.f32 %v3572_v29, %v12375_v9  ;;  %v3681_v1 = vpop.f32.mrf.mxu1 }
 0x483   :  { %v3778_v33 = vpop.f32.mrf.mxu2 }
 0x484   :  { %v3511_v6 = vpop.f32.mrf.mxu3  ;;  %v10458_v53 = vadd.f32 %v3681_v1, %v3573_v7  ;;  %v10464_v46 = vadd.f32 %v3778_v33, %v10396_v59  ;;  %v12380_v59 = vld [vmem:[#allocation147_spill] sm:$0xff] }
 0x485   :  { %v6892_v63 = vpop.eup %6891  ;;  %v3512_v0 = vadd.f32 %v3511_v6, %v10223_v42 }
 0x486   :  { %v5366_v35 = vmul.f32 %v6892_v63, %v10460_v2  ;;  %v12381_v63 = vld [vmem:[#allocation148_spill] sm:$0xff]  ;;  %v10495_v2 = vpop.permute.xlu2 %5216 }
 0x487   :  { %6893 = vtanh.f32 %v3512_v0  ;;  %12387 = vst [vmem:[#allocation16_spill] sm:$0xff] %v10495_v2 }
 0x488   :  { %v5426_v56 = vadd.f32 %v5425_v12, %v5366_v35  ;;  %v12383_v35 = vld [vmem:[#allocation132_spill] sm:$0xff] }
 0x489   :  { %v3575_v47 = vpop.f32.mrf.mxu0 }
 0x48a   :  { %v3576_v29 = vadd.f32 %v3575_v47, %v12377_v23  ;;  %v3684_v9 = vpop.f32.mrf.mxu1 }
 0x48b   :  { %v3780_v1 = vpop.f32.mrf.mxu2  ;;  %3614 = vmatmul.bf16.gmra.mxu0 %v12378_v43  ;;  %3723 = vmatmul.bf16.gmra.mxu1 %v12380_v59 }
 0x48c   :  { %v3513_v13 = vpop.f32.mrf.mxu3  ;;  %v10468_v7 = vadd.f32 %v3684_v9, %v3576_v29  ;;  %v10475_v6 = vadd.f32 %v3780_v1, %v10410_v62  ;;  %v12382_v9 = vld [vmem:[#allocation149_spill] sm:$0xff] }
 0x48d   :  { %v6894_v26 = vpop.eup %6893  ;;  %v3514_v42 = vadd.f32 %v3513_v13, %v10240_v30  ;;  %v10484_v13 = vpop.permute.xlu1 %5211 }
 0x48e   :  { %v5370_v12 = vmul.f32 %v6894_v26, %v10471_v17  ;;  %12384 = vst [vmem:[#allocation154_spill] sm:$0xff] %v10484_v13  ;;  %v12386_v17 = vld [vmem:[#allocation155_spill] sm:$0xff] }
 0x48f   :  { %6895 = vtanh.f32 %v3514_v42 }
 0x490   :  { %v5427_v33 = vadd.f32 %v5426_v56, %v5370_v12  ;;  %3822 = vmatmul.bf16.gmra.mxu2 %v12381_v63  ;;  %3891 = vmatmul.bf16.gmra.mxu3 %v12382_v9  ;;  %v12385_v9 = vld [vmem:[#allocation137_spill] sm:$0xff] }
 0x491   :  { %v3577_v0 = vpop.f32.mrf.mxu0 }
 0x492   :  { %v3578_v47 = vadd.f32 %v3577_v0, %v12383_v35  ;;  %v3686_v29 = vpop.f32.mrf.mxu1 }
 0x493   :  { %v3783_v30 = vpop.f32.mrf.mxu2 }
 0x494   :  { %v3516_v43 = vpop.f32.mrf.mxu3  ;;  %v10482_v23 = vadd.f32 %v3686_v29, %v3578_v47  ;;  %v10488_v26 = vadd.f32 %v3783_v30, %v10420_v28  ;;  %v12388_v28 = vld [vmem:[#allocation156_spill] sm:$0xff] }
 0x495   :  { %v6896_v62 = vpop.eup %6895  ;;  %v3517_v1 = vadd.f32 %v3516_v43, %v10255_v38 }
 0x496   :  { %v5374_v56 = vmul.f32 %v6896_v62, %v10484_v13  ;;  %v12389_v62 = vld [vmem:[#allocation159_spill] sm:$0xff]  ;;  %v10519_v13 = vpop.permute.xlu1 %5226 }
 0x497   :  { %6897 = vtanh.f32 %v3517_v1  ;;  %12395 = vst [vmem:[#allocation21_spill] sm:$0xff] %v10519_v13 }
 0x498   :  { %v5428_v42 = vadd.f32 %v5427_v33, %v5374_v56  ;;  %v12391_v56 = vld [vmem:[#allocation141_spill] sm:$0xff] }
 0x499   :  { %v3580_v12 = vpop.f32.mrf.mxu0 }
 0x49a   :  { %v3581_v0 = vadd.f32 %v3580_v12, %v12385_v9  ;;  %v3689_v35 = vpop.f32.mrf.mxu1 }
 0x49b   :  { %v3785_v29 = vpop.f32.mrf.mxu2  ;;  %3619 = vmatmul.bf16.gmra.mxu0 %v12386_v17  ;;  %3728 = vmatmul.bf16.gmra.mxu1 %v12388_v28 }
 0x49c   :  { %v3518_v63 = vpop.f32.mrf.mxu3  ;;  %v10492_v47 = vadd.f32 %v3689_v35, %v3581_v0  ;;  %v10499_v43 = vadd.f32 %v3785_v29, %v10434_v25  ;;  %v12390_v35 = vld [vmem:[#allocation160_spill] sm:$0xff] }
 0x49d   :  { %v6898_v59 = vpop.eup %6897  ;;  %v3519_v38 = vadd.f32 %v3518_v63, %v10276_v61  ;;  %v10508_v63 = vpop.permute.xlu0 %5221 }
 0x49e   :  { %v5378_v33 = vmul.f32 %v6898_v59, %v10495_v2  ;;  %12392 = vst [vmem:[#allocation150_spill] sm:$0xff] %v10508_v63  ;;  %v12394_v2 = vld [vmem:[#allocation166_spill] sm:$0xff] }
 0x49f   :  { %6899 = vtanh.f32 %v3519_v38 }
 0x4a0   :  { %v5429_v30 = vadd.f32 %v5428_v42, %v5378_v33  ;;  %3827 = vmatmul.bf16.gmra.mxu2 %v12389_v62  ;;  %3896 = vmatmul.bf16.gmra.mxu3 %v12390_v35  ;;  %v12393_v35 = vld [vmem:[#allocation140_spill] sm:$0xff] }
 0x4a1   :  { %v3582_v1 = vpop.f32.mrf.mxu0 }
 0x4a2   :  { %v3583_v12 = vadd.f32 %v3582_v1, %v12391_v56  ;;  %v3691_v0 = vpop.f32.mrf.mxu1 }
 0x4a3   :  { %v3788_v61 = vpop.f32.mrf.mxu2 }
 0x4a4   :  { %v3521_v17 = vpop.f32.mrf.mxu3  ;;  %v10506_v9 = vadd.f32 %v3691_v0, %v3583_v12  ;;  %v10512_v59 = vadd.f32 %v3788_v61, %v10444_v16  ;;  %v12396_v16 = vld [vmem:[#allocation167_spill] sm:$0xff] }
 0x4a5   :  { %v6900_v25 = vpop.eup %6899  ;;  %v3522_v29 = vadd.f32 %v3521_v17, %v10299_v45 }
 0x4a6   :  { %v5382_v42 = vmul.f32 %v6900_v25, %v10508_v63  ;;  %v12397_v25 = vld [vmem:[#allocation170_spill] sm:$0xff] }
 0x4a7   :  { %6901 = vtanh.f32 %v3522_v29 }
 0x4a8   :  { %v5430_v38 = vadd.f32 %v5429_v30, %v5382_v42  ;;  %v12399_v42 = vld [vmem:[#allocation143_spill] sm:$0xff] }
 0x4a9   :  { %v3585_v33 = vpop.f32.mrf.mxu0 }
 0x4aa   :  { %v3586_v1 = vadd.f32 %v3585_v33, %v12393_v35  ;;  %v3694_v56 = vpop.f32.mrf.mxu1 }
 0x4ab   :  { %v3790_v0 = vpop.f32.mrf.mxu2  ;;  %3624 = vmatmul.bf16.gmra.mxu0 %v12394_v2  ;;  %3733 = vmatmul.bf16.gmra.mxu1 %v12396_v16 }
 0x4ac   :  { %v3523_v62 = vpop.f32.mrf.mxu3  ;;  %v10516_v12 = vadd.f32 %v3694_v56, %v3586_v1  ;;  %v10523_v17 = vadd.f32 %v3790_v0, %v10458_v53  ;;  %v12398_v56 = vld [vmem:[#allocation171_spill] sm:$0xff]  ;;  %v10532_v0 = vpop.permute.xlu2 %5231 }
 0x4ad   :  { %v6902_v28 = vpop.eup %6901  ;;  %v3524_v45 = vadd.f32 %v3523_v62, %v10318_v4  ;;  %12400 = vst [vmem:[#allocation142_spill] sm:$0xff] %v10532_v0 }
 0x4ae   :  { %v5386_v30 = vmul.f32 %v6902_v28, %v10519_v13  ;;  %v12403_v13 = vld [vmem:[#allocation42_spill] sm:$0xff] }
 0x4af   :  { %6903 = vtanh.f32 %v3524_v45 }
 0x4b0   :  { %v5431_v61 = vadd.f32 %v5430_v38, %v5386_v30  ;;  %3832 = vmatmul.bf16.gmra.mxu2 %v12397_v25  ;;  %3901 = vmatmul.bf16.gmra.mxu3 %v12398_v56  ;;  %v12402_v56 = vld [vmem:[#allocation146_spill] sm:$0xff] }
 0x4b1   :  { %v3587_v29 = vpop.f32.mrf.mxu0 }
 0x4b2   :  { %v3588_v33 = vadd.f32 %v3587_v29, %v12399_v42  ;;  %v3696_v1 = vpop.f32.mrf.mxu1 }
 0x4b3   :  { %v3793_v4 = vpop.f32.mrf.mxu2 }
 0x4b4   :  { %v10530_v2 = vadd.f32 %v3696_v1, %v3588_v33  ;;  %v3862_v62 = vpop.f32.mrf.mxu3  ;;  %v10535_v16 = vadd.f32 %v3793_v4, %v10468_v7  ;;  %v12404_v4 = vld [vmem:[#allocation174_spill] sm:$0xff] }
 0x4b5   :  { %v6904_v53 = vpop.eup %6903  ;;  %v3863_v28 = vadd.f32 %v3862_v62, %v10340_v10  ;;  %v12406_v62 = vld [vmem:[#allocation177_spill] sm:$0xff] }
 0x4b6   :  { %v5390_v38 = vmul.f32 %v6904_v53, %v10532_v0 }
 0x4b7   :  { %6905 = vtanh.f32 %v3863_v28 }
 0x4b8   :  { %v10539_v45 = vadd.f32 %v5431_v61, %v5390_v38  ;;  %v12405_v61 = vld [vmem:[#allocation54_spill] sm:$0xff] }
 0x4b9   :  { %v3590_v30 = vpop.f32.mrf.mxu0 }
 0x4ba   :  { %12401 = vst [vmem:[#allocation14_spill] sm:$0xff] %v10539_v45  ;;  %v3591_v29 = vadd.f32 %v3590_v30, %v12402_v56  ;;  %v3699_v42 = vpop.f32.mrf.mxu1 }
 0x4bb   :  { %v3795_v1 = vpop.f32.mrf.mxu2  ;;  %3629 = vmatmul.bf16.gmra.mxu0 %v12403_v13  ;;  %3738 = vmatmul.bf16.gmra.mxu1 %v12404_v4 }
 0x4bc   :  { %v10542_v33 = vadd.f32 %v3699_v42, %v3591_v29  ;;  %v3864_v25 = vpop.f32.mrf.mxu3  ;;  %v10546_v7 = vadd.f32 %v3795_v1, %v10482_v23  ;;  %v12407_v42 = vld [vmem:[#allocation144_spill] sm:$0xff] }
 0x4bd   :  { %v3865_v10 = vadd.f32 %v3864_v25, %v10355_v8  ;;  %v6906_v29 = vpop.eup %6905  ;;  %v12408_v25 = vld [vmem:[#allocation48_spill] sm:$0xff] }
 0x4bf   :  { %6907 = vtanh.f32 %v3865_v10  ;;  %v5235_v10 = vmul.f32 %v6906_v29, %v12408_v25 }
 0x4c0   :  { %3837 = vmatmul.bf16.gmra.mxu2 %v12405_v61  ;;  %3906 = vmatmul.bf16.gmra.mxu3 %v12406_v62  ;;  %v12409_v61 = vld [vmem:[#allocation61_spill] sm:$0xff] }
 0x4c1   :  { %v3592_v53 = vpop.f32.mrf.mxu0 }
 0x4c2   :  { %v3593_v38 = vadd.f32 %v3592_v53, %v12407_v42  ;;  %v3701_v30 = vpop.f32.mrf.mxu1  ;;  %v12410_v53 = vld [vmem:[#allocation151_spill] sm:$0xff] }
 0x4c3   :  { %v3798_v28 = vpop.f32.mrf.mxu2 }
 0x4c4   :  { %v10553_v56 = vadd.f32 %v3701_v30, %v3593_v38  ;;  %v3867_v13 = vpop.f32.mrf.mxu3  ;;  %v10556_v1 = vadd.f32 %v3798_v28, %v10492_v47 }
 0x4c5   :  { %v6908_v23 = vpop.eup %6907  ;;  %v3868_v8 = vadd.f32 %v3867_v13, %v10368_v41 }
 0x4c6   :  { %v5239_v4 = vmul.f32 %v6908_v23, %v12409_v61 }
 0x4c7   :  { %6909 = vtanh.f32 %v3868_v8 }
 0x4c8   :  { %v5439_v62 = vadd.f32 %v5239_v4, %v5235_v10 }
 0x4c9   :  { %v3595_v0 = vpop.f32.mrf.mxu0 }
 0x4ca   :  { %v3596_v42 = vadd.f32 %v3595_v0, %v12410_v53  ;;  %v3704_v45 = vpop.f32.mrf.mxu1  ;;  %v12411_v0 = vld [vmem:[#allocation59_spill] sm:$0xff] }
 0x4cb   :  { %v3800_v30 = vpop.f32.mrf.mxu2  ;;  %3970 = vmatmul.bf16.vlgmr.msrb.gmra.mxu0 %v12205_v39  ;;  %4079 = vmatmul.bf16.vlgmr.msrb.gmra.mxu1 %v12207_v44 }
 0x4cc   :  { %v10562_v38 = vadd.f32 %v3704_v45, %v3596_v42  ;;  %v3869_v35 = vpop.f32.mrf.mxu3  ;;  %v10566_v28 = vadd.f32 %v3800_v30, %v10506_v9 }
 0x4cd   :  { %v6910_v47 = vpop.eup %6909  ;;  %v3870_v41 = vadd.f32 %v3869_v35, %v10379_v24 }
 0x4ce   :  { %v5243_v13 = vmul.f32 %v6910_v47, %v9926_v60 }
 0x4cf   :  { %6911 = vtanh.f32 %v3870_v41  ;;  %v12412_v41 = vld [vmem:[#allocation152_spill] sm:$0xff] }
 0x4d0   :  { %v5440_v4 = vadd.f32 %v5439_v62, %v5243_v13  ;;  %3842 = vmatmul.bf16.gmra.mxu2 %v9924_v31  ;;  %3911 = vmatmul.bf16.gmra.mxu3 %v12411_v0 }
 0x4d1   :  { %v3597_v45 = vpop.f32.mrf.mxu0 }
 0x4d2   :  { %v3598_v42 = vadd.f32 %v3597_v45, %v9677_v34  ;;  %v3706_v29 = vpop.f32.mrf.mxu1  ;;  %v12413_v34 = vld [vmem:[#allocation71_spill] sm:$0xff] }
 0x4d3   :  { %v3803_v9 = vpop.f32.mrf.mxu2 }
 0x4d4   :  { %v10574_v23 = vadd.f32 %v3706_v29, %v3598_v42  ;;  %v3872_v8 = vpop.f32.mrf.mxu3  ;;  %v10577_v24 = vadd.f32 %v3803_v9, %v10516_v12  ;;  %v12414_v9 = vld [vmem:[#allocation72_spill] sm:$0xff] }
 0x4d5   :  { %v6912_v10 = vpop.eup %6911  ;;  %v3873_v35 = vadd.f32 %v3872_v8, %v10392_v48 }
 0x4d6   :  { %v5247_v62 = vmul.f32 %v6912_v10, %v9948_v20 }
 0x4d7   :  { %6913 = vtanh.f32 %v3873_v35 }
 0x4d8   :  { %v5441_v30 = vadd.f32 %v5440_v4, %v5247_v62 }
 0x4d9   :  { %v3600_v47 = vpop.f32.mrf.mxu0 }
 0x4da   :  { %v3601_v13 = vadd.f32 %v3600_v47, %v12412_v41  ;;  %v3709_v0 = vpop.f32.mrf.mxu1 }
 0x4db   :  { %v3805_v42 = vpop.f32.mrf.mxu2  ;;  %3975 = vmatmul.bf16.gmra.mxu0 %v12413_v34  ;;  %4084 = vmatmul.bf16.gmra.mxu1 %v12414_v9 }
 0x4dc   :  { %v10582_v45 = vadd.f32 %v3709_v0, %v3601_v13  ;;  %v3874_v29 = vpop.f32.mrf.mxu3  ;;  %v10586_v12 = vadd.f32 %v3805_v42, %v10530_v2 }
 0x4dd   :  { %v6914_v31 = vpop.eup %6913  ;;  %v3875_v48 = vadd.f32 %v3874_v29, %v10403_v57 }
 0x4de   :  { %v5251_v4 = vmul.f32 %v6914_v31, %v9985_v32 }
 0x4df   :  { %6915 = vtanh.f32 %v3875_v48 }
 0x4e0   :  { %v5442_v8 = vadd.f32 %v5441_v30, %v5251_v4  ;;  %3847 = vmatmul.bf16.gmra.mxu2 %v9992_v49  ;;  %3916 = vmatmul.bf16.gmra.mxu3 %v9994_v5 }
 0x4e1   :  { %v3602_v0 = vpop.f32.mrf.mxu0 }
 0x4e2   :  { %v3603_v10 = vadd.f32 %v3602_v0, %v9715_v40  ;;  %v3711_v35 = vpop.f32.mrf.mxu1 }
 0x4e3   :  { %v3808_v2 = vpop.f32.mrf.mxu2 }
 0x4e4   :  { %v10594_v62 = vadd.f32 %v3711_v35, %v3603_v10  ;;  %v3877_v47 = vpop.f32.mrf.mxu3  ;;  %v10597_v57 = vadd.f32 %v3808_v2, %v10542_v33 }
 0x4e5   :  { %v6916_v13 = vpop.eup %6915  ;;  %v3878_v31 = vadd.f32 %v3877_v47, %v10416_v19  ;;  %v12415_v47 = vld [vmem:[#allocation47_spill] sm:$0xff] }
 0x4e6   :  { %v5255_v30 = vmul.f32 %v6916_v13, %v10016_v50  ;;  %v12416_v13 = vld [vmem:[#allocation43_spill] sm:$0xff] }
 0x4e7   :  { %6917 = vtanh.f32 %v3878_v31 }
 0x4e8   :  { %v5443_v42 = vadd.f32 %v5442_v8, %v5255_v30  ;;  %v12417_v30 = vld [vmem:[#allocation158_spill] sm:$0xff] }
 0x4e9   :  { %v3605_v29 = vpop.f32.mrf.mxu0 }
 0x4ea   :  { %v3606_v48 = vadd.f32 %v3605_v29, %v9722_v27  ;;  %v3714_v4 = vpop.f32.mrf.mxu1 }
 0x4eb   :  { %v3810_v10 = vpop.f32.mrf.mxu2  ;;  %3980 = vmatmul.bf16.gmra.mxu0 %v12231_v51  ;;  %4089 = vmatmul.bf16.gmra.mxu1 %v12233_v55 }
 0x4ec   :  { %v10602_v0 = vadd.f32 %v3714_v4, %v3606_v48  ;;  %v3879_v35 = vpop.f32.mrf.mxu3  ;;  %v10606_v33 = vadd.f32 %v3810_v10, %v10553_v56 }
 0x4ed   :  { %v6918_v40 = vpop.eup %6917  ;;  %v3880_v19 = vadd.f32 %v3879_v35, %v10427_v14  ;;  %v12418_v35 = vld [vmem:[#allocation49_spill] sm:$0xff] }
 0x4ee   :  { %v5259_v8 = vmul.f32 %v6918_v40, %v10037_v15 }
 0x4ef   :  { %6919 = vtanh.f32 %v3880_v19 }
 0x4f0   :  { %v5444_v2 = vadd.f32 %v5443_v42, %v5259_v8  ;;  %3921 = vmatmul.bf16.gmra.mxu3 %v12415_v47  ;;  %4188 = vmatmul.bf16.vlgmr.msrb.gmra.mxu2 %v12416_v13  ;;  %v12419_v13 = vld [vmem:[#allocation162_spill] sm:$0xff] }
 0x4f1   :  { %v3607_v31 = vpop.f32.mrf.mxu0 }
 0x4f2   :  { %v3608_v29 = vadd.f32 %v3607_v31, %v12417_v30  ;;  %v3716_v48 = vpop.f32.mrf.mxu1  ;;  %v12420_v30 = vld [vmem:[#allocation20_spill] sm:$0xff] }
 0x4f3   :  { %v3813_v56 = vpop.f32.mrf.mxu2 }
 0x4f4   :  { %v10614_v4 = vadd.f32 %v3716_v48, %v3608_v29  ;;  %v3882_v10 = vpop.f32.mrf.mxu3  ;;  %v10617_v14 = vadd.f32 %v3813_v56, %v10562_v38  ;;  %v12421_v56 = vld [vmem:[#allocation30_spill] sm:$0xff] }
 0x4f5   :  { %v6920_v51 = vpop.eup %6919  ;;  %v3883_v40 = vadd.f32 %v3882_v10, %v10440_v36 }
 0x4f6   :  { %v5263_v42 = vmul.f32 %v6920_v51, %v12418_v35  ;;  %v12422_v51 = vld [vmem:[#allocation58_spill] sm:$0xff] }
 0x4f7   :  { %6921 = vtanh.f32 %v3883_v40  ;;  %v12423_v40 = vld [vmem:[#allocation57_spill] sm:$0xff] }
 0x4f8   :  { %v5445_v19 = vadd.f32 %v5444_v2, %v5263_v42  ;;  %v12425_v42 = vld [vmem:[#allocation165_spill] sm:$0xff] }
 0x4f9   :  { %v3610_v8 = vpop.f32.mrf.mxu0 }
 0x4fa   :  { %v3611_v47 = vadd.f32 %v3610_v8, %v12419_v13  ;;  %v3719_v15 = vpop.f32.mrf.mxu1 }
 0x4fb   :  { %v3815_v29 = vpop.f32.mrf.mxu2  ;;  %3985 = vmatmul.bf16.gmra.mxu0 %v12420_v30  ;;  %4094 = vmatmul.bf16.gmra.mxu1 %v12421_v56 }
 0x4fc   :  { %v10622_v31 = vadd.f32 %v3719_v15, %v3611_v47  ;;  %v3884_v48 = vpop.f32.mrf.mxu3  ;;  %v10626_v38 = vadd.f32 %v3815_v29, %v10574_v23  ;;  %v12424_v15 = vld [vmem:[#allocation37_spill] sm:$0xff] }
 0x4fd   :  { %v6922_v55 = vpop.eup %6921  ;;  %v3885_v36 = vadd.f32 %v3884_v48, %v10451_v18  ;;  %v12426_v48 = vld [vmem:[#allocation55_spill] sm:$0xff] }
 0x4fe   :  { %v5267_v2 = vmul.f32 %v6922_v55, %v12422_v51 }
 0x4ff   :  { %6923 = vtanh.f32 %v3885_v36 }
 0x500   :  { %v5446_v10 = vadd.f32 %v5445_v19, %v5267_v2  ;;  %3926 = vmatmul.bf16.gmra.mxu3 %v12423_v40  ;;  %4193 = vmatmul.bf16.gmra.mxu2 %v12424_v15  ;;  %v12427_v15 = vld [vmem:[#allocation164_spill] sm:$0xff] }
 0x501   :  { %v3612_v47 = vpop.f32.mrf.mxu0 }
 0x502   :  { %v3613_v8 = vadd.f32 %v3612_v47, %v12425_v42  ;;  %v3721_v30 = vpop.f32.mrf.mxu1  ;;  %v12428_v42 = vld [vmem:[#allocation34_spill] sm:$0xff] }
 0x503   :  { %v3818_v23 = vpop.f32.mrf.mxu2 }
 0x504   :  { %v10634_v13 = vadd.f32 %v3721_v30, %v3613_v8  ;;  %v3887_v29 = vpop.f32.mrf.mxu3  ;;  %v10637_v18 = vadd.f32 %v3818_v23, %v10582_v45  ;;  %v12429_v23 = vld [vmem:[#allocation39_spill] sm:$0xff] }
 0x505   :  { %v6924_v35 = vpop.eup %6923  ;;  %v3888_v55 = vadd.f32 %v3887_v29, %v10464_v46 }
 0x506   :  { %v5271_v19 = vmul.f32 %v6924_v35, %v12426_v48  ;;  %v12430_v35 = vld [vmem:[#allocation56_spill] sm:$0xff] }
 0x507   :  { %6925 = vtanh.f32 %v3888_v55  ;;  %v12431_v55 = vld [vmem:[#allocation10_spill] sm:$0xff] }
 0x508   :  { %v5447_v36 = vadd.f32 %v5446_v10, %v5271_v19  ;;  %v12433_v19 = vld [vmem:[#allocation172_spill] sm:$0xff] }
 0x509   :  { %v3615_v2 = vpop.f32.mrf.mxu0 }
 0x50a   :  { %v3616_v40 = vadd.f32 %v3615_v2, %v12427_v15  ;;  %v3724_v51 = vpop.f32.mrf.mxu1 }
 0x50b   :  { %v3820_v30 = vpop.f32.mrf.mxu2  ;;  %3990 = vmatmul.bf16.gmra.mxu0 %v12428_v42  ;;  %4099 = vmatmul.bf16.gmra.mxu1 %v12429_v23 }
 0x50c   :  { %v10642_v47 = vadd.f32 %v3724_v51, %v3616_v40  ;;  %v3889_v8 = vpop.f32.mrf.mxu3  ;;  %v10646_v45 = vadd.f32 %v3820_v30, %v10594_v62  ;;  %v12432_v51 = vld [vmem:[#allocation13_spill] sm:$0xff] }
 0x50d   :  { %v6926_v56 = vpop.eup %6925  ;;  %v3890_v46 = vadd.f32 %v3889_v8, %v10475_v6  ;;  %v12434_v8 = vld [vmem:[#allocation83_spill] sm:$0xff] }
 0x50e   :  { %v5275_v10 = vmul.f32 %v6926_v56, %v12430_v35 }
 0x50f   :  { %6927 = vtanh.f32 %v3890_v46 }
 0x510   :  { %v5448_v29 = vadd.f32 %v5447_v36, %v5275_v10  ;;  %3931 = vmatmul.bf16.gmra.mxu3 %v12431_v55  ;;  %4198 = vmatmul.bf16.gmra.mxu2 %v12432_v51  ;;  %v12435_v51 = vld [vmem:[#allocation35_spill] sm:$0xff] }
 0x511   :  { %v3617_v40 = vpop.f32.mrf.mxu0 }
 0x512   :  { %v3618_v2 = vadd.f32 %v3617_v40, %v12433_v19  ;;  %v3726_v42 = vpop.f32.mrf.mxu1  ;;  %v12436_v19 = vld [vmem:[#allocation69_spill] sm:$0xff] }
 0x513   :  { %v3823_v62 = vpop.f32.mrf.mxu2 }
 0x514   :  { %v10654_v15 = vadd.f32 %v3726_v42, %v3618_v2  ;;  %v3892_v30 = vpop.f32.mrf.mxu3  ;;  %v10657_v6 = vadd.f32 %v3823_v62, %v10602_v0  ;;  %v12437_v62 = vld [vmem:[#allocation65_spill] sm:$0xff] }
 0x515   :  { %v6928_v48 = vpop.eup %6927  ;;  %v3893_v56 = vadd.f32 %v3892_v30, %v10488_v26 }
 0x516   :  { %v5279_v36 = vmul.f32 %v6928_v48, %v12434_v8  ;;  %v12438_v48 = vld [vmem:[#allocation9_spill] sm:$0xff] }
 0x517   :  { %6929 = vtanh.f32 %v3893_v56  ;;  %v12439_v56 = vld [vmem:[#allocation79_spill] sm:$0xff] }
 0x518   :  { %v5449_v46 = vadd.f32 %v5448_v29, %v5279_v36  ;;  %v12441_v36 = vld [vmem:[#allocation173_spill] sm:$0xff] }
 0x519   :  { %v3620_v10 = vpop.f32.mrf.mxu0 }
 0x51a   :  { %v3621_v55 = vadd.f32 %v3620_v10, %v12435_v51  ;;  %v3729_v35 = vpop.f32.mrf.mxu1 }
 0x51b   :  { %v3825_v42 = vpop.f32.mrf.mxu2  ;;  %3995 = vmatmul.bf16.gmra.mxu0 %v12436_v19  ;;  %4104 = vmatmul.bf16.gmra.mxu1 %v12437_v62 }
 0x51c   :  { %v10662_v40 = vadd.f32 %v3729_v35, %v3621_v55  ;;  %v3894_v2 = vpop.f32.mrf.mxu3  ;;  %v10666_v0 = vadd.f32 %v3825_v42, %v10614_v4  ;;  %v12440_v35 = vld [vmem:[#allocation27_spill] sm:$0xff] }
 0x51d   :  { %v6930_v23 = vpop.eup %6929  ;;  %v3895_v26 = vadd.f32 %v3894_v2, %v10499_v43  ;;  %v12442_v2 = vld [vmem:[#allocation8_spill] sm:$0xff] }
 0x51e   :  { %v5283_v29 = vmul.f32 %v6930_v23, %v12438_v48 }
 0x51f   :  { %6931 = vtanh.f32 %v3895_v26 }
 0x520   :  { %v5450_v30 = vadd.f32 %v5449_v46, %v5283_v29  ;;  %3936 = vmatmul.bf16.gmra.mxu3 %v12439_v56  ;;  %4203 = vmatmul.bf16.gmra.mxu2 %v12440_v35  ;;  %v12443_v35 = vld [vmem:[#allocation46_spill] sm:$0xff] }
 0x521   :  { %v3622_v55 = vpop.f32.mrf.mxu0 }
 0x522   :  { %v3623_v10 = vadd.f32 %v3622_v55, %v12441_v36  ;;  %v3731_v19 = vpop.f32.mrf.mxu1  ;;  %v12444_v36 = vld [vmem:[#allocation36_spill] sm:$0xff] }
 0x523   :  { %v3828_v4 = vpop.f32.mrf.mxu2 }
 0x524   :  { %v10674_v51 = vadd.f32 %v3731_v19, %v3623_v10  ;;  %v3897_v42 = vpop.f32.mrf.mxu3  ;;  %v10677_v43 = vadd.f32 %v3828_v4, %v10622_v31  ;;  %v12445_v4 = vld [vmem:[#allocation32_spill] sm:$0xff] }
 0x525   :  { %v6932_v8 = vpop.eup %6931  ;;  %v3898_v23 = vadd.f32 %v3897_v42, %v10512_v59 }
 0x526   :  { %v5287_v46 = vmul.f32 %v6932_v8, %v12442_v2  ;;  %v12446_v8 = vld [vmem:[#allocation74_spill] sm:$0xff] }
 0x527   :  { %6933 = vtanh.f32 %v3898_v23  ;;  %v12447_v23 = vld [vmem:[#allocation15_spill] sm:$0xff] }
 0x528   :  { %v5451_v26 = vadd.f32 %v5450_v30, %v5287_v46  ;;  %v12449_v46 = vld [vmem:[#allocation175_spill] sm:$0xff] }
 0x529   :  { %v3625_v29 = vpop.f32.mrf.mxu0 }
 0x52a   :  { %v3626_v56 = vadd.f32 %v3625_v29, %v12443_v35  ;;  %v3734_v48 = vpop.f32.mrf.mxu1 }
 0x52b   :  { %v3830_v19 = vpop.f32.mrf.mxu2  ;;  %4000 = vmatmul.bf16.gmra.mxu0 %v12444_v36  ;;  %4109 = vmatmul.bf16.gmra.mxu1 %v12445_v4 }
 0x52c   :  { %v10682_v55 = vadd.f32 %v3734_v48, %v3626_v56  ;;  %v3899_v10 = vpop.f32.mrf.mxu3  ;;  %v10686_v31 = vadd.f32 %v3830_v19, %v10634_v13  ;;  %v12448_v48 = vld [vmem:[#allocation73_spill] sm:$0xff] }
 0x52d   :  { %v6934_v62 = vpop.eup %6933  ;;  %v3900_v59 = vadd.f32 %v3899_v10, %v10523_v17  ;;  %v12450_v10 = vld [vmem:[#allocation75_spill] sm:$0xff] }
 0x52e   :  { %v5291_v30 = vmul.f32 %v6934_v62, %v12446_v8 }
 0x52f   :  { %6935 = vtanh.f32 %v3900_v59 }
 0x530   :  { %v5452_v42 = vadd.f32 %v5451_v26, %v5291_v30  ;;  %3941 = vmatmul.bf16.gmra.mxu3 %v12447_v23  ;;  %4208 = vmatmul.bf16.gmra.mxu2 %v12448_v48  ;;  %v12451_v48 = vld [vmem:[#allocation51_spill] sm:$0xff] }
 0x531   :  { %v3627_v56 = vpop.f32.mrf.mxu0 }
 0x532   :  { %v3628_v29 = vadd.f32 %v3627_v56, %v12449_v46  ;;  %v3736_v36 = vpop.f32.mrf.mxu1  ;;  %v12452_v46 = vld [vmem:[#allocation76_spill] sm:$0xff] }
 0x533   :  { %v3833_v13 = vpop.f32.mrf.mxu2 }
 0x534   :  { %v10694_v35 = vadd.f32 %v3736_v36, %v3628_v29  ;;  %v3902_v19 = vpop.f32.mrf.mxu3  ;;  %v10697_v17 = vadd.f32 %v3833_v13, %v10642_v47  ;;  %v12453_v13 = vld [vmem:[#allocation77_spill] sm:$0xff] }
 0x535   :  { %v6936_v2 = vpop.eup %6935  ;;  %v3903_v62 = vadd.f32 %v3902_v19, %v10535_v16 }
 0x536   :  { %v5295_v26 = vmul.f32 %v6936_v2, %v12450_v10  ;;  %v12454_v2 = vld [vmem:[#allocation18_spill] sm:$0xff] }
 0x537   :  { %6937 = vtanh.f32 %v3903_v62  ;;  %v12455_v62 = vld [vmem:[#allocation67_spill] sm:$0xff] }
 0x538   :  { %v5453_v59 = vadd.f32 %v5452_v42, %v5295_v26  ;;  %v12457_v26 = vld [vmem:[#allocation12_spill] sm:$0xff] }
 0x539   :  { %v3630_v30 = vpop.f32.mrf.mxu0 }
 0x53a   :  { %v3631_v23 = vadd.f32 %v3630_v30, %v12451_v48  ;;  %v3739_v8 = vpop.f32.mrf.mxu1 }
 0x53b   :  { %v3835_v36 = vpop.f32.mrf.mxu2  ;;  %4005 = vmatmul.bf16.gmra.mxu0 %v12452_v46  ;;  %4114 = vmatmul.bf16.gmra.mxu1 %v12453_v13 }
 0x53c   :  { %v10702_v56 = vadd.f32 %v3739_v8, %v3631_v23  ;;  %v3904_v29 = vpop.f32.mrf.mxu3  ;;  %v10706_v47 = vadd.f32 %v3835_v36, %v10654_v15  ;;  %v12456_v8 = vld [vmem:[#allocation78_spill] sm:$0xff] }
 0x53d   :  { %v6938_v4 = vpop.eup %6937  ;;  %v3905_v16 = vadd.f32 %v3904_v29, %v10546_v7  ;;  %v12458_v29 = vld [vmem:[#allocation11_spill] sm:$0xff] }
 0x53e   :  { %v5299_v42 = vmul.f32 %v6938_v4, %v12454_v2 }
 0x53f   :  { %6939 = vtanh.f32 %v3905_v16 }
 0x540   :  { %v5454_v19 = vadd.f32 %v5453_v59, %v5299_v42  ;;  %3946 = vmatmul.bf16.gmra.mxu3 %v12455_v62  ;;  %4213 = vmatmul.bf16.gmra.mxu2 %v12456_v8  ;;  %v12459_v8 = vld [vmem:[#allocation81_spill] sm:$0xff] }
 0x541   :  { %v3632_v23 = vpop.f32.mrf.mxu0 }
 0x542   :  { %v3633_v30 = vadd.f32 %v3632_v23, %v12457_v26  ;;  %v3741_v46 = vpop.f32.mrf.mxu1 }
 0x543   :  { %v3838_v15 = vpop.f32.mrf.mxu2 }
 0x544   :  { %v10714_v48 = vadd.f32 %v3741_v46, %v3633_v30  ;;  %v3907_v36 = vpop.f32.mrf.mxu3  ;;  %v10717_v7 = vadd.f32 %v3838_v15, %v10662_v40  ;;  %v12460_v30 = vld [vmem:[#allocation80_spill] sm:$0xff]  ;;  %v12461_v15 = vld [vmem:[#allocation82_spill] sm:$0xff] }
 0x545   :  { %v6940_v10 = vpop.eup %6939  ;;  %v3908_v4 = vadd.f32 %v3907_v36, %v10556_v1 }
 0x546   :  { %v5303_v59 = vmul.f32 %v6940_v10, %v12458_v29  ;;  %v12462_v10 = vld [vmem:[#allocation25_spill] sm:$0xff] }
 0x547   :  { %6941 = vtanh.f32 %v3908_v4  ;;  %v12463_v4 = vld [vmem:[#allocation23_spill] sm:$0xff] }
 0x548   :  { %v5455_v16 = vadd.f32 %v5454_v19, %v5303_v59  ;;  %v12464_v59 = vld [vmem:[#allocation84_spill] sm:$0xff] }
 0x549   :  { %v3971_v42 = vpop.f32.mrf.mxu0 }
 0x54a   :  { %v3972_v62 = vadd.f32 %v3971_v42, %v12459_v8  ;;  %v4080_v2 = vpop.f32.mrf.mxu1 }
 0x54b   :  { %v3840_v23 = vpop.f32.mrf.mxu2  ;;  %4010 = vmatmul.bf16.gmra.mxu0 %v12460_v30  ;;  %4119 = vmatmul.bf16.gmra.mxu1 %v12461_v15 }
 0x54c   :  { %v3909_v26 = vpop.f32.mrf.mxu3  ;;  %v10722_v46 = vadd.f32 %v4080_v2, %v3972_v62  ;;  %v10726_v40 = vadd.f32 %v3840_v23, %v10674_v51  ;;  %v12465_v62 = vld [vmem:[#allocation85_spill] sm:$0xff] }
 0x54d   :  { %v6942_v13 = vpop.eup %6941  ;;  %v3910_v1 = vadd.f32 %v3909_v26, %v10566_v28  ;;  %v12466_v26 = vld [vmem:[#allocation45_spill] sm:$0xff] }
 0x54e   :  { %v5307_v19 = vmul.f32 %v6942_v13, %v12462_v10 }
 0x54f   :  { %6943 = vtanh.f32 %v3910_v1 }
 0x550   :  { %v5456_v36 = vadd.f32 %v5455_v16, %v5307_v19  ;;  %3951 = vmatmul.bf16.gmra.mxu3 %v12463_v4  ;;  %4218 = vmatmul.bf16.gmra.mxu2 %v12464_v59  ;;  %v12467_v59 = vld [vmem:[#allocation88_spill] sm:$0xff] }
 0x551   :  { %v3973_v2 = vpop.f32.mrf.mxu0 }
 0x552   :  { %v3974_v42 = vadd.f32 %v3973_v2, %v12465_v62  ;;  %v4082_v30 = vpop.f32.mrf.mxu1 }
 0x553   :  { %v3843_v8 = vpop.f32.mrf.mxu2 }
 0x554   :  { %v3912_v29 = vpop.f32.mrf.mxu3  ;;  %v10734_v51 = vadd.f32 %v4082_v30, %v3974_v42  ;;  %v10737_v28 = vadd.f32 %v3843_v8, %v10682_v55  ;;  %v12468_v30 = vld [vmem:[#allocation87_spill] sm:$0xff]  ;;  %v12469_v8 = vld [vmem:[#allocation89_spill] sm:$0xff] }
 0x555   :  { %v6944_v23 = vpop.eup %6943  ;;  %v3913_v13 = vadd.f32 %v3912_v29, %v10577_v24  ;;  %v12470_v29 = vld [vmem:[#allocation22_spill] sm:$0xff] }
 0x556   :  { %v5311_v16 = vmul.f32 %v6944_v23, %v12466_v26 }
 0x557   :  { %6945 = vtanh.f32 %v3913_v13  ;;  %v12471_v13 = vld [vmem:[#allocation68_spill] sm:$0xff] }
 0x558   :  { %v5457_v1 = vadd.f32 %v5456_v36, %v5311_v16  ;;  %v12472_v16 = vld [vmem:[#allocation90_spill] sm:$0xff] }
 0x559   :  { %v3976_v19 = vpop.f32.mrf.mxu0 }
 0x55a   :  { %v3977_v4 = vadd.f32 %v3976_v19, %v12467_v59  ;;  %v4085_v10 = vpop.f32.mrf.mxu1 }
 0x55b   :  { %v3845_v2 = vpop.f32.mrf.mxu2  ;;  %4015 = vmatmul.bf16.gmra.mxu0 %v12468_v30  ;;  %4124 = vmatmul.bf16.gmra.mxu1 %v12469_v8 }
 0x55c   :  { %v3914_v62 = vpop.f32.mrf.mxu3  ;;  %v10742_v15 = vadd.f32 %v4085_v10, %v3977_v4  ;;  %v10746_v55 = vadd.f32 %v3845_v2, %v10694_v35  ;;  %v12473_v4 = vld [vmem:[#allocation92_spill] sm:$0xff] }
 0x55d   :  { %v6946_v42 = vpop.eup %6945  ;;  %v3915_v24 = vadd.f32 %v3914_v62, %v10586_v12 }
 0x55e   :  { %v5315_v36 = vmul.f32 %v6946_v42, %v12470_v29  ;;  %v12474_v42 = vld [vmem:[#allocation64_spill] sm:$0xff] }
 0x55f   :  { %6947 = vtanh.f32 %v3915_v24 }
 0x560   :  { %v5458_v23 = vadd.f32 %v5457_v1, %v5315_v36  ;;  %3956 = vmatmul.bf16.gmra.mxu3 %v12471_v13  ;;  %4223 = vmatmul.bf16.gmra.mxu2 %v12472_v16  ;;  %v12475_v16 = vld [vmem:[#allocation94_spill] sm:$0xff] }
 0x561   :  { %v3978_v10 = vpop.f32.mrf.mxu0 }
 0x562   :  { %v3979_v19 = vadd.f32 %v3978_v10, %v12473_v4  ;;  %v4087_v30 = vpop.f32.mrf.mxu1 }
 0x563   :  { %v3848_v59 = vpop.f32.mrf.mxu2 }
 0x564   :  { %v3917_v26 = vpop.f32.mrf.mxu3  ;;  %v10754_v35 = vadd.f32 %v4087_v30, %v3979_v19  ;;  %v10757_v12 = vadd.f32 %v3848_v59, %v10702_v56  ;;  %v12476_v30 = vld [vmem:[#allocation93_spill] sm:$0xff]  ;;  %v12477_v59 = vld [vmem:[#allocation95_spill] sm:$0xff] }
 0x565   :  { %v6948_v2 = vpop.eup %6947  ;;  %v3918_v62 = vadd.f32 %v3917_v26, %v10597_v57  ;;  %v12478_v26 = vld [vmem:[#allocation63_spill] sm:$0xff] }
 0x566   :  { %v5319_v1 = vmul.f32 %v6948_v2, %v12474_v42 }
 0x567   :  { %6949 = vtanh.f32 %v3918_v62  ;;  %v12479_v62 = vld [vmem:[#allocation97_spill] sm:$0xff] }
 0x568   :  { %v5459_v24 = vadd.f32 %v5458_v23, %v5319_v1  ;;  %v12480_v1 = vld [vmem:[#allocation98_spill] sm:$0xff] }
 0x569   :  { %v3981_v36 = vpop.f32.mrf.mxu0 }
 0x56a   :  { %v3982_v13 = vadd.f32 %v3981_v36, %v12475_v16  ;;  %v4090_v29 = vpop.f32.mrf.mxu1 }
 0x56b   :  { %v3850_v10 = vpop.f32.mrf.mxu2  ;;  %4020 = vmatmul.bf16.gmra.mxu0 %v12476_v30  ;;  %4129 = vmatmul.bf16.gmra.mxu1 %v12477_v59 }
 0x56c   :  { %v3919_v4 = vpop.f32.mrf.mxu3  ;;  %v10762_v8 = vadd.f32 %v4090_v29, %v3982_v13  ;;  %v10766_v56 = vadd.f32 %v3850_v10, %v10714_v48 }
 0x56d   :  { %v6950_v19 = vpop.eup %6949  ;;  %v3920_v57 = vadd.f32 %v3919_v4, %v10606_v33 }
 0x56e   :  { %v5323_v23 = vmul.f32 %v6950_v19, %v12478_v26  ;;  %v12481_v19 = vld [vmem:[#allocation62_spill] sm:$0xff] }
 0x56f   :  { %6951 = vtanh.f32 %v3920_v57 }
 0x570   :  { %v5460_v2 = vadd.f32 %v5459_v24, %v5323_v23  ;;  %4228 = vmatmul.bf16.gmra.mxu2 %v12479_v62  ;;  %4297 = vmatmul.bf16.vlgmr.msrb.gmra.mxu3 %v12480_v1 }
 0x571   :  { %v3983_v29 = vpop.f32.mrf.mxu0 }
 0x572   :  { %v3984_v13 = vadd.f32 %v3983_v29, %v12329_v22  ;;  %v4092_v36 = vpop.f32.mrf.mxu1 }
 0x573   :  { %v4189_v48 = vpop.f32.mrf.mxu2 }
 0x574   :  { %v3922_v30 = vpop.f32.mrf.mxu3  ;;  %v10774_v16 = vadd.f32 %v4092_v36, %v3984_v13  ;;  %v10778_v4 = vadd.f32 %v4189_v48, %v10722_v46  ;;  %v12482_v48 = vld [vmem:[#allocation105_spill] sm:$0xff] }
 0x575   :  { %v6952_v10 = vpop.eup %6951  ;;  %v3923_v33 = vadd.f32 %v3922_v30, %v10617_v14 }
 0x576   :  { %v5327_v24 = vmul.f32 %v6952_v10, %v12481_v19 }
 0x577   :  { %6953 = vtanh.f32 %v3923_v33 }
 0x578   :  { %v5461_v57 = vadd.f32 %v5460_v2, %v5327_v24 }
 0x579   :  { %v3986_v23 = vpop.f32.mrf.mxu0 }
 0x57a   :  { %v3987_v1 = vadd.f32 %v3986_v23, %v12337_v21  ;;  %v4095_v62 = vpop.f32.mrf.mxu1 }
 0x57b   :  { %v4191_v13 = vpop.f32.mrf.mxu2  ;;  %4025 = vmatmul.bf16.gmra.mxu0 %v12338_v37  ;;  %4134 = vmatmul.bf16.gmra.mxu1 %v12340_v3  ;;  %v12540_v3 = vld [vmem:[#allocation42_spill] sm:$0xff] }
 0x57c   :  { %v3924_v29 = vpop.f32.mrf.mxu3  ;;  %v10782_v22 = vadd.f32 %v4095_v62, %v3987_v1  ;;  %v10787_v46 = vadd.f32 %v4191_v13, %v10734_v51  ;;  %v12483_v1 = vld [vmem:[#allocation107_spill] sm:$0xff] }
 0x57d   :  { %v6954_v36 = vpop.eup %6953  ;;  %v3925_v14 = vadd.f32 %v3924_v29, %v10626_v38 }
 0x57e   :  { %v5331_v30 = vmul.f32 %v6954_v36, %v10351_v52 }
 0x57f   :  { %6955 = vtanh.f32 %v3925_v14 }
 0x580   :  { %v5462_v2 = vadd.f32 %v5461_v57, %v5331_v30  ;;  %4233 = vmatmul.bf16.gmra.mxu2 %v12341_v58  ;;  %4302 = vmatmul.bf16.gmra.mxu3 %v12482_v48 }
 0x581   :  { %v3988_v62 = vpop.f32.mrf.mxu0 }
 0x582   :  { %v3989_v10 = vadd.f32 %v3988_v62, %v12483_v1  ;;  %v4097_v33 = vpop.f32.mrf.mxu1 }
 0x583   :  { %v4194_v38 = vpop.f32.mrf.mxu2 }
 0x584   :  { %v3927_v24 = vpop.f32.mrf.mxu3  ;;  %v10794_v23 = vadd.f32 %v4097_v33, %v3989_v10  ;;  %v10798_v13 = vadd.f32 %v4194_v38, %v10742_v15  ;;  %v12484_v33 = vld [vmem:[#allocation109_spill] sm:$0xff] }
 0x585   :  { %v6956_v51 = vpop.eup %6955  ;;  %v3928_v29 = vadd.f32 %v3927_v24, %v10637_v18  ;;  %v12485_v24 = vld [vmem:[#allocation111_spill] sm:$0xff]  ;;  %v12486_v38 = vld [vmem:[#allocation169_spill] sm:$0xff] }
 0x586   :  { %v5335_v57 = vmul.f32 %v6956_v51, %v10364_v54 }
 0x587   :  { %6957 = vtanh.f32 %v3928_v29  ;;  %v12487_v29 = vld [vmem:[#allocation112_spill] sm:$0xff] }
 0x588   :  { %v5463_v36 = vadd.f32 %v5462_v2, %v5335_v57  ;;  %v12488_v57 = vld [vmem:[#allocation113_spill] sm:$0xff] }
 0x589   :  { %v3991_v14 = vpop.f32.mrf.mxu0 }
 0x58a   :  { %v3992_v30 = vadd.f32 %v3991_v14, %v12345_v11  ;;  %v4100_v48 = vpop.f32.mrf.mxu1  ;;  %v12489_v14 = vld [vmem:[#allocation114_spill] sm:$0xff] }
 0x58b   :  { %v4196_v10 = vpop.f32.mrf.mxu2  ;;  %4030 = vmatmul.bf16.gmra.mxu0 %v12484_v33  ;;  %4139 = vmatmul.bf16.gmra.mxu1 %v12485_v24 }
 0x58c   :  { %v3929_v62 = vpop.f32.mrf.mxu3  ;;  %v10802_v1 = vadd.f32 %v4100_v48, %v3992_v30  ;;  %v10807_v15 = vadd.f32 %v4196_v10, %v10754_v35 }
 0x58d   :  { %v6958_v58 = vpop.eup %6957  ;;  %v3930_v18 = vadd.f32 %v3929_v62, %v10646_v45 }
 0x58e   :  { %v5339_v2 = vmul.f32 %v6958_v58, %v12486_v38  ;;  %v12490_v58 = vld [vmem:[#allocation40_spill] sm:$0xff] }
 0x58f   :  { %6959 = vtanh.f32 %v3930_v18 }
 0x590   :  { %v5464_v51 = vadd.f32 %v5463_v36, %v5339_v2  ;;  %4238 = vmatmul.bf16.gmra.mxu2 %v12487_v29  ;;  %4307 = vmatmul.bf16.gmra.mxu3 %v12488_v57  ;;  %v12491_v57 = vld [vmem:[#allocation116_spill] sm:$0xff] }
 0x591   :  { %v3993_v48 = vpop.f32.mrf.mxu0 }
 0x592   :  { %v3994_v30 = vadd.f32 %v3993_v48, %v12489_v14  ;;  %v4102_v33 = vpop.f32.mrf.mxu1 }
 0x593   :  { %v4199_v45 = vpop.f32.mrf.mxu2 }
 0x594   :  { %v3932_v11 = vpop.f32.mrf.mxu3  ;;  %v10814_v54 = vadd.f32 %v4102_v33, %v3994_v30  ;;  %v10818_v10 = vadd.f32 %v4199_v45, %v10762_v8  ;;  %v12492_v30 = vld [vmem:[#allocation115_spill] sm:$0xff]  ;;  %v12493_v8 = vld [vmem:[#allocation117_spill] sm:$0xff]  ;;  %v12494_v45 = vld [vmem:[#allocation176_spill] sm:$0xff] }
 0x595   :  { %v6960_v35 = vpop.eup %6959  ;;  %v3933_v62 = vadd.f32 %v3932_v11, %v10657_v6 }
 0x596   :  { %v5343_v36 = vmul.f32 %v6960_v35, %v12490_v58 }
 0x597   :  { %6961 = vtanh.f32 %v3933_v62  ;;  %v12495_v62 = vld [vmem:[#allocation119_spill] sm:$0xff] }
 0x598   :  { %v5465_v18 = vadd.f32 %v5464_v51, %v5343_v36  ;;  %v12496_v36 = vld [vmem:[#allocation120_spill] sm:$0xff] }
 0x599   :  { %v3996_v2 = vpop.f32.mrf.mxu0 }
 0x59a   :  { %v3997_v29 = vadd.f32 %v3996_v2, %v12491_v57  ;;  %v4105_v38 = vpop.f32.mrf.mxu1 }
 0x59b   :  { %v4201_v33 = vpop.f32.mrf.mxu2  ;;  %4035 = vmatmul.bf16.gmra.mxu0 %v12492_v30  ;;  %4144 = vmatmul.bf16.gmra.mxu1 %v12493_v8 }
 0x59c   :  { %v3934_v48 = vpop.f32.mrf.mxu3  ;;  %v10822_v14 = vadd.f32 %v4105_v38, %v3997_v29  ;;  %v10827_v6 = vadd.f32 %v4201_v33, %v10774_v16  ;;  %v12497_v29 = vld [vmem:[#allocation121_spill] sm:$0xff] }
 0x59d   :  { %v6962_v24 = vpop.eup %6961  ;;  %v3935_v11 = vadd.f32 %v3934_v48, %v10666_v0 }
 0x59e   :  { %v5347_v51 = vmul.f32 %v6962_v24, %v12494_v45  ;;  %v12498_v24 = vld [vmem:[#allocation178_spill] sm:$0xff] }
 0x59f   :  { %6963 = vtanh.f32 %v3935_v11 }
 0x5a0   :  { %v5466_v35 = vadd.f32 %v5465_v18, %v5347_v51  ;;  %4243 = vmatmul.bf16.gmra.mxu2 %v12495_v62  ;;  %4312 = vmatmul.bf16.gmra.mxu3 %v12496_v36  ;;  %v12499_v36 = vld [vmem:[#allocation124_spill] sm:$0xff] }
 0x5a1   :  { %v3998_v38 = vpop.f32.mrf.mxu0 }
 0x5a2   :  { %v3999_v2 = vadd.f32 %v3998_v38, %v12497_v29  ;;  %v4107_v30 = vpop.f32.mrf.mxu1 }
 0x5a3   :  { %v4204_v0 = vpop.f32.mrf.mxu2 }
 0x5a4   :  { %v3937_v57 = vpop.f32.mrf.mxu3  ;;  %v10834_v58 = vadd.f32 %v4107_v30, %v3999_v2  ;;  %v10838_v33 = vadd.f32 %v4204_v0, %v10782_v22  ;;  %v12500_v2 = vld [vmem:[#allocation123_spill] sm:$0xff] }
 0x5a5   :  { %v6964_v16 = vpop.eup %6963  ;;  %v3938_v48 = vadd.f32 %v3937_v57, %v10677_v43  ;;  %v12501_v57 = vld [vmem:[#allocation125_spill] sm:$0xff]  ;;  %v12502_v0 = vld [vmem:[#allocation7_spill] sm:$0xff] }
 0x5a6   :  { %v5351_v18 = vmul.f32 %v6964_v16, %v12498_v24 }
 0x5a7   :  { %6965 = vtanh.f32 %v3938_v48  ;;  %v12503_v48 = vld [vmem:[#allocation128_spill] sm:$0xff] }
 0x5a8   :  { %v5467_v11 = vadd.f32 %v5466_v35, %v5351_v18  ;;  %v12504_v18 = vld [vmem:[#allocation129_spill] sm:$0xff] }
 0x5a9   :  { %v4001_v51 = vpop.f32.mrf.mxu0 }
 0x5aa   :  { %v4002_v62 = vadd.f32 %v4001_v51, %v12499_v36  ;;  %v4110_v45 = vpop.f32.mrf.mxu1 }
 0x5ab   :  { %v4206_v30 = vpop.f32.mrf.mxu2  ;;  %4040 = vmatmul.bf16.gmra.mxu0 %v12500_v2  ;;  %4149 = vmatmul.bf16.gmra.mxu1 %v12501_v57 }
 0x5ac   :  { %v3939_v38 = vpop.f32.mrf.mxu3  ;;  %v10842_v29 = vadd.f32 %v4110_v45, %v4002_v62  ;;  %v10847_v22 = vadd.f32 %v4206_v30, %v10794_v23  ;;  %v12505_v62 = vld [vmem:[#allocation127_spill] sm:$0xff] }
 0x5ad   :  { %v6966_v8 = vpop.eup %6965  ;;  %v3940_v43 = vadd.f32 %v3939_v38, %v10686_v31 }
 0x5ae   :  { %v5355_v35 = vmul.f32 %v6966_v8, %v12502_v0  ;;  %v12506_v8 = vld [vmem:[#allocation168_spill] sm:$0xff] }
 0x5af   :  { %6967 = vtanh.f32 %v3940_v43 }
 0x5b0   :  { %v5468_v16 = vadd.f32 %v5467_v11, %v5355_v35  ;;  %4248 = vmatmul.bf16.gmra.mxu2 %v12503_v48  ;;  %4317 = vmatmul.bf16.gmra.mxu3 %v12504_v18  ;;  %v12507_v18 = vld [vmem:[#allocation126_spill] sm:$0xff] }
 0x5b1   :  { %v4003_v45 = vpop.f32.mrf.mxu0 }
 0x5b2   :  { %v4004_v51 = vadd.f32 %v4003_v45, %v12505_v62  ;;  %v4112_v2 = vpop.f32.mrf.mxu1 }
 0x5b3   :  { %v4209_v31 = vpop.f32.mrf.mxu2 }
 0x5b4   :  { %v3942_v36 = vpop.f32.mrf.mxu3  ;;  %v10854_v24 = vadd.f32 %v4112_v2, %v4004_v51  ;;  %v10858_v30 = vadd.f32 %v4209_v31, %v10802_v1  ;;  %v12508_v51 = vld [vmem:[#allocation134_spill] sm:$0xff] }
 0x5b5   :  { %v6968_v23 = vpop.eup %6967  ;;  %v3943_v38 = vadd.f32 %v3942_v36, %v10697_v17  ;;  %v12509_v36 = vld [vmem:[#allocation135_spill] sm:$0xff]  ;;  %v12510_v31 = vld [vmem:[#allocation6_spill] sm:$0xff] }
 0x5b6   :  { %v5359_v11 = vmul.f32 %v6968_v23, %v12506_v8 }
 0x5b7   :  { %6969 = vtanh.f32 %v3943_v38  ;;  %v12511_v38 = vld [vmem:[#allocation138_spill] sm:$0xff] }
 0x5b8   :  { %v5469_v43 = vadd.f32 %v5468_v16, %v5359_v11  ;;  %v12512_v11 = vld [vmem:[#allocation139_spill] sm:$0xff] }
 0x5b9   :  { %v4006_v35 = vpop.f32.mrf.mxu0 }
 0x5ba   :  { %v4007_v48 = vadd.f32 %v4006_v35, %v12507_v18  ;;  %v4115_v0 = vpop.f32.mrf.mxu1 }
 0x5bb   :  { %v4211_v2 = vpop.f32.mrf.mxu2  ;;  %4045 = vmatmul.bf16.gmra.mxu0 %v12508_v51  ;;  %4154 = vmatmul.bf16.gmra.mxu1 %v12509_v36 }
 0x5bc   :  { %v3944_v45 = vpop.f32.mrf.mxu3  ;;  %v10862_v62 = vadd.f32 %v4115_v0, %v4007_v48  ;;  %v10867_v1 = vadd.f32 %v4211_v2, %v10814_v54  ;;  %v12513_v48 = vld [vmem:[#allocation131_spill] sm:$0xff] }
 0x5bd   :  { %v6970_v57 = vpop.eup %6969  ;;  %v3945_v17 = vadd.f32 %v3944_v45, %v10706_v47 }
 0x5be   :  { %v5363_v16 = vmul.f32 %v6970_v57, %v12510_v31  ;;  %v12514_v57 = vld [vmem:[#allocation161_spill] sm:$0xff] }
 0x5bf   :  { %6971 = vtanh.f32 %v3945_v17 }
 0x5c0   :  { %v5470_v23 = vadd.f32 %v5469_v43, %v5363_v16  ;;  %4253 = vmatmul.bf16.gmra.mxu2 %v12511_v38  ;;  %4322 = vmatmul.bf16.gmra.mxu3 %v12512_v11  ;;  %v12515_v11 = vld [vmem:[#allocation133_spill] sm:$0xff] }
 0x5c1   :  { %v4008_v0 = vpop.f32.mrf.mxu0 }
 0x5c2   :  { %v4009_v35 = vadd.f32 %v4008_v0, %v12513_v48  ;;  %v4117_v51 = vpop.f32.mrf.mxu1 }
 0x5c3   :  { %v4214_v47 = vpop.f32.mrf.mxu2 }
 0x5c4   :  { %v3947_v18 = vpop.f32.mrf.mxu3  ;;  %v10874_v8 = vadd.f32 %v4117_v51, %v4009_v35  ;;  %v10878_v2 = vadd.f32 %v4214_v47, %v10822_v14  ;;  %v12516_v35 = vld [vmem:[#allocation145_spill] sm:$0xff] }
 0x5c5   :  { %v6972_v54 = vpop.eup %6971  ;;  %v3948_v45 = vadd.f32 %v3947_v18, %v10717_v7  ;;  %v12517_v18 = vld [vmem:[#allocation147_spill] sm:$0xff]  ;;  %v12518_v47 = vld [vmem:[#allocation17_spill] sm:$0xff] }
 0x5c6   :  { %v5367_v43 = vmul.f32 %v6972_v54, %v12514_v57 }
 0x5c7   :  { %6973 = vtanh.f32 %v3948_v45  ;;  %v12519_v45 = vld [vmem:[#allocation148_spill] sm:$0xff] }
 0x5c8   :  { %v5471_v17 = vadd.f32 %v5470_v23, %v5367_v43  ;;  %v12520_v43 = vld [vmem:[#allocation149_spill] sm:$0xff] }
 0x5c9   :  { %v4011_v16 = vpop.f32.mrf.mxu0 }
 0x5ca   :  { %v4012_v38 = vadd.f32 %v4011_v16, %v12515_v11  ;;  %v4120_v31 = vpop.f32.mrf.mxu1 }
 0x5cb   :  { %v4216_v51 = vpop.f32.mrf.mxu2  ;;  %4050 = vmatmul.bf16.gmra.mxu0 %v12516_v35  ;;  %4159 = vmatmul.bf16.gmra.mxu1 %v12517_v18 }
 0x5cc   :  { %v3949_v0 = vpop.f32.mrf.mxu3  ;;  %v10882_v48 = vadd.f32 %v4120_v31, %v4012_v38  ;;  %v10887_v14 = vadd.f32 %v4216_v51, %v10834_v58  ;;  %v12521_v38 = vld [vmem:[#allocation132_spill] sm:$0xff] }
 0x5cd   :  { %v6974_v36 = vpop.eup %6973  ;;  %v3950_v7 = vadd.f32 %v3949_v0, %v10726_v40 }
 0x5ce   :  { %v5371_v23 = vmul.f32 %v6974_v36, %v12518_v47  ;;  %v12522_v36 = vld [vmem:[#allocation154_spill] sm:$0xff] }
 0x5cf   :  { %6975 = vtanh.f32 %v3950_v7 }
 0x5d0   :  { %v5472_v54 = vadd.f32 %v5471_v17, %v5371_v23  ;;  %4258 = vmatmul.bf16.gmra.mxu2 %v12519_v45  ;;  %4327 = vmatmul.bf16.gmra.mxu3 %v12520_v43  ;;  %v12523_v43 = vld [vmem:[#allocation137_spill] sm:$0xff] }
 0x5d1   :  { %v4013_v31 = vpop.f32.mrf.mxu0 }
 0x5d2   :  { %v4014_v16 = vadd.f32 %v4013_v31, %v12521_v38  ;;  %v4122_v35 = vpop.f32.mrf.mxu1 }
 0x5d3   :  { %v4219_v40 = vpop.f32.mrf.mxu2 }
 0x5d4   :  { %v3952_v11 = vpop.f32.mrf.mxu3  ;;  %v10894_v57 = vadd.f32 %v4122_v35, %v4014_v16  ;;  %v10898_v51 = vadd.f32 %v4219_v40, %v10842_v29  ;;  %v12524_v16 = vld [vmem:[#allocation155_spill] sm:$0xff]  ;;  %v12526_v40 = vld [vmem:[#allocation16_spill] sm:$0xff] }
 0x5d5   :  { %v6976_v58 = vpop.eup %6975  ;;  %v3953_v0 = vadd.f32 %v3952_v11, %v10737_v28  ;;  %v12525_v11 = vld [vmem:[#allocation156_spill] sm:$0xff] }
 0x5d6   :  { %v5375_v17 = vmul.f32 %v6976_v58, %v12522_v36 }
 0x5d7   :  { %6977 = vtanh.f32 %v3953_v0  ;;  %v12527_v0 = vld [vmem:[#allocation159_spill] sm:$0xff] }
 0x5d8   :  { %v5473_v7 = vadd.f32 %v5472_v54, %v5375_v17  ;;  %v12528_v17 = vld [vmem:[#allocation160_spill] sm:$0xff] }
 0x5d9   :  { %v4016_v23 = vpop.f32.mrf.mxu0 }
 0x5da   :  { %v4017_v45 = vadd.f32 %v4016_v23, %v12523_v43  ;;  %v4125_v47 = vpop.f32.mrf.mxu1 }
 0x5db   :  { %v4221_v35 = vpop.f32.mrf.mxu2  ;;  %4055 = vmatmul.bf16.gmra.mxu0 %v12524_v16  ;;  %4164 = vmatmul.bf16.gmra.mxu1 %v12525_v11 }
 0x5dc   :  { %v3954_v31 = vpop.f32.mrf.mxu3  ;;  %v10902_v38 = vadd.f32 %v4125_v47, %v4017_v45  ;;  %v10907_v29 = vadd.f32 %v4221_v35, %v10854_v24  ;;  %v12529_v45 = vld [vmem:[#allocation141_spill] sm:$0xff] }
 0x5dd   :  { %v6978_v18 = vpop.eup %6977  ;;  %v3955_v28 = vadd.f32 %v3954_v31, %v10746_v55 }
 0x5de   :  { %v5379_v54 = vmul.f32 %v6978_v18, %v12526_v40 }
 0x5df   :  { %6979 = vtanh.f32 %v3955_v28 }
 0x5e0   :  { %v5474_v58 = vadd.f32 %v5473_v7, %v5379_v54  ;;  %4263 = vmatmul.bf16.gmra.mxu2 %v12527_v0  ;;  %4332 = vmatmul.bf16.gmra.mxu3 %v12528_v17  ;;  %v12530_v54 = vld [vmem:[#allocation140_spill] sm:$0xff] }
 0x5e1   :  { %v4018_v47 = vpop.f32.mrf.mxu0 }
 0x5e2   :  { %v4019_v23 = vadd.f32 %v4018_v47, %v12529_v45  ;;  %v4127_v16 = vpop.f32.mrf.mxu1 }
 0x5e3   :  { %v4224_v55 = vpop.f32.mrf.mxu2 }
 0x5e4   :  { %v3957_v43 = vpop.f32.mrf.mxu3  ;;  %v10914_v36 = vadd.f32 %v4127_v16, %v4019_v23  ;;  %v10918_v35 = vadd.f32 %v4224_v55, %v10862_v62  ;;  %v12531_v23 = vld [vmem:[#allocation166_spill] sm:$0xff]  ;;  %v12533_v55 = vld [vmem:[#allocation21_spill] sm:$0xff] }
 0x5e5   :  { %v6980_v24 = vpop.eup %6979  ;;  %v3958_v31 = vadd.f32 %v3957_v43, %v10757_v12  ;;  %v12532_v43 = vld [vmem:[#allocation167_spill] sm:$0xff] }
 0x5e6   :  { %v5383_v18 = vmul.f32 %v6980_v24, %v10508_v63  ;;  %v12534_v24 = vld [vmem:[#allocation14_spill] sm:$0xff] }
 0x5e7   :  { %6981 = vtanh.f32 %v3958_v31  ;;  %v5433_v31 = vrot.slane %v12534_v24, 4 }
 0x5e8   :  { %v5475_v7 = vadd.f32 %v5474_v58, %v5383_v18 }
 0x5e9   :  { %v4021_v28 = vpop.f32.mrf.mxu0 }
 0x5ea   :  { %v4022_v17 = vadd.f32 %v4021_v28, %v12530_v54  ;;  %v4130_v0 = vpop.f32.mrf.mxu1  ;;  %v12535_v28 = vld [vmem:[#allocation170_spill] sm:$0xff] }
 0x5eb   :  { %v4226_v16 = vpop.f32.mrf.mxu2  ;;  %4060 = vmatmul.bf16.gmra.mxu0 %v12531_v23  ;;  %4169 = vmatmul.bf16.gmra.mxu1 %v12532_v43  ;;  %v12537_v23 = vld [vmem:[#allocation143_spill] sm:$0xff] }
 0x5ec   :  { %v3959_v47 = vpop.f32.mrf.mxu3  ;;  %v10922_v45 = vadd.f32 %v4130_v0, %v4022_v17  ;;  %v10927_v62 = vadd.f32 %v4226_v16, %v10874_v8  ;;  %v12536_v0 = vld [vmem:[#allocation171_spill] sm:$0xff] }
 0x5ed   :  { %v6982_v40 = vpop.eup %6981  ;;  %v3960_v12 = vadd.f32 %v3959_v47, %v10766_v56  ;;  %v5434_v56 = vadd.f32 %v5433_v31, %v12534_v24 }
 0x5ee   :  { %v5387_v58 = vmul.f32 %v6982_v40, %v12533_v55 }
 0x5ef   :  { %6983 = vtanh.f32 %v3960_v12  ;;  %v12538_v12 = vld [vmem:[#allocation142_spill] sm:$0xff] }
 0x5f0   :  { %v5476_v18 = vadd.f32 %v5475_v7, %v5387_v58  ;;  %4268 = vmatmul.bf16.gmra.mxu2 %v12535_v28  ;;  %4337 = vmatmul.bf16.gmra.mxu3 %v12536_v0  ;;  %v5435_v28 = vrot.slane %v5434_v56, 2 }
 0x5f1   :  { %v4023_v17 = vpop.f32.mrf.mxu0 }
 0x5f2   :  { %v4024_v54 = vadd.f32 %v4023_v17, %v12537_v23  ;;  %v4132_v63 = vpop.f32.mrf.mxu1  ;;  %v12539_v17 = vld [vmem:[#allocation146_spill] sm:$0xff] }
 0x5f3   :  { %v4229_v47 = vpop.f32.mrf.mxu2 }
 0x5f4   :  { %v10936_v8 = vadd.f32 %v4132_v63, %v4024_v54  ;;  %v4298_v16 = vpop.f32.mrf.mxu3  ;;  %v10939_v40 = vadd.f32 %v4229_v47, %v10882_v48  ;;  %v5436_v48 = vadd.f32 %v5435_v28, %v5434_v56 }
 0x5f5   :  { %v6984_v43 = vpop.eup %6983  ;;  %v4299_v7 = vadd.f32 %v4298_v16, %v10778_v4 }
 0x5f6   :  { %v5391_v58 = vmul.f32 %v6984_v43, %v12538_v12  ;;  %v5437_v16 = vrot.slane %v5436_v48, 1 }
 0x5f7   :  { %6985 = vtanh.f32 %v4299_v7 }
 0x5f8   :  { %v5477_v0 = vadd.f32 %v5476_v18, %v5391_v58  ;;  %v12541_v18 = vld [vmem:[#allocation174_spill] sm:$0xff]  ;;  %v12544_v58 = vld [vmem:[#allocation144_spill] sm:$0xff] }
 0x5f9   :  { %v4026_v55 = vpop.f32.mrf.mxu0 }
 0x5fa   :  { %v5478_v11 = vrot.slane %v5477_v0, 4  ;;  %v4027_v23 = vadd.f32 %v4026_v55, %v12539_v17  ;;  %v4135_v52 = vpop.f32.mrf.mxu1 }
 0x5fb   :  { %v4231_v54 = vpop.f32.mrf.mxu2  ;;  %4065 = vmatmul.bf16.gmra.mxu0 %v12540_v3  ;;  %4174 = vmatmul.bf16.gmra.mxu1 %v12541_v18 }
 0x5fc   :  { %v5479_v24 = vadd.f32 %v5478_v11, %v5477_v0  ;;  %v10944_v63 = vadd.f32 %v4135_v52, %v4027_v23  ;;  %v4300_v31 = vpop.f32.mrf.mxu3  ;;  %v10948_v4 = vadd.f32 %v4231_v54, %v10894_v57  ;;  %v5578_v11 = vpop.permute.xlu0 %5577  ;;  %v12542_v52 = vld [vmem:[#allocation54_spill] sm:$0xff]  ;;  %v12543_v23 = vld [vmem:[#allocation177_spill] sm:$0xff] }
 0x5fd   :  { %v4301_v43 = vadd.f32 %v4300_v31, %v10787_v46  ;;  %v6986_v57 = vpop.eup %6985  ;;  %v10955_v54 = vperm.slane %v5578_v11, 0 }
 0x5fe   :  { %v5480_v47 = vrot.slane %v5479_v24, 2 }
 0x5ff   :  { %6987 = vtanh.f32 %v4301_v43  ;;  %12545 = vst [vmem:[#allocation136_spill] sm:$0xff] %v10955_v54  ;;  %v5438_v43 = vadd.f32 %v5437_v16, %v5436_v48 }
 0x600   :  { %v5481_v55 = vadd.f32 %v5480_v47, %v5479_v24  ;;  %4273 = vmatmul.bf16.gmra.mxu2 %v12542_v52  ;;  %4342 = vmatmul.bf16.gmra.mxu3 %v12543_v23  ;;  %v5236_v52 = vmul.f32 %v6986_v57, %v12408_v25 }
 0x601   :  { %v4028_v0 = vpop.f32.mrf.mxu0 }
 0x602   :  { %v4029_v28 = vadd.f32 %v4028_v0, %v12544_v58  ;;  %v4137_v56 = vpop.f32.mrf.mxu1  ;;  %v5482_v7 = vrot.slane %v5481_v55, 1 }
 0x603   :  { %v4234_v31 = vpop.f32.mrf.mxu2 }
 0x604   :  { %v10957_v46 = vadd.f32 %v4137_v56, %v4029_v28  ;;  %v4303_v18 = vpop.f32.mrf.mxu3  ;;  %v5483_v24 = vadd.f32 %v5482_v7, %v5481_v55  ;;  %v10960_v3 = vadd.f32 %v4234_v31, %v10902_v38  ;;  %v5581_v28 = vadd.f32 %v10955_v54, %v5438_v43  ;;  %v12547_v43 = vld [vmem:[#allocation60_spill] sm:$0xff] }
 0x605   :  { %v6988_v47 = vpop.eup %6987  ;;  %v4304_v23 = vadd.f32 %v4303_v18, %v10798_v13 }
 0x606   :  { %v5240_v0 = vmul.f32 %v6988_v47, %v12409_v61  ;;  %v5582_v58 = vadd.f32 %v10955_v54, %v5483_v24  ;;  %v12548_v24 = vld [vmem:[#allocation59_spill] sm:$0xff] }
 0x607   :  { %6989 = vtanh.f32 %v4304_v23 }
 0x608   :  { %v5484_v11 = vadd.f32 %v5240_v0, %v5236_v52  ;;  %v5589_v56 = vrot.slane %v5582_v58, 7  ;;  %v12549_v0 = vld [vmem:[#allocation153_spill] sm:$0xff] }
 0x609   :  { %v4031_v48 = vpop.f32.mrf.mxu0 }
 0x60a   :  { %v4032_v55 = vadd.f32 %v4031_v48, %v12410_v53  ;;  %v4140_v16 = vpop.f32.mrf.mxu1  ;;  %v10968_v38 = vsel %vm5592_vm1, %v5581_v28, %v5589_v56 }
 0x60b   :  { %12546 = vst [vmem:[#allocation19_spill] sm:$0xff] %v10968_v38  ;;  %v4236_v13 = vpop.f32.mrf.mxu2  ;;  %4406 = vmatmul.bf16.vlgmr.msra.gmra.mxu0 %v12205_v39  ;;  %4515 = vmatmul.bf16.vlgmr.msra.gmra.mxu1 %v12207_v44 }
 0x60c   :  { %v10970_v7 = vadd.f32 %v4140_v16, %v4032_v55  ;;  %v4305_v18 = vpop.f32.mrf.mxu3  ;;  %v10974_v23 = vadd.f32 %v4236_v13, %v10914_v36 }
 0x60d   :  { %v6990_v57 = vpop.eup %6989  ;;  %v4306_v52 = vadd.f32 %v4305_v18, %v10807_v15 }
 0x60e   :  { %v5244_v58 = vmul.f32 %v6990_v57, %v9926_v60 }
 0x60f   :  { %6991 = vtanh.f32 %v4306_v52 }
 0x610   :  { %v5485_v31 = vadd.f32 %v5484_v11, %v5244_v58  ;;  %4278 = vmatmul.bf16.gmra.mxu2 %v12547_v43  ;;  %4347 = vmatmul.bf16.gmra.mxu3 %v12548_v24 }
 0x611   :  { %v4033_v47 = vpop.f32.mrf.mxu0 }
 0x612   :  { %v4034_v28 = vadd.f32 %v4033_v47, %v12549_v0  ;;  %v4142_v39 = vpop.f32.mrf.mxu1 }
 0x613   :  { %v4239_v36 = vpop.f32.mrf.mxu2 }
 0x614   :  { %v10982_v56 = vadd.f32 %v4142_v39, %v4034_v28  ;;  %v4308_v48 = vpop.f32.mrf.mxu3  ;;  %v10985_v15 = vadd.f32 %v4239_v36, %v10922_v45 }
 0x615   :  { %v6992_v55 = vpop.eup %6991  ;;  %v4309_v44 = vadd.f32 %v4308_v48, %v10818_v10  ;;  %v12550_v48 = vld [vmem:[#allocation157_spill] sm:$0xff] }
 0x616   :  { %v5248_v11 = vmul.f32 %v6992_v55, %v9948_v20 }
 0x617   :  { %6993 = vtanh.f32 %v4309_v44 }
 0x618   :  { %v5486_v16 = vadd.f32 %v5485_v31, %v5248_v11 }
 0x619   :  { %v4036_v13 = vpop.f32.mrf.mxu0 }
 0x61a   :  { %v4037_v18 = vadd.f32 %v4036_v13, %v12412_v41  ;;  %v4145_v57 = vpop.f32.mrf.mxu1 }
 0x61b   :  { %v4241_v58 = vpop.f32.mrf.mxu2  ;;  %4411 = vmatmul.bf16.gmra.mxu0 %v12413_v34  ;;  %4520 = vmatmul.bf16.gmra.mxu1 %v12414_v9 }
 0x61c   :  { %v10990_v52 = vadd.f32 %v4145_v57, %v4037_v18  ;;  %v4310_v47 = vpop.f32.mrf.mxu3  ;;  %v10994_v45 = vadd.f32 %v4241_v58, %v10936_v8 }
 0x61d   :  { %v6994_v28 = vpop.eup %6993  ;;  %v4311_v10 = vadd.f32 %v4310_v47, %v10827_v6 }
 0x61e   :  { %v5252_v31 = vmul.f32 %v6994_v28, %v9985_v32 }
 0x61f   :  { %6995 = vtanh.f32 %v4311_v10 }
 0x620   :  { %v5487_v39 = vadd.f32 %v5486_v16, %v5252_v31  ;;  %4283 = vmatmul.bf16.gmra.mxu2 %v9992_v49  ;;  %4352 = vmatmul.bf16.gmra.mxu3 %v9994_v5 }
 0x621   :  { %v4038_v36 = vpop.f32.mrf.mxu0 }
 0x622   :  { %v4039_v55 = vadd.f32 %v4038_v36, %v12550_v48  ;;  %v4147_v34 = vpop.f32.mrf.mxu1  ;;  %v12551_v36 = vld [vmem:[#allocation66_spill] sm:$0xff] }
 0x623   :  { %v4244_v8 = vpop.f32.mrf.mxu2 }
 0x624   :  { %v11002_v44 = vadd.f32 %v4147_v34, %v4039_v55  ;;  %v4313_v11 = vpop.f32.mrf.mxu3  ;;  %v11005_v6 = vadd.f32 %v4244_v8, %v10944_v63  ;;  %v12552_v34 = vld [vmem:[#allocation41_spill] sm:$0xff]  ;;  %v12553_v8 = vld [vmem:[#allocation44_spill] sm:$0xff] }
 0x625   :  { %v6996_v13 = vpop.eup %6995  ;;  %v4314_v9 = vadd.f32 %v4313_v11, %v10838_v33 }
 0x626   :  { %v5256_v16 = vmul.f32 %v6996_v13, %v10016_v50  ;;  %v12554_v13 = vld [vmem:[#allocation47_spill] sm:$0xff] }
 0x627   :  { %6997 = vtanh.f32 %v4314_v9  ;;  %v12555_v9 = vld [vmem:[#allocation43_spill] sm:$0xff] }
 0x628   :  { %v5488_v18 = vadd.f32 %v5487_v39, %v5256_v16 }
 0x629   :  { %v4041_v57 = vpop.f32.mrf.mxu0 }
 0x62a   :  { %v4042_v58 = vadd.f32 %v4041_v57, %v9722_v27  ;;  %v4150_v47 = vpop.f32.mrf.mxu1  ;;  %v12556_v57 = vld [vmem:[#allocation158_spill] sm:$0xff] }
 0x62b   :  { %v4246_v10 = vpop.f32.mrf.mxu2  ;;  %4416 = vmatmul.bf16.gmra.mxu0 %v12551_v36  ;;  %4525 = vmatmul.bf16.gmra.mxu1 %v12552_v34 }
 0x62c   :  { %v11010_v28 = vadd.f32 %v4150_v47, %v4042_v58  ;;  %v4315_v31 = vpop.f32.mrf.mxu3  ;;  %v11014_v63 = vadd.f32 %v4246_v10, %v10957_v46 }
 0x62d   :  { %v6998_v55 = vpop.eup %6997  ;;  %v4316_v33 = vadd.f32 %v4315_v31, %v10847_v22 }
 0x62e   :  { %v5260_v39 = vmul.f32 %v6998_v55, %v12553_v8  ;;  %v12557_v55 = vld [vmem:[#allocation49_spill] sm:$0xff] }
 0x62f   :  { %6999 = vtanh.f32 %v4316_v33 }
 0x630   :  { %v5489_v11 = vadd.f32 %v5488_v18, %v5260_v39  ;;  %4357 = vmatmul.bf16.gmra.mxu3 %v12554_v13  ;;  %4624 = vmatmul.bf16.vlgmr.msra.gmra.mxu2 %v12555_v9  ;;  %v12558_v39 = vld [vmem:[#allocation162_spill] sm:$0xff] }
 0x631   :  { %v4043_v16 = vpop.f32.mrf.mxu0 }
 0x632   :  { %v4044_v58 = vadd.f32 %v4043_v16, %v12556_v57  ;;  %v4152_v47 = vpop.f32.mrf.mxu1  ;;  %v12559_v57 = vld [vmem:[#allocation20_spill] sm:$0xff] }
 0x633   :  { %v4249_v46 = vpop.f32.mrf.mxu2 }
 0x634   :  { %v11022_v36 = vadd.f32 %v4152_v47, %v4044_v58  ;;  %v4318_v10 = vpop.f32.mrf.mxu3  ;;  %v11025_v22 = vadd.f32 %v4249_v46, %v10970_v7  ;;  %v12560_v46 = vld [vmem:[#allocation30_spill] sm:$0xff] }
 0x635   :  { %v7000_v38 = vpop.eup %6999  ;;  %v4319_v31 = vadd.f32 %v4318_v10, %v10858_v30 }
 0x636   :  { %v5264_v18 = vmul.f32 %v7000_v38, %v12557_v55  ;;  %v12561_v38 = vld [vmem:[#allocation58_spill] sm:$0xff] }
 0x637   :  { %7001 = vtanh.f32 %v4319_v31  ;;  %v12562_v31 = vld [vmem:[#allocation57_spill] sm:$0xff] }
 0x638   :  { %v5490_v33 = vadd.f32 %v5489_v11, %v5264_v18 }
 0x639   :  { %v4046_v34 = vpop.f32.mrf.mxu0 }
 0x63a   :  { %v4047_v9 = vadd.f32 %v4046_v34, %v12558_v39  ;;  %v4155_v54 = vpop.f32.mrf.mxu1  ;;  %v12564_v34 = vld [vmem:[#allocation165_spill] sm:$0xff] }
 0x63b   :  { %v4251_v58 = vpop.f32.mrf.mxu2  ;;  %4421 = vmatmul.bf16.gmra.mxu0 %v12559_v57  ;;  %4530 = vmatmul.bf16.gmra.mxu1 %v12560_v46 }
 0x63c   :  { %v11030_v16 = vadd.f32 %v4155_v54, %v4047_v9  ;;  %v4320_v47 = vpop.f32.mrf.mxu3  ;;  %v11034_v7 = vadd.f32 %v4251_v58, %v10982_v56  ;;  %v12563_v54 = vld [vmem:[#allocation37_spill] sm:$0xff] }
 0x63d   :  { %v7002_v13 = vpop.eup %7001  ;;  %v4321_v30 = vadd.f32 %v4320_v47, %v10867_v1  ;;  %v12565_v47 = vld [vmem:[#allocation55_spill] sm:$0xff] }
 0x63e   :  { %v5268_v11 = vmul.f32 %v7002_v13, %v12561_v38 }
 0x63f   :  { %7003 = vtanh.f32 %v4321_v30 }
 0x640   :  { %v5491_v10 = vadd.f32 %v5490_v33, %v5268_v11  ;;  %4362 = vmatmul.bf16.gmra.mxu3 %v12562_v31  ;;  %4629 = vmatmul.bf16.gmra.mxu2 %v12563_v54  ;;  %v12566_v11 = vld [vmem:[#allocation164_spill] sm:$0xff] }
 0x641   :  { %v4048_v18 = vpop.f32.mrf.mxu0 }
 0x642   :  { %v4049_v9 = vadd.f32 %v4048_v18, %v12564_v34  ;;  %v4157_v57 = vpop.f32.mrf.mxu1  ;;  %v12567_v34 = vld [vmem:[#allocation34_spill] sm:$0xff] }
 0x643   :  { %v4254_v56 = vpop.f32.mrf.mxu2 }
 0x644   :  { %v11042_v39 = vadd.f32 %v4157_v57, %v4049_v9  ;;  %v4323_v58 = vpop.f32.mrf.mxu3  ;;  %v11045_v1 = vadd.f32 %v4254_v56, %v10990_v52  ;;  %v12568_v56 = vld [vmem:[#allocation39_spill] sm:$0xff] }
 0x645   :  { %v7004_v55 = vpop.eup %7003  ;;  %v4324_v13 = vadd.f32 %v4323_v58, %v10878_v2 }
 0x646   :  { %v5272_v33 = vmul.f32 %v7004_v55, %v12565_v47  ;;  %v12569_v55 = vld [vmem:[#allocation56_spill] sm:$0xff] }
 0x647   :  { %7005 = vtanh.f32 %v4324_v13  ;;  %v12570_v13 = vld [vmem:[#allocation10_spill] sm:$0xff] }
 0x648   :  { %v5492_v30 = vadd.f32 %v5491_v10, %v5272_v33 }
 0x649   :  { %v4051_v46 = vpop.f32.mrf.mxu0 }
 0x64a   :  { %v4052_v54 = vadd.f32 %v4051_v46, %v12566_v11  ;;  %v4160_v31 = vpop.f32.mrf.mxu1  ;;  %v12572_v46 = vld [vmem:[#allocation172_spill] sm:$0xff] }
 0x64b   :  { %v4256_v9 = vpop.f32.mrf.mxu2  ;;  %4426 = vmatmul.bf16.gmra.mxu0 %v12567_v34  ;;  %4535 = vmatmul.bf16.gmra.mxu1 %v12568_v56 }
 0x64c   :  { %v11050_v18 = vadd.f32 %v4160_v31, %v4052_v54  ;;  %v4325_v57 = vpop.f32.mrf.mxu3  ;;  %v11054_v52 = vadd.f32 %v4256_v9, %v11002_v44  ;;  %v12571_v31 = vld [vmem:[#allocation13_spill] sm:$0xff] }
 0x64d   :  { %v7006_v38 = vpop.eup %7005  ;;  %v4326_v2 = vadd.f32 %v4325_v57, %v10887_v14  ;;  %v12573_v57 = vld [vmem:[#allocation83_spill] sm:$0xff] }
 0x64e   :  { %v5276_v10 = vmul.f32 %v7006_v38, %v12569_v55 }
 0x64f   :  { %7007 = vtanh.f32 %v4326_v2 }
 0x650   :  { %v5493_v58 = vadd.f32 %v5492_v30, %v5276_v10  ;;  %4367 = vmatmul.bf16.gmra.mxu3 %v12570_v13  ;;  %4634 = vmatmul.bf16.gmra.mxu2 %v12571_v31  ;;  %v12574_v10 = vld [vmem:[#allocation35_spill] sm:$0xff] }
 0x651   :  { %v4053_v33 = vpop.f32.mrf.mxu0 }
 0x652   :  { %v4054_v54 = vadd.f32 %v4053_v33, %v12572_v46  ;;  %v4162_v34 = vpop.f32.mrf.mxu1  ;;  %v12575_v46 = vld [vmem:[#allocation69_spill] sm:$0xff] }
 0x653   :  { %v4259_v44 = vpop.f32.mrf.mxu2 }
 0x654   :  { %v11062_v11 = vadd.f32 %v4162_v34, %v4054_v54  ;;  %v4328_v9 = vpop.f32.mrf.mxu3  ;;  %v11065_v14 = vadd.f32 %v4259_v44, %v11010_v28  ;;  %v12576_v44 = vld [vmem:[#allocation65_spill] sm:$0xff] }
 0x655   :  { %v7008_v47 = vpop.eup %7007  ;;  %v4329_v38 = vadd.f32 %v4328_v9, %v10898_v51 }
 0x656   :  { %v5280_v30 = vmul.f32 %v7008_v47, %v12573_v57  ;;  %v12577_v47 = vld [vmem:[#allocation9_spill] sm:$0xff] }
 0x657   :  { %7009 = vtanh.f32 %v4329_v38  ;;  %v12578_v38 = vld [vmem:[#allocation79_spill] sm:$0xff] }
 0x658   :  { %v5494_v2 = vadd.f32 %v5493_v58, %v5280_v30 }
 0x659   :  { %v4056_v56 = vpop.f32.mrf.mxu0 }
 0x65a   :  { %v4057_v31 = vadd.f32 %v4056_v56, %v12574_v10  ;;  %v4165_v13 = vpop.f32.mrf.mxu1  ;;  %v12580_v56 = vld [vmem:[#allocation173_spill] sm:$0xff] }
 0x65b   :  { %v4261_v54 = vpop.f32.mrf.mxu2  ;;  %4431 = vmatmul.bf16.gmra.mxu0 %v12575_v46  ;;  %4540 = vmatmul.bf16.gmra.mxu1 %v12576_v44 }
 0x65c   :  { %v11070_v33 = vadd.f32 %v4165_v13, %v4057_v31  ;;  %v4330_v34 = vpop.f32.mrf.mxu3  ;;  %v11074_v28 = vadd.f32 %v4261_v54, %v11022_v36  ;;  %v12579_v13 = vld [vmem:[#allocation27_spill] sm:$0xff] }
 0x65d   :  { %v7010_v55 = vpop.eup %7009  ;;  %v4331_v51 = vadd.f32 %v4330_v34, %v10907_v29  ;;  %v12581_v34 = vld [vmem:[#allocation8_spill] sm:$0xff] }
 0x65e   :  { %v5284_v58 = vmul.f32 %v7010_v55, %v12577_v47 }
 0x65f   :  { %7011 = vtanh.f32 %v4331_v51 }
 0x660   :  { %v5495_v9 = vadd.f32 %v5494_v2, %v5284_v58  ;;  %4372 = vmatmul.bf16.gmra.mxu3 %v12578_v38  ;;  %4639 = vmatmul.bf16.gmra.mxu2 %v12579_v13  ;;  %v12582_v58 = vld [vmem:[#allocation46_spill] sm:$0xff] }
 0x661   :  { %v4058_v30 = vpop.f32.mrf.mxu0 }
 0x662   :  { %v4059_v31 = vadd.f32 %v4058_v30, %v12580_v56  ;;  %v4167_v46 = vpop.f32.mrf.mxu1  ;;  %v12583_v56 = vld [vmem:[#allocation36_spill] sm:$0xff] }
 0x663   :  { %v4264_v36 = vpop.f32.mrf.mxu2 }
 0x664   :  { %v11082_v10 = vadd.f32 %v4167_v46, %v4059_v31  ;;  %v4333_v54 = vpop.f32.mrf.mxu3  ;;  %v11085_v29 = vadd.f32 %v4264_v36, %v11030_v16  ;;  %v12584_v36 = vld [vmem:[#allocation32_spill] sm:$0xff] }
 0x665   :  { %v7012_v57 = vpop.eup %7011  ;;  %v4334_v55 = vadd.f32 %v4333_v54, %v10918_v35 }
 0x666   :  { %v5288_v2 = vmul.f32 %v7012_v57, %v12581_v34  ;;  %v12585_v57 = vld [vmem:[#allocation74_spill] sm:$0xff] }
 0x667   :  { %7013 = vtanh.f32 %v4334_v55  ;;  %v12586_v55 = vld [vmem:[#allocation15_spill] sm:$0xff] }
 0x668   :  { %v5496_v51 = vadd.f32 %v5495_v9, %v5288_v2 }
 0x669   :  { %v4061_v44 = vpop.f32.mrf.mxu0 }
 0x66a   :  { %v4062_v13 = vadd.f32 %v4061_v44, %v12582_v58  ;;  %v4170_v38 = vpop.f32.mrf.mxu1  ;;  %v12588_v44 = vld [vmem:[#allocation175_spill] sm:$0xff] }
 0x66b   :  { %v4266_v31 = vpop.f32.mrf.mxu2  ;;  %4436 = vmatmul.bf16.gmra.mxu0 %v12583_v56  ;;  %4545 = vmatmul.bf16.gmra.mxu1 %v12584_v36 }
 0x66c   :  { %v11090_v30 = vadd.f32 %v4170_v38, %v4062_v13  ;;  %v4335_v46 = vpop.f32.mrf.mxu3  ;;  %v11094_v16 = vadd.f32 %v4266_v31, %v11042_v39  ;;  %v12587_v38 = vld [vmem:[#allocation73_spill] sm:$0xff] }
 0x66d   :  { %v7014_v47 = vpop.eup %7013  ;;  %v4336_v35 = vadd.f32 %v4335_v46, %v10927_v62  ;;  %v12589_v46 = vld [vmem:[#allocation75_spill] sm:$0xff] }
 0x66e   :  { %v5292_v9 = vmul.f32 %v7014_v47, %v12585_v57 }
 0x66f   :  { %7015 = vtanh.f32 %v4336_v35 }
 0x670   :  { %v5497_v54 = vadd.f32 %v5496_v51, %v5292_v9  ;;  %4377 = vmatmul.bf16.gmra.mxu3 %v12586_v55  ;;  %4644 = vmatmul.bf16.gmra.mxu2 %v12587_v38  ;;  %v12590_v9 = vld [vmem:[#allocation51_spill] sm:$0xff] }
 0x671   :  { %v4063_v2 = vpop.f32.mrf.mxu0 }
 0x672   :  { %v4064_v13 = vadd.f32 %v4063_v2, %v12588_v44  ;;  %v4172_v56 = vpop.f32.mrf.mxu1  ;;  %v12591_v44 = vld [vmem:[#allocation76_spill] sm:$0xff] }
 0x673   :  { %v4269_v39 = vpop.f32.mrf.mxu2 }
 0x674   :  { %v11102_v58 = vadd.f32 %v4172_v56, %v4064_v13  ;;  %v4338_v31 = vpop.f32.mrf.mxu3  ;;  %v11105_v62 = vadd.f32 %v4269_v39, %v11050_v18  ;;  %v12592_v39 = vld [vmem:[#allocation77_spill] sm:$0xff] }
 0x675   :  { %v7016_v34 = vpop.eup %7015  ;;  %v4339_v47 = vadd.f32 %v4338_v31, %v10939_v40 }
 0x676   :  { %v5296_v51 = vmul.f32 %v7016_v34, %v12589_v46  ;;  %v12593_v34 = vld [vmem:[#allocation18_spill] sm:$0xff] }
 0x677   :  { %7017 = vtanh.f32 %v4339_v47  ;;  %v12594_v47 = vld [vmem:[#allocation67_spill] sm:$0xff] }
 0x678   :  { %v5498_v35 = vadd.f32 %v5497_v54, %v5296_v51 }
 0x679   :  { %v4066_v36 = vpop.f32.mrf.mxu0 }
 0x67a   :  { %v4067_v38 = vadd.f32 %v4066_v36, %v12590_v9  ;;  %v4175_v55 = vpop.f32.mrf.mxu1  ;;  %v12596_v36 = vld [vmem:[#allocation12_spill] sm:$0xff] }
 0x67b   :  { %v4271_v13 = vpop.f32.mrf.mxu2  ;;  %4441 = vmatmul.bf16.gmra.mxu0 %v12591_v44  ;;  %4550 = vmatmul.bf16.gmra.mxu1 %v12592_v39 }
 0x67c   :  { %v11110_v2 = vadd.f32 %v4175_v55, %v4067_v38  ;;  %v4340_v56 = vpop.f32.mrf.mxu3  ;;  %v11114_v18 = vadd.f32 %v4271_v13, %v11062_v11  ;;  %v12595_v55 = vld [vmem:[#allocation78_spill] sm:$0xff] }
 0x67d   :  { %v7018_v57 = vpop.eup %7017  ;;  %v4341_v40 = vadd.f32 %v4340_v56, %v10948_v4  ;;  %v12597_v56 = vld [vmem:[#allocation11_spill] sm:$0xff] }
 0x67e   :  { %v5300_v54 = vmul.f32 %v7018_v57, %v12593_v34 }
 0x67f   :  { %7019 = vtanh.f32 %v4341_v40 }
 0x680   :  { %v5499_v31 = vadd.f32 %v5498_v35, %v5300_v54  ;;  %4382 = vmatmul.bf16.gmra.mxu3 %v12594_v47  ;;  %4649 = vmatmul.bf16.gmra.mxu2 %v12595_v55  ;;  %v12598_v54 = vld [vmem:[#allocation81_spill] sm:$0xff] }
 0x681   :  { %v4068_v51 = vpop.f32.mrf.mxu0 }
 0x682   :  { %v4069_v38 = vadd.f32 %v4068_v51, %v12596_v36  ;;  %v4177_v44 = vpop.f32.mrf.mxu1 }
 0x683   :  { %v4274_v11 = vpop.f32.mrf.mxu2 }
 0x684   :  { %v11122_v9 = vadd.f32 %v4177_v44, %v4069_v38  ;;  %v4343_v13 = vpop.f32.mrf.mxu3  ;;  %v11125_v4 = vadd.f32 %v4274_v11, %v11070_v33  ;;  %v12599_v44 = vld [vmem:[#allocation80_spill] sm:$0xff]  ;;  %v12600_v11 = vld [vmem:[#allocation82_spill] sm:$0xff] }
 0x685   :  { %v7020_v46 = vpop.eup %7019  ;;  %v4344_v57 = vadd.f32 %v4343_v13, %v10960_v3 }
 0x686   :  { %v5304_v35 = vmul.f32 %v7020_v46, %v12597_v56  ;;  %v12601_v46 = vld [vmem:[#allocation25_spill] sm:$0xff] }
 0x687   :  { %7021 = vtanh.f32 %v4344_v57  ;;  %v12602_v57 = vld [vmem:[#allocation23_spill] sm:$0xff] }
 0x688   :  { %v5500_v40 = vadd.f32 %v5499_v31, %v5304_v35  ;;  %v12603_v35 = vld [vmem:[#allocation84_spill] sm:$0xff] }
 0x689   :  { %v4407_v39 = vpop.f32.mrf.mxu0 }
 0x68a   :  { %v4408_v55 = vadd.f32 %v4407_v39, %v12598_v54  ;;  %v4516_v47 = vpop.f32.mrf.mxu1  ;;  %v12604_v39 = vld [vmem:[#allocation85_spill] sm:$0xff] }
 0x68b   :  { %v4276_v51 = vpop.f32.mrf.mxu2  ;;  %4446 = vmatmul.bf16.gmra.mxu0 %v12599_v44  ;;  %4555 = vmatmul.bf16.gmra.mxu1 %v12600_v11 }
 0x68c   :  { %v4345_v36 = vpop.f32.mrf.mxu3  ;;  %v11130_v38 = vadd.f32 %v4516_v47, %v4408_v55  ;;  %v11134_v33 = vadd.f32 %v4276_v51, %v11082_v10 }
 0x68d   :  { %v7022_v34 = vpop.eup %7021  ;;  %v4346_v3 = vadd.f32 %v4345_v36, %v10974_v23  ;;  %v12605_v36 = vld [vmem:[#allocation45_spill] sm:$0xff] }
 0x68e   :  { %v5308_v31 = vmul.f32 %v7022_v34, %v12601_v46 }
 0x68f   :  { %7023 = vtanh.f32 %v4346_v3 }
 0x690   :  { %v5501_v13 = vadd.f32 %v5500_v40, %v5308_v31  ;;  %4387 = vmatmul.bf16.gmra.mxu3 %v12602_v57  ;;  %4654 = vmatmul.bf16.gmra.mxu2 %v12603_v35  ;;  %v12606_v31 = vld [vmem:[#allocation88_spill] sm:$0xff] }
 0x691   :  { %v4409_v47 = vpop.f32.mrf.mxu0 }
 0x692   :  { %v4410_v54 = vadd.f32 %v4409_v47, %v12604_v39  ;;  %v4518_v55 = vpop.f32.mrf.mxu1 }
 0x693   :  { %v4279_v44 = vpop.f32.mrf.mxu2 }
 0x694   :  { %v4348_v56 = vpop.f32.mrf.mxu3  ;;  %v11142_v10 = vadd.f32 %v4518_v55, %v4410_v54  ;;  %v11145_v23 = vadd.f32 %v4279_v44, %v11090_v30  ;;  %v12607_v54 = vld [vmem:[#allocation87_spill] sm:$0xff]  ;;  %v12609_v44 = vld [vmem:[#allocation22_spill] sm:$0xff] }
 0x695   :  { %v7024_v51 = vpop.eup %7023  ;;  %v4349_v34 = vadd.f32 %v4348_v56, %v10985_v15  ;;  %v12608_v56 = vld [vmem:[#allocation89_spill] sm:$0xff] }
 0x696   :  { %v5312_v40 = vmul.f32 %v7024_v51, %v12605_v36 }
 0x697   :  { %7025 = vtanh.f32 %v4349_v34  ;;  %v12610_v34 = vld [vmem:[#allocation68_spill] sm:$0xff] }
 0x698   :  { %v5502_v3 = vadd.f32 %v5501_v13, %v5312_v40  ;;  %v12611_v40 = vld [vmem:[#allocation90_spill] sm:$0xff] }
 0x699   :  { %v4412_v11 = vpop.f32.mrf.mxu0 }
 0x69a   :  { %v4413_v35 = vadd.f32 %v4412_v11, %v12606_v31  ;;  %v4521_v57 = vpop.f32.mrf.mxu1  ;;  %v12612_v11 = vld [vmem:[#allocation92_spill] sm:$0xff] }
 0x69b   :  { %v4281_v47 = vpop.f32.mrf.mxu2  ;;  %4451 = vmatmul.bf16.gmra.mxu0 %v12607_v54  ;;  %4560 = vmatmul.bf16.gmra.mxu1 %v12608_v56  ;;  %v12613_v56 = vld [vmem:[#allocation94_spill] sm:$0xff] }
 0x69c   :  { %v4350_v39 = vpop.f32.mrf.mxu3  ;;  %v11150_v46 = vadd.f32 %v4521_v57, %v4413_v35  ;;  %v11154_v30 = vadd.f32 %v4281_v47, %v11102_v58 }
 0x69d   :  { %v7026_v55 = vpop.eup %7025  ;;  %v4351_v15 = vadd.f32 %v4350_v39, %v10994_v45 }
 0x69e   :  { %v5316_v13 = vmul.f32 %v7026_v55, %v12609_v44 }
 0x69f   :  { %7027 = vtanh.f32 %v4351_v15 }
 0x6a0   :  { %v5503_v51 = vadd.f32 %v5502_v3, %v5316_v13  ;;  %4392 = vmatmul.bf16.gmra.mxu3 %v12610_v34  ;;  %4659 = vmatmul.bf16.gmra.mxu2 %v12611_v40 }
 0x6a1   :  { %v4414_v57 = vpop.f32.mrf.mxu0 }
 0x6a2   :  { %v4415_v31 = vadd.f32 %v4414_v57, %v12612_v11  ;;  %v4523_v35 = vpop.f32.mrf.mxu1 }
 0x6a3   :  { %v4284_v54 = vpop.f32.mrf.mxu2 }
 0x6a4   :  { %v4353_v36 = vpop.f32.mrf.mxu3  ;;  %v11162_v58 = vadd.f32 %v4523_v35, %v4415_v31  ;;  %v11165_v45 = vadd.f32 %v4284_v54, %v11110_v2  ;;  %v12614_v31 = vld [vmem:[#allocation93_spill] sm:$0xff] }
 0x6a5   :  { %v7028_v47 = vpop.eup %7027  ;;  %v4354_v39 = vadd.f32 %v4353_v36, %v11005_v6  ;;  %v12615_v54 = vld [vmem:[#allocation97_spill] sm:$0xff] }
 0x6a6   :  { %v5320_v3 = vmul.f32 %v7028_v47, %v12474_v42  ;;  %v12616_v47 = vld [vmem:[#allocation98_spill] sm:$0xff] }
 0x6a7   :  { %7029 = vtanh.f32 %v4354_v39 }
 0x6a8   :  { %v5504_v55 = vadd.f32 %v5503_v51, %v5320_v3  ;;  %v12617_v3 = vld [vmem:[#allocation99_spill] sm:$0xff] }
 0x6a9   :  { %v4417_v15 = vpop.f32.mrf.mxu0 }
 0x6aa   :  { %v4418_v13 = vadd.f32 %v4417_v15, %v12613_v56  ;;  %v4526_v40 = vpop.f32.mrf.mxu1 }
 0x6ab   :  { %v4286_v57 = vpop.f32.mrf.mxu2  ;;  %4456 = vmatmul.bf16.gmra.mxu0 %v12614_v31  ;;  %4565 = vmatmul.bf16.gmra.mxu1 %v12477_v59 }
 0x6ac   :  { %v4355_v11 = vpop.f32.mrf.mxu3  ;;  %v11170_v34 = vadd.f32 %v4526_v40, %v4418_v13  ;;  %v11174_v2 = vadd.f32 %v4286_v57, %v11122_v9 }
 0x6ad   :  { %v7030_v35 = vpop.eup %7029  ;;  %v4356_v6 = vadd.f32 %v4355_v11, %v11014_v63 }
 0x6ae   :  { %v5324_v36 = vmul.f32 %v7030_v35, %v12478_v26 }
 0x6af   :  { %7031 = vtanh.f32 %v4356_v6 }
 0x6b0   :  { %v5505_v51 = vadd.f32 %v5504_v55, %v5324_v36  ;;  %4664 = vmatmul.bf16.gmra.mxu2 %v12615_v54  ;;  %4733 = vmatmul.bf16.vlgmr.msra.gmra.mxu3 %v12616_v47 }
 0x6b1   :  { %v4419_v39 = vpop.f32.mrf.mxu0 }
 0x6b2   :  { %v4420_v15 = vadd.f32 %v4419_v39, %v12617_v3  ;;  %v4528_v56 = vpop.f32.mrf.mxu1  ;;  %v12618_v3 = vld [vmem:[#allocation103_spill] sm:$0xff] }
 0x6b3   :  { %v4625_v9 = vpop.f32.mrf.mxu2 }
 0x6b4   :  { %v4358_v13 = vpop.f32.mrf.mxu3  ;;  %v11182_v40 = vadd.f32 %v4528_v56, %v4420_v15  ;;  %v11186_v59 = vadd.f32 %v4625_v9, %v11130_v38  ;;  %v12619_v15 = vld [vmem:[#allocation50_spill] sm:$0xff] }
 0x6b5   :  { %v7032_v57 = vpop.eup %7031  ;;  %v4359_v63 = vadd.f32 %v4358_v13, %v11025_v22  ;;  %v12621_v13 = vld [vmem:[#allocation105_spill] sm:$0xff] }
 0x6b6   :  { %v5328_v55 = vmul.f32 %v7032_v57, %v12481_v19  ;;  %v12622_v57 = vld [vmem:[#allocation107_spill] sm:$0xff] }
 0x6b7   :  { %7033 = vtanh.f32 %v4359_v63 }
 0x6b8   :  { %v5506_v11 = vadd.f32 %v5505_v51, %v5328_v55 }
 0x6b9   :  { %v4422_v31 = vpop.f32.mrf.mxu0 }
 0x6ba   :  { %v4423_v35 = vadd.f32 %v4422_v31, %v12337_v21  ;;  %v4531_v6 = vpop.f32.mrf.mxu1  ;;  %v12620_v21 = vld [vmem:[#allocation104_spill] sm:$0xff] }
 0x6bb   :  { %v4627_v47 = vpop.f32.mrf.mxu2  ;;  %4461 = vmatmul.bf16.gmra.mxu0 %v12338_v37  ;;  %4570 = vmatmul.bf16.gmra.mxu1 %v12618_v3 }
 0x6bc   :  { %v4360_v36 = vpop.f32.mrf.mxu3  ;;  %v11190_v54 = vadd.f32 %v4531_v6, %v4423_v35  ;;  %v11195_v38 = vadd.f32 %v4627_v47, %v11142_v10 }
 0x6bd   :  { %v7034_v39 = vpop.eup %7033  ;;  %v4361_v22 = vadd.f32 %v4360_v36, %v11034_v7  ;;  %v12623_v36 = vld [vmem:[#allocation163_spill] sm:$0xff] }
 0x6be   :  { %v5332_v51 = vmul.f32 %v7034_v39, %v12619_v15 }
 0x6bf   :  { %7035 = vtanh.f32 %v4361_v22  ;;  %v12624_v22 = vld [vmem:[#allocation110_spill] sm:$0xff] }
 0x6c0   :  { %v5507_v56 = vadd.f32 %v5506_v11, %v5332_v51  ;;  %4669 = vmatmul.bf16.gmra.mxu2 %v12620_v21  ;;  %4738 = vmatmul.bf16.gmra.mxu3 %v12621_v13 }
 0x6c1   :  { %v4424_v9 = vpop.f32.mrf.mxu0 }
 0x6c2   :  { %v4425_v63 = vadd.f32 %v4424_v9, %v12622_v57  ;;  %v4533_v37 = vpop.f32.mrf.mxu1  ;;  %v12625_v57 = vld [vmem:[#allocation109_spill] sm:$0xff] }
 0x6c3   :  { %v4630_v7 = vpop.f32.mrf.mxu2 }
 0x6c4   :  { %v4363_v55 = vpop.f32.mrf.mxu3  ;;  %v11202_v31 = vadd.f32 %v4533_v37, %v4425_v63  ;;  %v11206_v6 = vadd.f32 %v4630_v7, %v11150_v46  ;;  %v12626_v37 = vld [vmem:[#allocation111_spill] sm:$0xff] }
 0x6c5   :  { %v7036_v10 = vpop.eup %7035  ;;  %v4364_v35 = vadd.f32 %v4363_v55, %v11045_v1  ;;  %v12627_v55 = vld [vmem:[#allocation169_spill] sm:$0xff] }
 0x6c6   :  { %v5336_v11 = vmul.f32 %v7036_v10, %v12623_v36  ;;  %v12628_v10 = vld [vmem:[#allocation112_spill] sm:$0xff] }
 0x6c7   :  { %7037 = vtanh.f32 %v4364_v35  ;;  %v12629_v35 = vld [vmem:[#allocation113_spill] sm:$0xff] }
 0x6c8   :  { %v5508_v47 = vadd.f32 %v5507_v56, %v5336_v11 }
 0x6c9   :  { %v4427_v39 = vpop.f32.mrf.mxu0 }
 0x6ca   :  { %v4428_v3 = vadd.f32 %v4427_v39, %v12624_v22  ;;  %v4536_v51 = vpop.f32.mrf.mxu1  ;;  %v12630_v39 = vld [vmem:[#allocation114_spill] sm:$0xff] }
 0x6cb   :  { %v4632_v9 = vpop.f32.mrf.mxu2  ;;  %4466 = vmatmul.bf16.gmra.mxu0 %v12625_v57  ;;  %4575 = vmatmul.bf16.gmra.mxu1 %v12626_v37 }
 0x6cc   :  { %v4365_v21 = vpop.f32.mrf.mxu3  ;;  %v11210_v13 = vadd.f32 %v4536_v51, %v4428_v3  ;;  %v11215_v46 = vadd.f32 %v4632_v9, %v11162_v58 }
 0x6cd   :  { %v7038_v63 = vpop.eup %7037  ;;  %v4366_v1 = vadd.f32 %v4365_v21, %v11054_v52 }
 0x6ce   :  { %v5340_v56 = vmul.f32 %v7038_v63, %v12627_v55  ;;  %v12631_v63 = vld [vmem:[#allocation40_spill] sm:$0xff] }
 0x6cf   :  { %7039 = vtanh.f32 %v4366_v1 }
 0x6d0   :  { %v5509_v7 = vadd.f32 %v5508_v47, %v5340_v56  ;;  %4674 = vmatmul.bf16.gmra.mxu2 %v12628_v10  ;;  %4743 = vmatmul.bf16.gmra.mxu3 %v12629_v35  ;;  %v12632_v56 = vld [vmem:[#allocation116_spill] sm:$0xff] }
 0x6d1   :  { %v4429_v11 = vpop.f32.mrf.mxu0 }
 0x6d2   :  { %v4430_v22 = vadd.f32 %v4429_v11, %v12630_v39  ;;  %v4538_v3 = vpop.f32.mrf.mxu1 }
 0x6d3   :  { %v4635_v52 = vpop.f32.mrf.mxu2 }
 0x6d4   :  { %v4368_v51 = vpop.f32.mrf.mxu3  ;;  %v11222_v57 = vadd.f32 %v4538_v3, %v4430_v22  ;;  %v11226_v9 = vadd.f32 %v4635_v52, %v11170_v34  ;;  %v12633_v3 = vld [vmem:[#allocation115_spill] sm:$0xff]  ;;  %v12635_v52 = vld [vmem:[#allocation176_spill] sm:$0xff] }
 0x6d5   :  { %v7040_v58 = vpop.eup %7039  ;;  %v4369_v21 = vadd.f32 %v4368_v51, %v11065_v14  ;;  %v12634_v51 = vld [vmem:[#allocation117_spill] sm:$0xff] }
 0x6d6   :  { %v5344_v47 = vmul.f32 %v7040_v58, %v12631_v63 }
 0x6d7   :  { %7041 = vtanh.f32 %v4369_v21  ;;  %v12636_v21 = vld [vmem:[#allocation119_spill] sm:$0xff] }
 0x6d8   :  { %v5510_v1 = vadd.f32 %v5509_v7, %v5344_v47  ;;  %v12637_v47 = vld [vmem:[#allocation120_spill] sm:$0xff] }
 0x6d9   :  { %v4432_v37 = vpop.f32.mrf.mxu0 }
 0x6da   :  { %v4433_v10 = vadd.f32 %v4432_v37, %v12632_v56  ;;  %v4541_v35 = vpop.f32.mrf.mxu1  ;;  %v12638_v56 = vld [vmem:[#allocation121_spill] sm:$0xff] }
 0x6db   :  { %v4637_v22 = vpop.f32.mrf.mxu2  ;;  %4471 = vmatmul.bf16.gmra.mxu0 %v12633_v3  ;;  %4580 = vmatmul.bf16.gmra.mxu1 %v12634_v51 }
 0x6dc   :  { %v4370_v11 = vpop.f32.mrf.mxu3  ;;  %v11230_v39 = vadd.f32 %v4541_v35, %v4433_v10  ;;  %v11235_v34 = vadd.f32 %v4637_v22, %v11182_v40 }
 0x6dd   :  { %v7042_v55 = vpop.eup %7041  ;;  %v4371_v14 = vadd.f32 %v4370_v11, %v11074_v28 }
 0x6de   :  { %v5348_v7 = vmul.f32 %v7042_v55, %v12635_v52  ;;  %v12639_v55 = vld [vmem:[#allocation178_spill] sm:$0xff] }
 0x6df   :  { %7043 = vtanh.f32 %v4371_v14 }
 0x6e0   :  { %v5511_v58 = vadd.f32 %v5510_v1, %v5348_v7  ;;  %4679 = vmatmul.bf16.gmra.mxu2 %v12636_v21  ;;  %4748 = vmatmul.bf16.gmra.mxu3 %v12637_v47  ;;  %v12640_v7 = vld [vmem:[#allocation124_spill] sm:$0xff] }
 0x6e1   :  { %v4434_v37 = vpop.f32.mrf.mxu0 }
 0x6e2   :  { %v4435_v10 = vadd.f32 %v4434_v37, %v12638_v56  ;;  %v4543_v35 = vpop.f32.mrf.mxu1 }
 0x6e3   :  { %v4640_v28 = vpop.f32.mrf.mxu2 }
 0x6e4   :  { %v4373_v3 = vpop.f32.mrf.mxu3  ;;  %v11242_v63 = vadd.f32 %v4543_v35, %v4435_v10  ;;  %v11246_v22 = vadd.f32 %v4640_v28, %v11190_v54  ;;  %v12641_v35 = vld [vmem:[#allocation123_spill] sm:$0xff] }
 0x6e5   :  { %v7044_v40 = vpop.eup %7043  ;;  %v4374_v11 = vadd.f32 %v4373_v3, %v11085_v29  ;;  %v12642_v3 = vld [vmem:[#allocation125_spill] sm:$0xff]  ;;  %v12643_v28 = vld [vmem:[#allocation7_spill] sm:$0xff] }
 0x6e6   :  { %v5352_v1 = vmul.f32 %v7044_v40, %v12639_v55 }
 0x6e7   :  { %7045 = vtanh.f32 %v4374_v11  ;;  %v12644_v11 = vld [vmem:[#allocation128_spill] sm:$0xff] }
 0x6e8   :  { %v5512_v14 = vadd.f32 %v5511_v58, %v5352_v1  ;;  %v12645_v1 = vld [vmem:[#allocation129_spill] sm:$0xff] }
 0x6e9   :  { %v4437_v51 = vpop.f32.mrf.mxu0 }
 0x6ea   :  { %v4438_v21 = vadd.f32 %v4437_v51, %v12640_v7  ;;  %v4546_v47 = vpop.f32.mrf.mxu1  ;;  %v12646_v7 = vld [vmem:[#allocation127_spill] sm:$0xff] }
 0x6eb   :  { %v4642_v10 = vpop.f32.mrf.mxu2  ;;  %4476 = vmatmul.bf16.gmra.mxu0 %v12641_v35  ;;  %4585 = vmatmul.bf16.gmra.mxu1 %v12642_v3 }
 0x6ec   :  { %v4375_v37 = vpop.f32.mrf.mxu3  ;;  %v11250_v56 = vadd.f32 %v4546_v47, %v4438_v21  ;;  %v11255_v54 = vadd.f32 %v4642_v10, %v11202_v31 }
 0x6ed   :  { %v7046_v52 = vpop.eup %7045  ;;  %v4376_v29 = vadd.f32 %v4375_v37, %v11094_v16 }
 0x6ee   :  { %v5356_v58 = vmul.f32 %v7046_v52, %v12643_v28  ;;  %v12647_v52 = vld [vmem:[#allocation168_spill] sm:$0xff] }
 0x6ef   :  { %7047 = vtanh.f32 %v4376_v29 }
 0x6f0   :  { %v5513_v40 = vadd.f32 %v5512_v14, %v5356_v58  ;;  %4684 = vmatmul.bf16.gmra.mxu2 %v12644_v11  ;;  %4753 = vmatmul.bf16.gmra.mxu3 %v12645_v1  ;;  %v12648_v58 = vld [vmem:[#allocation126_spill] sm:$0xff] }
 0x6f1   :  { %v4439_v51 = vpop.f32.mrf.mxu0 }
 0x6f2   :  { %v4440_v21 = vadd.f32 %v4439_v51, %v12646_v7  ;;  %v4548_v47 = vpop.f32.mrf.mxu1 }
 0x6f3   :  { %v4645_v16 = vpop.f32.mrf.mxu2 }
 0x6f4   :  { %v4378_v35 = vpop.f32.mrf.mxu3  ;;  %v11262_v55 = vadd.f32 %v4548_v47, %v4440_v21  ;;  %v11266_v10 = vadd.f32 %v4645_v16, %v11210_v13  ;;  %v12649_v47 = vld [vmem:[#allocation134_spill] sm:$0xff] }
 0x6f5   :  { %v7048_v31 = vpop.eup %7047  ;;  %v4379_v37 = vadd.f32 %v4378_v35, %v11105_v62  ;;  %v12650_v35 = vld [vmem:[#allocation135_spill] sm:$0xff]  ;;  %v12651_v16 = vld [vmem:[#allocation6_spill] sm:$0xff] }
 0x6f6   :  { %v5360_v14 = vmul.f32 %v7048_v31, %v12647_v52 }
 0x6f7   :  { %7049 = vtanh.f32 %v4379_v37  ;;  %v12652_v37 = vld [vmem:[#allocation138_spill] sm:$0xff] }
 0x6f8   :  { %v5514_v29 = vadd.f32 %v5513_v40, %v5360_v14  ;;  %v12653_v14 = vld [vmem:[#allocation139_spill] sm:$0xff] }
 0x6f9   :  { %v4442_v3 = vpop.f32.mrf.mxu0 }
 0x6fa   :  { %v4443_v11 = vadd.f32 %v4442_v3, %v12648_v58  ;;  %v4551_v1 = vpop.f32.mrf.mxu1  ;;  %v12654_v58 = vld [vmem:[#allocation131_spill] sm:$0xff] }
 0x6fb   :  { %v4647_v21 = vpop.f32.mrf.mxu2  ;;  %4481 = vmatmul.bf16.gmra.mxu0 %v12649_v47  ;;  %4590 = vmatmul.bf16.gmra.mxu1 %v12650_v35 }
 0x6fc   :  { %v4380_v51 = vpop.f32.mrf.mxu3  ;;  %v11270_v7 = vadd.f32 %v4551_v1, %v4443_v11  ;;  %v11275_v13 = vadd.f32 %v4647_v21, %v11222_v57 }
 0x6fd   :  { %v7050_v28 = vpop.eup %7049  ;;  %v4381_v62 = vadd.f32 %v4380_v51, %v11114_v18 }
 0x6fe   :  { %v5364_v40 = vmul.f32 %v7050_v28, %v12651_v16  ;;  %v12655_v28 = vld [vmem:[#allocation161_spill] sm:$0xff] }
 0x6ff   :  { %7051 = vtanh.f32 %v4381_v62 }
 0x700   :  { %v5515_v31 = vadd.f32 %v5514_v29, %v5364_v40  ;;  %4689 = vmatmul.bf16.gmra.mxu2 %v12652_v37  ;;  %4758 = vmatmul.bf16.gmra.mxu3 %v12653_v14  ;;  %v12656_v40 = vld [vmem:[#allocation133_spill] sm:$0xff] }
 0x701   :  { %v4444_v3 = vpop.f32.mrf.mxu0 }
 0x702   :  { %v4445_v11 = vadd.f32 %v4444_v3, %v12654_v58  ;;  %v4553_v1 = vpop.f32.mrf.mxu1 }
 0x703   :  { %v4650_v18 = vpop.f32.mrf.mxu2 }
 0x704   :  { %v4383_v47 = vpop.f32.mrf.mxu3  ;;  %v11282_v52 = vadd.f32 %v4553_v1, %v4445_v11  ;;  %v11286_v21 = vadd.f32 %v4650_v18, %v11230_v39  ;;  %v12657_v1 = vld [vmem:[#allocation145_spill] sm:$0xff] }
 0x705   :  { %v7052_v57 = vpop.eup %7051  ;;  %v4384_v51 = vadd.f32 %v4383_v47, %v11125_v4  ;;  %v12658_v47 = vld [vmem:[#allocation147_spill] sm:$0xff]  ;;  %v12659_v18 = vld [vmem:[#allocation17_spill] sm:$0xff] }
 0x706   :  { %v5368_v29 = vmul.f32 %v7052_v57, %v12655_v28 }
 0x707   :  { %7053 = vtanh.f32 %v4384_v51  ;;  %v12660_v51 = vld [vmem:[#allocation148_spill] sm:$0xff] }
 0x708   :  { %v5516_v62 = vadd.f32 %v5515_v31, %v5368_v29  ;;  %v12661_v29 = vld [vmem:[#allocation149_spill] sm:$0xff] }
 0x709   :  { %v4447_v35 = vpop.f32.mrf.mxu0 }
 0x70a   :  { %v4448_v37 = vadd.f32 %v4447_v35, %v12656_v40  ;;  %v4556_v14 = vpop.f32.mrf.mxu1  ;;  %v12662_v40 = vld [vmem:[#allocation132_spill] sm:$0xff] }
 0x70b   :  { %v4652_v11 = vpop.f32.mrf.mxu2  ;;  %4486 = vmatmul.bf16.gmra.mxu0 %v12657_v1  ;;  %4595 = vmatmul.bf16.gmra.mxu1 %v12658_v47 }
 0x70c   :  { %v4385_v3 = vpop.f32.mrf.mxu3  ;;  %v11290_v58 = vadd.f32 %v4556_v14, %v4448_v37  ;;  %v11295_v39 = vadd.f32 %v4652_v11, %v11242_v63 }
 0x70d   :  { %v7054_v16 = vpop.eup %7053  ;;  %v4386_v4 = vadd.f32 %v4385_v3, %v11134_v33 }
 0x70e   :  { %v5372_v31 = vmul.f32 %v7054_v16, %v12659_v18  ;;  %v12663_v16 = vld [vmem:[#allocation154_spill] sm:$0xff] }
 0x70f   :  { %7055 = vtanh.f32 %v4386_v4 }
 0x710   :  { %v5517_v57 = vadd.f32 %v5516_v62, %v5372_v31  ;;  %4694 = vmatmul.bf16.gmra.mxu2 %v12660_v51  ;;  %4763 = vmatmul.bf16.gmra.mxu3 %v12661_v29  ;;  %v12664_v31 = vld [vmem:[#allocation137_spill] sm:$0xff] }
 0x711   :  { %v4449_v35 = vpop.f32.mrf.mxu0 }
 0x712   :  { %v4450_v37 = vadd.f32 %v4449_v35, %v12662_v40  ;;  %v4558_v14 = vpop.f32.mrf.mxu1 }
 0x713   :  { %v4655_v33 = vpop.f32.mrf.mxu2 }
 0x714   :  { %v4388_v1 = vpop.f32.mrf.mxu3  ;;  %v11302_v28 = vadd.f32 %v4558_v14, %v4450_v37  ;;  %v11306_v11 = vadd.f32 %v4655_v33, %v11250_v56  ;;  %v12665_v14 = vld [vmem:[#allocation155_spill] sm:$0xff]  ;;  %v12667_v33 = vld [vmem:[#allocation16_spill] sm:$0xff] }
 0x715   :  { %v7056_v63 = vpop.eup %7055  ;;  %v4389_v3 = vadd.f32 %v4388_v1, %v11145_v23  ;;  %v12666_v1 = vld [vmem:[#allocation156_spill] sm:$0xff] }
 0x716   :  { %v5376_v62 = vmul.f32 %v7056_v63, %v12663_v16 }
 0x717   :  { %7057 = vtanh.f32 %v4389_v3  ;;  %v12668_v3 = vld [vmem:[#allocation159_spill] sm:$0xff] }
 0x718   :  { %v5518_v4 = vadd.f32 %v5517_v57, %v5376_v62  ;;  %v12669_v62 = vld [vmem:[#allocation160_spill] sm:$0xff] }
 0x719   :  { %v4452_v47 = vpop.f32.mrf.mxu0 }
 0x71a   :  { %v4453_v51 = vadd.f32 %v4452_v47, %v12664_v31  ;;  %v4561_v29 = vpop.f32.mrf.mxu1  ;;  %v12670_v31 = vld [vmem:[#allocation141_spill] sm:$0xff] }
 0x71b   :  { %v4657_v37 = vpop.f32.mrf.mxu2  ;;  %4491 = vmatmul.bf16.gmra.mxu0 %v12665_v14  ;;  %4600 = vmatmul.bf16.gmra.mxu1 %v12666_v1 }
 0x71c   :  { %v4390_v35 = vpop.f32.mrf.mxu3  ;;  %v11310_v40 = vadd.f32 %v4561_v29, %v4453_v51  ;;  %v11315_v56 = vadd.f32 %v4657_v37, %v11262_v55 }
 0x71d   :  { %v7058_v18 = vpop.eup %7057  ;;  %v4391_v23 = vadd.f32 %v4390_v35, %v11154_v30 }
 0x71e   :  { %v5380_v57 = vmul.f32 %v7058_v18, %v12667_v33  ;;  %v12671_v18 = vld [vmem:[#allocation150_spill] sm:$0xff] }
 0x71f   :  { %7059 = vtanh.f32 %v4391_v23 }
 0x720   :  { %v5519_v63 = vadd.f32 %v5518_v4, %v5380_v57  ;;  %4699 = vmatmul.bf16.gmra.mxu2 %v12668_v3  ;;  %4768 = vmatmul.bf16.gmra.mxu3 %v12669_v62  ;;  %v12672_v57 = vld [vmem:[#allocation140_spill] sm:$0xff] }
 0x721   :  { %v4454_v47 = vpop.f32.mrf.mxu0 }
 0x722   :  { %v4455_v51 = vadd.f32 %v4454_v47, %v12670_v31  ;;  %v4563_v29 = vpop.f32.mrf.mxu1 }
 0x723   :  { %v4660_v30 = vpop.f32.mrf.mxu2 }
 0x724   :  { %v4393_v14 = vpop.f32.mrf.mxu3  ;;  %v11322_v16 = vadd.f32 %v4563_v29, %v4455_v51  ;;  %v11326_v37 = vadd.f32 %v4660_v30, %v11270_v7  ;;  %v12673_v29 = vld [vmem:[#allocation166_spill] sm:$0xff]  ;;  %v12675_v30 = vld [vmem:[#allocation21_spill] sm:$0xff] }
 0x725   :  { %v7060_v55 = vpop.eup %7059  ;;  %v4394_v35 = vadd.f32 %v4393_v14, %v11165_v45  ;;  %v12674_v14 = vld [vmem:[#allocation167_spill] sm:$0xff] }
 0x726   :  { %v5384_v4 = vmul.f32 %v7060_v55, %v12671_v18 }
 0x727   :  { %7061 = vtanh.f32 %v4394_v35  ;;  %v12676_v35 = vld [vmem:[#allocation170_spill] sm:$0xff] }
 0x728   :  { %v5520_v23 = vadd.f32 %v5519_v63, %v5384_v4  ;;  %v12677_v4 = vld [vmem:[#allocation171_spill] sm:$0xff] }
 0x729   :  { %v4457_v1 = vpop.f32.mrf.mxu0 }
 0x72a   :  { %v4458_v3 = vadd.f32 %v4457_v1, %v12672_v57  ;;  %v4566_v62 = vpop.f32.mrf.mxu1  ;;  %v12678_v57 = vld [vmem:[#allocation143_spill] sm:$0xff] }
 0x72b   :  { %v4662_v51 = vpop.f32.mrf.mxu2  ;;  %4496 = vmatmul.bf16.gmra.mxu0 %v12673_v29  ;;  %4605 = vmatmul.bf16.gmra.mxu1 %v12674_v14 }
 0x72c   :  { %v4395_v47 = vpop.f32.mrf.mxu3  ;;  %v11330_v31 = vadd.f32 %v4566_v62, %v4458_v3  ;;  %v11335_v7 = vadd.f32 %v4662_v51, %v11282_v52 }
 0x72d   :  { %v7062_v33 = vpop.eup %7061  ;;  %v4396_v45 = vadd.f32 %v4395_v47, %v11174_v2 }
 0x72e   :  { %v5388_v63 = vmul.f32 %v7062_v33, %v12675_v30 }
 0x72f   :  { %7063 = vtanh.f32 %v4396_v45 }
 0x730   :  { %v5521_v55 = vadd.f32 %v5520_v23, %v5388_v63  ;;  %4704 = vmatmul.bf16.gmra.mxu2 %v12676_v35  ;;  %4773 = vmatmul.bf16.gmra.mxu3 %v12677_v4 }
 0x731   :  { %v4459_v1 = vpop.f32.mrf.mxu0 }
 0x732   :  { %v4460_v3 = vadd.f32 %v4459_v1, %v12678_v57  ;;  %v4568_v62 = vpop.f32.mrf.mxu1 }
 0x733   :  { %v4665_v2 = vpop.f32.mrf.mxu2 }
 0x734   :  { %v11342_v29 = vadd.f32 %v4568_v62, %v4460_v3  ;;  %v4734_v47 = vpop.f32.mrf.mxu3  ;;  %v11345_v51 = vadd.f32 %v4665_v2, %v11290_v58  ;;  %v12679_v3 = vld [vmem:[#allocation42_spill] sm:$0xff]  ;;  %v12682_v2 = vld [vmem:[#allocation177_spill] sm:$0xff] }
 0x735   :  { %v7064_v52 = vpop.eup %7063  ;;  %v4735_v33 = vadd.f32 %v4734_v47, %v11186_v59  ;;  %v12680_v62 = vld [vmem:[#allocation174_spill] sm:$0xff]  ;;  %v12683_v47 = vld [vmem:[#allocation144_spill] sm:$0xff] }
 0x736   :  { %v5392_v23 = vmul.f32 %v7064_v52, %v12538_v12 }
 0x737   :  { %7065 = vtanh.f32 %v4735_v33 }
 0x738   :  { %v11349_v45 = vadd.f32 %v5521_v55, %v5392_v23  ;;  %v12681_v55 = vld [vmem:[#allocation54_spill] sm:$0xff] }
 0x739   :  { %v4462_v14 = vpop.f32.mrf.mxu0 }
 0x73a   :  { %v4463_v63 = vadd.f32 %v4462_v14, %v12539_v17  ;;  %v4571_v35 = vpop.f32.mrf.mxu1 }
 0x73b   :  { %v4667_v1 = vpop.f32.mrf.mxu2  ;;  %4501 = vmatmul.bf16.gmra.mxu0 %v12679_v3  ;;  %4610 = vmatmul.bf16.gmra.mxu1 %v12680_v62 }
 0x73c   :  { %v11352_v4 = vadd.f32 %v4571_v35, %v4463_v63  ;;  %v4736_v57 = vpop.f32.mrf.mxu3  ;;  %v11356_v58 = vadd.f32 %v4667_v1, %v11302_v28 }
 0x73d   :  { %v4737_v59 = vadd.f32 %v4736_v57, %v11195_v38  ;;  %v7066_v14 = vpop.eup %7065 }
 0x73e   :  { %v5237_v57 = vmul.f32 %v7066_v14, %v12408_v25 }
 0x73f   :  { %7067 = vtanh.f32 %v4737_v59 }
 0x740   :  { %4709 = vmatmul.bf16.gmra.mxu2 %v12681_v55  ;;  %4778 = vmatmul.bf16.gmra.mxu3 %v12682_v2 }
 0x741   :  { %v4464_v17 = vpop.f32.mrf.mxu0 }
 0x742   :  { %v4465_v52 = vadd.f32 %v4464_v17, %v12683_v47  ;;  %v4573_v23 = vpop.f32.mrf.mxu1 }
 0x743   :  { %v4670_v33 = vpop.f32.mrf.mxu2 }
 0x744   :  { %v11363_v63 = vadd.f32 %v4573_v23, %v4465_v52  ;;  %v4739_v35 = vpop.f32.mrf.mxu3  ;;  %v11366_v1 = vadd.f32 %v4670_v33, %v11310_v40 }
 0x745   :  { %v7068_v28 = vpop.eup %7067  ;;  %v4740_v38 = vadd.f32 %v4739_v35, %v11206_v6 }
 0x746   :  { %v5241_v3 = vmul.f32 %v7068_v28, %v12409_v61 }
 0x747   :  { %7069 = vtanh.f32 %v4740_v38 }
 0x748   :  { %v5529_v59 = vadd.f32 %v5241_v3, %v5237_v57 }
 0x749   :  { %v4467_v62 = vpop.f32.mrf.mxu0 }
 0x74a   :  { %v4468_v55 = vadd.f32 %v4467_v62, %v12410_v53  ;;  %v4576_v2 = vpop.f32.mrf.mxu1 }
 0x74b   :  { %v4672_v47 = vpop.f32.mrf.mxu2 }
 0x74c   :  { %v11372_v17 = vadd.f32 %v4576_v2, %v4468_v55  ;;  %v4741_v52 = vpop.f32.mrf.mxu3  ;;  %v11375_v40 = vadd.f32 %v4672_v47, %v11322_v16 }
 0x74d   :  { %v7070_v23 = vpop.eup %7069  ;;  %v4742_v6 = vadd.f32 %v4741_v52, %v11215_v46 }
 0x74e   :  { %v5245_v25 = vmul.f32 %v7070_v23, %v9926_v60 }
 0x74f   :  { %7071 = vtanh.f32 %v4742_v6 }
 0x750   :  { %v5530_v61 = vadd.f32 %v5529_v59, %v5245_v25  ;;  %4714 = vmatmul.bf16.gmra.mxu2 %v12547_v43  ;;  %4783 = vmatmul.bf16.gmra.mxu3 %v12548_v24 }
 0x751   :  { %v4469_v53 = vpop.f32.mrf.mxu0 }
 0x752   :  { %v4470_v14 = vadd.f32 %v4469_v53, %v12549_v0  ;;  %v4578_v33 = vpop.f32.mrf.mxu1 }
 0x753   :  { %v4675_v28 = vpop.f32.mrf.mxu2 }
 0x754   :  { %v4579_v35 = vadd.f32 %v4578_v33, %v4470_v14  ;;  %v4744_v38 = vpop.f32.mrf.mxu3  ;;  %v11383_v16 = vadd.f32 %v4675_v28, %v11330_v31 }
 0x755   :  { %v7072_v57 = vpop.eup %7071  ;;  %v4745_v46 = vadd.f32 %v4744_v38, %v11226_v9 }
 0x756   :  { %v5249_v60 = vmul.f32 %v7072_v57, %v9948_v20 }
 0x757   :  { %7073 = vtanh.f32 %v4745_v46 }
 0x758   :  { %v5531_v3 = vadd.f32 %v5530_v61, %v5249_v60 }
 0x759   :  { %v4472_v43 = vpop.f32.mrf.mxu0 }
 0x75a   :  { %v4473_v24 = vadd.f32 %v4472_v43, %v12412_v41  ;;  %v4581_v59 = vpop.f32.mrf.mxu1 }
 0x75b   :  { %v4677_v0 = vpop.f32.mrf.mxu2 }
 0x75c   :  { %v4582_v62 = vadd.f32 %v4581_v59, %v4473_v24  ;;  %v4746_v55 = vpop.f32.mrf.mxu3  ;;  %v11389_v47 = vadd.f32 %v4677_v0, %v11342_v29  ;;  %v12685_v0 = vld [vmem:[#allocation49_spill] sm:$0xff] }
 0x75d   :  { %v7074_v2 = vpop.eup %7073  ;;  %v4747_v31 = vadd.f32 %v4746_v55, %v11235_v34 }
 0x75e   :  { %v5253_v52 = vmul.f32 %v7074_v2, %v9985_v32 }
 0x75f   :  { %7075 = vtanh.f32 %v4747_v31 }
 0x760   :  { %v5532_v9 = vadd.f32 %v5531_v3, %v5253_v52  ;;  %4719 = vmatmul.bf16.gmra.mxu2 %v9992_v49  ;;  %4788 = vmatmul.bf16.gmra.mxu3 %v9994_v5 }
 0x761   :  { %v4474_v20 = vpop.f32.mrf.mxu0 }
 0x762   :  { %v4475_v41 = vadd.f32 %v4474_v20, %v12550_v48  ;;  %v4583_v23 = vpop.f32.mrf.mxu1 }
 0x763   :  { %v4680_v25 = vpop.f32.mrf.mxu2 }
 0x764   :  { %v4584_v6 = vadd.f32 %v4583_v23, %v4475_v41  ;;  %v4749_v61 = vpop.f32.mrf.mxu3  ;;  %v11397_v29 = vadd.f32 %v4680_v25, %v11352_v4  ;;  %v12687_v23 = vld [vmem:[#allocation57_spill] sm:$0xff] }
 0x765   :  { %v7076_v53 = vpop.eup %7075  ;;  %v4750_v34 = vadd.f32 %v4749_v61, %v11246_v22 }
 0x766   :  { %v5257_v32 = vmul.f32 %v7076_v53, %v10016_v50  ;;  %v12684_v50 = vld [vmem:[#allocation47_spill] sm:$0xff] }
 0x767   :  { %7077 = vtanh.f32 %v4750_v34  ;;  %v12688_v34 = vld [vmem:[#allocation55_spill] sm:$0xff] }
 0x768   :  { %v5533_v14 = vadd.f32 %v5532_v9, %v5257_v32  ;;  %v12686_v9 = vld [vmem:[#allocation58_spill] sm:$0xff] }
 0x769   :  { %v4477_v49 = vpop.f32.mrf.mxu0 }
 0x76a   :  { %v4478_v5 = vadd.f32 %v4477_v49, %v9722_v27  ;;  %v4586_v33 = vpop.f32.mrf.mxu1 }
 0x76b   :  { %v4682_v48 = vpop.f32.mrf.mxu2 }
 0x76c   :  { %v4587_v28 = vadd.f32 %v4586_v33, %v4478_v5  ;;  %v4751_v38 = vpop.f32.mrf.mxu3  ;;  %v11403_v46 = vadd.f32 %v4682_v48, %v11363_v63  ;;  %v12689_v48 = vld [vmem:[#allocation56_spill] sm:$0xff] }
 0x76d   :  { %v7078_v57 = vpop.eup %7077  ;;  %v4752_v4 = vadd.f32 %v4751_v38, %v11255_v54 }
 0x76e   :  { %v5261_v60 = vmul.f32 %v7078_v57, %v12553_v8 }
 0x76f   :  { %7079 = vtanh.f32 %v4752_v4  ;;  %v12690_v4 = vld [vmem:[#allocation10_spill] sm:$0xff] }
 0x770   :  { %v5534_v22 = vadd.f32 %v5533_v14, %v5261_v60  ;;  %4793 = vmatmul.bf16.gmra.mxu3 %v12684_v50 }
 0x773   :  { %v4685_v3 = vpop.f32.mrf.mxu2 }
 0x774   :  { %v4754_v43 = vpop.f32.mrf.mxu3  ;;  %v11409_v27 = vadd.f32 %v4685_v3, %v11372_v17  ;;  %v12691_v3 = vld [vmem:[#allocation83_spill] sm:$0xff] }
 0x775   :  { %v7080_v24 = vpop.eup %7079  ;;  %v4755_v59 = vadd.f32 %v4754_v43, %v11266_v10 }
 0x776   :  { %v5265_v55 = vmul.f32 %v7080_v24, %v12685_v0  ;;  %v12692_v0 = vld [vmem:[#allocation9_spill] sm:$0xff] }
 0x777   :  { %7081 = vtanh.f32 %v4755_v59 }
 0x778   :  { %v5535_v63 = vadd.f32 %v5534_v22, %v5265_v55 }
 0x77b   :  { %v4687_v2 = vpop.f32.mrf.mxu2 }
 0x77c   :  { %v4756_v54 = vpop.f32.mrf.mxu3  ;;  %v11413_v8 = vadd.f32 %v4687_v2, %v4579_v35  ;;  %v12693_v2 = vld [vmem:[#allocation79_spill] sm:$0xff] }
 0x77d   :  { %v7082_v31 = vpop.eup %7081  ;;  %v4757_v52 = vadd.f32 %v4756_v54, %v11275_v13 }
 0x77e   :  { %v5269_v20 = vmul.f32 %v7082_v31, %v12686_v9 }
 0x77f   :  { %7083 = vtanh.f32 %v4757_v52  ;;  %v12694_v52 = vld [vmem:[#allocation8_spill] sm:$0xff] }
 0x780   :  { %v5536_v41 = vadd.f32 %v5535_v63, %v5269_v20  ;;  %4798 = vmatmul.bf16.gmra.mxu3 %v12687_v23 }
 0x783   :  { %v4690_v17 = vpop.f32.mrf.mxu2 }
 0x784   :  { %v4759_v25 = vpop.f32.mrf.mxu3  ;;  %v11418_v61 = vadd.f32 %v4690_v17, %v4582_v62  ;;  %v12695_v17 = vld [vmem:[#allocation74_spill] sm:$0xff] }
 0x785   :  { %v7084_v10 = vpop.eup %7083  ;;  %v4760_v53 = vadd.f32 %v4759_v25, %v11286_v21 }
 0x786   :  { %v5273_v32 = vmul.f32 %v7084_v10, %v12688_v34  ;;  %v12696_v10 = vld [vmem:[#allocation15_spill] sm:$0xff] }
 0x787   :  { %7085 = vtanh.f32 %v4760_v53 }
 0x788   :  { %v5537_v35 = vadd.f32 %v5536_v41, %v5273_v32 }
 0x78b   :  { %v4692_v14 = vpop.f32.mrf.mxu2 }
 0x78c   :  { %v4761_v49 = vpop.f32.mrf.mxu3  ;;  %v11422_v5 = vadd.f32 %v4692_v14, %v4584_v6 }
 0x78d   :  { %v7086_v13 = vpop.eup %7085  ;;  %v4762_v33 = vadd.f32 %v4761_v49, %v11295_v39 }
 0x78e   :  { %v5277_v38 = vmul.f32 %v7086_v13, %v12689_v48  ;;  %v12698_v48 = vld [vmem:[#allocation18_spill] sm:$0xff] }
 0x78f   :  { %7087 = vtanh.f32 %v4762_v33 }
 0x790   :  { %v5538_v57 = vadd.f32 %v5537_v35, %v5277_v38  ;;  %4803 = vmatmul.bf16.gmra.mxu3 %v12690_v4  ;;  %v12697_v35 = vld [vmem:[#allocation75_spill] sm:$0xff] }
 0x793   :  { %v4695_v62 = vpop.f32.mrf.mxu2 }
 0x794   :  { %v4764_v60 = vpop.f32.mrf.mxu3  ;;  %v11427_v22 = vadd.f32 %v4695_v62, %v4587_v28 }
 0x795   :  { %v7088_v21 = vpop.eup %7087  ;;  %v4765_v50 = vadd.f32 %v4764_v60, %v11306_v11 }
 0x796   :  { %v5281_v43 = vmul.f32 %v7088_v21, %v12691_v3  ;;  %v12700_v21 = vld [vmem:[#allocation11_spill] sm:$0xff] }
 0x797   :  { %7089 = vtanh.f32 %v4765_v50 }
 0x798   :  { %v5539_v6 = vadd.f32 %v5538_v57, %v5281_v43  ;;  %v12699_v57 = vld [vmem:[#allocation67_spill] sm:$0xff] }
 0x79c   :  { %v4766_v24 = vpop.f32.mrf.mxu3 }
 0x79d   :  { %v7090_v59 = vpop.eup %7089  ;;  %v4767_v39 = vadd.f32 %v4766_v24, %v11315_v56  ;;  %v12701_v24 = vld [vmem:[#allocation25_spill] sm:$0xff] }
 0x79e   :  { %v5285_v55 = vmul.f32 %v7090_v59, %v12692_v0 }
 0x79f   :  { %7091 = vtanh.f32 %v4767_v39  ;;  %v12702_v39 = vld [vmem:[#allocation23_spill] sm:$0xff] }
 0x7a0   :  { %v5540_v63 = vadd.f32 %v5539_v6, %v5285_v55  ;;  %4808 = vmatmul.bf16.gmra.mxu3 %v12693_v2  ;;  %v12703_v2 = vld [vmem:[#allocation45_spill] sm:$0xff] }
 0x7a4   :  { %v4769_v54 = vpop.f32.mrf.mxu3 }
 0x7a5   :  { %v7092_v31 = vpop.eup %7091  ;;  %v4770_v28 = vadd.f32 %v4769_v54, %v11326_v37 }
 0x7a6   :  { %v5289_v11 = vmul.f32 %v7092_v31, %v12694_v52 }
 0x7a7   :  { %7093 = vtanh.f32 %v4770_v28 }
 0x7a8   :  { %v5541_v9 = vadd.f32 %v5540_v63, %v5289_v11 }
 0x7ac   :  { %v4771_v20 = vpop.f32.mrf.mxu3 }
 0x7ad   :  { %v7094_v41 = vpop.eup %7093  ;;  %v4772_v23 = vadd.f32 %v4771_v20, %v11335_v7 }
 0x7ae   :  { %v5293_v56 = vmul.f32 %v7094_v41, %v12695_v17 }
 0x7af   :  { %7095 = vtanh.f32 %v4772_v23 }
 0x7b0   :  { %v5542_v25 = vadd.f32 %v5541_v9, %v5293_v56  ;;  %4813 = vmatmul.bf16.gmra.mxu3 %v12696_v10  ;;  %v12704_v9 = vld [vmem:[#allocation68_spill] sm:$0xff] }
 0x7b4   :  { %v4774_v53 = vpop.f32.mrf.mxu3 }
 0x7b5   :  { %v7096_v34 = vpop.eup %7095  ;;  %v4775_v32 = vadd.f32 %v4774_v53, %v11345_v51 }
 0x7b6   :  { %v5297_v37 = vmul.f32 %v7096_v34, %v12697_v35 }
 0x7b7   :  { %7097 = vtanh.f32 %v4775_v32 }
 0x7b8   :  { %v5543_v14 = vadd.f32 %v5542_v25, %v5297_v37 }
 0x7bc   :  { %v4776_v49 = vpop.f32.mrf.mxu3 }
 0x7bd   :  { %v7098_v13 = vpop.eup %7097  ;;  %v4777_v33 = vadd.f32 %v4776_v49, %v11356_v58  ;;  %v4479_v49 = vpop.f32.mrf.mxu0 }
 0x7be   :  { %v5301_v7 = vmul.f32 %v7098_v13, %v12698_v48 }
 0x7bf   :  { %7099 = vtanh.f32 %v4777_v33  ;;  %v4697_v33 = vpop.f32.mrf.mxu2 }
 0x7c0   :  { %v5544_v38 = vadd.f32 %v5543_v14, %v5301_v7  ;;  %4818 = vmatmul.bf16.gmra.mxu3 %v12699_v57 }
 0x7c4   :  { %v4779_v4 = vpop.f32.mrf.mxu3 }
 0x7c5   :  { %v7100_v62 = vpop.eup %7099  ;;  %v4780_v60 = vadd.f32 %v4779_v4, %v11366_v1 }
 0x7c6   :  { %v5305_v51 = vmul.f32 %v7100_v62, %v12700_v21 }
 0x7c7   :  { %7101 = vtanh.f32 %v4780_v60  ;;  %v4700_v21 = vpop.f32.mrf.mxu2 }
 0x7c8   :  { %v5545_v50 = vadd.f32 %v5544_v38, %v5305_v51 }
 0x7cc   :  { %v4781_v3 = vpop.f32.mrf.mxu3 }
 0x7cd   :  { %v7102_v43 = vpop.eup %7101  ;;  %v4782_v6 = vadd.f32 %v4781_v3, %v11375_v40 }
 0x7ce   :  { %v5309_v58 = vmul.f32 %v7102_v43, %v12701_v24 }
 0x7cf   :  { %7103 = vtanh.f32 %v4782_v6 }
 0x7d0   :  { %v5546_v59 = vadd.f32 %v5545_v50, %v5309_v58  ;;  %4823 = vmatmul.bf16.gmra.mxu3 %v12702_v39 }
 0x7d4   :  { %v4784_v0 = vpop.f32.mrf.mxu3 }
 0x7d5   :  { %v7104_v55 = vpop.eup %7103  ;;  %v4785_v63 = vadd.f32 %v4784_v0, %v11383_v16 }
 0x7d6   :  { %v5313_v1 = vmul.f32 %v7104_v55, %v12703_v2 }
 0x7d7   :  { %7105 = vtanh.f32 %v4785_v63 }
 0x7d8   :  { %v5547_v54 = vadd.f32 %v5546_v59, %v5313_v1  ;;  %v4702_v59 = vpop.f32.mrf.mxu2 }
 0x7dc   :  { %v4786_v31 = vpop.f32.mrf.mxu3 }
 0x7dd   :  { %v7106_v28 = vpop.eup %7105  ;;  %v4787_v52 = vadd.f32 %v4786_v31, %v11389_v47 }
 0x7de   :  { %v5317_v40 = vmul.f32 %v7106_v28, %v12609_v44 }
 0x7df   :  { %7107 = vtanh.f32 %v4787_v52 }
 0x7e0   :  { %v5548_v11 = vadd.f32 %v5547_v54, %v5317_v40  ;;  %4828 = vmatmul.bf16.gmra.mxu3 %v12704_v9  ;;  %v4705_v31 = vpop.f32.mrf.mxu2 }
 0x7e4   :  { %v4789_v20 = vpop.f32.mrf.mxu3 }
 0x7e5   :  { %v7108_v41 = vpop.eup %7107  ;;  %v4790_v23 = vadd.f32 %v4789_v20, %v11397_v29 }
 0x7e6   :  { %v5321_v16 = vmul.f32 %v7108_v41, %v12474_v42 }
 0x7e7   :  { %7109 = vtanh.f32 %v4790_v23 }
 0x7e8   :  { %v5549_v17 = vadd.f32 %v5548_v11, %v5321_v16  ;;  %v4707_v11 = vpop.f32.mrf.mxu2 }
 0x7ec   :  { %v4791_v56 = vpop.f32.mrf.mxu3 }
 0x7ed   :  { %v7110_v25 = vpop.eup %7109  ;;  %v4792_v10 = vadd.f32 %v4791_v56, %v11403_v46 }
 0x7ee   :  { %v5325_v47 = vmul.f32 %v7110_v25, %v12478_v26  ;;  %v4588_v26 = vpop.f32.mrf.mxu1 }
 0x7ef   :  { %7111 = vtanh.f32 %v4792_v10 }
 0x7f0   :  { %v5550_v44 = vadd.f32 %v5549_v17, %v5325_v47  ;;  %v4710_v23 = vpop.f32.mrf.mxu2 }
 0x7f4   :  { %v4794_v53 = vpop.f32.mrf.mxu3 }
 0x7f5   :  { %v7112_v34 = vpop.eup %7111  ;;  %v4795_v32 = vadd.f32 %v4794_v53, %v11409_v27 }
 0x7f6   :  { %v5329_v35 = vmul.f32 %v7112_v34, %v12481_v19  ;;  %v4482_v19 = vpop.f32.mrf.mxu0  ;;  %v4591_v4 = vpop.f32.mrf.mxu1  ;;  %v12708_v34 = vld [vmem:[#allocation158_spill] sm:$0xff] }
 0x7f7   :  { %7113 = vtanh.f32 %v4795_v32  ;;  %v4480_v32 = vadd.f32 %v4479_v49, %v12708_v34 }
 0x7f8   :  { %v5551_v29 = vadd.f32 %v5550_v44, %v5329_v35  ;;  %v4712_v25 = vpop.f32.mrf.mxu2 }
 0x7fc   :  { %v4796_v37 = vpop.f32.mrf.mxu3 }
 0x7fd   :  { %v7114_v42 = vpop.eup %7113  ;;  %v4797_v14 = vadd.f32 %v4796_v37, %v11413_v8 }
 0x7fe   :  { %v5333_v13 = vmul.f32 %v7114_v42, %v12619_v15  ;;  %v12705_v15 = vld [vmem:[#allocation169_spill] sm:$0xff]  ;;  %v4484_v3 = vpop.f32.mrf.mxu0  ;;  %v4593_v24 = vpop.f32.mrf.mxu1 }
 0x7ff   :  { %7115 = vtanh.f32 %v4797_v14  ;;  %v4589_v14 = vadd.f32 %v4588_v26, %v4480_v32  ;;  %v12714_v26 = vld [vmem:[#allocation173_spill] sm:$0xff] }
 0x800   :  { %v5552_v46 = vadd.f32 %v5551_v29, %v5333_v13  ;;  %v4715_v53 = vpop.f32.mrf.mxu2  ;;  %v12709_v29 = vld [vmem:[#allocation162_spill] sm:$0xff]  ;;  %v12710_v13 = vld [vmem:[#allocation165_spill] sm:$0xff] }
 0x801   :  { %v4483_v37 = vadd.f32 %v4482_v19, %v12709_v29 }
 0x804   :  { %v4799_v48 = vpop.f32.mrf.mxu3 }
 0x805   :  { %v7116_v7 = vpop.eup %7115  ;;  %v4800_v38 = vadd.f32 %v4799_v48, %v11418_v61  ;;  %v4592_v48 = vadd.f32 %v4591_v4, %v4483_v37 }
 0x806   :  { %v5337_v27 = vmul.f32 %v7116_v7, %v12623_v36  ;;  %v12706_v36 = vld [vmem:[#allocation40_spill] sm:$0xff]  ;;  %v4487_v0 = vpop.f32.mrf.mxu0  ;;  %v4596_v1 = vpop.f32.mrf.mxu1 }
 0x807   :  { %7117 = vtanh.f32 %v4800_v38  ;;  %v12711_v7 = vld [vmem:[#allocation164_spill] sm:$0xff] }
 0x808   :  { %v5553_v57 = vadd.f32 %v5552_v46, %v5337_v27  ;;  %v4485_v46 = vadd.f32 %v4484_v3, %v12710_v13  ;;  %v4488_v38 = vadd.f32 %v4487_v0, %v12711_v7  ;;  %v4698_v27 = vadd.f32 %v4697_v33, %v4589_v14  ;;  %v12715_v33 = vld [vmem:[#allocation46_spill] sm:$0xff]  ;;  %v12719_v13 = vld [vmem:[#allocation7_spill] sm:$0xff] }
 0x80a   :  { %v4597_v49 = vadd.f32 %v4596_v1, %v4488_v38  ;;  %v12720_v38 = vld [vmem:[#allocation168_spill] sm:$0xff] }
 0x80c   :  { %v4801_v62 = vpop.f32.mrf.mxu3  ;;  %v4706_v4 = vadd.f32 %v4705_v31, %v4597_v49  ;;  %v12717_v31 = vld [vmem:[#allocation51_spill] sm:$0xff] }
 0x80d   :  { %v7118_v60 = vpop.eup %7117  ;;  %v4802_v8 = vadd.f32 %v4801_v62, %v11422_v5  ;;  %v12707_v5 = vld [vmem:[#allocation176_spill] sm:$0xff]  ;;  %v4594_v62 = vadd.f32 %v4593_v24, %v4485_v46 }
 0x80e   :  { %v5341_v51 = vmul.f32 %v7118_v60, %v12705_v15  ;;  %v4489_v52 = vpop.f32.mrf.mxu0  ;;  %v4598_v40 = vpop.f32.mrf.mxu1  ;;  %v12712_v60 = vld [vmem:[#allocation172_spill] sm:$0xff]  ;;  %v4701_v15 = vadd.f32 %v4700_v21, %v4592_v48 }
 0x80f   :  { %7119 = vtanh.f32 %v4802_v8  ;;  %v4490_v8 = vadd.f32 %v4489_v52, %v12712_v60  ;;  %v4703_v19 = vadd.f32 %v4702_v59, %v4594_v62 }
 0x810   :  { %v5554_v50 = vadd.f32 %v5553_v57, %v5341_v51 }
 0x811   :  { %v4599_v3 = vadd.f32 %v4598_v40, %v4490_v8 }
 0x814   :  { %v4804_v43 = vpop.f32.mrf.mxu3 }
 0x815   :  { %v7120_v6 = vpop.eup %7119  ;;  %v4805_v61 = vadd.f32 %v4804_v43, %v11427_v22 }
 0x816   :  { %v5345_v58 = vmul.f32 %v7120_v6, %v12706_v36  ;;  %v4492_v9 = vpop.f32.mrf.mxu0  ;;  %v4601_v20 = vpop.f32.mrf.mxu1  ;;  %v12713_v6 = vld [vmem:[#allocation35_spill] sm:$0xff] }
 0x817   :  { %7121 = vtanh.f32 %v4805_v61  ;;  %v4493_v61 = vadd.f32 %v4492_v9, %v12713_v6 }
 0x818   :  { %v5555_v39 = vadd.f32 %v5554_v50, %v5345_v58  ;;  %v4717_v50 = vpop.f32.mrf.mxu2 }
 0x81c   :  { %v4806_v55 = vpop.f32.mrf.mxu3 }
 0x81d   :  { %v7122_v63 = vpop.eup %7121  ;;  %v4807_v51 = vadd.f32 %v4806_v55, %v4698_v27 }
 0x81e   :  { %v5349_v2 = vmul.f32 %v7122_v63, %v12707_v5  ;;  %v4494_v16 = vpop.f32.mrf.mxu0  ;;  %v4603_v56 = vpop.f32.mrf.mxu1  ;;  %v4602_v63 = vadd.f32 %v4601_v20, %v4493_v61  ;;  %v4708_v5 = vadd.f32 %v4707_v11, %v4599_v3  ;;  %v12723_v61 = vld [vmem:[#allocation161_spill] sm:$0xff] }
 0x81f   :  { %v4495_v58 = vadd.f32 %v4494_v16, %v12714_v26  ;;  %7123 = vtanh.f32 %v4807_v51  ;;  %v12722_v51 = vld [vmem:[#allocation6_spill] sm:$0xff] }
 0x820   :  { %v11469_v54 = vadd.f32 %v5555_v39, %v5349_v2  ;;  %v12716_v2 = vld [vmem:[#allocation175_spill] sm:$0xff]  ;;  %v4711_v52 = vadd.f32 %v4710_v23, %v4602_v63  ;;  %v4720_v32 = vpop.f32.mrf.mxu2 }
 0x821   :  { %v4604_v55 = vadd.f32 %v4603_v56, %v4495_v58  ;;  %v12718_v56 = vld [vmem:[#allocation178_spill] sm:$0xff]  ;;  %v12724_v58 = vld [vmem:[#allocation17_spill] sm:$0xff] }
 0x824   :  { %v4809_v28 = vpop.f32.mrf.mxu3 }
 0x825   :  { %v4810_v36 = vadd.f32 %v4809_v28, %v4701_v15  ;;  %v7124_v40 = vpop.eup %7123 }
 0x826   :  { %v4497_v10 = vpop.f32.mrf.mxu0  ;;  %v4606_v44 = vpop.f32.mrf.mxu1  ;;  %v5353_v37 = vmul.f32 %v7124_v40, %v12718_v56 }
 0x827   :  { %v4498_v0 = vadd.f32 %v4497_v10, %v12715_v33  ;;  %7125 = vtanh.f32 %v4810_v36  ;;  %v5523_v33 = vrot.slane %v11349_v45, 4 }
 0x828   :  { %v5557_v7 = vadd.f32 %v11469_v54, %v5353_v37  ;;  %v4722_v49 = vpop.f32.mrf.mxu2 }
 0x829   :  { %v4607_v28 = vadd.f32 %v4606_v44, %v4498_v0 }
 0x82b   :  { %v4716_v29 = vadd.f32 %v4715_v53, %v4607_v28  ;;  %v5524_v28 = vadd.f32 %v5523_v33, %v11349_v45 }
 0x82c   :  { %v4811_v22 = vpop.f32.mrf.mxu3 }
 0x82d   :  { %v4812_v39 = vadd.f32 %v4811_v22, %v4703_v19  ;;  %v4713_v22 = vadd.f32 %v4712_v25, %v4604_v55  ;;  %v7126_v20 = vpop.eup %7125 }
 0x82e   :  { %v4499_v42 = vpop.f32.mrf.mxu0  ;;  %v4608_v57 = vpop.f32.mrf.mxu1  ;;  %v5357_v46 = vmul.f32 %v7126_v20, %v12719_v13  ;;  %v5599_v13 = vlaneseq }
 0x82f   :  { %v4500_v1 = vadd.f32 %v4499_v42, %v12716_v2  ;;  %7127 = vtanh.f32 %v4812_v39 }
 0x830   :  { %v5558_v15 = vadd.f32 %v5557_v7, %v5357_v46  ;;  %vm5601_vm4 = vcmp.lt.s32.totalorder %v5599_v13, 512 }
 0x831   :  { %v4609_v11 = vadd.f32 %v4608_v57, %v4500_v1  ;;  %v12721_v57 = vld [vmem:[#allocation12_spill] sm:$0xff] }
 0x832   :  { %v12726_v1 = vld [vmem:[#allocation16_spill] sm:$0xff] }
 0x834   :  { %v4814_v41 = vpop.f32.mrf.mxu3 }
 0x835   :  { %v4815_v21 = vadd.f32 %v4814_v41, %v4706_v4  ;;  %v7128_v23 = vpop.eup %7127 }
 0x836   :  { %v4502_v24 = vpop.f32.mrf.mxu0  ;;  %v4611_v9 = vpop.f32.mrf.mxu1  ;;  %v5361_v53 = vmul.f32 %v7128_v23, %v12720_v38 }
 0x837   :  { %v4503_v34 = vadd.f32 %v4502_v24, %v12717_v31  ;;  %7129 = vtanh.f32 %v4815_v21  ;;  %v12725_v24 = vld [vmem:[#allocation154_spill] sm:$0xff] }
 0x838   :  { %v5559_v6 = vadd.f32 %v5558_v15, %v5361_v53 }
 0x839   :  { %v4612_v42 = vadd.f32 %v4611_v9, %v4503_v34  ;;  %v5525_v34 = vrot.slane %v5524_v28, 2 }
 0x83b   :  { %v4721_v25 = vadd.f32 %v4720_v32, %v4612_v42 }
 0x83c   :  { %v4816_v17 = vpop.f32.mrf.mxu3 }
 0x83d   :  { %v4817_v59 = vadd.f32 %v4816_v17, %v4708_v5  ;;  %v4718_v17 = vadd.f32 %v4717_v50, %v4609_v11  ;;  %v7130_v48 = vpop.eup %7129  ;;  %v5526_v11 = vadd.f32 %v5525_v34, %v5524_v28 }
 0x83e   :  { %v4504_v14 = vpop.f32.mrf.mxu0  ;;  %v4613_v8 = vpop.f32.mrf.mxu1  ;;  %v5365_v50 = vmul.f32 %v7130_v48, %v12722_v51 }
 0x83f   :  { %7131 = vtanh.f32 %v4817_v59  ;;  %v4505_v62 = vadd.f32 %v4504_v14, %v12721_v57  ;;  %v5527_v37 = vrot.slane %v5526_v11, 1 }
 0x840   :  { %v5560_v26 = vadd.f32 %v5559_v6, %v5365_v50 }
 0x841   :  { %v4614_v54 = vadd.f32 %v4613_v8, %v4505_v62  ;;  %v5528_v45 = vadd.f32 %v5527_v37, %v5526_v11 }
 0x843   :  { %v4723_v39 = vadd.f32 %v4722_v49, %v4614_v54 }
 0x844   :  { %v4819_v47 = vpop.f32.mrf.mxu3 }
 0x845   :  { %v4820_v10 = vadd.f32 %v4819_v47, %v4711_v52 }
 0x847   :  { %7133 = vtanh.f32 %v4820_v10 }
 0x84c   :  { %v4821_v35 = vpop.f32.mrf.mxu3 }
 0x84d   :  { %v4822_v41 = vadd.f32 %v4821_v35, %v4713_v22  ;;  %v7132_v35 = vpop.eup %7131 }
 0x84e   :  { %v5369_v19 = vmul.f32 %v7132_v35, %v12723_v61 }
 0x84f   :  { %7135 = vtanh.f32 %v4822_v41 }
 0x850   :  { %v5561_v0 = vadd.f32 %v5560_v26, %v5369_v19 }
 0x854   :  { %v4824_v43 = vpop.f32.mrf.mxu3 }
 0x855   :  { %v4825_v44 = vadd.f32 %v4824_v43, %v4716_v29  ;;  %v7134_v43 = vpop.eup %7133 }
 0x856   :  { %v7136_v36 = vpop.eup %7135  ;;  %v5373_v3 = vmul.f32 %v7134_v43, %v12724_v58 }
 0x857   :  { %7137 = vtanh.f32 %v4825_v44  ;;  %v5377_v63 = vmul.f32 %v7136_v36, %v12725_v24 }
 0x858   :  { %v5562_v2 = vadd.f32 %v5561_v0, %v5373_v3 }
 0x85a   :  { %v5563_v9 = vadd.f32 %v5562_v2, %v5377_v63 }
 0x85c   :  { %v4826_v16 = vpop.f32.mrf.mxu3 }
 0x85d   :  { %v4827_v47 = vadd.f32 %v4826_v16, %v4718_v17  ;;  %v7138_v4 = vpop.eup %7137 }
 0x85e   :  { %v5381_v52 = vmul.f32 %v7138_v4, %v12726_v1 }
 0x85f   :  { %7139 = vtanh.f32 %v4827_v47 }
 0x860   :  { %v5564_v40 = vadd.f32 %v5563_v9, %v5381_v52 }
 0x864   :  { %v4829_v27 = vpop.f32.mrf.mxu3 }
 0x865   :  { %v4830_v60 = vadd.f32 %v4829_v27, %v4721_v25  ;;  %v7140_v21 = vpop.eup %7139  ;;  %v12728_v25 = vld [vmem:[#allocation19_spill] sm:$0xff] }
 0x866   :  { %v5385_v16 = vmul.f32 %v7140_v21, %v12671_v18  ;;  %v12727_v18 = vld [vmem:[#allocation136_spill] sm:$0xff] }
 0x867   :  { %7141 = vtanh.f32 %v4830_v60  ;;  %v5583_v14 = vadd.f32 %v12727_v18, %v5528_v45 }
 0x868   :  { %v5565_v22 = vadd.f32 %v5564_v40, %v5385_v16 }
 0x86c   :  { %v4831_v5 = vpop.f32.mrf.mxu3 }
 0x86d   :  { %v4832_v55 = vadd.f32 %v4831_v5, %v4723_v39  ;;  %v7142_v59 = vpop.eup %7141 }
 0x86e   :  { %v5389_v31 = vmul.f32 %v7142_v59, %v12675_v30 }
 0x86f   :  { %7143 = vtanh.f32 %v4832_v55 }
 0x870   :  { %v5566_v32 = vadd.f32 %v5565_v22, %v5389_v31 }
 0x875   :  { %v7144_v10 = vpop.eup %7143 }
 0x876   :  { %v5393_v20 = vmul.f32 %v7144_v10, %v12538_v12  ;;  %v5590_v12 = vrot.slane %v5583_v14, 6 }
 0x878   :  { %v5567_v29 = vadd.f32 %v5566_v32, %v5393_v20 }
 0x87a   :  { %v5568_v41 = vrot.slane %v5567_v29, 4 }
 0x87c   :  { %v5569_v56 = vadd.f32 %v5568_v41, %v5567_v29 }
 0x87e   :  { %v5570_v23 = vrot.slane %v5569_v56, 2 }
 0x880   :  { %v5571_v42 = vadd.f32 %v5570_v23, %v5569_v56 }
 0x882   :  { %v5572_v17 = vrot.slane %v5571_v42, 1 }
 0x884   :  { %v5573_v44 = vadd.f32 %v5572_v17, %v5571_v42 }
 0x886   :  { %v5584_v30 = vadd.f32 %v12727_v18, %v5573_v44 }
 0x888   :  { %v5591_v46 = vrot.slane %v5584_v30, 5 }
 0x88a   :  { %v5595_v48 = vsel %vm5594_vm2, %v5590_v12, %v5591_v46 }
 0x88b   :  { %v5597_v47 = vsel %vm5596_vm3, %v12728_v25, %v5595_v48 }
 0x88c   :  { %5603 = vst.msk [vmem:[#allocation3] sm:$0xf] %vm5601_vm4, %v5597_v47 }
 0x88d   :  { %5614 = dma.vmem_to_hbm [thread:$0]  %s5610_s25, 64, %s5612_s28, [#allocation4]  }
 0x88e   :  { %7169 = dma.done.wait [#allocation4], 64  }
 0x88f   :  { %7170 = vsyncadd [#allocation4], 4294967232 }
 0x890   :  { %5619 = vsyncpa [#allocation4], 1 }

</bundles_post_ra>
